<compile_context>
chip_gen: v7x
topology: tpu7x:2x2x1
jax: 0.10.0
libtpu: 0.0.40
codegen_flags: <defaults>
</compile_context>

<pallas_src>
import jax
import jax.numpy as jnp
from jax import lax
from jax.experimental import pallas as pl
from jax.experimental.pallas import tpu as pltpu

HIDDEN = 128        # nn.LSTM hidden_size
NUM_CLASSES = 48    # fc out_features
CONV_OUT_C = 64     # conv1 out_channels (becomes the LSTM sequence length T)
LSTM_IN = 672       # hard-coded input_size in the PyTorch module


# ---------------------------------------------------------------------------
# conv1 as im2col + ONE lane-dense Pallas matmul (bf16 MXU operands, f32 accum)
# ---------------------------------------------------------------------------
def _conv_mm_kernel(w_ref, x_ref, b_ref, o_ref):
    """(O,K)@(K,N) + b(O,1) -> (O,N); N = B*H*W is lane-dense (multiple of 128)."""
    o_ref[...] = (jnp.dot(w_ref[...], x_ref[...],
                          preferred_element_type=jnp.float32)
                  + b_ref[...]).astype(o_ref.dtype)


def conv_matmul(w2, cols, bias):
    O, K = w2.shape
    K2, N = cols.shape
    assert K == K2
    return pl.pallas_call(
        _conv_mm_kernel,
        out_shape=jax.ShapeDtypeStruct((O, N), jnp.bfloat16),
        grid=(1,),
        in_specs=[pl.BlockSpec((O, K), lambda i: (0, 0)),
                  pl.BlockSpec((K, N), lambda i: (0, 0)),
                  pl.BlockSpec((O, 1), lambda i: (0, 0))],
        out_specs=pl.BlockSpec((O, N), lambda i: (0, 0)),
        compiler_params=pltpu.CompilerParams(
            dimension_semantics=("arbitrary",)),
    )(w2, cols, bias.astype(jnp.float32).reshape(O, 1))


def conv2d_3x1_pad1_seq(x, weight, bias):
    """PyTorch nn.Conv2d(C, O, (3,1), stride=1, padding=1) + the module's reshape,
    emitted directly as the flattened time-major LSTM input (T*B, H*(W+2)) bf16."""
    B, C, H, W = x.shape
    O, Cw, KH, KW = weight.shape
    # edge-column == bias trick is only valid for kernel width 1 with padding=1
    assert (KH, KW) == (3, 1) and Cw == C
    xb = x.astype(jnp.bfloat16)
    x_pad = jnp.pad(xb, ((0, 0), (0, 0), (1, 1), (0, 0)))                      # pad H
    cols = jnp.stack([x_pad[:, :, kh:kh + H, :] for kh in range(3)], axis=2)   # (B,C,3,H,W)
    cols = cols.transpose(1, 2, 0, 3, 4).reshape(C * 3, B * H * W)             # (K, B*H*W)
    w2 = weight.reshape(O, C * 3).astype(jnp.bfloat16)
    inner = conv_matmul(w2, cols, bias)                                        # (O, B*H*W) bf16
    inner = inner.reshape(O, B, H, W)
    # width padding: edge output columns only see zero-padded input -> bias only
    edge = jnp.broadcast_to(bias.astype(jnp.bfloat16).reshape(O, 1, 1, 1),
                            (O, B, H, 1))
    full = jnp.concatenate([edge, inner, edge], axis=3)                        # (O,B,H,W+2)
    return full.reshape(O * B, H * (W + 2))                                    # (T*B, D)


# ---------------------------------------------------------------------------
# Fused 2-layer BiLSTM + fc kernel (single pallas_call, fully VMEM-resident)
# ---------------------------------------------------------------------------
def _sigmoid(x):
    # exact: sigmoid(x) = 0.5 * (1 + tanh(x/2)); one EUP op instead of exp+recip
    return 0.5 * jnp.tanh(0.5 * x) + 0.5


def _bidir_lstm_recurrence(xp_ref, whh_ref, hout_ref, *, T, B, H):
    """Forward + reverse LSTM chains of one bidirectional layer.

    xp_ref  : (T*B, 8H) f32  gate pre-activations x@W_ih^T + b, rows time-major
              (row t*B + b); lanes [:4H] = forward dir, lanes [4H:] = reverse.
    whh_ref : (2H, 4H) bf16  rows [:H] = W_hh_fwd^T, rows [H:] = W_hh_rev^T.
    hout_ref: (T*B, 2H) f32  lanes [:H] = fwd hidden, lanes [H:] = rev hidden,
              rows indexed by ORIGINAL time position.

    Per timestep both directions share ONE MXU matmul (block LHS
    [[h_f, 0], [0, h_r]]) and ONE stacked gate update.  The time loop is
    manually unrolled so every xp read / h write is an aligned unmasked slice.
    """
    if B % 8 == 0:
        G = 1                               # timesteps per aligned chunk
    else:
        assert 8 % B == 0, "batch must divide 8 (or be a multiple of 8)"
        G = 8 // B
    assert T % G == 0
    CB = G * B                              # chunk rows (multiple of 8)
    n_groups = T // G
    H4 = 4 * H

    row_ids = lax.broadcasted_iota(jnp.int32, (2 * B, H), 0)
    is_fwd_row = row_ids < B                # rows [:B] carry the forward direction

    def group_body(g, carry):
        h_st, c_st = carry                                     # (2B, H) f32 each
        f_base = pl.multiple_of(g * CB, CB)                    # fwd rows of chunk
        r_base = pl.multiple_of((n_groups - 1 - g) * CB, CB)   # rev rows of chunk
        chunk_f = xp_ref[pl.ds(f_base, CB), pl.ds(0, H4)]      # (CB, 4H)
        chunk_r = xp_ref[pl.ds(r_base, CB), pl.ds(H4, H4)]     # (CB, 4H)

        hf_parts = []
        hr_parts = []
        for k in range(G):                                     # manual unroll
            xp_f = chunk_f[k * B:(k + 1) * B, :]               # fwd time t = g*G + k
            xp_r = chunk_r[(G - 1 - k) * B:(G - k) * B, :]     # rev time T-1-t
            xp_st = jnp.concatenate([xp_f, xp_r], axis=0)      # (2B, 4H)

            # block LHS [[h_f, 0], [0, h_r]] -> one MXU call for both directions
            lhs_f = jnp.where(is_fwd_row, h_st, 0.0)
            lhs_r = h_st - lhs_f
            lhs = jnp.concatenate([lhs_f, lhs_r], axis=1).astype(jnp.bfloat16)
            gates = xp_st + jnp.dot(lhs, whh_ref[...],
                                    preferred_element_type=jnp.float32)  # (2B,4H)

            i_g = _sigmoid(gates[:, 0 * H:1 * H])
            f_g = _sigmoid(gates[:, 1 * H:2 * H])
            g_g = jnp.tanh(gates[:, 2 * H:3 * H])
            o_g = _sigmoid(gates[:, 3 * H:4 * H])
            c_st = f_g * c_st + i_g * g_g
            h_st = o_g * jnp.tanh(c_st)

            hf_parts.append(h_st[:B, :])
            hr_parts.append(h_st[B:, :])

        # one aligned, unmasked (CB, H) store per direction per chunk
        hout_ref[pl.ds(f_base, CB), pl.ds(0, H)] = jnp.concatenate(hf_parts, axis=0)
        hout_ref[pl.ds(r_base, CB), pl.ds(H, H)] = jnp.concatenate(hr_parts[::-1], axis=0)
        return h_st, c_st

    zeros = jnp.zeros((2 * B, H), jnp.float32)                 # h0 = c0 = 0
    lax.fori_loop(0, n_groups, group_body, (zeros, zeros))


def _cnn_bilstm_core_kernel(seq_ref, wih0_ref, b0_ref, whh0_ref,
                            wih1_ref, b1_ref, whh1_ref,
                            fcw_ref, fcb_ref, out_ref,
                            xp0_ref, xp1_ref, h0_ref, h1_ref):
    """Both BiLSTM layers + fc head, fully VMEM-resident."""
    TB = seq_ref.shape[0]
    B = out_ref.shape[0]
    T = TB // B
    H = whh0_ref.shape[0] // 2

    # layer-0 input projection: all T timesteps x both directions in one matmul
    xp0_ref[...] = (jnp.dot(seq_ref[...], wih0_ref[...],
                            preferred_element_type=jnp.float32) + b0_ref[...])
    _bidir_lstm_recurrence(xp0_ref, whh0_ref, h0_ref, T=T, B=B, H=H)

    # layer-1 input projection straight from the layer-0 hidden VMEM scratch
    xp1_ref[...] = (jnp.dot(h0_ref[...].astype(jnp.bfloat16), wih1_ref[...],
                            preferred_element_type=jnp.float32) + b1_ref[...])
    _bidir_lstm_recurrence(xp1_ref, whh1_ref, h1_ref, T=T, B=B, H=H)

    # fc on out[:, -1, :] == [h_fwd(T-1) | h_rev(T-1)] of layer 1
    base = ((TB - B) // 8) * 8
    tail = h1_ref[base:TB, :]                    # aligned static ref slice
    last = tail[(TB - B) - base:, :]             # (B, 2H)
    out_ref[...] = (jnp.dot(last, fcw_ref[...],
                            preferred_element_type=jnp.float32)
                    + fcb_ref[...]).astype(out_ref.dtype)


# ---------------------------------------------------------------------------
# Forward pass (glue in plain JAX, hot paths in Pallas)
# ---------------------------------------------------------------------------
def cnn_bilstm_forward(x, params):
    B = x.shape[0]
    seq = conv2d_3x1_pad1_seq(x, params["conv1_w"], params["conv1_b"])  # (T*B, D) bf16
    TB, D = seq.shape
    assert D == LSTM_IN, "in_h * (in_w + 2) must equal 672 (hard-coded input_size)"
    H = HIDDEN
    l0, l1 = params["lstm"]

    return pl.pallas_call(
        _cnn_bilstm_core_kernel,
        out_shape=jax.ShapeDtypeStruct((B, NUM_CLASSES), jnp.float32),
        grid=(1,),
        in_specs=[
            pl.BlockSpec((TB, D), lambda i: (0, 0)),                # conv output (bf16)
            pl.BlockSpec((D, 8 * H), lambda i: (0, 0)),             # W_ih layer 0 (bf16)
            pl.BlockSpec((1, 8 * H), lambda i: (0, 0)),             # fused bias layer 0
            pl.BlockSpec((2 * H, 4 * H), lambda i: (0, 0)),         # W_hh layer 0 (bf16)
            pl.BlockSpec((2 * H, 8 * H), lambda i: (0, 0)),         # W_ih layer 1 (bf16)
            pl.BlockSpec((1, 8 * H), lambda i: (0, 0)),             # fused bias layer 1
            pl.BlockSpec((2 * H, 4 * H), lambda i: (0, 0)),         # W_hh layer 1 (bf16)
            pl.BlockSpec((2 * H, NUM_CLASSES), lambda i: (0, 0)),   # fc weight (f32)
            pl.BlockSpec((1, NUM_CLASSES), lambda i: (0, 0)),       # fc bias (f32)
        ],
        out_specs=pl.BlockSpec((B, NUM_CLASSES), lambda i: (0, 0)),
        scratch_shapes=[
            pltpu.VMEM((TB, 8 * H), jnp.float32),   # xp layer 0 (gate pre-activations)
            pltpu.VMEM((TB, 8 * H), jnp.float32),   # xp layer 1
            pltpu.VMEM((TB, 2 * H), jnp.float32),   # layer-0 hidden sequence
            pltpu.VMEM((TB, 2 * H), jnp.float32),   # layer-1 hidden sequence
        ],
        compiler_params=pltpu.CompilerParams(
            dimension_semantics=("arbitrary",)),
    )(seq, l0["wih"], l0["bias"], l0["whh"],
      l1["wih"], l1["bias"], l1["whh"],
      params["fc_w_t"], params["fc_b"])


# ---------------------------------------------------------------------------
# Deterministic parameter construction (synthetic, PyTorch-shaped, then
# pre-concatenated / pre-cast ONCE for the kernel - perf feedback)
# ---------------------------------------------------------------------------
def make_params(key, in_c):
    def uni(k, shape, scale):
        return jax.random.uniform(k, shape, jnp.float32, -scale, scale)

    keys = iter(jax.random.split(key, 64))
    params = {}
    s_conv = 1.0 / (in_c * 3) ** 0.5
    params["conv1_w"] = uni(next(keys), (CONV_OUT_C, in_c, 3, 1), s_conv)
    params["conv1_b"] = uni(next(keys), (CONV_OUT_C,), s_conv)

    lstm = []
    s = 1.0 / HIDDEN ** 0.5
    for layer, in_sz in ((0, LSTM_IN), (1, 2 * HIDDEN)):
        dirs = {}
        for direction in ("fwd", "rev"):
            dirs[direction] = {                      # PyTorch layout, gate order i,f,g,o
                "w_ih": uni(next(keys), (4 * HIDDEN, in_sz), s),
                "w_hh": uni(next(keys), (4 * HIDDEN, HIDDEN), s),
                "b_ih": uni(next(keys), (4 * HIDDEN,), s),
                "b_hh": uni(next(keys), (4 * HIDDEN,), s),
            }
        wih = jnp.concatenate([dirs["fwd"]["w_ih"].T,
                               dirs["rev"]["w_ih"].T], axis=1)        # (in, 8H)
        whh = jnp.concatenate([dirs["fwd"]["w_hh"].T,
                               dirs["rev"]["w_hh"].T], axis=0)        # (2H, 4H)
        bias = jnp.concatenate([dirs["fwd"]["b_ih"] + dirs["fwd"]["b_hh"],
                                dirs["rev"]["b_ih"] + dirs["rev"]["b_hh"]])  # (8H,)
        lstm.append({"wih": wih.astype(jnp.bfloat16),
                     "whh": whh.astype(jnp.bfloat16),
                     "bias": bias.reshape(1, 8 * HIDDEN)})
    params["lstm"] = lstm

    s_fc = 1.0 / (2 * HIDDEN) ** 0.5
    params["fc_w_t"] = uni(next(keys), (2 * HIDDEN, NUM_CLASSES), s_fc)
    params["fc_b"] = uni(next(keys), (1, NUM_CLASSES), s_fc)
    return params


# TODO(synk): .cuda() calls (and the unused self.conv2) in the PyTorch module are
# device placement / dead code; they have no Pallas equivalent and are no-ops here.

if __name__ == "__main__":
    # input_size=672 is hard-coded in the module, so in_h * (in_w + 2) must be 672.
    B, C, Hin, Win = 2, 4, 16, 40      # 16 * (40 + 2) = 672
    key = jax.random.PRNGKey(0)
    k_x, k_p = jax.random.split(key)
    x = jax.random.normal(k_x, (B, C, Hin, Win), jnp.float32)
    params = make_params(k_p, C)

    out = jax.jit(cnn_bilstm_forward)(x, params)
    out = jax.block_until_ready(out)
    assert out.shape == (B, NUM_CLASSES) and out.dtype == jnp.float32
    assert bool(jnp.all(jnp.isfinite(out)))
    print("KERNEL_OK")
</pallas_src>

<mosaic_0001>
module attributes {stable_mosaic.version = 11 : i64} {
  func.func @_conv_mm_kernel(%arg0: i32, %arg1: memref<64x12xbf16, #tpu.memory_space<vmem>>, %arg2: memref<12x1280xbf16, #tpu.memory_space<vmem>>, %arg3: memref<64x1xf32, #tpu.memory_space<vmem>>, %arg4: memref<64x1280xbf16, #tpu.memory_space<vmem>>) attributes {dimension_semantics = [#tpu.dimension_semantics<arbitrary>], iteration_bounds = array<i64: 1>, scalar_prefetch = 0 : i64, scratch_operands = 0 : i64, tpu.core_type = #tpu.core_type<tc>, window_params = [{pipeline_mode = #tpu.pipeline_mode<synchronous>, transform_indices = @transform_0, window_bounds = array<i64: 64, 12>}, {pipeline_mode = #tpu.pipeline_mode<synchronous>, transform_indices = @transform_1, window_bounds = array<i64: 12, 1280>}, {pipeline_mode = #tpu.pipeline_mode<synchronous>, transform_indices = @transform_2, window_bounds = array<i64: 64, 1>}, {pipeline_mode = #tpu.pipeline_mode<synchronous>, transform_indices = @transform_3, window_bounds = array<i64: 64, 1280>}]} {
    %c0 = arith.constant 0 : index
    %c0_0 = arith.constant 0 : index
    %0 = vector.load %arg1[%c0, %c0_0] : memref<64x12xbf16, #tpu.memory_space<vmem>>, vector<64x12xbf16>
    %c0_1 = arith.constant 0 : index
    %c0_2 = arith.constant 0 : index
    %1 = vector.load %arg2[%c0_1, %c0_2] : memref<12x1280xbf16, #tpu.memory_space<vmem>>, vector<12x1280xbf16>
    %cst = arith.constant dense<0.000000e+00> : vector<64x1280xf32>
    %2 = tpu.matmul %0, %1, %cst {dimension_numbers = #tpu.dot_dimension_numbers<[1], [0], [0], [1], [0, 0, 1, 1], [], []>} : vector<64x12xbf16>, vector<12x1280xbf16>, vector<64x1280xf32> -> vector<64x1280xf32>
    %c0_3 = arith.constant 0 : index
    %c0_4 = arith.constant 0 : index
    %3 = vector.load %arg3[%c0_3, %c0_4] : memref<64x1xf32, #tpu.memory_space<vmem>>, vector<64x1xf32>
    %4 = vector.broadcast %3 : vector<64x1xf32> to vector<64x1280xf32>
    %5 = arith.addf %2, %4 : vector<64x1280xf32>
    %6 = arith.truncf %5 : vector<64x1280xf32> to vector<64x1280xbf16>
    %c0_5 = arith.constant 0 : index
    %c0_6 = arith.constant 0 : index
    %7 = vector.load %arg4[%c0_5, %c0_6] : memref<64x1280xbf16, #tpu.memory_space<vmem>>, vector<64x1280xbf16>
    tpu.vector_store %arg4[%c0_5, %c0_6], %6 {strides = array<i32>} : memref<64x1280xbf16, #tpu.memory_space<vmem>>, vector<64x1280xbf16>,
    return
  }
  func.func @transform_0(%arg0: i32) -> (i32, i32) {
    %c0_i32 = arith.constant 0 : i32
    %c0_i32_0 = arith.constant 0 : i32
    %c0_i32_1 = arith.constant 0 : i32
    return %c0_i32, %c0_i32_0 : i32, i32
  }
  func.func @transform_1(%arg0: i32) -> (i32, i32) {
    %c0_i32 = arith.constant 0 : i32
    %c0_i32_0 = arith.constant 0 : i32
    %c0_i32_1 = arith.constant 0 : i32
    return %c0_i32, %c0_i32_0 : i32, i32
  }
  func.func @transform_2(%arg0: i32) -> (i32, i32) {
    %c0_i32 = arith.constant 0 : i32
    %c0_i32_0 = arith.constant 0 : i32
    %c0_i32_1 = arith.constant 0 : i32
    return %c0_i32, %c0_i32_0 : i32, i32
  }
  func.func @transform_3(%arg0: i32) -> (i32, i32) {
    %c0_i32 = arith.constant 0 : i32
    %c0_i32_0 = arith.constant 0 : i32
    %c0_i32_1 = arith.constant 0 : i32
    return %c0_i32, %c0_i32_0 : i32, i32
  }
}

module attributes {stable_mosaic.version = 11 : i64} {
  func.func @_cnn_bilstm_core_kernel(%arg0: i32, %arg1: memref<128x672xbf16, #tpu.memory_space<vmem>>, %arg2: memref<672x1024xbf16, #tpu.memory_space<vmem>>, %arg3: memref<1x1024xf32, #tpu.memory_space<vmem>>, %arg4: memref<256x512xbf16, #tpu.memory_space<vmem>>, %arg5: memref<256x1024xbf16, #tpu.memory_space<vmem>>, %arg6: memref<1x1024xf32, #tpu.memory_space<vmem>>, %arg7: memref<256x512xbf16, #tpu.memory_space<vmem>>, %arg8: memref<256x48xf32, #tpu.memory_space<vmem>>, %arg9: memref<1x48xf32, #tpu.memory_space<vmem>>, %arg10: memref<2x48xf32, #tpu.memory_space<vmem>>, %arg11: memref<128x1024xf32, #tpu.memory_space<vmem>>, %arg12: memref<128x1024xf32, #tpu.memory_space<vmem>>, %arg13: memref<128x256xf32, #tpu.memory_space<vmem>>, %arg14: memref<128x256xf32, #tpu.memory_space<vmem>>) attributes {dimension_semantics = [#tpu.dimension_semantics<arbitrary>], iteration_bounds = array<i64: 1>, scalar_prefetch = 0 : i64, scratch_operands = 4 : i64, tpu.core_type = #tpu.core_type<tc>, window_params = [{pipeline_mode = #tpu.pipeline_mode<synchronous>, transform_indices = @transform_0, window_bounds = array<i64: 128, 672>}, {pipeline_mode = #tpu.pipeline_mode<synchronous>, transform_indices = @transform_1, window_bounds = array<i64: 672, 1024>}, {pipeline_mode = #tpu.pipeline_mode<synchronous>, transform_indices = @transform_2, window_bounds = array<i64: 1, 1024>}, {pipeline_mode = #tpu.pipeline_mode<synchronous>, transform_indices = @transform_3, window_bounds = array<i64: 256, 512>}, {pipeline_mode = #tpu.pipeline_mode<synchronous>, transform_indices = @transform_4, window_bounds = array<i64: 256, 1024>}, {pipeline_mode = #tpu.pipeline_mode<synchronous>, transform_indices = @transform_5, window_bounds = array<i64: 1, 1024>}, {pipeline_mode = #tpu.pipeline_mode<synchronous>, transform_indices = @transform_6, window_bounds = array<i64: 256, 512>}, {pipeline_mode = #tpu.pipeline_mode<synchronous>, transform_indices = @transform_7, window_bounds = array<i64: 256, 48>}, {pipeline_mode = #tpu.pipeline_mode<synchronous>, transform_indices = @transform_8, window_bounds = array<i64: 1, 48>}, {pipeline_mode = #tpu.pipeline_mode<synchronous>, transform_indices = @transform_9, window_bounds = array<i64: 2, 48>}]} {
    %c0 = arith.constant 0 : index
    %c0_0 = arith.constant 0 : index
    %0 = vector.load %arg1[%c0, %c0_0] : memref<128x672xbf16, #tpu.memory_space<vmem>>, vector<128x672xbf16>
    %c0_1 = arith.constant 0 : index
    %c0_2 = arith.constant 0 : index
    %1 = vector.load %arg2[%c0_1, %c0_2] : memref<672x1024xbf16, #tpu.memory_space<vmem>>, vector<672x1024xbf16>
    %cst = arith.constant dense<0.000000e+00> : vector<128x1024xf32>
    %2 = tpu.matmul %0, %1, %cst {dimension_numbers = #tpu.dot_dimension_numbers<[1], [0], [0], [1], [0, 0, 1, 1], [], []>} : vector<128x672xbf16>, vector<672x1024xbf16>, vector<128x1024xf32> -> vector<128x1024xf32>
    %c0_3 = arith.constant 0 : index
    %c0_4 = arith.constant 0 : index
    %3 = vector.load %arg3[%c0_3, %c0_4] : memref<1x1024xf32, #tpu.memory_space<vmem>>, vector<1x1024xf32>
    %4 = vector.broadcast %3 : vector<1x1024xf32> to vector<128x1024xf32>
    %5 = arith.addf %2, %4 : vector<128x1024xf32>
    %c0_5 = arith.constant 0 : index
    %c0_6 = arith.constant 0 : index
    %6 = vector.load %arg11[%c0_5, %c0_6] : memref<128x1024xf32, #tpu.memory_space<vmem>>, vector<128x1024xf32>
    tpu.vector_store %arg11[%c0_5, %c0_6], %5 {strides = array<i32>} : memref<128x1024xf32, #tpu.memory_space<vmem>>, vector<128x1024xf32>,
    %7 = tpu.iota {dimensions = array<i32: 0>} : vector<4x128xi32>
    %c2_i32 = arith.constant 2 : i32
    %8 = vector.broadcast %c2_i32 : i32 to vector<4x128xi32>
    %9 = arith.cmpi slt, %7, %8 : vector<4x128xi32>
    %cst_7 = arith.constant 0.000000e+00 : f32
    %10 = vector.broadcast %cst_7 : f32 to vector<4x128xf32>
    %c0_i32 = arith.constant 0 : i32
    %c16_i32 = arith.constant 16 : i32
    %11 = arith.addi %c0_i32, %c16_i32 : i32
    %c1_i32 = arith.constant 1 : i32
    %12:2 = scf.for %arg15 = %c0_i32 to %11 step %c1_i32 iter_args(%arg16 = %10, %arg17 = %10) -> (vector<4x128xf32>, vector<4x128xf32>)  : i32 {
      %c8_i32 = arith.constant 8 : i32
      %35 = arith.muli %arg15, %c8_i32 : i32
      %36 = tpu.assume_multiple %35, 8 : i32
      %c15_i32 = arith.constant 15 : i32
      %37 = arith.subi %c15_i32, %arg15 : i32
      %c8_i32_32 = arith.constant 8 : i32
      %38 = arith.muli %37, %c8_i32_32 : i32
      %39 = tpu.assume_multiple %38, 8 : i32
      %40 = arith.index_cast %36 : i32 to index
      %c0_33 = arith.constant 0 : index
      %41 = vector.load %arg11[%40, %c0_33] : memref<128x1024xf32, #tpu.memory_space<vmem>>, vector<8x512xf32>
      %42 = arith.index_cast %39 : i32 to index
      %c512 = arith.constant 512 : index
      %43 = vector.load %arg11[%42, %c512] : memref<128x1024xf32, #tpu.memory_space<vmem>>, vector<8x512xf32>
      %44 = vector.extract_strided_slice %41 {offsets = [0, 0], sizes = [2, 512], strides = [1, 1]} : vector<8x512xf32> to vector<2x512xf32>
      %45 = vector.extract_strided_slice %43 {offsets = [6, 0], sizes = [2, 512], strides = [1, 1]} : vector<8x512xf32> to vector<2x512xf32>
      %46 = tpu.concatenate %44, %45 in 0 : vector<2x512xf32>, vector<2x512xf32> -> vector<4x512xf32>
      %cst_34 = arith.constant 0.000000e+00 : f32
      %47 = vector.broadcast %cst_34 : f32 to vector<4x128xf32>
      %48 = arith.select %9, %arg16, %47 : vector<4x128xi1>, vector<4x128xf32>
      %49 = arith.subf %arg16, %48 : vector<4x128xf32>
      %50 = tpu.concatenate %48, %49 in 1 : vector<4x128xf32>, vector<4x128xf32> -> vector<4x256xf32>
      %51 = arith.truncf %50 : vector<4x256xf32> to vector<4x256xbf16>
      %c0_35 = arith.constant 0 : index
      %c0_36 = arith.constant 0 : index
      %52 = vector.load %arg4[%c0_35, %c0_36] : memref<256x512xbf16, #tpu.memory_space<vmem>>, vector<256x512xbf16>
      %cst_37 = arith.constant dense<0.000000e+00> : vector<4x512xf32>
      %53 = tpu.matmul %51, %52, %cst_37 {dimension_numbers = #tpu.dot_dimension_numbers<[1], [0], [0], [1], [0, 0, 1, 1], [], []>} : vector<4x256xbf16>, vector<256x512xbf16>, vector<4x512xf32> -> vector<4x512xf32>
      %54 = arith.addf %46, %53 : vector<4x512xf32>
      %55 = vector.extract_strided_slice %54 {offsets = [0, 0], sizes = [4, 128], strides = [1, 1]} : vector<4x512xf32> to vector<4x128xf32>
      %cst_38 = arith.constant 5.000000e-01 : f32
      %56 = vector.broadcast %cst_38 : f32 to vector<4x128xf32>
      %57 = arith.mulf %56, %55 : vector<4x128xf32>
      %58 = math.tanh %57 : vector<4x128xf32>
      %cst_39 = arith.constant 5.000000e-01 : f32
      %59 = vector.broadcast %cst_39 : f32 to vector<4x128xf32>
      %60 = arith.mulf %59, %58 : vector<4x128xf32>
      %cst_40 = arith.constant 5.000000e-01 : f32
      %61 = vector.broadcast %cst_40 : f32 to vector<4x128xf32>
      %62 = arith.addf %60, %61 : vector<4x128xf32>
      %63 = vector.extract_strided_slice %54 {offsets = [0, 128], sizes = [4, 128], strides = [1, 1]} : vector<4x512xf32> to vector<4x128xf32>
      %cst_41 = arith.constant 5.000000e-01 : f32
      %64 = vector.broadcast %cst_41 : f32 to vector<4x128xf32>
      %65 = arith.mulf %64, %63 : vector<4x128xf32>
      %66 = math.tanh %65 : vector<4x128xf32>
      %cst_42 = arith.constant 5.000000e-01 : f32
      %67 = vector.broadcast %cst_42 : f32 to vector<4x128xf32>
      %68 = arith.mulf %67, %66 : vector<4x128xf32>
      %cst_43 = arith.constant 5.000000e-01 : f32
      %69 = vector.broadcast %cst_43 : f32 to vector<4x128xf32>
      %70 = arith.addf %68, %69 : vector<4x128xf32>
      %71 = vector.extract_strided_slice %54 {offsets = [0, 256], sizes = [4, 128], strides = [1, 1]} : vector<4x512xf32> to vector<4x128xf32>
      %72 = math.tanh %71 : vector<4x128xf32>
      %73 = vector.extract_strided_slice %54 {offsets = [0, 384], sizes = [4, 128], strides = [1, 1]} : vector<4x512xf32> to vector<4x128xf32>
      %cst_44 = arith.constant 5.000000e-01 : f32
      %74 = vector.broadcast %cst_44 : f32 to vector<4x128xf32>
      %75 = arith.mulf %74, %73 : vector<4x128xf32>
      %76 = math.tanh %75 : vector<4x128xf32>
      %cst_45 = arith.constant 5.000000e-01 : f32
      %77 = vector.broadcast %cst_45 : f32 to vector<4x128xf32>
      %78 = arith.mulf %77, %76 : vector<4x128xf32>
      %cst_46 = arith.constant 5.000000e-01 : f32
      %79 = vector.broadcast %cst_46 : f32 to vector<4x128xf32>
      %80 = arith.addf %78, %79 : vector<4x128xf32>
      %81 = arith.mulf %70, %arg17 : vector<4x128xf32>
      %82 = arith.mulf %62, %72 : vector<4x128xf32>
      %83 = arith.addf %81, %82 : vector<4x128xf32>
      %84 = math.tanh %83 : vector<4x128xf32>
      %85 = arith.mulf %80, %84 : vector<4x128xf32>
      %86 = vector.extract_strided_slice %85 {offsets = [0, 0], sizes = [2, 128], strides = [1, 1]} : vector<4x128xf32> to vector<2x128xf32>
      %87 = vector.extract_strided_slice %85 {offsets = [2, 0], sizes = [2, 128], strides = [1, 1]} : vector<4x128xf32> to vector<2x128xf32>
      %88 = vector.extract_strided_slice %41 {offsets = [2, 0], sizes = [2, 512], strides = [1, 1]} : vector<8x512xf32> to vector<2x512xf32>
      %89 = vector.extract_strided_slice %43 {offsets = [4, 0], sizes = [2, 512], strides = [1, 1]} : vector<8x512xf32> to vector<2x512xf32>
      %90 = tpu.concatenate %88, %89 in 0 : vector<2x512xf32>, vector<2x512xf32> -> vector<4x512xf32>
      %cst_47 = arith.constant 0.000000e+00 : f32
      %91 = vector.broadcast %cst_47 : f32 to vector<4x128xf32>
      %92 = arith.select %9, %85, %91 : vector<4x128xi1>, vector<4x128xf32>
      %93 = arith.subf %85, %92 : vector<4x128xf32>
      %94 = tpu.concatenate %92, %93 in 1 : vector<4x128xf32>, vector<4x128xf32> -> vector<4x256xf32>
      %95 = arith.truncf %94 : vector<4x256xf32> to vector<4x256xbf16>
      %c0_48 = arith.constant 0 : index
      %c0_49 = arith.constant 0 : index
      %96 = vector.load %arg4[%c0_48, %c0_49] : memref<256x512xbf16, #tpu.memory_space<vmem>>, vector<256x512xbf16>
      %cst_50 = arith.constant dense<0.000000e+00> : vector<4x512xf32>
      %97 = tpu.matmul %95, %96, %cst_50 {dimension_numbers = #tpu.dot_dimension_numbers<[1], [0], [0], [1], [0, 0, 1, 1], [], []>} : vector<4x256xbf16>, vector<256x512xbf16>, vector<4x512xf32> -> vector<4x512xf32>
      %98 = arith.addf %90, %97 : vector<4x512xf32>
      %99 = vector.extract_strided_slice %98 {offsets = [0, 0], sizes = [4, 128], strides = [1, 1]} : vector<4x512xf32> to vector<4x128xf32>
      %cst_51 = arith.constant 5.000000e-01 : f32
      %100 = vector.broadcast %cst_51 : f32 to vector<4x128xf32>
      %101 = arith.mulf %100, %99 : vector<4x128xf32>
      %102 = math.tanh %101 : vector<4x128xf32>
      %cst_52 = arith.constant 5.000000e-01 : f32
      %103 = vector.broadcast %cst_52 : f32 to vector<4x128xf32>
      %104 = arith.mulf %103, %102 : vector<4x128xf32>
      %cst_53 = arith.constant 5.000000e-01 : f32
      %105 = vector.broadcast %cst_53 : f32 to vector<4x128xf32>
      %106 = arith.addf %104, %105 : vector<4x128xf32>
      %107 = vector.extract_strided_slice %98 {offsets = [0, 128], sizes = [4, 128], strides = [1, 1]} : vector<4x512xf32> to vector<4x128xf32>
      %cst_54 = arith.constant 5.000000e-01 : f32
      %108 = vector.broadcast %cst_54 : f32 to vector<4x128xf32>
      %109 = arith.mulf %108, %107 : vector<4x128xf32>
      %110 = math.tanh %109 : vector<4x128xf32>
      %cst_55 = arith.constant 5.000000e-01 : f32
      %111 = vector.broadcast %cst_55 : f32 to vector<4x128xf32>
      %112 = arith.mulf %111, %110 : vector<4x128xf32>
      %cst_56 = arith.constant 5.000000e-01 : f32
      %113 = vector.broadcast %cst_56 : f32 to vector<4x128xf32>
      %114 = arith.addf %112, %113 : vector<4x128xf32>
      %115 = vector.extract_strided_slice %98 {offsets = [0, 256], sizes = [4, 128], strides = [1, 1]} : vector<4x512xf32> to vector<4x128xf32>
      %116 = math.tanh %115 : vector<4x128xf32>
      %117 = vector.extract_strided_slice %98 {offsets = [0, 384], sizes = [4, 128], strides = [1, 1]} : vector<4x512xf32> to vector<4x128xf32>
      %cst_57 = arith.constant 5.000000e-01 : f32
      %118 = vector.broadcast %cst_57 : f32 to vector<4x128xf32>
      %119 = arith.mulf %118, %117 : vector<4x128xf32>
      %120 = math.tanh %119 : vector<4x128xf32>
      %cst_58 = arith.constant 5.000000e-01 : f32
      %121 = vector.broadcast %cst_58 : f32 to vector<4x128xf32>
      %122 = arith.mulf %121, %120 : vector<4x128xf32>
      %cst_59 = arith.constant 5.000000e-01 : f32
      %123 = vector.broadcast %cst_59 : f32 to vector<4x128xf32>
      %124 = arith.addf %122, %123 : vector<4x128xf32>
      %125 = arith.mulf %114, %83 : vector<4x128xf32>
      %126 = arith.mulf %106, %116 : vector<4x128xf32>
      %127 = arith.addf %125, %126 : vector<4x128xf32>
      %128 = math.tanh %127 : vector<4x128xf32>
      %129 = arith.mulf %124, %128 : vector<4x128xf32>
      %130 = vector.extract_strided_slice %129 {offsets = [0, 0], sizes = [2, 128], strides = [1, 1]} : vector<4x128xf32> to vector<2x128xf32>
      %131 = vector.extract_strided_slice %129 {offsets = [2, 0], sizes = [2, 128], strides = [1, 1]} : vector<4x128xf32> to vector<2x128xf32>
      %132 = vector.extract_strided_slice %41 {offsets = [4, 0], sizes = [2, 512], strides = [1, 1]} : vector<8x512xf32> to vector<2x512xf32>
      %133 = vector.extract_strided_slice %43 {offsets = [2, 0], sizes = [2, 512], strides = [1, 1]} : vector<8x512xf32> to vector<2x512xf32>
      %134 = tpu.concatenate %132, %133 in 0 : vector<2x512xf32>, vector<2x512xf32> -> vector<4x512xf32>
      %cst_60 = arith.constant 0.000000e+00 : f32
      %135 = vector.broadcast %cst_60 : f32 to vector<4x128xf32>
      %136 = arith.select %9, %129, %135 : vector<4x128xi1>, vector<4x128xf32>
      %137 = arith.subf %129, %136 : vector<4x128xf32>
      %138 = tpu.concatenate %136, %137 in 1 : vector<4x128xf32>, vector<4x128xf32> -> vector<4x256xf32>
      %139 = arith.truncf %138 : vector<4x256xf32> to vector<4x256xbf16>
      %c0_61 = arith.constant 0 : index
      %c0_62 = arith.constant 0 : index
      %140 = vector.load %arg4[%c0_61, %c0_62] : memref<256x512xbf16, #tpu.memory_space<vmem>>, vector<256x512xbf16>
      %cst_63 = arith.constant dense<0.000000e+00> : vector<4x512xf32>
      %141 = tpu.matmul %139, %140, %cst_63 {dimension_numbers = #tpu.dot_dimension_numbers<[1], [0], [0], [1], [0, 0, 1, 1], [], []>} : vector<4x256xbf16>, vector<256x512xbf16>, vector<4x512xf32> -> vector<4x512xf32>
      %142 = arith.addf %134, %141 : vector<4x512xf32>
      %143 = vector.extract_strided_slice %142 {offsets = [0, 0], sizes = [4, 128], strides = [1, 1]} : vector<4x512xf32> to vector<4x128xf32>
      %cst_64 = arith.constant 5.000000e-01 : f32
      %144 = vector.broadcast %cst_64 : f32 to vector<4x128xf32>
      %145 = arith.mulf %144, %143 : vector<4x128xf32>
      %146 = math.tanh %145 : vector<4x128xf32>
      %cst_65 = arith.constant 5.000000e-01 : f32
      %147 = vector.broadcast %cst_65 : f32 to vector<4x128xf32>
      %148 = arith.mulf %147, %146 : vector<4x128xf32>
      %cst_66 = arith.constant 5.000000e-01 : f32
      %149 = vector.broadcast %cst_66 : f32 to vector<4x128xf32>
      %150 = arith.addf %148, %149 : vector<4x128xf32>
      %151 = vector.extract_strided_slice %142 {offsets = [0, 128], sizes = [4, 128], strides = [1, 1]} : vector<4x512xf32> to vector<4x128xf32>
      %cst_67 = arith.constant 5.000000e-01 : f32
      %152 = vector.broadcast %cst_67 : f32 to vector<4x128xf32>
      %153 = arith.mulf %152, %151 : vector<4x128xf32>
      %154 = math.tanh %153 : vector<4x128xf32>
      %cst_68 = arith.constant 5.000000e-01 : f32
      %155 = vector.broadcast %cst_68 : f32 to vector<4x128xf32>
      %156 = arith.mulf %155, %154 : vector<4x128xf32>
      %cst_69 = arith.constant 5.000000e-01 : f32
      %157 = vector.broadcast %cst_69 : f32 to vector<4x128xf32>
      %158 = arith.addf %156, %157 : vector<4x128xf32>
      %159 = vector.extract_strided_slice %142 {offsets = [0, 256], sizes = [4, 128], strides = [1, 1]} : vector<4x512xf32> to vector<4x128xf32>
      %160 = math.tanh %159 : vector<4x128xf32>
      %161 = vector.extract_strided_slice %142 {offsets = [0, 384], sizes = [4, 128], strides = [1, 1]} : vector<4x512xf32> to vector<4x128xf32>
      %cst_70 = arith.constant 5.000000e-01 : f32
      %162 = vector.broadcast %cst_70 : f32 to vector<4x128xf32>
      %163 = arith.mulf %162, %161 : vector<4x128xf32>
      %164 = math.tanh %163 : vector<4x128xf32>
      %cst_71 = arith.constant 5.000000e-01 : f32
      %165 = vector.broadcast %cst_71 : f32 to vector<4x128xf32>
      %166 = arith.mulf %165, %164 : vector<4x128xf32>
      %cst_72 = arith.constant 5.000000e-01 : f32
      %167 = vector.broadcast %cst_72 : f32 to vector<4x128xf32>
      %168 = arith.addf %166, %167 : vector<4x128xf32>
      %169 = arith.mulf %158, %127 : vector<4x128xf32>
      %170 = arith.mulf %150, %160 : vector<4x128xf32>
      %171 = arith.addf %169, %170 : vector<4x128xf32>
      %172 = math.tanh %171 : vector<4x128xf32>
      %173 = arith.mulf %168, %172 : vector<4x128xf32>
      %174 = vector.extract_strided_slice %173 {offsets = [0, 0], sizes = [2, 128], strides = [1, 1]} : vector<4x128xf32> to vector<2x128xf32>
      %175 = vector.extract_strided_slice %173 {offsets = [2, 0], sizes = [2, 128], strides = [1, 1]} : vector<4x128xf32> to vector<2x128xf32>
      %176 = vector.extract_strided_slice %41 {offsets = [6, 0], sizes = [2, 512], strides = [1, 1]} : vector<8x512xf32> to vector<2x512xf32>
      %177 = vector.extract_strided_slice %43 {offsets = [0, 0], sizes = [2, 512], strides = [1, 1]} : vector<8x512xf32> to vector<2x512xf32>
      %178 = tpu.concatenate %176, %177 in 0 : vector<2x512xf32>, vector<2x512xf32> -> vector<4x512xf32>
      %cst_73 = arith.constant 0.000000e+00 : f32
      %179 = vector.broadcast %cst_73 : f32 to vector<4x128xf32>
      %180 = arith.select %9, %173, %179 : vector<4x128xi1>, vector<4x128xf32>
      %181 = arith.subf %173, %180 : vector<4x128xf32>
      %182 = tpu.concatenate %180, %181 in 1 : vector<4x128xf32>, vector<4x128xf32> -> vector<4x256xf32>
      %183 = arith.truncf %182 : vector<4x256xf32> to vector<4x256xbf16>
      %c0_74 = arith.constant 0 : index
      %c0_75 = arith.constant 0 : index
      %184 = vector.load %arg4[%c0_74, %c0_75] : memref<256x512xbf16, #tpu.memory_space<vmem>>, vector<256x512xbf16>
      %cst_76 = arith.constant dense<0.000000e+00> : vector<4x512xf32>
      %185 = tpu.matmul %183, %184, %cst_76 {dimension_numbers = #tpu.dot_dimension_numbers<[1], [0], [0], [1], [0, 0, 1, 1], [], []>} : vector<4x256xbf16>, vector<256x512xbf16>, vector<4x512xf32> -> vector<4x512xf32>
      %186 = arith.addf %178, %185 : vector<4x512xf32>
      %187 = vector.extract_strided_slice %186 {offsets = [0, 0], sizes = [4, 128], strides = [1, 1]} : vector<4x512xf32> to vector<4x128xf32>
      %cst_77 = arith.constant 5.000000e-01 : f32
      %188 = vector.broadcast %cst_77 : f32 to vector<4x128xf32>
      %189 = arith.mulf %188, %187 : vector<4x128xf32>
      %190 = math.tanh %189 : vector<4x128xf32>
      %cst_78 = arith.constant 5.000000e-01 : f32
      %191 = vector.broadcast %cst_78 : f32 to vector<4x128xf32>
      %192 = arith.mulf %191, %190 : vector<4x128xf32>
      %cst_79 = arith.constant 5.000000e-01 : f32
      %193 = vector.broadcast %cst_79 : f32 to vector<4x128xf32>
      %194 = arith.addf %192, %193 : vector<4x128xf32>
      %195 = vector.extract_strided_slice %186 {offsets = [0, 128], sizes = [4, 128], strides = [1, 1]} : vector<4x512xf32> to vector<4x128xf32>
      %cst_80 = arith.constant 5.000000e-01 : f32
      %196 = vector.broadcast %cst_80 : f32 to vector<4x128xf32>
      %197 = arith.mulf %196, %195 : vector<4x128xf32>
      %198 = math.tanh %197 : vector<4x128xf32>
      %cst_81 = arith.constant 5.000000e-01 : f32
      %199 = vector.broadcast %cst_81 : f32 to vector<4x128xf32>
      %200 = arith.mulf %199, %198 : vector<4x128xf32>
      %cst_82 = arith.constant 5.000000e-01 : f32
      %201 = vector.broadcast %cst_82 : f32 to vector<4x128xf32>
      %202 = arith.addf %200, %201 : vector<4x128xf32>
      %203 = vector.extract_strided_slice %186 {offsets = [0, 256], sizes = [4, 128], strides = [1, 1]} : vector<4x512xf32> to vector<4x128xf32>
      %204 = math.tanh %203 : vector<4x128xf32>
      %205 = vector.extract_strided_slice %186 {offsets = [0, 384], sizes = [4, 128], strides = [1, 1]} : vector<4x512xf32> to vector<4x128xf32>
      %cst_83 = arith.constant 5.000000e-01 : f32
      %206 = vector.broadcast %cst_83 : f32 to vector<4x128xf32>
      %207 = arith.mulf %206, %205 : vector<4x128xf32>
      %208 = math.tanh %207 : vector<4x128xf32>
      %cst_84 = arith.constant 5.000000e-01 : f32
      %209 = vector.broadcast %cst_84 : f32 to vector<4x128xf32>
      %210 = arith.mulf %209, %208 : vector<4x128xf32>
      %cst_85 = arith.constant 5.000000e-01 : f32
      %211 = vector.broadcast %cst_85 : f32 to vector<4x128xf32>
      %212 = arith.addf %210, %211 : vector<4x128xf32>
      %213 = arith.mulf %202, %171 : vector<4x128xf32>
      %214 = arith.mulf %194, %204 : vector<4x128xf32>
      %215 = arith.addf %213, %214 : vector<4x128xf32>
      %216 = math.tanh %215 : vector<4x128xf32>
      %217 = arith.mulf %212, %216 : vector<4x128xf32>
      %218 = vector.extract_strided_slice %217 {offsets = [0, 0], sizes = [2, 128], strides = [1, 1]} : vector<4x128xf32> to vector<2x128xf32>
      %219 = vector.extract_strided_slice %217 {offsets = [2, 0], sizes = [2, 128], strides = [1, 1]} : vector<4x128xf32> to vector<2x128xf32>
      %220 = tpu.concatenate %86, %130, %174, %218 in 0 : vector<2x128xf32>, vector<2x128xf32>, vector<2x128xf32>, vector<2x128xf32> -> vector<8x128xf32>
      %221 = arith.index_cast %36 : i32 to index
      %c0_86 = arith.constant 0 : index
      %222 = vector.load %arg13[%221, %c0_86] : memref<128x256xf32, #tpu.memory_space<vmem>>, vector<8x128xf32>
      tpu.vector_store %arg13[%221, %c0_86], %220 {strides = array<i32>} : memref<128x256xf32, #tpu.memory_space<vmem>>, vector<8x128xf32>,
      %223 = tpu.concatenate %219, %175, %131, %87 in 0 : vector<2x128xf32>, vector<2x128xf32>, vector<2x128xf32>, vector<2x128xf32> -> vector<8x128xf32>
      %224 = arith.index_cast %39 : i32 to index
      %c128 = arith.constant 128 : index
      %225 = vector.load %arg13[%224, %c128] : memref<128x256xf32, #tpu.memory_space<vmem>>, vector<8x128xf32>
      tpu.vector_store %arg13[%224, %c128], %223 {strides = array<i32>} : memref<128x256xf32, #tpu.memory_space<vmem>>, vector<8x128xf32>,
      scf.yield %217, %215 : vector<4x128xf32>, vector<4x128xf32>
    }
    %c16_i32_8 = arith.constant 16 : i32
    %c0_9 = arith.constant 0 : index
    %c0_10 = arith.constant 0 : index
    %13 = vector.load %arg13[%c0_9, %c0_10] : memref<128x256xf32, #tpu.memory_space<vmem>>, vector<128x256xf32>
    %14 = arith.truncf %13 : vector<128x256xf32> to vector<128x256xbf16>
    %c0_11 = arith.constant 0 : index
    %c0_12 = arith.constant 0 : index
    %15 = vector.load %arg5[%c0_11, %c0_12] : memref<256x1024xbf16, #tpu.memory_space<vmem>>, vector<256x1024xbf16>
    %cst_13 = arith.constant dense<0.000000e+00> : vector<128x1024xf32>
    %16 = tpu.matmul %14, %15, %cst_13 {dimension_numbers = #tpu.dot_dimension_numbers<[1], [0], [0], [1], [0, 0, 1, 1], [], []>} : vector<128x256xbf16>, vector<256x1024xbf16>, vector<128x1024xf32> -> vector<128x1024xf32>
    %c0_14 = arith.constant 0 : index
    %c0_15 = arith.constant 0 : index
    %17 = vector.load %arg6[%c0_14, %c0_15] : memref<1x1024xf32, #tpu.memory_space<vmem>>, vector<1x1024xf32>
    %18 = vector.broadcast %17 : vector<1x1024xf32> to vector<128x1024xf32>
    %19 = arith.addf %16, %18 : vector<128x1024xf32>
    %c0_16 = arith.constant 0 : index
    %c0_17 = arith.constant 0 : index
    %20 = vector.load %arg12[%c0_16, %c0_17] : memref<128x1024xf32, #tpu.memory_space<vmem>>, vector<128x1024xf32>
    tpu.vector_store %arg12[%c0_16, %c0_17], %19 {strides = array<i32>} : memref<128x1024xf32, #tpu.memory_space<vmem>>, vector<128x1024xf32>,
    %21 = tpu.iota {dimensions = array<i32: 0>} : vector<4x128xi32>
    %c2_i32_18 = arith.constant 2 : i32
    %22 = vector.broadcast %c2_i32_18 : i32 to vector<4x128xi32>
    %23 = arith.cmpi slt, %21, %22 : vector<4x128xi32>
    %cst_19 = arith.constant 0.000000e+00 : f32
    %24 = vector.broadcast %cst_19 : f32 to vector<4x128xf32>
    %c0_i32_20 = arith.constant 0 : i32
    %c16_i32_21 = arith.constant 16 : i32
    %25 = arith.addi %c0_i32_20, %c16_i32_21 : i32
    %c1_i32_22 = arith.constant 1 : i32
    %26:2 = scf.for %arg15 = %c0_i32_20 to %25 step %c1_i32_22 iter_args(%arg16 = %24, %arg17 = %24) -> (vector<4x128xf32>, vector<4x128xf32>)  : i32 {
      %c8_i32 = arith.constant 8 : i32
      %35 = arith.muli %arg15, %c8_i32 : i32
      %36 = tpu.assume_multiple %35, 8 : i32
      %c15_i32 = arith.constant 15 : i32
      %37 = arith.subi %c15_i32, %arg15 : i32
      %c8_i32_32 = arith.constant 8 : i32
      %38 = arith.muli %37, %c8_i32_32 : i32
      %39 = tpu.assume_multiple %38, 8 : i32
      %40 = arith.index_cast %36 : i32 to index
      %c0_33 = arith.constant 0 : index
      %41 = vector.load %arg12[%40, %c0_33] : memref<128x1024xf32, #tpu.memory_space<vmem>>, vector<8x512xf32>
      %42 = arith.index_cast %39 : i32 to index
      %c512 = arith.constant 512 : index
      %43 = vector.load %arg12[%42, %c512] : memref<128x1024xf32, #tpu.memory_space<vmem>>, vector<8x512xf32>
      %44 = vector.extract_strided_slice %41 {offsets = [0, 0], sizes = [2, 512], strides = [1, 1]} : vector<8x512xf32> to vector<2x512xf32>
      %45 = vector.extract_strided_slice %43 {offsets = [6, 0], sizes = [2, 512], strides = [1, 1]} : vector<8x512xf32> to vector<2x512xf32>
      %46 = tpu.concatenate %44, %45 in 0 : vector<2x512xf32>, vector<2x512xf32> -> vector<4x512xf32>
      %cst_34 = arith.constant 0.000000e+00 : f32
      %47 = vector.broadcast %cst_34 : f32 to vector<4x128xf32>
      %48 = arith.select %23, %arg16, %47 : vector<4x128xi1>, vector<4x128xf32>
      %49 = arith.subf %arg16, %48 : vector<4x128xf32>
      %50 = tpu.concatenate %48, %49 in 1 : vector<4x128xf32>, vector<4x128xf32> -> vector<4x256xf32>
      %51 = arith.truncf %50 : vector<4x256xf32> to vector<4x256xbf16>
      %c0_35 = arith.constant 0 : index
      %c0_36 = arith.constant 0 : index
      %52 = vector.load %arg7[%c0_35, %c0_36] : memref<256x512xbf16, #tpu.memory_space<vmem>>, vector<256x512xbf16>
      %cst_37 = arith.constant dense<0.000000e+00> : vector<4x512xf32>
      %53 = tpu.matmul %51, %52, %cst_37 {dimension_numbers = #tpu.dot_dimension_numbers<[1], [0], [0], [1], [0, 0, 1, 1], [], []>} : vector<4x256xbf16>, vector<256x512xbf16>, vector<4x512xf32> -> vector<4x512xf32>
      %54 = arith.addf %46, %53 : vector<4x512xf32>
      %55 = vector.extract_strided_slice %54 {offsets = [0, 0], sizes = [4, 128], strides = [1, 1]} : vector<4x512xf32> to vector<4x128xf32>
      %cst_38 = arith.constant 5.000000e-01 : f32
      %56 = vector.broadcast %cst_38 : f32 to vector<4x128xf32>
      %57 = arith.mulf %56, %55 : vector<4x128xf32>
      %58 = math.tanh %57 : vector<4x128xf32>
      %cst_39 = arith.constant 5.000000e-01 : f32
      %59 = vector.broadcast %cst_39 : f32 to vector<4x128xf32>
      %60 = arith.mulf %59, %58 : vector<4x128xf32>
      %cst_40 = arith.constant 5.000000e-01 : f32
      %61 = vector.broadcast %cst_40 : f32 to vector<4x128xf32>
      %62 = arith.addf %60, %61 : vector<4x128xf32>
      %63 = vector.extract_strided_slice %54 {offsets = [0, 128], sizes = [4, 128], strides = [1, 1]} : vector<4x512xf32> to vector<4x128xf32>
      %cst_41 = arith.constant 5.000000e-01 : f32
      %64 = vector.broadcast %cst_41 : f32 to vector<4x128xf32>
      %65 = arith.mulf %64, %63 : vector<4x128xf32>
      %66 = math.tanh %65 : vector<4x128xf32>
      %cst_42 = arith.constant 5.000000e-01 : f32
      %67 = vector.broadcast %cst_42 : f32 to vector<4x128xf32>
      %68 = arith.mulf %67, %66 : vector<4x128xf32>
      %cst_43 = arith.constant 5.000000e-01 : f32
      %69 = vector.broadcast %cst_43 : f32 to vector<4x128xf32>
      %70 = arith.addf %68, %69 : vector<4x128xf32>
      %71 = vector.extract_strided_slice %54 {offsets = [0, 256], sizes = [4, 128], strides = [1, 1]} : vector<4x512xf32> to vector<4x128xf32>
      %72 = math.tanh %71 : vector<4x128xf32>
      %73 = vector.extract_strided_slice %54 {offsets = [0, 384], sizes = [4, 128], strides = [1, 1]} : vector<4x512xf32> to vector<4x128xf32>
      %cst_44 = arith.constant 5.000000e-01 : f32
      %74 = vector.broadcast %cst_44 : f32 to vector<4x128xf32>
      %75 = arith.mulf %74, %73 : vector<4x128xf32>
      %76 = math.tanh %75 : vector<4x128xf32>
      %cst_45 = arith.constant 5.000000e-01 : f32
      %77 = vector.broadcast %cst_45 : f32 to vector<4x128xf32>
      %78 = arith.mulf %77, %76 : vector<4x128xf32>
      %cst_46 = arith.constant 5.000000e-01 : f32
      %79 = vector.broadcast %cst_46 : f32 to vector<4x128xf32>
      %80 = arith.addf %78, %79 : vector<4x128xf32>
      %81 = arith.mulf %70, %arg17 : vector<4x128xf32>
      %82 = arith.mulf %62, %72 : vector<4x128xf32>
      %83 = arith.addf %81, %82 : vector<4x128xf32>
      %84 = math.tanh %83 : vector<4x128xf32>
      %85 = arith.mulf %80, %84 : vector<4x128xf32>
      %86 = vector.extract_strided_slice %85 {offsets = [0, 0], sizes = [2, 128], strides = [1, 1]} : vector<4x128xf32> to vector<2x128xf32>
      %87 = vector.extract_strided_slice %85 {offsets = [2, 0], sizes = [2, 128], strides = [1, 1]} : vector<4x128xf32> to vector<2x128xf32>
      %88 = vector.extract_strided_slice %41 {offsets = [2, 0], sizes = [2, 512], strides = [1, 1]} : vector<8x512xf32> to vector<2x512xf32>
      %89 = vector.extract_strided_slice %43 {offsets = [4, 0], sizes = [2, 512], strides = [1, 1]} : vector<8x512xf32> to vector<2x512xf32>
      %90 = tpu.concatenate %88, %89 in 0 : vector<2x512xf32>, vector<2x512xf32> -> vector<4x512xf32>
      %cst_47 = arith.constant 0.000000e+00 : f32
      %91 = vector.broadcast %cst_47 : f32 to vector<4x128xf32>
      %92 = arith.select %23, %85, %91 : vector<4x128xi1>, vector<4x128xf32>
      %93 = arith.subf %85, %92 : vector<4x128xf32>
      %94 = tpu.concatenate %92, %93 in 1 : vector<4x128xf32>, vector<4x128xf32> -> vector<4x256xf32>
      %95 = arith.truncf %94 : vector<4x256xf32> to vector<4x256xbf16>
      %c0_48 = arith.constant 0 : index
      %c0_49 = arith.constant 0 : index
      %96 = vector.load %arg7[%c0_48, %c0_49] : memref<256x512xbf16, #tpu.memory_space<vmem>>, vector<256x512xbf16>
      %cst_50 = arith.constant dense<0.000000e+00> : vector<4x512xf32>
      %97 = tpu.matmul %95, %96, %cst_50 {dimension_numbers = #tpu.dot_dimension_numbers<[1], [0], [0], [1], [0, 0, 1, 1], [], []>} : vector<4x256xbf16>, vector<256x512xbf16>, vector<4x512xf32> -> vector<4x512xf32>
      %98 = arith.addf %90, %97 : vector<4x512xf32>
      %99 = vector.extract_strided_slice %98 {offsets = [0, 0], sizes = [4, 128], strides = [1, 1]} : vector<4x512xf32> to vector<4x128xf32>
      %cst_51 = arith.constant 5.000000e-01 : f32
      %100 = vector.broadcast %cst_51 : f32 to vector<4x128xf32>
      %101 = arith.mulf %100, %99 : vector<4x128xf32>
      %102 = math.tanh %101 : vector<4x128xf32>
      %cst_52 = arith.constant 5.000000e-01 : f32
      %103 = vector.broadcast %cst_52 : f32 to vector<4x128xf32>
      %104 = arith.mulf %103, %102 : vector<4x128xf32>
      %cst_53 = arith.constant 5.000000e-01 : f32
      %105 = vector.broadcast %cst_53 : f32 to vector<4x128xf32>
      %106 = arith.addf %104, %105 : vector<4x128xf32>
      %107 = vector.extract_strided_slice %98 {offsets = [0, 128], sizes = [4, 128], strides = [1, 1]} : vector<4x512xf32> to vector<4x128xf32>
      %cst_54 = arith.constant 5.000000e-01 : f32
      %108 = vector.broadcast %cst_54 : f32 to vector<4x128xf32>
      %109 = arith.mulf %108, %107 : vector<4x128xf32>
      %110 = math.tanh %109 : vector<4x128xf32>
      %cst_55 = arith.constant 5.000000e-01 : f32
      %111 = vector.broadcast %cst_55 : f32 to vector<4x128xf32>
      %112 = arith.mulf %111, %110 : vector<4x128xf32>
      %cst_56 = arith.constant 5.000000e-01 : f32
      %113 = vector.broadcast %cst_56 : f32 to vector<4x128xf32>
      %114 = arith.addf %112, %113 : vector<4x128xf32>
      %115 = vector.extract_strided_slice %98 {offsets = [0, 256], sizes = [4, 128], strides = [1, 1]} : vector<4x512xf32> to vector<4x128xf32>
      %116 = math.tanh %115 : vector<4x128xf32>
      %117 = vector.extract_strided_slice %98 {offsets = [0, 384], sizes = [4, 128], strides = [1, 1]} : vector<4x512xf32> to vector<4x128xf32>
      %cst_57 = arith.constant 5.000000e-01 : f32
      %118 = vector.broadcast %cst_57 : f32 to vector<4x128xf32>
      %119 = arith.mulf %118, %117 : vector<4x128xf32>
      %120 = math.tanh %119 : vector<4x128xf32>
      %cst_58 = arith.constant 5.000000e-01 : f32
      %121 = vector.broadcast %cst_58 : f32 to vector<4x128xf32>
      %122 = arith.mulf %121, %120 : vector<4x128xf32>
      %cst_59 = arith.constant 5.000000e-01 : f32
      %123 = vector.broadcast %cst_59 : f32 to vector<4x128xf32>
      %124 = arith.addf %122, %123 : vector<4x128xf32>
      %125 = arith.mulf %114, %83 : vector<4x128xf32>
      %126 = arith.mulf %106, %116 : vector<4x128xf32>
      %127 = arith.addf %125, %126 : vector<4x128xf32>
      %128 = math.tanh %127 : vector<4x128xf32>
      %129 = arith.mulf %124, %128 : vector<4x128xf32>
      %130 = vector.extract_strided_slice %129 {offsets = [0, 0], sizes = [2, 128], strides = [1, 1]} : vector<4x128xf32> to vector<2x128xf32>
      %131 = vector.extract_strided_slice %129 {offsets = [2, 0], sizes = [2, 128], strides = [1, 1]} : vector<4x128xf32> to vector<2x128xf32>
      %132 = vector.extract_strided_slice %41 {offsets = [4, 0], sizes = [2, 512], strides = [1, 1]} : vector<8x512xf32> to vector<2x512xf32>
      %133 = vector.extract_strided_slice %43 {offsets = [2, 0], sizes = [2, 512], strides = [1, 1]} : vector<8x512xf32> to vector<2x512xf32>
      %134 = tpu.concatenate %132, %133 in 0 : vector<2x512xf32>, vector<2x512xf32> -> vector<4x512xf32>
      %cst_60 = arith.constant 0.000000e+00 : f32
      %135 = vector.broadcast %cst_60 : f32 to vector<4x128xf32>
      %136 = arith.select %23, %129, %135 : vector<4x128xi1>, vector<4x128xf32>
      %137 = arith.subf %129, %136 : vector<4x128xf32>
      %138 = tpu.concatenate %136, %137 in 1 : vector<4x128xf32>, vector<4x128xf32> -> vector<4x256xf32>
      %139 = arith.truncf %138 : vector<4x256xf32> to vector<4x256xbf16>
      %c0_61 = arith.constant 0 : index
      %c0_62 = arith.constant 0 : index
      %140 = vector.load %arg7[%c0_61, %c0_62] : memref<256x512xbf16, #tpu.memory_space<vmem>>, vector<256x512xbf16>
      %cst_63 = arith.constant dense<0.000000e+00> : vector<4x512xf32>
      %141 = tpu.matmul %139, %140, %cst_63 {dimension_numbers = #tpu.dot_dimension_numbers<[1], [0], [0], [1], [0, 0, 1, 1], [], []>} : vector<4x256xbf16>, vector<256x512xbf16>, vector<4x512xf32> -> vector<4x512xf32>
      %142 = arith.addf %134, %141 : vector<4x512xf32>
      %143 = vector.extract_strided_slice %142 {offsets = [0, 0], sizes = [4, 128], strides = [1, 1]} : vector<4x512xf32> to vector<4x128xf32>
      %cst_64 = arith.constant 5.000000e-01 : f32
      %144 = vector.broadcast %cst_64 : f32 to vector<4x128xf32>
      %145 = arith.mulf %144, %143 : vector<4x128xf32>
      %146 = math.tanh %145 : vector<4x128xf32>
      %cst_65 = arith.constant 5.000000e-01 : f32
      %147 = vector.broadcast %cst_65 : f32 to vector<4x128xf32>
      %148 = arith.mulf %147, %146 : vector<4x128xf32>
      %cst_66 = arith.constant 5.000000e-01 : f32
      %149 = vector.broadcast %cst_66 : f32 to vector<4x128xf32>
      %150 = arith.addf %148, %149 : vector<4x128xf32>
      %151 = vector.extract_strided_slice %142 {offsets = [0, 128], sizes = [4, 128], strides = [1, 1]} : vector<4x512xf32> to vector<4x128xf32>
      %cst_67 = arith.constant 5.000000e-01 : f32
      %152 = vector.broadcast %cst_67 : f32 to vector<4x128xf32>
      %153 = arith.mulf %152, %151 : vector<4x128xf32>
      %154 = math.tanh %153 : vector<4x128xf32>
      %cst_68 = arith.constant 5.000000e-01 : f32
      %155 = vector.broadcast %cst_68 : f32 to vector<4x128xf32>
      %156 = arith.mulf %155, %154 : vector<4x128xf32>
      %cst_69 = arith.constant 5.000000e-01 : f32
      %157 = vector.broadcast %cst_69 : f32 to vector<4x128xf32>
      %158 = arith.addf %156, %157 : vector<4x128xf32>
      %159 = vector.extract_strided_slice %142 {offsets = [0, 256], sizes = [4, 128], strides = [1, 1]} : vector<4x512xf32> to vector<4x128xf32>
      %160 = math.tanh %159 : vector<4x128xf32>
      %161 = vector.extract_strided_slice %142 {offsets = [0, 384], sizes = [4, 128], strides = [1, 1]} : vector<4x512xf32> to vector<4x128xf32>
      %cst_70 = arith.constant 5.000000e-01 : f32
      %162 = vector.broadcast %cst_70 : f32 to vector<4x128xf32>
      %163 = arith.mulf %162, %161 : vector<4x128xf32>
      %164 = math.tanh %163 : vector<4x128xf32>
      %cst_71 = arith.constant 5.000000e-01 : f32
      %165 = vector.broadcast %cst_71 : f32 to vector<4x128xf32>
      %166 = arith.mulf %165, %164 : vector<4x128xf32>
      %cst_72 = arith.constant 5.000000e-01 : f32
      %167 = vector.broadcast %cst_72 : f32 to vector<4x128xf32>
      %168 = arith.addf %166, %167 : vector<4x128xf32>
      %169 = arith.mulf %158, %127 : vector<4x128xf32>
      %170 = arith.mulf %150, %160 : vector<4x128xf32>
      %171 = arith.addf %169, %170 : vector<4x128xf32>
      %172 = math.tanh %171 : vector<4x128xf32>
      %173 = arith.mulf %168, %172 : vector<4x128xf32>
      %174 = vector.extract_strided_slice %173 {offsets = [0, 0], sizes = [2, 128], strides = [1, 1]} : vector<4x128xf32> to vector<2x128xf32>
      %175 = vector.extract_strided_slice %173 {offsets = [2, 0], sizes = [2, 128], strides = [1, 1]} : vector<4x128xf32> to vector<2x128xf32>
      %176 = vector.extract_strided_slice %41 {offsets = [6, 0], sizes = [2, 512], strides = [1, 1]} : vector<8x512xf32> to vector<2x512xf32>
      %177 = vector.extract_strided_slice %43 {offsets = [0, 0], sizes = [2, 512], strides = [1, 1]} : vector<8x512xf32> to vector<2x512xf32>
      %178 = tpu.concatenate %176, %177 in 0 : vector<2x512xf32>, vector<2x512xf32> -> vector<4x512xf32>
      %cst_73 = arith.constant 0.000000e+00 : f32
      %179 = vector.broadcast %cst_73 : f32 to vector<4x128xf32>
      %180 = arith.select %23, %173, %179 : vector<4x128xi1>, vector<4x128xf32>
      %181 = arith.subf %173, %180 : vector<4x128xf32>
      %182 = tpu.concatenate %180, %181 in 1 : vector<4x128xf32>, vector<4x128xf32> -> vector<4x256xf32>
      %183 = arith.truncf %182 : vector<4x256xf32> to vector<4x256xbf16>
      %c0_74 = arith.constant 0 : index
      %c0_75 = arith.constant 0 : index
      %184 = vector.load %arg7[%c0_74, %c0_75] : memref<256x512xbf16, #tpu.memory_space<vmem>>, vector<256x512xbf16>
      %cst_76 = arith.constant dense<0.000000e+00> : vector<4x512xf32>
      %185 = tpu.matmul %183, %184, %cst_76 {dimension_numbers = #tpu.dot_dimension_numbers<[1], [0], [0], [1], [0, 0, 1, 1], [], []>} : vector<4x256xbf16>, vector<256x512xbf16>, vector<4x512xf32> -> vector<4x512xf32>
      %186 = arith.addf %178, %185 : vector<4x512xf32>
      %187 = vector.extract_strided_slice %186 {offsets = [0, 0], sizes = [4, 128], strides = [1, 1]} : vector<4x512xf32> to vector<4x128xf32>
      %cst_77 = arith.constant 5.000000e-01 : f32
      %188 = vector.broadcast %cst_77 : f32 to vector<4x128xf32>
      %189 = arith.mulf %188, %187 : vector<4x128xf32>
      %190 = math.tanh %189 : vector<4x128xf32>
      %cst_78 = arith.constant 5.000000e-01 : f32
      %191 = vector.broadcast %cst_78 : f32 to vector<4x128xf32>
      %192 = arith.mulf %191, %190 : vector<4x128xf32>
      %cst_79 = arith.constant 5.000000e-01 : f32
      %193 = vector.broadcast %cst_79 : f32 to vector<4x128xf32>
      %194 = arith.addf %192, %193 : vector<4x128xf32>
      %195 = vector.extract_strided_slice %186 {offsets = [0, 128], sizes = [4, 128], strides = [1, 1]} : vector<4x512xf32> to vector<4x128xf32>
      %cst_80 = arith.constant 5.000000e-01 : f32
      %196 = vector.broadcast %cst_80 : f32 to vector<4x128xf32>
      %197 = arith.mulf %196, %195 : vector<4x128xf32>
      %198 = math.tanh %197 : vector<4x128xf32>
      %cst_81 = arith.constant 5.000000e-01 : f32
      %199 = vector.broadcast %cst_81 : f32 to vector<4x128xf32>
      %200 = arith.mulf %199, %198 : vector<4x128xf32>
      %cst_82 = arith.constant 5.000000e-01 : f32
      %201 = vector.broadcast %cst_82 : f32 to vector<4x128xf32>
      %202 = arith.addf %200, %201 : vector<4x128xf32>
      %203 = vector.extract_strided_slice %186 {offsets = [0, 256], sizes = [4, 128], strides = [1, 1]} : vector<4x512xf32> to vector<4x128xf32>
      %204 = math.tanh %203 : vector<4x128xf32>
      %205 = vector.extract_strided_slice %186 {offsets = [0, 384], sizes = [4, 128], strides = [1, 1]} : vector<4x512xf32> to vector<4x128xf32>
      %cst_83 = arith.constant 5.000000e-01 : f32
      %206 = vector.broadcast %cst_83 : f32 to vector<4x128xf32>
      %207 = arith.mulf %206, %205 : vector<4x128xf32>
      %208 = math.tanh %207 : vector<4x128xf32>
      %cst_84 = arith.constant 5.000000e-01 : f32
      %209 = vector.broadcast %cst_84 : f32 to vector<4x128xf32>
      %210 = arith.mulf %209, %208 : vector<4x128xf32>
      %cst_85 = arith.constant 5.000000e-01 : f32
      %211 = vector.broadcast %cst_85 : f32 to vector<4x128xf32>
      %212 = arith.addf %210, %211 : vector<4x128xf32>
      %213 = arith.mulf %202, %171 : vector<4x128xf32>
      %214 = arith.mulf %194, %204 : vector<4x128xf32>
      %215 = arith.addf %213, %214 : vector<4x128xf32>
      %216 = math.tanh %215 : vector<4x128xf32>
      %217 = arith.mulf %212, %216 : vector<4x128xf32>
      %218 = vector.extract_strided_slice %217 {offsets = [0, 0], sizes = [2, 128], strides = [1, 1]} : vector<4x128xf32> to vector<2x128xf32>
      %219 = vector.extract_strided_slice %217 {offsets = [2, 0], sizes = [2, 128], strides = [1, 1]} : vector<4x128xf32> to vector<2x128xf32>
      %220 = tpu.concatenate %86, %130, %174, %218 in 0 : vector<2x128xf32>, vector<2x128xf32>, vector<2x128xf32>, vector<2x128xf32> -> vector<8x128xf32>
      %221 = arith.index_cast %36 : i32 to index
      %c0_86 = arith.constant 0 : index
      %222 = vector.load %arg14[%221, %c0_86] : memref<128x256xf32, #tpu.memory_space<vmem>>, vector<8x128xf32>
      tpu.vector_store %arg14[%221, %c0_86], %220 {strides = array<i32>} : memref<128x256xf32, #tpu.memory_space<vmem>>, vector<8x128xf32>,
      %223 = tpu.concatenate %219, %175, %131, %87 in 0 : vector<2x128xf32>, vector<2x128xf32>, vector<2x128xf32>, vector<2x128xf32> -> vector<8x128xf32>
      %224 = arith.index_cast %39 : i32 to index
      %c128 = arith.constant 128 : index
      %225 = vector.load %arg14[%224, %c128] : memref<128x256xf32, #tpu.memory_space<vmem>>, vector<8x128xf32>
      tpu.vector_store %arg14[%224, %c128], %223 {strides = array<i32>} : memref<128x256xf32, #tpu.memory_space<vmem>>, vector<8x128xf32>,
      scf.yield %217, %215 : vector<4x128xf32>, vector<4x128xf32>
    }
    %c16_i32_23 = arith.constant 16 : i32
    %c120 = arith.constant 120 : index
    %c0_24 = arith.constant 0 : index
    %27 = vector.load %arg14[%c120, %c0_24] : memref<128x256xf32, #tpu.memory_space<vmem>>, vector<8x256xf32>
    %28 = vector.extract_strided_slice %27 {offsets = [6, 0], sizes = [2, 256], strides = [1, 1]} : vector<8x256xf32> to vector<2x256xf32>
    %c0_25 = arith.constant 0 : index
    %c0_26 = arith.constant 0 : index
    %29 = vector.load %arg8[%c0_25, %c0_26] : memref<256x48xf32, #tpu.memory_space<vmem>>, vector<256x48xf32>
    %cst_27 = arith.constant dense<0.000000e+00> : vector<2x48xf32>
    %30 = tpu.matmul %28, %29, %cst_27 {dimension_numbers = #tpu.dot_dimension_numbers<[1], [0], [0], [1], [0, 0, 1, 1], [], []>} : vector<2x256xf32>, vector<256x48xf32>, vector<2x48xf32> -> vector<2x48xf32>
    %c0_28 = arith.constant 0 : index
    %c0_29 = arith.constant 0 : index
    %31 = vector.load %arg9[%c0_28, %c0_29] : memref<1x48xf32, #tpu.memory_space<vmem>>, vector<1x48xf32>
    %32 = vector.broadcast %31 : vector<1x48xf32> to vector<2x48xf32>
    %33 = arith.addf %30, %32 : vector<2x48xf32>
    %c0_30 = arith.constant 0 : index
    %c0_31 = arith.constant 0 : index
    %34 = vector.load %arg10[%c0_30, %c0_31] : memref<2x48xf32, #tpu.memory_space<vmem>>, vector<2x48xf32>
    tpu.vector_store %arg10[%c0_30, %c0_31], %33 {strides = array<i32>} : memref<2x48xf32, #tpu.memory_space<vmem>>, vector<2x48xf32>,
    return
  }
  func.func @transform_0(%arg0: i32) -> (i32, i32) {
    %c0_i32 = arith.constant 0 : i32
    %c0_i32_0 = arith.constant 0 : i32
    %c0_i32_1 = arith.constant 0 : i32
    return %c0_i32, %c0_i32_0 : i32, i32
  }
  func.func @transform_1(%arg0: i32) -> (i32, i32) {
    %c0_i32 = arith.constant 0 : i32
    %c0_i32_0 = arith.constant 0 : i32
    %c0_i32_1 = arith.constant 0 : i32
    return %c0_i32, %c0_i32_0 : i32, i32
  }
  func.func @transform_2(%arg0: i32) -> (i32, i32) {
    %c0_i32 = arith.constant 0 : i32
    %c0_i32_0 = arith.constant 0 : i32
    %c0_i32_1 = arith.constant 0 : i32
    return %c0_i32, %c0_i32_0 : i32, i32
  }
  func.func @transform_3(%arg0: i32) -> (i32, i32) {
    %c0_i32 = arith.constant 0 : i32
    %c0_i32_0 = arith.constant 0 : i32
    %c0_i32_1 = arith.constant 0 : i32
    return %c0_i32, %c0_i32_0 : i32, i32
  }
  func.func @transform_4(%arg0: i32) -> (i32, i32) {
    %c0_i32 = arith.constant 0 : i32
    %c0_i32_0 = arith.constant 0 : i32
    %c0_i32_1 = arith.constant 0 : i32
    return %c0_i32, %c0_i32_0 : i32, i32
  }
  func.func @transform_5(%arg0: i32) -> (i32, i32) {
    %c0_i32 = arith.constant 0 : i32
    %c0_i32_0 = arith.constant 0 : i32
    %c0_i32_1 = arith.constant 0 : i32
    return %c0_i32, %c0_i32_0 : i32, i32
  }
  func.func @transform_6(%arg0: i32) -> (i32, i32) {
    %c0_i32 = arith.constant 0 : i32
    %c0_i32_0 = arith.constant 0 : i32
    %c0_i32_1 = arith.constant 0 : i32
    return %c0_i32, %c0_i32_0 : i32, i32
  }
  func.func @transform_7(%arg0: i32) -> (i32, i32) {
    %c0_i32 = arith.constant 0 : i32
    %c0_i32_0 = arith.constant 0 : i32
    %c0_i32_1 = arith.constant 0 : i32
    return %c0_i32, %c0_i32_0 : i32, i32
  }
  func.func @transform_8(%arg0: i32) -> (i32, i32) {
    %c0_i32 = arith.constant 0 : i32
    %c0_i32_0 = arith.constant 0 : i32
    %c0_i32_1 = arith.constant 0 : i32
    return %c0_i32, %c0_i32_0 : i32, i32
  }
  func.func @transform_9(%arg0: i32) -> (i32, i32) {
    %c0_i32 = arith.constant 0 : i32
    %c0_i32_0 = arith.constant 0 : i32
    %c0_i32_1 = arith.constant 0 : i32
    return %c0_i32, %c0_i32_0 : i32, i32
  }
}

</mosaic_0001>

<bundles_post_ra>
// kernel: cnn_bilstm_forward.2
= control target key start
LH: loop header
LB: loop body
LE: loop exit
PB: predicated region body
PF: predicated region fallthrough
CT: control target
= control target key end

     0   :  { %vm154_vm0 = vcmask 1045504   ;;  %v977_v1 = vmov 0   ;;  %vm141_vm1 = vcmask 97280   ;;  %s1347_s1 = inlined_call_operand.vmem [shape: bf16[12,1280], index: 1, kind: input, shape index: {}]   ;;  %s1348_s0 = inlined_call_operand.vmem [shape: bf16[64,12], index: 0, kind: input, shape index: {}]   ;;  %s1349_s2 = inlined_call_operand.vmem [shape: f32[64,1], index: 2, kind: input, shape index: {}]   ;;  %s1350_s3 = inlined_call_operand.vmem [shape: bf16[64,1280], index: 3, kind: output, shape index: {}]  }
   0x1   :  { %v958_v0 = vld [vmem:[%s1347_s1 + $0x4] ss:$40 sps:$4 sm:$0x3f]   ;;  %217 = vmatprep.mubr.bf16.mxu0 %v977_v1  ;;  %237 = vmatprep.mubr.bf16.mxu1 %v977_v1  ;;  %v960_v2 = vld [vmem:[%s1347_s1] ss:$40 sps:$4 sm:$0x3f]  }
   0x2   :  { %v1009_v3 = vld [vmem:[%s1348_s0] sm:$0xff]   ;;  %956 = vset.pattern.permute.xlu0 %v977_v1  ;;  %957 = vset.pattern.permute.xlu1 %v977_v1  ;;  %v156_v4 = vsel %vm154_vm0, %v960_v2, 0  ;;  %v1019_v5 = vld [vmem:[%s1348_s0 + $0x10] sm:$0xff]   ;;  %v969_v13 = vld [vmem:[%s1348_s0 + $0x8] sm:$0xff]  }
   0x3   :  { %848 = vmatprep.subr.msk.bf16.mxu0 %vm154_vm0, %v958_v0  ;;  %953 = vmatprep.subr.msk.bf16.mxu1 %vm154_vm0, %v958_v0  ;;  %v963_v6 = vld [vmem:[%s1347_s1 + $0xc] ss:$40 sps:$4 sm:$0x3f]   ;;  %v967_v8 = vld [vmem:[%s1347_s1 + $0x8] ss:$40 sps:$4 sm:$0x3f]  }
   0x4   :  { %186 = vmatpush1.bf16.msra.mxu0 %v156_v4  ;;  %954 = vmatpush1.bf16.msra.mxu1 %v156_v4  ;;  %v965_v7 = vld [vmem:[%s1347_s1 + $0x14] ss:$40 sps:$4 sm:$0x3f]   ;;  %v968_v9 = vld [vmem:[%s1347_s1 + $0x10] ss:$40 sps:$4 sm:$0x3f]  }
   0x5   :  { %853 = vmatprep.subr.msk.bf16.mxu1 %vm154_vm0, %v963_v6  ;;  %v162_v10 = vsel %vm154_vm0, %v967_v8, 0  ;;  %858 = vmatprep.subr.msk.bf16.mxu0 %vm154_vm0, %v965_v7  ;;  %v168_v11 = vsel %vm154_vm0, %v968_v9, 0  ;;  %v971_v12 = vld [vmem:[%s1347_s1 + $0x1c] ss:$40 sps:$4 sm:$0x3f]   ;;  %v35_v17 = vld [vmem:[%s1349_s2 + $0x10] sm:$0xff] }
   0x6   :  { %v973_v14 = vld [vmem:[%s1347_s1 + $0x24] ss:$40 sps:$4 sm:$0x3f]   ;;  %v970_v15 = vld [vmem:[%s1348_s0 + $0x18] sm:$0xff]   ;;  %53 = vperm.xlu1 %957, %v35_v17   ;;  %v39_v26 = vld [vmem:[%s1349_s2 + $0x30] sm:$0xff] }
   0x7   :  { %849 = vmatmul.mubr.msk.bf16.vlgmr.msra.gmra.mrb[0].mxu0 %vm141_vm1, %v1009_v3  ;;  %851 = vmatmul.mubr.msk.bf16.vlgmr.msra.gmra.mrb[0].mxu1 %vm141_vm1, %v1019_v5  ;;  %v33_v16 = vld [vmem:[%s1349_s2] sm:$0xff]  ;;  %v34_v18 = vld [vmem:[%s1349_s2 + $0x8] sm:$0xff]  ;;  %v36_v19 = vld [vmem:[%s1349_s2 + $0x18] sm:$0xff] }
   0x8   :  { %259 = vmatpush1.bf16.msra.mxu1 %v162_v10  ;;  %332 = vmatpush1.bf16.msra.mxu0 %v168_v11  ;;  %v975_v20 = vld [vmem:[%s1347_s1 + $0x18] ss:$40 sps:$4 sm:$0x3f]   ;;  %v38_v23 = vld [vmem:[%s1349_s2 + $0x28] sm:$0xff] }
   0x9   :  { %227 = vmatprep.mubr.bf16.mxu0 %v977_v1  ;;  %247 = vmatprep.mubr.bf16.mxu1 %v977_v1  ;;  %v976_v21 = vld [vmem:[%s1347_s1 + $0x20] ss:$40 sps:$4 sm:$0x3f]   ;;  %v174_v24 = vsel %vm154_vm0, %v975_v20, 0  ;;  %v40_v27 = vld [vmem:[%s1349_s2 + $0x38] sm:$0xff] }
   0xa   :  { %863 = vmatprep.subr.msk.bf16.mxu1 %vm154_vm0, %v971_v12  ;;  %868 = vmatprep.subr.msk.bf16.mxu0 %vm154_vm0, %v973_v14  ;;  %v37_v22 = vld [vmem:[%s1349_s2 + $0x20] sm:$0xff]  ;;  %v180_v25 = vsel %vm154_vm0, %v976_v21, 0 }
   0xb   :  { %43 = vperm.xlu0 %956, %v33_v16   ;;  %58 = vperm.xlu1 %957, %v36_v19  }
   0xf   :  { %850 = vmatmul.mubr.msk.bf16.gmra.mrb[4].mxu0 %vm141_vm1, %v969_v13  ;;  %852 = vmatmul.mubr.msk.bf16.gmra.mrb[4].mxu1 %vm141_vm1, %v970_v15 }
  0x10   :  { %290 = vmatprep.mubr.bf16.mxu1 %v977_v1  ;;  %363 = vmatprep.mubr.bf16.mxu0 %v977_v1 }
  0x11   :  { %48 = vperm.xlu0 %956, %v34_v18   ;;  %68 = vperm.xlu1 %957, %v38_v23  }
  0x15   :  { %63 = vperm.xlu0 %956, %v37_v22   ;;  %78 = vperm.xlu1 %957, %v40_v27  }
  0x17   :  { %854 = vmatmul.mubr.msk.bf16.vlgmr.msra.gmra.mrb[8].mxu1 %vm141_vm1, %v1009_v3  ;;  %859 = vmatmul.mubr.msk.bf16.vlgmr.msra.gmra.mrb[8].mxu0 %vm141_vm1, %v1009_v3 }
  0x18   :  { %405 = vmatpush1.bf16.msra.mxu1 %v174_v24  ;;  %478 = vmatpush1.bf16.msra.mxu0 %v180_v25 }
  0x19   :  { %300 = vmatprep.mubr.bf16.mxu1 %v977_v1  ;;  %373 = vmatprep.mubr.bf16.mxu0 %v977_v1 }
  0x1a   :  { %73 = vperm.xlu0 %956, %v39_v26  }
  0x1f   :  { %855 = vmatmul.mubr.msk.bf16.gmra.mrb[12].mxu1 %vm141_vm1, %v969_v13  ;;  %860 = vmatmul.mubr.msk.bf16.gmra.mrb[12].mxu0 %vm141_vm1, %v969_v13 }
  0x20   :  { %310 = vmatprep.mubr.bf16.mxu1 %v977_v1  ;;  %383 = vmatprep.mubr.bf16.mxu0 %v977_v1 }
  0x27   :  { %856 = vmatmul.mubr.msk.bf16.gmra.mrb[16].mxu1 %vm141_vm1, %v1019_v5  ;;  %861 = vmatmul.mubr.msk.bf16.gmra.mrb[16].mxu0 %vm141_vm1, %v1019_v5 }
  0x28   :  { %320 = vmatprep.mubr.bf16.mxu1 %v977_v1  ;;  %393 = vmatprep.mubr.bf16.mxu0 %v977_v1 }
  0x2f   :  { %857 = vmatmul.mubr.msk.bf16.gmra.mrb[20].mxu1 %vm141_vm1, %v970_v15  ;;  %862 = vmatmul.mubr.msk.bf16.gmra.mrb[20].mxu0 %vm141_vm1, %v970_v15 }
  0x30   :  { %436 = vmatprep.mubr.bf16.mxu1 %v977_v1  ;;  %509 = vmatprep.mubr.bf16.mxu0 %v977_v1 }
  0x37   :  { %864 = vmatmul.mubr.msk.bf16.vlgmr.msra.gmra.mrb[24].mxu1 %vm141_vm1, %v1009_v3  ;;  %869 = vmatmul.mubr.msk.bf16.vlgmr.msra.gmra.mrb[24].mxu0 %vm141_vm1, %v1009_v3 }
  0x38   :  { %446 = vmatprep.mubr.bf16.mxu1 %v977_v1  ;;  %519 = vmatprep.mubr.bf16.mxu0 %v977_v1 }
  0x3f   :  { %865 = vmatmul.mubr.msk.bf16.gmra.mrb[28].mxu1 %vm141_vm1, %v969_v13  ;;  %870 = vmatmul.mubr.msk.bf16.gmra.mrb[28].mxu0 %vm141_vm1, %v969_v13 }
  0x40   :  { %456 = vmatprep.mubr.bf16.mxu1 %v977_v1  ;;  %529 = vmatprep.mubr.bf16.mxu0 %v977_v1 }
  0x47   :  { %866 = vmatmul.mubr.msk.bf16.gmra.mrb[32].mxu1 %vm141_vm1, %v1019_v5  ;;  %871 = vmatmul.mubr.msk.bf16.gmra.mrb[32].mxu0 %vm141_vm1, %v1019_v5 }
  0x48   :  { %466 = vmatprep.mubr.bf16.mxu1 %v977_v1  ;;  %539 = vmatprep.mubr.bf16.mxu0 %v977_v1 }
  0x4f   :  { %867 = vmatmul.mubr.msk.bf16.gmra.mrb[36].mxu1 %vm141_vm1, %v970_v15  ;;  %872 = vmatmul.mubr.msk.bf16.gmra.mrb[36].mxu0 %vm141_vm1, %v970_v15 }
  0x85   :  { %v1133_v29 = vpop.permute.xlu1 %53 }
  0x8a   :  { %v1131_v28 = vpop.permute.xlu0 %43  ;;  %v1137_v31 = vpop.permute.xlu1 %58 }
  0x90   :  { %v1135_v30 = vpop.permute.xlu0 %48  ;;  %v1141_v33 = vpop.permute.xlu1 %68 }
  0x94   :  { %v1139_v32 = vpop.permute.xlu0 %63  ;;  %v1159_v55 = vpop.permute.xlu1 %78 }
  0x99   :  { %v1157_v54 = vpop.permute.xlu0 %73 }
  0xda   :  { %v219_v34 = vpop.f32.mrb[0].mxu0  ;;  %v239_v35 = vpop.f32.mrb[0].mxu1 }
  0xdb   :  { %v220_v36 = vadd.f32 %v219_v34, %v1131_v28  ;;  %v221_v37 = vpop.f32.mrb[1].mxu0  ;;  %v240_v38 = vadd.f32 %v239_v35, %v1139_v32  ;;  %v241_v39 = vpop.f32.mrb[1].mxu1 }
  0xdc   :  { %v222_v40 = vadd.f32 %v221_v37, %v1131_v28  ;;  %v242_v41 = vadd.f32 %v241_v39, %v1139_v32  ;;  %v223_v42 = vpop.f32.mrb[2].mxu0  ;;  %v243_v43 = vpop.f32.mrb[2].mxu1 }
  0xdd   :  { %v224_v44 = vadd.f32 %v223_v42, %v1135_v30  ;;  %v244_v45 = vadd.f32 %v243_v43, %v1141_v33  ;;  %v225_v46 = vpop.f32.mrb[3].mxu0  ;;  %v245_v47 = vpop.f32.mrb[3].mxu1 }
  0xde   :  { %v913_v48 = vpack.c.bf16 %v222_v40, %v220_v36  ;;  %v933_v49 = vpack.c.bf16 %v242_v41, %v240_v38  ;;  %v226_v50 = vadd.f32 %v225_v46, %v1135_v30  ;;  %v246_v51 = vadd.f32 %v245_v47, %v1141_v33 }
  0xe0   :  { %790 = vst [vmem:[%s1350_s3] sm:$0xff] %v913_v48  ;;  %810 = vst [vmem:[%s1350_s3 + $0xa0] sm:$0xff] %v933_v49  ;;  %v918_v52 = vpack.c.bf16 %v226_v50, %v224_v44  ;;  %v938_v53 = vpack.c.bf16 %v246_v51, %v244_v45 }
  0xe2   :  { %795 = vst [vmem:[%s1350_s3 + $0x28] sm:$0xff] %v918_v52  ;;  %815 = vst [vmem:[%s1350_s3 + $0xc8] sm:$0xff] %v938_v53  ;;  %v229_v56 = vpop.f32.mrb[4].mxu0  ;;  %v249_v57 = vpop.f32.mrb[4].mxu1 }
  0xe3   :  { %v230_v58 = vadd.f32 %v229_v56, %v1133_v29  ;;  %v231_v59 = vpop.f32.mrb[5].mxu0  ;;  %v250_v60 = vadd.f32 %v249_v57, %v1157_v54  ;;  %v251_v61 = vpop.f32.mrb[5].mxu1 }
  0xe4   :  { %v232_v62 = vadd.f32 %v231_v59, %v1133_v29  ;;  %v252_v63 = vadd.f32 %v251_v61, %v1157_v54  ;;  %v233_v0 = vpop.f32.mrb[6].mxu0  ;;  %v253_v1 = vpop.f32.mrb[6].mxu1 }
  0xe5   :  { %v234_v2 = vadd.f32 %v233_v0, %v1137_v31  ;;  %v254_v3 = vadd.f32 %v253_v1, %v1159_v55  ;;  %v235_v4 = vpop.f32.mrb[7].mxu0  ;;  %v255_v5 = vpop.f32.mrb[7].mxu1 }
  0xe6   :  { %v923_v6 = vpack.c.bf16 %v232_v62, %v230_v58  ;;  %v943_v7 = vpack.c.bf16 %v252_v63, %v250_v60  ;;  %v236_v8 = vadd.f32 %v235_v4, %v1137_v31  ;;  %v256_v9 = vadd.f32 %v255_v5, %v1159_v55 }
  0xe8   :  { %800 = vst [vmem:[%s1350_s3 + $0x50] sm:$0xff] %v923_v6  ;;  %820 = vst [vmem:[%s1350_s3 + $0xf0] sm:$0xff] %v943_v7  ;;  %v928_v10 = vpack.c.bf16 %v236_v8, %v234_v2  ;;  %v948_v11 = vpack.c.bf16 %v256_v9, %v254_v3 }
  0xea   :  { %805 = vst [vmem:[%s1350_s3 + $0x78] sm:$0xff] %v928_v10  ;;  %825 = vst [vmem:[%s1350_s3 + $0x118] sm:$0xff] %v948_v11  ;;  %v292_v12 = vpop.f32.mrb[8].mxu1  ;;  %v365_v13 = vpop.f32.mrb[8].mxu0 }
  0xeb   :  { %v293_v14 = vadd.f32 %v292_v12, %v1131_v28  ;;  %v366_v15 = vadd.f32 %v365_v13, %v1131_v28  ;;  %v294_v16 = vpop.f32.mrb[9].mxu1  ;;  %v367_v17 = vpop.f32.mrb[9].mxu0 }
  0xec   :  { %v295_v18 = vadd.f32 %v294_v16, %v1131_v28  ;;  %v368_v19 = vadd.f32 %v367_v17, %v1131_v28  ;;  %v296_v20 = vpop.f32.mrb[10].mxu1  ;;  %v369_v21 = vpop.f32.mrb[10].mxu0 }
  0xed   :  { %v297_v22 = vadd.f32 %v296_v20, %v1135_v30  ;;  %v370_v23 = vadd.f32 %v369_v21, %v1135_v30  ;;  %v298_v24 = vpop.f32.mrb[11].mxu1  ;;  %v371_v25 = vpop.f32.mrb[11].mxu0 }
  0xee   :  { %v914_v26 = vpack.c.bf16 %v295_v18, %v293_v14  ;;  %v915_v27 = vpack.c.bf16 %v368_v19, %v366_v15  ;;  %v299_v34 = vadd.f32 %v298_v24, %v1135_v30  ;;  %v372_v35 = vadd.f32 %v371_v25, %v1135_v30 }
  0xf0   :  { %791 = vst [vmem:[%s1350_s3 + $0x8] sm:$0xff] %v914_v26  ;;  %792 = vst [vmem:[%s1350_s3 + $0x10] sm:$0xff] %v915_v27  ;;  %v919_v36 = vpack.c.bf16 %v299_v34, %v297_v22  ;;  %v920_v37 = vpack.c.bf16 %v372_v35, %v370_v23 }
  0xf2   :  { %796 = vst [vmem:[%s1350_s3 + $0x30] sm:$0xff] %v919_v36  ;;  %797 = vst [vmem:[%s1350_s3 + $0x38] sm:$0xff] %v920_v37  ;;  %v302_v38 = vpop.f32.mrb[12].mxu1  ;;  %v375_v39 = vpop.f32.mrb[12].mxu0 }
  0xf3   :  { %v303_v40 = vadd.f32 %v302_v38, %v1133_v29  ;;  %v376_v41 = vadd.f32 %v375_v39, %v1133_v29  ;;  %v304_v42 = vpop.f32.mrb[13].mxu1  ;;  %v377_v43 = vpop.f32.mrb[13].mxu0 }
  0xf4   :  { %v305_v44 = vadd.f32 %v304_v42, %v1133_v29  ;;  %v378_v45 = vadd.f32 %v377_v43, %v1133_v29  ;;  %v306_v46 = vpop.f32.mrb[14].mxu1  ;;  %v379_v47 = vpop.f32.mrb[14].mxu0 }
  0xf5   :  { %v307_v48 = vadd.f32 %v306_v46, %v1137_v31  ;;  %v380_v49 = vadd.f32 %v379_v47, %v1137_v31  ;;  %v308_v50 = vpop.f32.mrb[15].mxu1  ;;  %v381_v51 = vpop.f32.mrb[15].mxu0 }
  0xf6   :  { %v924_v52 = vpack.c.bf16 %v305_v44, %v303_v40  ;;  %v925_v53 = vpack.c.bf16 %v378_v45, %v376_v41  ;;  %v309_v56 = vadd.f32 %v308_v50, %v1137_v31  ;;  %v382_v57 = vadd.f32 %v381_v51, %v1137_v31 }
  0xf8   :  { %801 = vst [vmem:[%s1350_s3 + $0x58] sm:$0xff] %v924_v52  ;;  %802 = vst [vmem:[%s1350_s3 + $0x60] sm:$0xff] %v925_v53  ;;  %v929_v58 = vpack.c.bf16 %v309_v56, %v307_v48  ;;  %v930_v59 = vpack.c.bf16 %v382_v57, %v380_v49 }
  0xfa   :  { %806 = vst [vmem:[%s1350_s3 + $0x80] sm:$0xff] %v929_v58  ;;  %807 = vst [vmem:[%s1350_s3 + $0x88] sm:$0xff] %v930_v59  ;;  %v312_v60 = vpop.f32.mrb[16].mxu1  ;;  %v385_v61 = vpop.f32.mrb[16].mxu0 }
  0xfb   :  { %v313_v62 = vadd.f32 %v312_v60, %v1139_v32  ;;  %v386_v63 = vadd.f32 %v385_v61, %v1139_v32  ;;  %v314_v0 = vpop.f32.mrb[17].mxu1  ;;  %v387_v1 = vpop.f32.mrb[17].mxu0 }
  0xfc   :  { %v315_v2 = vadd.f32 %v314_v0, %v1139_v32  ;;  %v388_v3 = vadd.f32 %v387_v1, %v1139_v32  ;;  %v316_v4 = vpop.f32.mrb[18].mxu1  ;;  %v389_v5 = vpop.f32.mrb[18].mxu0 }
  0xfd   :  { %v317_v6 = vadd.f32 %v316_v4, %v1141_v33  ;;  %v390_v7 = vadd.f32 %v389_v5, %v1141_v33  ;;  %v318_v8 = vpop.f32.mrb[19].mxu1  ;;  %v391_v9 = vpop.f32.mrb[19].mxu0 }
  0xfe   :  { %v934_v10 = vpack.c.bf16 %v315_v2, %v313_v62  ;;  %v935_v11 = vpack.c.bf16 %v388_v3, %v386_v63  ;;  %v319_v12 = vadd.f32 %v318_v8, %v1141_v33  ;;  %v392_v13 = vadd.f32 %v391_v9, %v1141_v33 }
 0x100   :  { %811 = vst [vmem:[%s1350_s3 + $0xa8] sm:$0xff] %v934_v10  ;;  %812 = vst [vmem:[%s1350_s3 + $0xb0] sm:$0xff] %v935_v11  ;;  %v939_v14 = vpack.c.bf16 %v319_v12, %v317_v6  ;;  %v940_v15 = vpack.c.bf16 %v392_v13, %v390_v7 }
 0x102   :  { %816 = vst [vmem:[%s1350_s3 + $0xd0] sm:$0xff] %v939_v14  ;;  %817 = vst [vmem:[%s1350_s3 + $0xd8] sm:$0xff] %v940_v15  ;;  %v322_v16 = vpop.f32.mrb[20].mxu1  ;;  %v395_v17 = vpop.f32.mrb[20].mxu0 }
 0x103   :  { %v323_v18 = vadd.f32 %v322_v16, %v1157_v54  ;;  %v396_v19 = vadd.f32 %v395_v17, %v1157_v54  ;;  %v324_v20 = vpop.f32.mrb[21].mxu1  ;;  %v397_v21 = vpop.f32.mrb[21].mxu0 }
 0x104   :  { %v325_v22 = vadd.f32 %v324_v20, %v1157_v54  ;;  %v398_v23 = vadd.f32 %v397_v21, %v1157_v54  ;;  %v326_v24 = vpop.f32.mrb[22].mxu1  ;;  %v399_v25 = vpop.f32.mrb[22].mxu0 }
 0x105   :  { %v327_v26 = vadd.f32 %v326_v24, %v1159_v55  ;;  %v400_v27 = vadd.f32 %v399_v25, %v1159_v55  ;;  %v328_v34 = vpop.f32.mrb[23].mxu1  ;;  %v401_v35 = vpop.f32.mrb[23].mxu0 }
 0x106   :  { %v944_v36 = vpack.c.bf16 %v325_v22, %v323_v18  ;;  %v945_v37 = vpack.c.bf16 %v398_v23, %v396_v19  ;;  %v329_v38 = vadd.f32 %v328_v34, %v1159_v55  ;;  %v402_v39 = vadd.f32 %v401_v35, %v1159_v55 }
 0x108   :  { %821 = vst [vmem:[%s1350_s3 + $0xf8] sm:$0xff] %v944_v36  ;;  %822 = vst [vmem:[%s1350_s3 + $0x100] sm:$0xff] %v945_v37  ;;  %v949_v40 = vpack.c.bf16 %v329_v38, %v327_v26  ;;  %v950_v41 = vpack.c.bf16 %v402_v39, %v400_v27 }
 0x10a   :  { %826 = vst [vmem:[%s1350_s3 + $0x120] sm:$0xff] %v949_v40  ;;  %827 = vst [vmem:[%s1350_s3 + $0x128] sm:$0xff] %v950_v41  ;;  %v438_v42 = vpop.f32.mrb[24].mxu1  ;;  %v511_v43 = vpop.f32.mrb[24].mxu0 }
 0x10b   :  { %v439_v44 = vadd.f32 %v438_v42, %v1131_v28  ;;  %v512_v45 = vadd.f32 %v511_v43, %v1131_v28  ;;  %v440_v46 = vpop.f32.mrb[25].mxu1  ;;  %v513_v47 = vpop.f32.mrb[25].mxu0 }
 0x10c   :  { %v441_v48 = vadd.f32 %v440_v46, %v1131_v28  ;;  %v514_v49 = vadd.f32 %v513_v47, %v1131_v28  ;;  %v442_v50 = vpop.f32.mrb[26].mxu1  ;;  %v515_v51 = vpop.f32.mrb[26].mxu0 }
 0x10d   :  { %v443_v52 = vadd.f32 %v442_v50, %v1135_v30  ;;  %v516_v53 = vadd.f32 %v515_v51, %v1135_v30  ;;  %v444_v56 = vpop.f32.mrb[27].mxu1  ;;  %v517_v57 = vpop.f32.mrb[27].mxu0 }
 0x10e   :  { %v916_v58 = vpack.c.bf16 %v441_v48, %v439_v44  ;;  %v917_v59 = vpack.c.bf16 %v514_v49, %v512_v45  ;;  %v445_v60 = vadd.f32 %v444_v56, %v1135_v30  ;;  %v518_v61 = vadd.f32 %v517_v57, %v1135_v30 }
 0x110   :  { %793 = vst [vmem:[%s1350_s3 + $0x18] sm:$0xff] %v916_v58  ;;  %794 = vst [vmem:[%s1350_s3 + $0x20] sm:$0xff] %v917_v59  ;;  %v921_v28 = vpack.c.bf16 %v445_v60, %v443_v52  ;;  %v922_v62 = vpack.c.bf16 %v518_v61, %v516_v53 }
 0x112   :  { %798 = vst [vmem:[%s1350_s3 + $0x40] sm:$0xff] %v921_v28  ;;  %799 = vst [vmem:[%s1350_s3 + $0x48] sm:$0xff] %v922_v62  ;;  %v448_v63 = vpop.f32.mrb[28].mxu1  ;;  %v521_v30 = vpop.f32.mrb[28].mxu0 }
 0x113   :  { %v449_v0 = vadd.f32 %v448_v63, %v1133_v29  ;;  %v522_v1 = vadd.f32 %v521_v30, %v1133_v29  ;;  %v450_v2 = vpop.f32.mrb[29].mxu1  ;;  %v523_v3 = vpop.f32.mrb[29].mxu0 }
 0x114   :  { %v451_v4 = vadd.f32 %v450_v2, %v1133_v29  ;;  %v524_v5 = vadd.f32 %v523_v3, %v1133_v29  ;;  %v452_v6 = vpop.f32.mrb[30].mxu1  ;;  %v525_v7 = vpop.f32.mrb[30].mxu0 }
 0x115   :  { %v453_v8 = vadd.f32 %v452_v6, %v1137_v31  ;;  %v526_v9 = vadd.f32 %v525_v7, %v1137_v31  ;;  %v454_v10 = vpop.f32.mrb[31].mxu1  ;;  %v527_v11 = vpop.f32.mrb[31].mxu0 }
 0x116   :  { %v926_v12 = vpack.c.bf16 %v451_v4, %v449_v0  ;;  %v927_v13 = vpack.c.bf16 %v524_v5, %v522_v1  ;;  %v455_v14 = vadd.f32 %v454_v10, %v1137_v31  ;;  %v528_v15 = vadd.f32 %v527_v11, %v1137_v31 }
 0x118   :  { %803 = vst [vmem:[%s1350_s3 + $0x68] sm:$0xff] %v926_v12  ;;  %804 = vst [vmem:[%s1350_s3 + $0x70] sm:$0xff] %v927_v13  ;;  %v931_v29 = vpack.c.bf16 %v455_v14, %v453_v8  ;;  %v932_v16 = vpack.c.bf16 %v528_v15, %v526_v9 }
 0x11a   :  { %808 = vst [vmem:[%s1350_s3 + $0x90] sm:$0xff] %v931_v29  ;;  %809 = vst [vmem:[%s1350_s3 + $0x98] sm:$0xff] %v932_v16  ;;  %v458_v17 = vpop.f32.mrb[32].mxu1  ;;  %v531_v31 = vpop.f32.mrb[32].mxu0 }
 0x11b   :  { %v459_v18 = vadd.f32 %v458_v17, %v1139_v32  ;;  %v532_v19 = vadd.f32 %v531_v31, %v1139_v32  ;;  %v460_v20 = vpop.f32.mrb[33].mxu1  ;;  %v533_v21 = vpop.f32.mrb[33].mxu0 }
 0x11c   :  { %v461_v22 = vadd.f32 %v460_v20, %v1139_v32  ;;  %v534_v23 = vadd.f32 %v533_v21, %v1139_v32  ;;  %v462_v24 = vpop.f32.mrb[34].mxu1  ;;  %v535_v25 = vpop.f32.mrb[34].mxu0 }
 0x11d   :  { %v463_v26 = vadd.f32 %v462_v24, %v1141_v33  ;;  %v536_v27 = vadd.f32 %v535_v25, %v1141_v33  ;;  %v464_v34 = vpop.f32.mrb[35].mxu1  ;;  %v537_v35 = vpop.f32.mrb[35].mxu0 }
 0x11e   :  { %v936_v36 = vpack.c.bf16 %v461_v22, %v459_v18  ;;  %v937_v37 = vpack.c.bf16 %v534_v23, %v532_v19  ;;  %v465_v38 = vadd.f32 %v464_v34, %v1141_v33  ;;  %v538_v39 = vadd.f32 %v537_v35, %v1141_v33 }
 0x120   :  { %813 = vst [vmem:[%s1350_s3 + $0xb8] sm:$0xff] %v936_v36  ;;  %814 = vst [vmem:[%s1350_s3 + $0xc0] sm:$0xff] %v937_v37  ;;  %v941_v32 = vpack.c.bf16 %v465_v38, %v463_v26  ;;  %v942_v40 = vpack.c.bf16 %v538_v39, %v536_v27 }
 0x122   :  { %818 = vst [vmem:[%s1350_s3 + $0xe0] sm:$0xff] %v941_v32  ;;  %819 = vst [vmem:[%s1350_s3 + $0xe8] sm:$0xff] %v942_v40  ;;  %v468_v41 = vpop.f32.mrb[36].mxu1  ;;  %v541_v33 = vpop.f32.mrb[36].mxu0 }
 0x123   :  { %v469_v42 = vadd.f32 %v468_v41, %v1157_v54  ;;  %v542_v43 = vadd.f32 %v541_v33, %v1157_v54  ;;  %v470_v44 = vpop.f32.mrb[37].mxu1  ;;  %v543_v45 = vpop.f32.mrb[37].mxu0 }
 0x124   :  { %v471_v46 = vadd.f32 %v470_v44, %v1157_v54  ;;  %v544_v47 = vadd.f32 %v543_v45, %v1157_v54  ;;  %v472_v48 = vpop.f32.mrb[38].mxu1  ;;  %v545_v49 = vpop.f32.mrb[38].mxu0 }
 0x125   :  { %v473_v50 = vadd.f32 %v472_v48, %v1159_v55  ;;  %v546_v51 = vadd.f32 %v545_v49, %v1159_v55  ;;  %v474_v52 = vpop.f32.mrb[39].mxu1  ;;  %v547_v53 = vpop.f32.mrb[39].mxu0 }
 0x126   :  { %v946_v56 = vpack.c.bf16 %v471_v46, %v469_v42  ;;  %v947_v57 = vpack.c.bf16 %v544_v47, %v542_v43  ;;  %v475_v58 = vadd.f32 %v474_v52, %v1159_v55  ;;  %v548_v59 = vadd.f32 %v547_v53, %v1159_v55 }
 0x128   :  { %823 = vst [vmem:[%s1350_s3 + $0x108] sm:$0xff] %v946_v56  ;;  %824 = vst [vmem:[%s1350_s3 + $0x110] sm:$0xff] %v947_v57  ;;  %v951_v54 = vpack.c.bf16 %v475_v58, %v473_v50  ;;  %v952_v60 = vpack.c.bf16 %v548_v59, %v546_v51 }
 0x12a   :  { %828 = vst [vmem:[%s1350_s3 + $0x130] sm:$0xff] %v951_v54  ;;  %829 = vst [vmem:[%s1350_s3 + $0x138] sm:$0xff] %v952_v60 }

// kernel: cnn_bilstm_forward.3
= control target key start
LH: loop header
LB: loop body
LE: loop exit
PB: predicated region body
PF: predicated region fallthrough
CT: control target
= control target key end

     0   :  { %14 = vsyncpa [#allocation7], 0  ;;  %vm2372_vm0 = vcmask 261120   ;;  %s12908_s0 = inlined_call_operand.vmem [shape: bf16[128,672], index: 0, kind: input, shape index: {}]   ;;  %s12909_s1 = inlined_call_operand.vmem [shape: bf16[672,1024], index: 1, kind: input, shape index: {}]   ;;  %s12910_s2 = inlined_call_operand.vmem [shape: f32[1,1024], index: 2, kind: input, shape index: {}]   ;;  %s12911_s3 = inlined_call_operand.vmem [shape: bf16[256,512], index: 3, kind: input, shape index: {}]   ;;  %s12912_s4 = inlined_call_operand.vmem [shape: bf16[256,1024], index: 4, kind: input, shape index: {}]   ;;  %s12913_s5 = inlined_call_operand.vmem [shape: f32[1,1024], index: 5, kind: input, shape index: {}]   ;;  %s12914_s6 = inlined_call_operand.vmem [shape: bf16[256,512], index: 6, kind: input, shape index: {}]   ;;  %s12915_s7 = inlined_call_operand.vmem [shape: f32[256,48], index: 7, kind: input, shape index: {}]   ;;  %s12916_s8 = inlined_call_operand.vmem [shape: f32[1,48], index: 8, kind: input, shape index: {}]   ;;  %s12917_s9 = inlined_call_operand.hbm [shape: f32[2,48], index: 9, kind: output, shape index: {}]  }
   0x1   :  { %v82_v0 = vld [vmem:[%s12909_s1] sm:$0xff]  ;;  %v83_v3 = vld [vmem:[%s12909_s1 + $0x8] sm:$0xff] }
   0x2   :  { %v86_v1 = vld [vmem:[%s12909_s1 + $0x20] sm:$0xff]  ;;  %v87_v4 = vld [vmem:[%s12909_s1 + $0x28] sm:$0xff] }
   0x3   :  { %v7434_v2 = vcombine.high %v82_v0, %v86_v1  ;;  %v7433_v5 = vcombine.low %v82_v0, %v86_v1  ;;  %v90_v6 = vld [vmem:[%s12909_s1 + $0x40] sm:$0xff]  ;;  %v7436_v7 = vcombine.high %v83_v3, %v87_v4  ;;  %v7435_v8 = vcombine.low %v83_v3, %v87_v4  ;;  %v91_v10 = vld [vmem:[%s12909_s1 + $0x48] sm:$0xff] }
   0x4   :  { %v94_v9 = vld [vmem:[%s12909_s1 + $0x60] sm:$0xff]  ;;  %v95_v11 = vld [vmem:[%s12909_s1 + $0x68] sm:$0xff] }
   0x5   :  { %2397 = vmatprep.subr.bf16.mxu0 %v7434_v2  ;;  %v7442_v12 = vcombine.high %v90_v6, %v94_v9  ;;  %v7444_v13 = vcombine.high %v91_v10, %v95_v11  ;;  %v98_v14 = vld [vmem:[%s12909_s1 + $0x80] sm:$0xff]  ;;  %v99_v16 = vld [vmem:[%s12909_s1 + $0x88] sm:$0xff]  ;;  %2736 = vmatprep.subr.bf16.mxu1 %v7436_v7  ;;  %v7441_v17 = vcombine.low %v90_v6, %v94_v9 }
   0x6   :  { %v102_v15 = vld [vmem:[%s12909_s1 + $0xa0] sm:$0xff]  ;;  %2398 = vmatpush1.bf16.msra.mxu0 %v7433_v5  ;;  %v103_v18 = vld [vmem:[%s12909_s1 + $0xa8] sm:$0xff]  ;;  %2737 = vmatpush1.bf16.msra.mxu1 %v7435_v8  ;;  %v7443_v19 = vcombine.low %v91_v10, %v95_v11 }
   0x7   :  { %2399 = vmatprep.subr.bf16.mxu0 %v7442_v12  ;;  %v7450_v20 = vcombine.high %v98_v14, %v102_v15  ;;  %2738 = vmatprep.subr.bf16.mxu1 %v7444_v13  ;;  %v7452_v21 = vcombine.high %v99_v16, %v103_v18  ;;  %v106_v22 = vld [vmem:[%s12909_s1 + $0xc0] sm:$0xff]  ;;  %v107_v24 = vld [vmem:[%s12909_s1 + $0xc8] sm:$0xff]  ;;  %v7449_v26 = vcombine.low %v98_v14, %v102_v15 }
   0x8   :  { %v110_v23 = vld [vmem:[%s12909_s1 + $0xe0] sm:$0xff]  ;;  %v111_v25 = vld [vmem:[%s12909_s1 + $0xe8] sm:$0xff]  ;;  %v7451_v27 = vcombine.low %v99_v16, %v103_v18 }
   0x9   :  { %v7458_v28 = vcombine.high %v106_v22, %v110_v23  ;;  %v7460_v29 = vcombine.high %v107_v24, %v111_v25  ;;  %v114_v30 = vld [vmem:[%s12909_s1 + $0x100] sm:$0xff]  ;;  %v115_v32 = vld [vmem:[%s12909_s1 + $0x108] sm:$0xff]  ;;  %v7457_v34 = vcombine.low %v106_v22, %v110_v23  ;;  %v7459_v35 = vcombine.low %v107_v24, %v111_v25 }
   0xa   :  { %2400 = vmatpush1.bf16.msra.mxu0 %v7441_v17  ;;  %2739 = vmatpush1.bf16.msra.mxu1 %v7443_v19  ;;  %v118_v31 = vld [vmem:[%s12909_s1 + $0x120] sm:$0xff]  ;;  %v119_v33 = vld [vmem:[%s12909_s1 + $0x128] sm:$0xff] }
   0xb   :  { %2401 = vmatprep.subr.bf16.mxu0 %v7450_v20  ;;  %2740 = vmatprep.subr.bf16.mxu1 %v7452_v21  ;;  %v7466_v36 = vcombine.high %v114_v30, %v118_v31  ;;  %v7468_v37 = vcombine.high %v115_v32, %v119_v33  ;;  %v122_v38 = vld [vmem:[%s12909_s1 + $0x140] sm:$0xff]  ;;  %v123_v40 = vld [vmem:[%s12909_s1 + $0x148] sm:$0xff]  ;;  %v7465_v42 = vcombine.low %v114_v30, %v118_v31 }
   0xc   :  { %v126_v39 = vld [vmem:[%s12909_s1 + $0x160] sm:$0xff]  ;;  %v127_v41 = vld [vmem:[%s12909_s1 + $0x168] sm:$0xff]  ;;  %v7467_v43 = vcombine.low %v115_v32, %v119_v33 }
   0xd   :  { %v7474_v44 = vcombine.high %v122_v38, %v126_v39  ;;  %v7476_v45 = vcombine.high %v123_v40, %v127_v41  ;;  %v130_v46 = vld [vmem:[%s12909_s1 + $0x180] sm:$0xff]  ;;  %v131_v48 = vld [vmem:[%s12909_s1 + $0x188] sm:$0xff]  ;;  %v7473_v50 = vcombine.low %v122_v38, %v126_v39  ;;  %v7475_v51 = vcombine.low %v123_v40, %v127_v41 }
   0xe   :  { %2402 = vmatpush1.bf16.msra.mxu0 %v7449_v26  ;;  %2741 = vmatpush1.bf16.msra.mxu1 %v7451_v27  ;;  %v134_v47 = vld [vmem:[%s12909_s1 + $0x1a0] sm:$0xff]  ;;  %v135_v49 = vld [vmem:[%s12909_s1 + $0x1a8] sm:$0xff] }
   0xf   :  { %2403 = vmatprep.subr.bf16.mxu0 %v7458_v28  ;;  %2742 = vmatprep.subr.bf16.mxu1 %v7460_v29  ;;  %v7482_v52 = vcombine.high %v130_v46, %v134_v47  ;;  %v138_v53 = vld [vmem:[%s12909_s1 + $0x1c0] sm:$0xff]  ;;  %v7484_v54 = vcombine.high %v131_v48, %v135_v49  ;;  %v139_v57 = vld [vmem:[%s12909_s1 + $0x1c8] sm:$0xff]  ;;  %v7481_v59 = vcombine.low %v130_v46, %v134_v47 }
  0x10   :  { %v142_v55 = vld [vmem:[%s12909_s1 + $0x1e0] sm:$0xff]  ;;  %v143_v58 = vld [vmem:[%s12909_s1 + $0x1e8] sm:$0xff]  ;;  %v7483_v60 = vcombine.low %v131_v48, %v135_v49 }
  0x11   :  { %v8634_v56 = vld [vmem:[%s12908_s0 + $0x4] ss:$24 sps:$4 sm:$0xff]   ;;  %v7490_v61 = vcombine.high %v138_v53, %v142_v55  ;;  %v7492_v62 = vcombine.high %v139_v57, %v143_v58  ;;  %v147_v1 = vld [vmem:[%s12909_s1 + $0x208] sm:$0xff]  ;;  %v7489_v3 = vcombine.low %v138_v53, %v142_v55  ;;  %v7491_v4 = vcombine.low %v139_v57, %v143_v58 }
  0x12   :  { %2404 = vmatpush1.bf16.msra.mxu0 %v7457_v34  ;;  %2743 = vmatpush1.bf16.msra.mxu1 %v7459_v35  ;;  %v146_v63 = vld [vmem:[%s12909_s1 + $0x200] sm:$0xff]  ;;  %v151_v2 = vld [vmem:[%s12909_s1 + $0x228] sm:$0xff] }
  0x13   :  { %2405 = vmatprep.subr.bf16.mxu0 %v7466_v36  ;;  %2744 = vmatprep.subr.bf16.mxu1 %v7468_v37  ;;  %v150_v0 = vld [vmem:[%s12909_s1 + $0x220] sm:$0xff]  ;;  %v7500_v6 = vcombine.high %v147_v1, %v151_v2  ;;  %v155_v9 = vld [vmem:[%s12909_s1 + $0x248] sm:$0xff]  ;;  %v7499_v12 = vcombine.low %v147_v1, %v151_v2 }
  0x14   :  { %2429 = vmatprep.mubr.bf16.mxu0 %v8634_v56  ;;  %2768 = vmatprep.mubr.bf16.mxu1 %v8634_v56  ;;  %v7498_v5 = vcombine.high %v146_v63, %v150_v0  ;;  %v154_v7 = vld [vmem:[%s12909_s1 + $0x240] sm:$0xff]  ;;  %v159_v10 = vld [vmem:[%s12909_s1 + $0x268] sm:$0xff]  ;;  %v7497_v11 = vcombine.low %v146_v63, %v150_v0 }
  0x15   :  { %v158_v8 = vld [vmem:[%s12909_s1 + $0x260] sm:$0xff]  ;;  %v7508_v14 = vcombine.high %v155_v9, %v159_v10  ;;  %v163_v17 = vld [vmem:[%s12909_s1 + $0x288] sm:$0xff]  ;;  %v7507_v20 = vcombine.low %v155_v9, %v159_v10 }
  0x16   :  { %2406 = vmatpush1.bf16.msra.mxu0 %v7465_v42  ;;  %2745 = vmatpush1.bf16.msra.mxu1 %v7467_v43  ;;  %v7506_v13 = vcombine.high %v154_v7, %v158_v8  ;;  %v162_v15 = vld [vmem:[%s12909_s1 + $0x280] sm:$0xff]  ;;  %v167_v18 = vld [vmem:[%s12909_s1 + $0x2a8] sm:$0xff]  ;;  %v7505_v19 = vcombine.low %v154_v7, %v158_v8 }
  0x17   :  { %2407 = vmatprep.subr.bf16.mxu0 %v7474_v44  ;;  %2746 = vmatprep.subr.bf16.mxu1 %v7476_v45  ;;  %v166_v16 = vld [vmem:[%s12909_s1 + $0x2a0] sm:$0xff]  ;;  %v7516_v22 = vcombine.high %v163_v17, %v167_v18  ;;  %v171_v25 = vld [vmem:[%s12909_s1 + $0x2c8] sm:$0xff]  ;;  %v7515_v28 = vcombine.low %v163_v17, %v167_v18 }
  0x18   :  { %v7514_v21 = vcombine.high %v162_v15, %v166_v16  ;;  %v170_v23 = vld [vmem:[%s12909_s1 + $0x2c0] sm:$0xff]  ;;  %v175_v26 = vld [vmem:[%s12909_s1 + $0x2e8] sm:$0xff]  ;;  %v7513_v27 = vcombine.low %v162_v15, %v166_v16 }
  0x19   :  { %v174_v24 = vld [vmem:[%s12909_s1 + $0x2e0] sm:$0xff]  ;;  %v7524_v30 = vcombine.high %v171_v25, %v175_v26  ;;  %v179_v33 = vld [vmem:[%s12909_s1 + $0x308] sm:$0xff]  ;;  %v7523_v36 = vcombine.low %v171_v25, %v175_v26 }
  0x1a   :  { %2408 = vmatpush1.bf16.msra.mxu0 %v7473_v50  ;;  %2747 = vmatpush1.bf16.msra.mxu1 %v7475_v51  ;;  %v7522_v29 = vcombine.high %v170_v23, %v174_v24  ;;  %v178_v31 = vld [vmem:[%s12909_s1 + $0x300] sm:$0xff]  ;;  %v183_v34 = vld [vmem:[%s12909_s1 + $0x328] sm:$0xff]  ;;  %v7521_v35 = vcombine.low %v170_v23, %v174_v24 }
  0x1b   :  { %2409 = vmatprep.subr.bf16.mxu0 %v7482_v52  ;;  %2748 = vmatprep.subr.bf16.mxu1 %v7484_v54  ;;  %v182_v32 = vld [vmem:[%s12909_s1 + $0x320] sm:$0xff]  ;;  %v7532_v38 = vcombine.high %v179_v33, %v183_v34  ;;  %v187_v41 = vld [vmem:[%s12909_s1 + $0x348] sm:$0xff]  ;;  %v7531_v44 = vcombine.low %v179_v33, %v183_v34 }
  0x1c   :  { %v7530_v37 = vcombine.high %v178_v31, %v182_v32  ;;  %v186_v39 = vld [vmem:[%s12909_s1 + $0x340] sm:$0xff]  ;;  %v191_v42 = vld [vmem:[%s12909_s1 + $0x368] sm:$0xff]  ;;  %v7529_v43 = vcombine.low %v178_v31, %v182_v32 }
  0x1d   :  { %v190_v40 = vld [vmem:[%s12909_s1 + $0x360] sm:$0xff]  ;;  %v7540_v46 = vcombine.high %v187_v41, %v191_v42  ;;  %v195_v49 = vld [vmem:[%s12909_s1 + $0x388] sm:$0xff]  ;;  %v7539_v52 = vcombine.low %v187_v41, %v191_v42 }
  0x1e   :  { %2410 = vmatpush1.bf16.msra.mxu0 %v7481_v59  ;;  %2749 = vmatpush1.bf16.msra.mxu1 %v7483_v60  ;;  %v7538_v45 = vcombine.high %v186_v39, %v190_v40  ;;  %v194_v47 = vld [vmem:[%s12909_s1 + $0x380] sm:$0xff]  ;;  %v199_v50 = vld [vmem:[%s12909_s1 + $0x3a8] sm:$0xff]  ;;  %v7537_v51 = vcombine.low %v186_v39, %v190_v40 }
  0x1f   :  { %2411 = vmatprep.subr.bf16.mxu0 %v7490_v61  ;;  %2750 = vmatprep.subr.bf16.mxu1 %v7492_v62  ;;  %v198_v48 = vld [vmem:[%s12909_s1 + $0x3a0] sm:$0xff]  ;;  %v7548_v54 = vcombine.high %v195_v49, %v199_v50  ;;  %v203_v57 = vld [vmem:[%s12909_s1 + $0x3c8] sm:$0xff]  ;;  %v7547_v60 = vcombine.low %v195_v49, %v199_v50 }
  0x20   :  { %v7546_v53 = vcombine.high %v194_v47, %v198_v48  ;;  %v202_v55 = vld [vmem:[%s12909_s1 + $0x3c0] sm:$0xff]  ;;  %v207_v58 = vld [vmem:[%s12909_s1 + $0x3e8] sm:$0xff]  ;;  %v7545_v59 = vcombine.low %v194_v47, %v198_v48 }
  0x21   :  { %v206_v56 = vld [vmem:[%s12909_s1 + $0x3e0] sm:$0xff]  ;;  %v7556_v62 = vcombine.high %v203_v57, %v207_v58  ;;  %v211_v1 = vld [vmem:[%s12909_s1 + $0x408] sm:$0xff] }
  0x22   :  { %2412 = vmatpush1.bf16.msra.mxu0 %v7489_v3  ;;  %2751 = vmatpush1.bf16.msra.mxu1 %v7491_v4  ;;  %v7554_v61 = vcombine.high %v202_v55, %v206_v56  ;;  %v210_v63 = vld [vmem:[%s12909_s1 + $0x400] sm:$0xff]  ;;  %v215_v2 = vld [vmem:[%s12909_s1 + $0x428] sm:$0xff]  ;;  %v7553_v3 = vcombine.low %v202_v55, %v206_v56  ;;  %v7555_v4 = vcombine.low %v203_v57, %v207_v58 }
  0x23   :  { %2413 = vmatprep.subr.bf16.mxu0 %v7498_v5  ;;  %2752 = vmatprep.subr.bf16.mxu1 %v7500_v6  ;;  %v214_v0 = vld [vmem:[%s12909_s1 + $0x420] sm:$0xff]  ;;  %v7564_v7 = vcombine.high %v211_v1, %v215_v2  ;;  %v219_v10 = vld [vmem:[%s12909_s1 + $0x448] sm:$0xff] }
  0x24   :  { %v8636_v5 = vld [vmem:[%s12908_s0] ss:$24 sps:$4 sm:$0xff]   ;;  %v7562_v6 = vcombine.high %v210_v63, %v214_v0  ;;  %v8637_v15 = vld [vmem:[%s12908_s0 + $0x34] ss:$24 sps:$4 sm:$0xff]   ;;  %v8640_v33 = vld [vmem:[%s12908_s0 + $0x64] ss:$24 sps:$4 sm:$0xff]  }
  0x25   :  { %v218_v8 = vld [vmem:[%s12909_s1 + $0x440] sm:$0xff]  ;;  %v255_v47 = vld [vmem:[%s12909_s1 + $0x568] sm:$0xff] }
  0x26   :  { %2414 = vmatpush1.bf16.msra.mxu0 %v7497_v11  ;;  %2753 = vmatpush1.bf16.msra.mxu1 %v7499_v12  ;;  %v222_v9 = vld [vmem:[%s12909_s1 + $0x460] sm:$0xff]  ;;  %v223_v11 = vld [vmem:[%s12909_s1 + $0x468] sm:$0xff]  ;;  %v7561_v12 = vcombine.low %v210_v63, %v214_v0 }
  0x27   :  { %2415 = vmatprep.subr.bf16.mxu0 %v7506_v13  ;;  %2754 = vmatprep.subr.bf16.mxu1 %v7508_v14  ;;  %v7563_v13 = vcombine.low %v211_v1, %v215_v2  ;;  %v7570_v14 = vcombine.high %v218_v8, %v222_v9  ;;  %v7572_v16 = vcombine.high %v219_v10, %v223_v11  ;;  %v226_v17 = vld [vmem:[%s12909_s1 + $0x480] sm:$0xff]  ;;  %v259_v55 = vld [vmem:[%s12909_s1 + $0x588] sm:$0xff] }
  0x28   :  { %v230_v18 = vld [vmem:[%s12909_s1 + $0x4a0] sm:$0xff]  ;;  %v263_v56 = vld [vmem:[%s12909_s1 + $0x5a8] sm:$0xff] }
  0x29   :  { %v7578_v23 = vcombine.high %v226_v17, %v230_v18  ;;  %v234_v25 = vld [vmem:[%s12909_s1 + $0x4c0] sm:$0xff]  ;;  %v8645_v63 = vld [vmem:[%s12908_s0 + $0x90] ss:$24 sps:$4 sm:$0xff]  }
  0x2a   :  { %2416 = vmatpush1.bf16.msra.mxu0 %v7505_v19  ;;  %2755 = vmatpush1.bf16.msra.mxu1 %v7507_v20  ;;  %v227_v19 = vld [vmem:[%s12909_s1 + $0x488] sm:$0xff]  ;;  %v238_v26 = vld [vmem:[%s12909_s1 + $0x4e0] sm:$0xff] }
  0x2b   :  { %2417 = vmatprep.subr.bf16.mxu0 %v7514_v21  ;;  %2756 = vmatprep.subr.bf16.mxu1 %v7516_v22  ;;  %v231_v20 = vld [vmem:[%s12909_s1 + $0x4a8] sm:$0xff]  ;;  %v7569_v21 = vcombine.low %v218_v8, %v222_v9  ;;  %v7571_v22 = vcombine.low %v219_v10, %v223_v11  ;;  %v7586_v32 = vcombine.high %v234_v25, %v238_v26  ;;  %v278_v8 = vld [vmem:[%s12909_s1 + $0x620] sm:$0xff] }
  0x2c   :  { %v7580_v24 = vcombine.high %v227_v19, %v231_v20  ;;  %v7579_v31 = vcombine.low %v227_v19, %v231_v20  ;;  %v7585_v39 = vcombine.low %v234_v25, %v238_v26  ;;  %v267_v0 = vld [vmem:[%s12909_s1 + $0x5c8] sm:$0xff]  ;;  %v290_v25 = vld [vmem:[%s12909_s1 + $0x680] sm:$0xff] }
  0x2d   :  { %v271_v1 = vld [vmem:[%s12909_s1 + $0x5e8] sm:$0xff]  ;;  %v294_v26 = vld [vmem:[%s12909_s1 + $0x6a0] sm:$0xff] }
  0x2e   :  { %2418 = vmatpush1.bf16.msra.mxu0 %v7513_v27  ;;  %2757 = vmatpush1.bf16.msra.mxu1 %v7515_v28  ;;  %v8639_v27 = vld [vmem:[%s12908_s0 + $0x30] ss:$24 sps:$4 sm:$0xff]  }
  0x2f   :  { %2419 = vmatprep.subr.bf16.mxu0 %v7522_v29  ;;  %2758 = vmatprep.subr.bf16.mxu1 %v7524_v30  ;;  %v235_v28 = vld [vmem:[%s12909_s1 + $0x4c8] sm:$0xff]  ;;  %v7577_v30 = vcombine.low %v226_v17, %v230_v18 }
  0x30   :  { %v239_v29 = vld [vmem:[%s12909_s1 + $0x4e8] sm:$0xff] }
  0x31   :  { %v7588_v34 = vcombine.high %v235_v28, %v239_v29  ;;  %v7587_v40 = vcombine.low %v235_v28, %v239_v29  ;;  %v275_v9 = vld [vmem:[%s12909_s1 + $0x608] sm:$0xff] }
  0x32   :  { %2420 = vmatpush1.bf16.msra.mxu0 %v7521_v35  ;;  %2759 = vmatpush1.bf16.msra.mxu1 %v7523_v36  ;;  %v242_v35 = vld [vmem:[%s12909_s1 + $0x500] sm:$0xff]  ;;  %v279_v10 = vld [vmem:[%s12909_s1 + $0x628] sm:$0xff] }
  0x33   :  { %2421 = vmatprep.subr.bf16.mxu0 %v7530_v37  ;;  %2760 = vmatprep.subr.bf16.mxu1 %v7532_v38  ;;  %v246_v36 = vld [vmem:[%s12909_s1 + $0x520] sm:$0xff]  ;;  %v243_v37 = vld [vmem:[%s12909_s1 + $0x508] sm:$0xff]  ;;  %v7628_v18 = vcombine.high %v275_v9, %v279_v10 }
  0x34   :  { %v247_v38 = vld [vmem:[%s12909_s1 + $0x528] sm:$0xff]  ;;  %v7594_v41 = vcombine.high %v242_v35, %v246_v36  ;;  %v7593_v48 = vcombine.low %v242_v35, %v246_v36 }
  0x35   :  { %v7596_v42 = vcombine.high %v243_v37, %v247_v38  ;;  %v7595_v49 = vcombine.low %v243_v37, %v247_v38  ;;  %v283_v17 = vld [vmem:[%s12909_s1 + $0x648] sm:$0xff]  ;;  %v7641_v38 = vcombine.low %v290_v25, %v294_v26 }
  0x36   :  { %2422 = vmatpush1.bf16.msra.mxu0 %v7529_v43  ;;  %2761 = vmatpush1.bf16.msra.mxu1 %v7531_v44  ;;  %v250_v43 = vld [vmem:[%s12909_s1 + $0x540] sm:$0xff]  ;;  %v287_v19 = vld [vmem:[%s12909_s1 + $0x668] sm:$0xff] }
  0x37   :  { %2423 = vmatprep.subr.bf16.mxu0 %v7538_v45  ;;  %2762 = vmatprep.subr.bf16.mxu1 %v7540_v46  ;;  %v254_v44 = vld [vmem:[%s12909_s1 + $0x560] sm:$0xff]  ;;  %v251_v46 = vld [vmem:[%s12909_s1 + $0x548] sm:$0xff] }
  0x38   :  { %v8642_v45 = vld [vmem:[%s12908_s0 + $0x60] ss:$24 sps:$4 sm:$0xff]   ;;  %v7602_v50 = vcombine.high %v250_v43, %v254_v44  ;;  %v7601_v57 = vcombine.low %v250_v43, %v254_v44  ;;  %v7603_v58 = vcombine.low %v251_v46, %v255_v47  ;;  %v295_v28 = vld [vmem:[%s12909_s1 + $0x6a8] sm:$0xff] }
  0x39   :  { %v8651_v35 = vld [vmem:[%s12908_s0 + $0xf0] ss:$24 sps:$4 sm:$0xff]   ;;  %v306_v43 = vld [vmem:[%s12909_s1 + $0x700] sm:$0xff] }
  0x3a   :  { %2424 = vmatpush1.bf16.msra.mxu0 %v7537_v51  ;;  %2763 = vmatpush1.bf16.msra.mxu1 %v7539_v52  ;;  %v8643_v51 = vld [vmem:[%s12908_s0 + $0x94] ss:$24 sps:$4 sm:$0xff]   ;;  %v7604_v52 = vcombine.high %v251_v46, %v255_v47  ;;  %v310_v44 = vld [vmem:[%s12909_s1 + $0x720] sm:$0xff] }
  0x3b   :  { %2425 = vmatprep.subr.bf16.mxu0 %v7546_v53  ;;  %2764 = vmatprep.subr.bf16.mxu1 %v7548_v54  ;;  %v258_v53 = vld [vmem:[%s12909_s1 + $0x580] sm:$0xff]  ;;  %v299_v36 = vld [vmem:[%s12909_s1 + $0x6c8] sm:$0xff] }
  0x3c   :  { %v262_v54 = vld [vmem:[%s12909_s1 + $0x5a0] sm:$0xff]  ;;  %v303_v37 = vld [vmem:[%s12909_s1 + $0x6e8] sm:$0xff] }
  0x3d   :  { %v7609_v2 = vcombine.low %v258_v53, %v262_v54  ;;  %v311_v46 = vld [vmem:[%s12909_s1 + $0x728] sm:$0xff] }
  0x3e   :  { %2426 = vmatpush1.bf16.msra.mxu0 %v7545_v59  ;;  %2765 = vmatpush1.bf16.msra.mxu1 %v7547_v60  ;;  %v7610_v59 = vcombine.high %v258_v53, %v262_v54  ;;  %v7612_v60 = vcombine.high %v259_v55, %v263_v56  ;;  %v8654_v53 = vld [vmem:[%s12908_s0 + $0x120] ss:$24 sps:$4 sm:$0xff]   ;;  %v315_v54 = vld [vmem:[%s12909_s1 + $0x748] sm:$0xff] }
  0x3f   :  { %2427 = vmatprep.subr.bf16.mxu0 %v7554_v61  ;;  %2766 = vmatprep.subr.bf16.mxu1 %v7556_v62  ;;  %v266_v61 = vld [vmem:[%s12909_s1 + $0x5c0] sm:$0xff] }
  0x40   :  { %v270_v62 = vld [vmem:[%s12909_s1 + $0x5e0] sm:$0xff] }
  0x41   :  { %v7617_v11 = vcombine.low %v266_v61, %v270_v62 }
  0x42   :  { %2428 = vmatpush1.bf16.msra.mxu0 %v7553_v3  ;;  %2767 = vmatpush1.bf16.msra.mxu1 %v7555_v4  ;;  %v7611_v3 = vcombine.low %v259_v55, %v263_v56  ;;  %v7618_v4 = vcombine.high %v266_v61, %v270_v62  ;;  %v319_v55 = vld [vmem:[%s12909_s1 + $0x768] sm:$0xff]  ;;  %v7657_v56 = vcombine.low %v306_v43, %v310_v44  ;;  %v322_v61 = vld [vmem:[%s12909_s1 + $0x780] sm:$0xff] }
  0x43   :  { %2510 = vmatprep.subr.bf16.mxu0 %v7562_v6  ;;  %2849 = vmatprep.subr.bf16.mxu1 %v7564_v7  ;;  %v7620_v6 = vcombine.high %v267_v0, %v271_v1  ;;  %v274_v7 = vld [vmem:[%s12909_s1 + $0x600] sm:$0xff] }
  0x44   :  { %v7625_v20 = vcombine.low %v274_v7, %v278_v8  ;;  %v326_v62 = vld [vmem:[%s12909_s1 + $0x7a0] sm:$0xff] }
  0x45   :  { %2430 = vmatmul.mubr.bf16.vlgmr.msra.gmra.mrb[0].mxu0 %v8636_v5  ;;  %2769 = vmatmul.mubr.bf16.vlgmr.msra.gmra.mrb[0].mxu1 %v8636_v5  ;;  %v8646_v5 = vld [vmem:[%s12908_s0 + $0xc4] ss:$24 sps:$4 sm:$0xff]  }
  0x46   :  { %2511 = vmatpush1.bf16.msra.mxu0 %v7561_v12  ;;  %2850 = vmatpush1.bf16.msra.mxu1 %v7563_v13  ;;  %v7619_v12 = vcombine.low %v267_v0, %v271_v1  ;;  %v8648_v13 = vld [vmem:[%s12908_s0 + $0xc0] ss:$24 sps:$4 sm:$0xff]   ;;  %v327_v0 = vld [vmem:[%s12909_s1 + $0x7a8] sm:$0xff] }
  0x47   :  { %2512 = vmatprep.subr.bf16.mxu0 %v7570_v14  ;;  %2851 = vmatprep.subr.bf16.mxu1 %v7572_v16  ;;  %v7626_v14 = vcombine.high %v274_v7, %v278_v8  ;;  %v286_v16 = vld [vmem:[%s12909_s1 + $0x660] sm:$0xff]  ;;  %v8657_v7 = vld [vmem:[%s12908_s0 + $0x150] ss:$24 sps:$4 sm:$0xff]  }
  0x48   :  { %2439 = vmatprep.mubr.bf16.mxu0 %v8637_v15  ;;  %2778 = vmatprep.mubr.bf16.mxu1 %v8637_v15  ;;  %v282_v15 = vld [vmem:[%s12909_s1 + $0x640] sm:$0xff]  ;;  %v331_v8 = vld [vmem:[%s12909_s1 + $0x7c8] sm:$0xff] }
  0x49   :  { %v7633_v29 = vcombine.low %v282_v15, %v286_v16 }
  0x4a   :  { %2513 = vmatpush1.bf16.msra.mxu0 %v7569_v21  ;;  %2852 = vmatpush1.bf16.msra.mxu1 %v7571_v22  ;;  %v7627_v21 = vcombine.low %v275_v9, %v279_v10  ;;  %v7634_v22 = vcombine.high %v282_v15, %v286_v16  ;;  %v335_v9 = vld [vmem:[%s12909_s1 + $0x7e8] sm:$0xff]  ;;  %v7673_v10 = vcombine.low %v322_v61, %v326_v62  ;;  %v338_v15 = vld [vmem:[%s12909_s1 + $0x800] sm:$0xff] }
  0x4b   :  { %2514 = vmatprep.subr.bf16.mxu0 %v7578_v23  ;;  %2853 = vmatprep.subr.bf16.mxu1 %v7580_v24  ;;  %v7636_v23 = vcombine.high %v283_v17, %v287_v19  ;;  %v8649_v24 = vld [vmem:[%s12908_s0 + $0xf4] ss:$24 sps:$4 sm:$0xff]   ;;  %v342_v16 = vld [vmem:[%s12909_s1 + $0x820] sm:$0xff] }
  0x4d   :  { %2440 = vmatmul.mubr.bf16.gmra.mrb[4].mxu0 %v8639_v27  ;;  %2779 = vmatmul.mubr.bf16.gmra.mrb[4].mxu1 %v8639_v27  ;;  %v291_v27 = vld [vmem:[%s12909_s1 + $0x688] sm:$0xff] }
  0x4e   :  { %2515 = vmatpush1.bf16.msra.mxu0 %v7577_v30  ;;  %2854 = vmatpush1.bf16.msra.mxu1 %v7579_v31  ;;  %v7635_v30 = vcombine.low %v283_v17, %v287_v19  ;;  %v7642_v31 = vcombine.high %v290_v25, %v294_v26  ;;  %v339_v17 = vld [vmem:[%s12909_s1 + $0x808] sm:$0xff]  ;;  %v350_v25 = vld [vmem:[%s12909_s1 + $0x860] sm:$0xff]  ;;  %v7689_v26 = vcombine.low %v338_v15, %v342_v16 }
  0x4f   :  { %2516 = vmatprep.subr.bf16.mxu0 %v7586_v32  ;;  %2855 = vmatprep.subr.bf16.mxu1 %v7588_v34  ;;  %v7644_v32 = vcombine.high %v291_v27, %v295_v28  ;;  %v302_v34 = vld [vmem:[%s12909_s1 + $0x6e0] sm:$0xff] }
  0x50   :  { %2449 = vmatprep.mubr.bf16.mxu0 %v8640_v33  ;;  %2788 = vmatprep.mubr.bf16.mxu1 %v8640_v33  ;;  %v298_v33 = vld [vmem:[%s12909_s1 + $0x6c0] sm:$0xff] }
  0x51   :  { %v7649_v47 = vcombine.low %v298_v33, %v302_v34 }
  0x52   :  { %2517 = vmatpush1.bf16.msra.mxu0 %v7585_v39  ;;  %2856 = vmatpush1.bf16.msra.mxu1 %v7587_v40  ;;  %v7643_v39 = vcombine.low %v291_v27, %v295_v28  ;;  %v7650_v40 = vcombine.high %v298_v33, %v302_v34  ;;  %v347_v27 = vld [vmem:[%s12909_s1 + $0x848] sm:$0xff]  ;;  %v358_v33 = vld [vmem:[%s12909_s1 + $0x8a0] sm:$0xff] }
  0x53   :  { %2518 = vmatprep.subr.bf16.mxu0 %v7594_v41  ;;  %2857 = vmatprep.subr.bf16.mxu1 %v7596_v42  ;;  %v7652_v41 = vcombine.high %v299_v36, %v303_v37  ;;  %v8652_v42 = vld [vmem:[%s12908_s0 + $0x124] ss:$24 sps:$4 sm:$0xff]   ;;  %v351_v28 = vld [vmem:[%s12909_s1 + $0x868] sm:$0xff] }
  0x54   :  { %v7700_v34 = vcombine.high %v347_v27, %v351_v28 }
  0x55   :  { %2450 = vmatmul.mubr.bf16.gmra.mrb[8].mxu0 %v8642_v45  ;;  %2789 = vmatmul.mubr.bf16.gmra.mrb[8].mxu1 %v8642_v45  ;;  %v307_v45 = vld [vmem:[%s12909_s1 + $0x708] sm:$0xff] }
  0x56   :  { %2519 = vmatpush1.bf16.msra.mxu0 %v7593_v48  ;;  %2858 = vmatpush1.bf16.msra.mxu1 %v7595_v49  ;;  %v7651_v48 = vcombine.low %v299_v36, %v303_v37  ;;  %v7658_v49 = vcombine.high %v306_v43, %v310_v44  ;;  %v359_v36 = vld [vmem:[%s12909_s1 + $0x8a8] sm:$0xff]  ;;  %v366_v43 = vld [vmem:[%s12909_s1 + $0x8e0] sm:$0xff] }
  0x57   :  { %2520 = vmatprep.subr.bf16.mxu0 %v7602_v50  ;;  %2859 = vmatprep.subr.bf16.mxu1 %v7604_v52  ;;  %v7660_v50 = vcombine.high %v307_v45, %v311_v46  ;;  %v318_v52 = vld [vmem:[%s12909_s1 + $0x760] sm:$0xff] }
  0x58   :  { %2459 = vmatprep.mubr.bf16.mxu0 %v8643_v51  ;;  %2798 = vmatprep.mubr.bf16.mxu1 %v8643_v51  ;;  %v314_v51 = vld [vmem:[%s12909_s1 + $0x740] sm:$0xff] }
  0x59   :  { %v7665_v1 = vcombine.low %v314_v51, %v318_v52 }
  0x5a   :  { %2521 = vmatpush1.bf16.msra.mxu0 %v7601_v57  ;;  %2860 = vmatpush1.bf16.msra.mxu1 %v7603_v58  ;;  %v7659_v57 = vcombine.low %v307_v45, %v311_v46  ;;  %v7666_v58 = vcombine.high %v314_v51, %v318_v52  ;;  %v363_v45 = vld [vmem:[%s12909_s1 + $0x8c8] sm:$0xff]  ;;  %v374_v51 = vld [vmem:[%s12909_s1 + $0x920] sm:$0xff] }
  0x5b   :  { %2522 = vmatprep.subr.bf16.mxu0 %v7610_v59  ;;  %2861 = vmatprep.subr.bf16.mxu1 %v7612_v60  ;;  %v7668_v59 = vcombine.high %v315_v54, %v319_v55  ;;  %v8655_v60 = vld [vmem:[%s12908_s0 + $0x154] ss:$24 sps:$4 sm:$0xff]  }
  0x5c   :  { %v367_v46 = vld [vmem:[%s12909_s1 + $0x8e8] sm:$0xff] }
  0x5d   :  { %2460 = vmatmul.mubr.bf16.gmra.mrb[12].mxu0 %v8645_v63  ;;  %2799 = vmatmul.mubr.bf16.gmra.mrb[12].mxu1 %v8645_v63  ;;  %v323_v63 = vld [vmem:[%s12909_s1 + $0x788] sm:$0xff]  ;;  %v7716_v52 = vcombine.high %v363_v45, %v367_v46 }
  0x5e   :  { %2523 = vmatpush1.bf16.msra.mxu0 %v7609_v2  ;;  %2862 = vmatpush1.bf16.msra.mxu1 %v7611_v3  ;;  %v7667_v2 = vcombine.low %v315_v54, %v319_v55  ;;  %v7674_v3 = vcombine.high %v322_v61, %v326_v62  ;;  %v375_v54 = vld [vmem:[%s12909_s1 + $0x928] sm:$0xff]  ;;  %v382_v61 = vld [vmem:[%s12909_s1 + $0x960] sm:$0xff]  ;;  %v8667_v62 = vld [vmem:[%s12908_s0 + $0x9c] ss:$24 sps:$4 sm:$0xff]  }
  0x5f   :  { %2524 = vmatprep.subr.bf16.mxu0 %v7618_v4  ;;  %2863 = vmatprep.subr.bf16.mxu1 %v7620_v6  ;;  %v7676_v4 = vcombine.high %v323_v63, %v327_v0  ;;  %v334_v6 = vld [vmem:[%s12909_s1 + $0x7e0] sm:$0xff] }
  0x60   :  { %2469 = vmatprep.mubr.bf16.mxu0 %v8646_v5  ;;  %2808 = vmatprep.mubr.bf16.mxu1 %v8646_v5  ;;  %v330_v5 = vld [vmem:[%s12909_s1 + $0x7c0] sm:$0xff] }
  0x61   :  { %v7681_v19 = vcombine.low %v330_v5, %v334_v6 }
  0x62   :  { %2525 = vmatpush1.bf16.msra.mxu0 %v7617_v11  ;;  %2864 = vmatpush1.bf16.msra.mxu1 %v7619_v12  ;;  %v7675_v11 = vcombine.low %v323_v63, %v327_v0  ;;  %v7682_v12 = vcombine.high %v330_v5, %v334_v6  ;;  %v379_v63 = vld [vmem:[%s12909_s1 + $0x948] sm:$0xff]  ;;  %v386_v5 = vld [vmem:[%s12909_s1 + $0x980] sm:$0xff] }
  0x63   :  { %2526 = vmatprep.subr.bf16.mxu0 %v7626_v14  ;;  %2865 = vmatprep.subr.bf16.mxu1 %v7628_v18  ;;  %v8660_v14 = vld [vmem:[%s12908_s0 + $0xc] ss:$24 sps:$4 sm:$0xff]  }
  0x64   :  { %v343_v18 = vld [vmem:[%s12909_s1 + $0x828] sm:$0xff]  ;;  %v390_v6 = vld [vmem:[%s12909_s1 + $0x9a0] sm:$0xff] }
  0x65   :  { %2470 = vmatmul.mubr.bf16.gmra.mrb[16].mxu0 %v8648_v13  ;;  %2809 = vmatmul.mubr.bf16.gmra.mrb[16].mxu1 %v8648_v13  ;;  %v7684_v13 = vcombine.high %v331_v8, %v335_v9  ;;  %v383_v0 = vld [vmem:[%s12909_s1 + $0x968] sm:$0xff] }
  0x66   :  { %2527 = vmatpush1.bf16.msra.mxu0 %v7625_v20  ;;  %2866 = vmatpush1.bf16.msra.mxu1 %v7627_v21  ;;  %v7683_v20 = vcombine.low %v331_v8, %v335_v9  ;;  %v7690_v21 = vcombine.high %v338_v15, %v342_v16  ;;  %v391_v8 = vld [vmem:[%s12909_s1 + $0x9a8] sm:$0xff]  ;;  %v398_v15 = vld [vmem:[%s12909_s1 + $0x9e0] sm:$0xff] }
  0x67   :  { %2528 = vmatprep.subr.bf16.mxu0 %v7634_v22  ;;  %2867 = vmatprep.subr.bf16.mxu1 %v7636_v23  ;;  %v7692_v22 = vcombine.high %v339_v17, %v343_v18  ;;  %v8658_v23 = vld [vmem:[%s12908_s0 + $0x8] ss:$24 sps:$4 sm:$0xff]   ;;  %v8670_v16 = vld [vmem:[%s12908_s0 + $0xcc] ss:$24 sps:$4 sm:$0xff]  }
  0x68   :  { %2479 = vmatprep.mubr.bf16.mxu0 %v8649_v24  ;;  %2818 = vmatprep.mubr.bf16.mxu1 %v8649_v24  ;;  %v346_v24 = vld [vmem:[%s12909_s1 + $0x840] sm:$0xff] }
  0x69   :  { %v7697_v37 = vcombine.low %v346_v24, %v350_v25 }
  0x6a   :  { %2529 = vmatpush1.bf16.msra.mxu0 %v7633_v29  ;;  %2868 = vmatpush1.bf16.msra.mxu1 %v7635_v30  ;;  %v7691_v29 = vcombine.low %v339_v17, %v343_v18  ;;  %v8661_v30 = vld [vmem:[%s12908_s0 + $0x3c] ss:$24 sps:$4 sm:$0xff]   ;;  %v395_v17 = vld [vmem:[%s12909_s1 + $0x9c8] sm:$0xff] }
  0x6b   :  { %2530 = vmatprep.subr.bf16.mxu0 %v7642_v31  ;;  %2869 = vmatprep.subr.bf16.mxu1 %v7644_v32  ;;  %v7698_v31 = vcombine.high %v346_v24, %v350_v25  ;;  %v354_v32 = vld [vmem:[%s12909_s1 + $0x880] sm:$0xff]  ;;  %v399_v18 = vld [vmem:[%s12909_s1 + $0x9e8] sm:$0xff] }
  0x6c   :  { %v7705_v44 = vcombine.low %v354_v32, %v358_v33  ;;  %v406_v24 = vld [vmem:[%s12909_s1 + $0xa20] sm:$0xff]  ;;  %v403_v25 = vld [vmem:[%s12909_s1 + $0xa08] sm:$0xff] }
  0x6d   :  { %2480 = vmatmul.mubr.bf16.gmra.mrb[20].mxu0 %v8651_v35  ;;  %2819 = vmatmul.mubr.bf16.gmra.mrb[20].mxu1 %v8651_v35  ;;  %v355_v35 = vld [vmem:[%s12909_s1 + $0x888] sm:$0xff] }
  0x6e   :  { %2531 = vmatpush1.bf16.msra.mxu0 %v7641_v38  ;;  %2870 = vmatpush1.bf16.msra.mxu1 %v7643_v39  ;;  %v7699_v38 = vcombine.low %v347_v27, %v351_v28  ;;  %v7706_v39 = vcombine.high %v354_v32, %v358_v33  ;;  %v7747_v28 = vcombine.low %v395_v17, %v399_v18  ;;  %v410_v32 = vld [vmem:[%s12909_s1 + $0xa40] sm:$0xff] }
  0x6f   :  { %2532 = vmatprep.subr.bf16.mxu0 %v7650_v40  ;;  %2871 = vmatprep.subr.bf16.mxu1 %v7652_v41  ;;  %v7708_v40 = vcombine.high %v355_v35, %v359_v36  ;;  %v8663_v41 = vld [vmem:[%s12908_s0 + $0x38] ss:$24 sps:$4 sm:$0xff]   ;;  %v414_v33 = vld [vmem:[%s12909_s1 + $0xa60] sm:$0xff] }
  0x70   :  { %2489 = vmatprep.mubr.bf16.mxu0 %v8652_v42  ;;  %2828 = vmatprep.mubr.bf16.mxu1 %v8652_v42  ;;  %v362_v42 = vld [vmem:[%s12909_s1 + $0x8c0] sm:$0xff] }
  0x71   :  { %v7713_v55 = vcombine.low %v362_v42, %v366_v43 }
  0x72   :  { %2533 = vmatpush1.bf16.msra.mxu0 %v7649_v47  ;;  %2872 = vmatpush1.bf16.msra.mxu1 %v7651_v48  ;;  %v7707_v47 = vcombine.low %v355_v35, %v359_v36  ;;  %v8664_v48 = vld [vmem:[%s12908_s0 + $0x6c] ss:$24 sps:$4 sm:$0xff]  }
  0x73   :  { %2534 = vmatprep.subr.bf16.mxu0 %v7658_v49  ;;  %2873 = vmatprep.subr.bf16.mxu1 %v7660_v50  ;;  %v7714_v49 = vcombine.high %v362_v42, %v366_v43  ;;  %v370_v50 = vld [vmem:[%s12909_s1 + $0x900] sm:$0xff]  ;;  %v411_v35 = vld [vmem:[%s12909_s1 + $0xa48] sm:$0xff]  ;;  %v88_v42 = vld [vmem:[%s12909_s1 + $0x30] sm:$0xff] }
  0x74   :  { %v415_v36 = vld [vmem:[%s12909_s1 + $0xa68] sm:$0xff]  ;;  %v85_v43 = vld [vmem:[%s12909_s1 + $0x18] sm:$0xff] }
  0x75   :  { %2490 = vmatmul.mubr.bf16.gmra.mrb[24].mxu0 %v8654_v53  ;;  %2829 = vmatmul.mubr.bf16.gmra.mrb[24].mxu1 %v8654_v53  ;;  %v371_v53 = vld [vmem:[%s12909_s1 + $0x908] sm:$0xff] }
  0x76   :  { %2535 = vmatpush1.bf16.msra.mxu0 %v7657_v56  ;;  %2874 = vmatpush1.bf16.msra.mxu1 %v7659_v57  ;;  %v7715_v56 = vcombine.low %v363_v45, %v367_v46  ;;  %v7722_v57 = vcombine.high %v370_v50, %v374_v51  ;;  %v7761_v45 = vcombine.low %v410_v32, %v414_v33 }
  0x77   :  { %2536 = vmatprep.subr.bf16.mxu0 %v7666_v58  ;;  %2875 = vmatprep.subr.bf16.mxu1 %v7668_v59  ;;  %v7724_v58 = vcombine.high %v371_v53, %v375_v54  ;;  %v8666_v59 = vld [vmem:[%s12908_s0 + $0x68] ss:$24 sps:$4 sm:$0xff]   ;;  %v7763_v46 = vcombine.low %v411_v35, %v415_v36 }
  0x78   :  { %2499 = vmatprep.mubr.bf16.mxu0 %v8655_v60  ;;  %2838 = vmatprep.mubr.bf16.mxu1 %v8655_v60  ;;  %v378_v60 = vld [vmem:[%s12909_s1 + $0x940] sm:$0xff] }
  0x79   :  { %v7729_v9 = vcombine.low %v378_v60, %v382_v61 }
  0x7a   :  { %2537 = vmatpush1.bf16.msra.mxu0 %v7665_v1  ;;  %2876 = vmatpush1.bf16.msra.mxu1 %v7667_v2  ;;  %v7721_v1 = vcombine.low %v370_v50, %v374_v51  ;;  %v7723_v2 = vcombine.low %v371_v53, %v375_v54  ;;  %v8676_v50 = vld [vmem:[%s12908_s0 + $0x12c] ss:$24 sps:$4 sm:$0xff]   ;;  %v8678_v51 = vld [vmem:[%s12908_s0 + $0x128] ss:$24 sps:$4 sm:$0xff]   ;;  %v8681_v53 = vld [vmem:[%s12908_s0 + $0x158] ss:$24 sps:$4 sm:$0xff]  }
  0x7b   :  { %2538 = vmatprep.subr.bf16.mxu0 %v7674_v3  ;;  %2877 = vmatprep.subr.bf16.mxu1 %v7676_v4  ;;  %v7730_v3 = vcombine.high %v378_v60, %v382_v61  ;;  %v7732_v4 = vcombine.high %v379_v63, %v383_v0  ;;  %v8684_v54 = vld [vmem:[%s12908_s0 + $0x14] ss:$24 sps:$4 sm:$0xff]  }
  0x7d   :  { %2500 = vmatmul.mubr.bf16.gmra.mrb[28].mxu0 %v8657_v7  ;;  %2839 = vmatmul.mubr.bf16.gmra.mrb[28].mxu1 %v8657_v7  ;;  %v387_v7 = vld [vmem:[%s12909_s1 + $0x988] sm:$0xff] }
  0x7e   :  { %2539 = vmatpush1.bf16.msra.mxu0 %v7673_v10  ;;  %2878 = vmatpush1.bf16.msra.mxu1 %v7675_v11  ;;  %v7731_v10 = vcombine.low %v379_v63, %v383_v0  ;;  %v7738_v11 = vcombine.high %v386_v5, %v390_v6  ;;  %v8685_v0 = vld [vmem:[%s12908_s0 + $0x44] ss:$24 sps:$4 sm:$0xff]  }
  0x7f   :  { %2540 = vmatprep.subr.bf16.mxu0 %v7682_v12  ;;  %2879 = vmatprep.subr.bf16.mxu1 %v7684_v13  ;;  %v8669_v12 = vld [vmem:[%s12908_s0 + $0x98] ss:$24 sps:$4 sm:$0xff]   ;;  %v7740_v13 = vcombine.high %v387_v7, %v391_v8 }
  0x80   :  { %2542 = vmatprep.mubr.bf16.mxu0 %v8660_v14  ;;  %2881 = vmatprep.mubr.bf16.mxu1 %v8660_v14  ;;  %v394_v14 = vld [vmem:[%s12909_s1 + $0x9c0] sm:$0xff] }
  0x81   :  { %v7745_v27 = vcombine.low %v394_v14, %v398_v15 }
  0x82   :  { %2541 = vmatpush1.bf16.msra.mxu0 %v7681_v19  ;;  %2880 = vmatpush1.bf16.msra.mxu1 %v7683_v20  ;;  %v7737_v19 = vcombine.low %v386_v5, %v390_v6  ;;  %v7739_v20 = vcombine.low %v387_v7, %v391_v8 }
  0x83   :  { %2623 = vmatprep.subr.bf16.mxu0 %v7690_v21  ;;  %2962 = vmatprep.subr.bf16.mxu1 %v7692_v22  ;;  %v7746_v21 = vcombine.high %v394_v14, %v398_v15  ;;  %v7748_v22 = vcombine.high %v395_v17, %v399_v18  ;;  %v8688_v18 = vld [vmem:[%s12908_s0 + $0x74] ss:$24 sps:$4 sm:$0xff]  }
  0x85   :  { %2543 = vmatmul.mubr.bf16.vlgmr.msra.gmra.mrb[0].mxu0 %v8658_v23  ;;  %2882 = vmatmul.mubr.bf16.vlgmr.msra.gmra.mrb[0].mxu1 %v8658_v23  ;;  %v402_v23 = vld [vmem:[%s12909_s1 + $0xa00] sm:$0xff] }
  0x86   :  { %2624 = vmatpush1.bf16.msra.mxu0 %v7689_v26  ;;  %2963 = vmatpush1.bf16.msra.mxu1 %v7691_v29  ;;  %v407_v26 = vld [vmem:[%s12909_s1 + $0xa28] sm:$0xff]  ;;  %v7754_v29 = vcombine.high %v402_v23, %v406_v24 }
  0x87   :  { %2552 = vmatprep.mubr.bf16.mxu0 %v8661_v30  ;;  %2625 = vmatprep.subr.bf16.mxu0 %v7698_v31  ;;  %v7756_v31 = vcombine.high %v403_v25, %v407_v26 }
  0x88   :  { %2891 = vmatprep.mubr.bf16.mxu1 %v8661_v30  ;;  %2964 = vmatprep.subr.bf16.mxu1 %v7700_v34  ;;  %v8672_v30 = vld [vmem:[%s12908_s0 + $0xc8] ss:$24 sps:$4 sm:$0xff]   ;;  %v8673_v34 = vld [vmem:[%s12908_s0 + $0xfc] ss:$24 sps:$4 sm:$0xff]  }
  0x8a   :  { %2626 = vmatpush1.bf16.msra.mxu0 %v7697_v37  ;;  %2965 = vmatpush1.bf16.msra.mxu1 %v7699_v38  ;;  %v7753_v37 = vcombine.low %v402_v23, %v406_v24  ;;  %v7755_v38 = vcombine.low %v403_v25, %v407_v26 }
  0x8b   :  { %2627 = vmatprep.subr.bf16.mxu0 %v7706_v39  ;;  %2966 = vmatprep.subr.bf16.mxu1 %v7708_v40  ;;  %v7762_v39 = vcombine.high %v410_v32, %v414_v33  ;;  %v7764_v40 = vcombine.high %v411_v35, %v415_v36  ;;  %v8691_v36 = vld [vmem:[%s12908_s0 + $0xa4] ss:$24 sps:$4 sm:$0xff]  }
  0x8d   :  { %2553 = vmatmul.mubr.bf16.gmra.mrb[4].mxu0 %v8663_v41  ;;  %2892 = vmatmul.mubr.bf16.gmra.mrb[4].mxu1 %v8663_v41  ;;  %v84_v41 = vld [vmem:[%s12909_s1 + $0x10] sm:$0xff] }
  0x8e   :  { %2628 = vmatpush1.bf16.msra.mxu0 %v7705_v44  ;;  %2967 = vmatpush1.bf16.msra.mxu1 %v7707_v47  ;;  %v89_v44 = vld [vmem:[%s12909_s1 + $0x38] sm:$0xff]  ;;  %v7438_v47 = vcombine.high %v84_v41, %v88_v42  ;;  %v7437_v60 = vcombine.low %v84_v41, %v88_v42 }
  0x8f   :  { %2562 = vmatprep.mubr.bf16.mxu0 %v8664_v48  ;;  %2901 = vmatprep.mubr.bf16.mxu1 %v8664_v48  ;;  %v8675_v48 = vld [vmem:[%s12908_s0 + $0xf8] ss:$24 sps:$4 sm:$0xff]   ;;  %v7439_v61 = vcombine.low %v85_v43, %v89_v44 }
  0x90   :  { %2629 = vmatprep.subr.bf16.mxu0 %v7714_v49  ;;  %2968 = vmatprep.subr.bf16.mxu1 %v7716_v52  ;;  %v7440_v49 = vcombine.high %v85_v43, %v89_v44  ;;  %v8679_v52 = vld [vmem:[%s12908_s0 + $0x15c] ss:$24 sps:$4 sm:$0xff]  }
  0x92   :  { %2630 = vmatpush1.bf16.msra.mxu0 %v7713_v55  ;;  %2969 = vmatpush1.bf16.msra.mxu1 %v7715_v56  ;;  %v92_v55 = vld [vmem:[%s12909_s1 + $0x50] sm:$0xff] }
  0x93   :  { %2631 = vmatprep.subr.bf16.mxu0 %v7722_v57  ;;  %2970 = vmatprep.subr.bf16.mxu1 %v7724_v58  ;;  %v96_v56 = vld [vmem:[%s12909_s1 + $0x70] sm:$0xff]  ;;  %v93_v58 = vld [vmem:[%s12909_s1 + $0x58] sm:$0xff] }
  0x94   :  { %v8682_v57 = vld [vmem:[%s12908_s0 + $0x10] ss:$24 sps:$4 sm:$0xff]   ;;  %v7445_v5 = vcombine.low %v92_v55, %v96_v56 }
  0x95   :  { %2563 = vmatmul.mubr.bf16.gmra.mrb[8].mxu0 %v8666_v59  ;;  %2902 = vmatmul.mubr.bf16.gmra.mrb[8].mxu1 %v8666_v59  ;;  %v97_v59 = vld [vmem:[%s12909_s1 + $0x78] sm:$0xff] }
  0x96   :  { %2572 = vmatprep.mubr.bf16.mxu0 %v8667_v62  ;;  %2911 = vmatprep.mubr.bf16.mxu1 %v8667_v62  ;;  %v7446_v62 = vcombine.high %v92_v55, %v96_v56  ;;  %v7448_v63 = vcombine.high %v93_v58, %v97_v59  ;;  %v7447_v6 = vcombine.low %v93_v58, %v97_v59  ;;  %v148_v55 = vld [vmem:[%s12909_s1 + $0x210] sm:$0xff]  ;;  %v153_v58 = vld [vmem:[%s12909_s1 + $0x238] sm:$0xff] }
  0x97   :  { %2632 = vmatpush1.bf16.msra.mxu0 %v7721_v1  ;;  %2971 = vmatpush1.bf16.msra.mxu1 %v7723_v2  ;;  %v100_v1 = vld [vmem:[%s12909_s1 + $0x90] sm:$0xff] }
  0x98   :  { %2633 = vmatprep.subr.bf16.mxu0 %v7730_v3  ;;  %2972 = vmatprep.subr.bf16.mxu1 %v7732_v4  ;;  %v104_v2 = vld [vmem:[%s12909_s1 + $0xb0] sm:$0xff]  ;;  %v101_v3 = vld [vmem:[%s12909_s1 + $0x98] sm:$0xff] }
  0x99   :  { %v105_v4 = vld [vmem:[%s12909_s1 + $0xb8] sm:$0xff]  ;;  %v7454_v7 = vcombine.high %v100_v1, %v104_v2  ;;  %v7453_v14 = vcombine.low %v100_v1, %v104_v2  ;;  %v152_v56 = vld [vmem:[%s12909_s1 + $0x230] sm:$0xff] }
  0x9a   :  { %v7456_v8 = vcombine.high %v101_v3, %v105_v4  ;;  %v7455_v15 = vcombine.low %v101_v3, %v105_v4  ;;  %v8696_v1 = vld [vmem:[%s12908_s0 + $0xd0] ss:$24 sps:$4 sm:$0xff]   ;;  %v157_v2 = vld [vmem:[%s12909_s1 + $0x258] sm:$0xff]  ;;  %v7501_v4 = vcombine.low %v148_v55, %v152_v56 }
  0x9b   :  { %2634 = vmatpush1.bf16.msra.mxu0 %v7729_v9  ;;  %2973 = vmatpush1.bf16.msra.mxu1 %v7731_v10  ;;  %v108_v9 = vld [vmem:[%s12909_s1 + $0xd0] sm:$0xff]  ;;  %v161_v3 = vld [vmem:[%s12909_s1 + $0x278] sm:$0xff] }
  0x9c   :  { %2635 = vmatprep.subr.bf16.mxu0 %v7738_v11  ;;  %2974 = vmatprep.subr.bf16.mxu1 %v7740_v13  ;;  %v112_v10 = vld [vmem:[%s12909_s1 + $0xf0] sm:$0xff]  ;;  %v8687_v11 = vld [vmem:[%s12908_s0 + $0x40] ss:$24 sps:$4 sm:$0xff]  }
  0x9d   :  { %2573 = vmatmul.mubr.bf16.gmra.mrb[12].mxu0 %v8669_v12  ;;  %2912 = vmatmul.mubr.bf16.gmra.mrb[12].mxu1 %v8669_v12  ;;  %v109_v12 = vld [vmem:[%s12909_s1 + $0xd8] sm:$0xff]  ;;  %v7461_v23 = vcombine.low %v108_v9, %v112_v10 }
  0x9e   :  { %2582 = vmatprep.mubr.bf16.mxu0 %v8670_v16  ;;  %2921 = vmatprep.mubr.bf16.mxu1 %v8670_v16  ;;  %v113_v13 = vld [vmem:[%s12909_s1 + $0xf8] sm:$0xff]  ;;  %v7462_v16 = vcombine.high %v108_v9, %v112_v10  ;;  %v164_v9 = vld [vmem:[%s12909_s1 + $0x290] sm:$0xff] }
  0x9f   :  { %2636 = vmatpush1.bf16.msra.mxu0 %v7737_v19  ;;  %2975 = vmatpush1.bf16.msra.mxu1 %v7739_v20  ;;  %v7464_v17 = vcombine.high %v109_v12, %v113_v13  ;;  %v116_v19 = vld [vmem:[%s12909_s1 + $0x110] sm:$0xff]  ;;  %v7463_v24 = vcombine.low %v109_v12, %v113_v13  ;;  %v169_v12 = vld [vmem:[%s12909_s1 + $0x2b8] sm:$0xff] }
  0xa0   :  { %2637 = vmatprep.subr.bf16.mxu0 %v7746_v21  ;;  %2976 = vmatprep.subr.bf16.mxu1 %v7748_v22  ;;  %v120_v20 = vld [vmem:[%s12909_s1 + $0x130] sm:$0xff]  ;;  %v117_v21 = vld [vmem:[%s12909_s1 + $0x118] sm:$0xff] }
  0xa1   :  { %v121_v22 = vld [vmem:[%s12909_s1 + $0x138] sm:$0xff]  ;;  %v7470_v25 = vcombine.high %v116_v19, %v120_v20  ;;  %v7469_v32 = vcombine.low %v116_v19, %v120_v20  ;;  %v168_v10 = vld [vmem:[%s12909_s1 + $0x2b0] sm:$0xff] }
  0xa2   :  { %v7472_v26 = vcombine.high %v117_v21, %v121_v22  ;;  %v7471_v33 = vcombine.low %v117_v21, %v121_v22  ;;  %v8699_v19 = vld [vmem:[%s12908_s0 + $0x100] ss:$24 sps:$4 sm:$0xff]   ;;  %v7517_v22 = vcombine.low %v164_v9, %v168_v10 }
  0xa3   :  { %2638 = vmatpush1.bf16.msra.mxu0 %v7745_v27  ;;  %2977 = vmatpush1.bf16.msra.mxu1 %v7747_v28  ;;  %v124_v27 = vld [vmem:[%s12909_s1 + $0x150] sm:$0xff]  ;;  %v173_v20 = vld [vmem:[%s12909_s1 + $0x2d8] sm:$0xff] }
  0xa4   :  { %2639 = vmatprep.subr.bf16.mxu0 %v7754_v29  ;;  %2978 = vmatprep.subr.bf16.mxu1 %v7756_v31  ;;  %v128_v28 = vld [vmem:[%s12909_s1 + $0x170] sm:$0xff]  ;;  %v129_v31 = vld [vmem:[%s12909_s1 + $0x178] sm:$0xff] }
  0xa5   :  { %2583 = vmatmul.mubr.bf16.gmra.mrb[16].mxu0 %v8672_v30  ;;  %2922 = vmatmul.mubr.bf16.gmra.mrb[16].mxu1 %v8672_v30  ;;  %v8690_v29 = vld [vmem:[%s12908_s0 + $0x70] ss:$24 sps:$4 sm:$0xff]   ;;  %v125_v30 = vld [vmem:[%s12909_s1 + $0x158] sm:$0xff]  ;;  %v7477_v41 = vcombine.low %v124_v27, %v128_v28 }
  0xa6   :  { %2592 = vmatprep.mubr.bf16.mxu0 %v8673_v34  ;;  %2931 = vmatprep.mubr.bf16.mxu1 %v8673_v34  ;;  %v7478_v34 = vcombine.high %v124_v27, %v128_v28  ;;  %v7480_v35 = vcombine.high %v125_v30, %v129_v31  ;;  %v7479_v42 = vcombine.low %v125_v30, %v129_v31  ;;  %v177_v21 = vld [vmem:[%s12909_s1 + $0x2f8] sm:$0xff]  ;;  %v180_v27 = vld [vmem:[%s12909_s1 + $0x310] sm:$0xff] }
  0xa7   :  { %2640 = vmatpush1.bf16.msra.mxu0 %v7753_v37  ;;  %2979 = vmatpush1.bf16.msra.mxu1 %v7755_v38  ;;  %v132_v37 = vld [vmem:[%s12909_s1 + $0x190] sm:$0xff]  ;;  %v185_v30 = vld [vmem:[%s12909_s1 + $0x338] sm:$0xff] }
  0xa8   :  { %2641 = vmatprep.subr.bf16.mxu0 %v7762_v39  ;;  %2980 = vmatprep.subr.bf16.mxu1 %v7764_v40  ;;  %v136_v38 = vld [vmem:[%s12909_s1 + $0x1b0] sm:$0xff]  ;;  %v133_v39 = vld [vmem:[%s12909_s1 + $0x198] sm:$0xff] }
  0xa9   :  { %v137_v40 = vld [vmem:[%s12909_s1 + $0x1b8] sm:$0xff]  ;;  %v7486_v43 = vcombine.high %v132_v37, %v136_v38  ;;  %v184_v28 = vld [vmem:[%s12909_s1 + $0x330] sm:$0xff] }
  0xaa   :  { %v7488_v44 = vcombine.high %v133_v39, %v137_v40 }
  0xab   :  { %2642 = vmatpush1.bf16.msra.mxu0 %v7761_v45  ;;  %2981 = vmatpush1.bf16.msra.mxu1 %v7763_v46  ;;  %v140_v45 = vld [vmem:[%s12909_s1 + $0x1d0] sm:$0xff] }
  0xac   :  { %3075 = vmatprep.subr.bf16.mxu0 %v7438_v47  ;;  %3414 = vmatprep.subr.bf16.mxu1 %v7440_v49  ;;  %v144_v46 = vld [vmem:[%s12909_s1 + $0x1f0] sm:$0xff]  ;;  %v8693_v47 = vld [vmem:[%s12908_s0 + $0xa0] ss:$24 sps:$4 sm:$0xff]  }
  0xad   :  { %2593 = vmatmul.mubr.bf16.gmra.mrb[20].mxu0 %v8675_v48  ;;  %2932 = vmatmul.mubr.bf16.gmra.mrb[20].mxu1 %v8675_v48  ;;  %v141_v48 = vld [vmem:[%s12909_s1 + $0x1d8] sm:$0xff]  ;;  %v7493_v59 = vcombine.low %v140_v45, %v144_v46 }
  0xae   :  { %2602 = vmatprep.mubr.bf16.mxu0 %v8676_v50  ;;  %2941 = vmatprep.mubr.bf16.mxu1 %v8676_v50  ;;  %v145_v49 = vld [vmem:[%s12909_s1 + $0x1f8] sm:$0xff]  ;;  %v7485_v50 = vcombine.low %v132_v37, %v136_v38  ;;  %v8702_v37 = vld [vmem:[%s12908_s0 + $0x130] ss:$24 sps:$4 sm:$0xff]  }
  0xaf   :  { %v189_v38 = vld [vmem:[%s12909_s1 + $0x358] sm:$0xff] }
  0xb5   :  { %2603 = vmatmul.mubr.bf16.gmra.mrb[24].mxu0 %v8678_v51  ;;  %2942 = vmatmul.mubr.bf16.gmra.mrb[24].mxu1 %v8678_v51  ;;  %v7487_v51 = vcombine.low %v133_v39, %v137_v40  ;;  %v193_v39 = vld [vmem:[%s12909_s1 + $0x378] sm:$0xff]  ;;  %v7533_v40 = vcombine.low %v180_v27, %v184_v28 }
  0xb6   :  { %2612 = vmatprep.mubr.bf16.mxu0 %v8679_v52  ;;  %2951 = vmatprep.mubr.bf16.mxu1 %v8679_v52  ;;  %v7494_v52 = vcombine.high %v140_v45, %v144_v46  ;;  %v196_v45 = vld [vmem:[%s12909_s1 + $0x390] sm:$0xff] }
  0xb7   :  { %v200_v46 = vld [vmem:[%s12909_s1 + $0x3b0] sm:$0xff] }
  0xbd   :  { %2613 = vmatmul.mubr.bf16.gmra.mrb[28].mxu0 %v8681_v53  ;;  %2952 = vmatmul.mubr.bf16.gmra.mrb[28].mxu1 %v8681_v53  ;;  %v7496_v53 = vcombine.high %v141_v48, %v145_v49 }
  0xbe   :  { %7769 = vmatprep.mubr.msk.bf16.mxu0 %vm2372_vm0, %v8684_v54  ;;  %7777 = vmatprep.mubr.msk.bf16.mxu1 %vm2372_vm0, %v8684_v54  ;;  %v8694_v54 = vld [vmem:[%s12908_s0 + $0xd4] ss:$24 sps:$4 sm:$0xff]  }
  0xc5   :  { %2656 = vmatmul.mubr.bf16.vlgmr.msra.gmra.mrb[0].mxu0 %v8682_v57  ;;  %2995 = vmatmul.mubr.bf16.vlgmr.msra.gmra.mrb[0].mxu1 %v8682_v57  ;;  %v149_v57 = vld [vmem:[%s12909_s1 + $0x218] sm:$0xff] }
  0xc6   :  { %3076 = vmatpush1.bf16.msra.mxu0 %v7437_v60  ;;  %3415 = vmatpush1.bf16.msra.mxu1 %v7439_v61  ;;  %v7495_v60 = vcombine.low %v141_v48, %v145_v49  ;;  %v7502_v61 = vcombine.high %v148_v55, %v152_v56  ;;  %v201_v48 = vld [vmem:[%s12909_s1 + $0x3b8] sm:$0xff] }
  0xc7   :  { %3077 = vmatprep.subr.bf16.mxu0 %v7446_v62  ;;  %3416 = vmatprep.subr.bf16.mxu1 %v7448_v63  ;;  %v7504_v62 = vcombine.high %v149_v57, %v153_v58  ;;  %v156_v63 = vld [vmem:[%s12909_s1 + $0x250] sm:$0xff]  ;;  %v8705_v55 = vld [vmem:[%s12908_s0 + $0x160] ss:$24 sps:$4 sm:$0xff]  }
  0xc8   :  { %7770 = vmatprep.mubr.msk.bf16.mxu0 %vm2372_vm0, %v8685_v0  ;;  %7778 = vmatprep.mubr.msk.bf16.mxu1 %vm2372_vm0, %v8685_v0  ;;  %v160_v0 = vld [vmem:[%s12909_s1 + $0x270] sm:$0xff]  ;;  %v205_v56 = vld [vmem:[%s12909_s1 + $0x3d8] sm:$0xff] }
  0xc9   :  { %v7509_v13 = vcombine.low %v156_v63, %v160_v0 }
  0xca   :  { %3078 = vmatpush1.bf16.msra.mxu0 %v7445_v5  ;;  %3417 = vmatpush1.bf16.msra.mxu1 %v7447_v6  ;;  %v7503_v5 = vcombine.low %v149_v57, %v153_v58  ;;  %v7510_v6 = vcombine.high %v156_v63, %v160_v0  ;;  %v209_v57 = vld [vmem:[%s12909_s1 + $0x3f8] sm:$0xff]  ;;  %v7549_v58 = vcombine.low %v196_v45, %v200_v46  ;;  %v216_v63 = vld [vmem:[%s12909_s1 + $0x430] sm:$0xff] }
  0xcb   :  { %3079 = vmatprep.subr.bf16.mxu0 %v7454_v7  ;;  %3418 = vmatprep.subr.bf16.mxu1 %v7456_v8  ;;  %v7512_v7 = vcombine.high %v157_v2, %v161_v3  ;;  %v8697_v8 = vld [vmem:[%s12908_s0 + $0x104] ss:$24 sps:$4 sm:$0xff]  }
  0xcc   :  { %v213_v0 = vld [vmem:[%s12909_s1 + $0x418] sm:$0xff] }
  0xcd   :  { %2666 = vmatmul.mubr.bf16.gmra.mrb[4].mxu0 %v8687_v11  ;;  %3005 = vmatmul.mubr.bf16.gmra.mrb[4].mxu1 %v8687_v11  ;;  %v165_v11 = vld [vmem:[%s12909_s1 + $0x298] sm:$0xff] }
  0xce   :  { %3080 = vmatpush1.bf16.msra.mxu0 %v7453_v14  ;;  %3419 = vmatpush1.bf16.msra.mxu1 %v7455_v15  ;;  %v7511_v14 = vcombine.low %v157_v2, %v161_v3  ;;  %v7518_v15 = vcombine.high %v164_v9, %v168_v10  ;;  %v7559_v3 = vcombine.low %v205_v56, %v209_v57  ;;  %v221_v9 = vld [vmem:[%s12909_s1 + $0x458] sm:$0xff] }
  0xcf   :  { %3081 = vmatprep.subr.bf16.mxu0 %v7462_v16  ;;  %3420 = vmatprep.subr.bf16.mxu1 %v7464_v17  ;;  %v7520_v16 = vcombine.high %v165_v11, %v169_v12  ;;  %v172_v17 = vld [vmem:[%s12909_s1 + $0x2d0] sm:$0xff]  ;;  %v225_v10 = vld [vmem:[%s12909_s1 + $0x478] sm:$0xff] }
  0xd0   :  { %7771 = vmatprep.mubr.msk.bf16.mxu0 %vm2372_vm0, %v8688_v18  ;;  %7779 = vmatprep.mubr.msk.bf16.mxu1 %vm2372_vm0, %v8688_v18  ;;  %v176_v18 = vld [vmem:[%s12909_s1 + $0x2f0] sm:$0xff] }
  0xd1   :  { %v7525_v31 = vcombine.low %v172_v17, %v176_v18 }
  0xd2   :  { %3082 = vmatpush1.bf16.msra.mxu0 %v7461_v23  ;;  %3421 = vmatpush1.bf16.msra.mxu1 %v7463_v24  ;;  %v7519_v23 = vcombine.low %v165_v11, %v169_v12  ;;  %v7526_v24 = vcombine.high %v172_v17, %v176_v18  ;;  %v8707_v17 = vld [vmem:[%s12908_s0] ss:$24 sps:$4 sm:$0xff]  }
  0xd3   :  { %3083 = vmatprep.subr.bf16.mxu0 %v7470_v25  ;;  %3422 = vmatprep.subr.bf16.mxu1 %v7472_v26  ;;  %v7528_v25 = vcombine.high %v173_v20, %v177_v21  ;;  %v8700_v26 = vld [vmem:[%s12908_s0 + $0x134] ss:$24 sps:$4 sm:$0xff]   ;;  %v229_v18 = vld [vmem:[%s12909_s1 + $0x498] sm:$0xff] }
  0xd5   :  { %2676 = vmatmul.mubr.bf16.gmra.mrb[8].mxu0 %v8690_v29  ;;  %3015 = vmatmul.mubr.bf16.gmra.mrb[8].mxu1 %v8690_v29  ;;  %v181_v29 = vld [vmem:[%s12909_s1 + $0x318] sm:$0xff] }
  0xd6   :  { %3084 = vmatpush1.bf16.msra.mxu0 %v7469_v32  ;;  %3423 = vmatpush1.bf16.msra.mxu1 %v7471_v33  ;;  %v7527_v32 = vcombine.low %v173_v20, %v177_v21  ;;  %v7534_v33 = vcombine.high %v180_v27, %v184_v28  ;;  %v7575_v21 = vcombine.low %v221_v9, %v225_v10  ;;  %v237_v27 = vld [vmem:[%s12909_s1 + $0x4d8] sm:$0xff] }
  0xd7   :  { %3085 = vmatprep.subr.bf16.mxu0 %v7478_v34  ;;  %3424 = vmatprep.subr.bf16.mxu1 %v7480_v35  ;;  %v7536_v34 = vcombine.high %v181_v29, %v185_v30  ;;  %v188_v35 = vld [vmem:[%s12909_s1 + $0x350] sm:$0xff]  ;;  %v241_v28 = vld [vmem:[%s12909_s1 + $0x4f8] sm:$0xff] }
  0xd8   :  { %7772 = vmatprep.mubr.msk.bf16.mxu0 %vm2372_vm0, %v8691_v36  ;;  %7780 = vmatprep.mubr.msk.bf16.mxu1 %vm2372_vm0, %v8691_v36  ;;  %v192_v36 = vld [vmem:[%s12909_s1 + $0x370] sm:$0xff] }
  0xd9   :  { %v7541_v49 = vcombine.low %v188_v35, %v192_v36 }
  0xda   :  { %3086 = vmatpush1.bf16.msra.mxu0 %v7477_v41  ;;  %3425 = vmatpush1.bf16.msra.mxu1 %v7479_v42  ;;  %v7535_v41 = vcombine.low %v181_v29, %v185_v30  ;;  %v7542_v42 = vcombine.high %v188_v35, %v192_v36  ;;  %v8709_v35 = vld [vmem:[%s12908_s0 + $0x30] ss:$24 sps:$4 sm:$0xff]   ;;  %v245_v36 = vld [vmem:[%s12909_s1 + $0x518] sm:$0xff] }
  0xdb   :  { %3087 = vmatprep.subr.bf16.mxu0 %v7486_v43  ;;  %3426 = vmatprep.subr.bf16.mxu1 %v7488_v44  ;;  %v7544_v43 = vcombine.high %v189_v38, %v193_v39  ;;  %v8703_v44 = vld [vmem:[%s12908_s0 + $0x164] ss:$24 sps:$4 sm:$0xff]  }
  0xdd   :  { %2686 = vmatmul.mubr.bf16.gmra.mrb[12].mxu0 %v8693_v47  ;;  %3025 = vmatmul.mubr.bf16.gmra.mrb[12].mxu1 %v8693_v47  ;;  %v197_v47 = vld [vmem:[%s12909_s1 + $0x398] sm:$0xff] }
  0xde   :  { %3088 = vmatpush1.bf16.msra.mxu0 %v7485_v50  ;;  %3427 = vmatpush1.bf16.msra.mxu1 %v7487_v51  ;;  %v7543_v50 = vcombine.low %v189_v38, %v193_v39  ;;  %v7550_v51 = vcombine.high %v196_v45, %v200_v46  ;;  %v7591_v39 = vcombine.low %v237_v27, %v241_v28  ;;  %v253_v45 = vld [vmem:[%s12909_s1 + $0x558] sm:$0xff] }
  0xdf   :  { %3089 = vmatprep.subr.bf16.mxu0 %v7494_v52  ;;  %3428 = vmatprep.subr.bf16.mxu1 %v7496_v53  ;;  %v7552_v52 = vcombine.high %v197_v47, %v201_v48  ;;  %v204_v53 = vld [vmem:[%s12909_s1 + $0x3d0] sm:$0xff]  ;;  %v257_v46 = vld [vmem:[%s12909_s1 + $0x578] sm:$0xff] }
  0xe0   :  { %7773 = vmatprep.mubr.msk.bf16.mxu0 %vm2372_vm0, %v8694_v54  ;;  %7781 = vmatprep.mubr.msk.bf16.mxu1 %vm2372_vm0, %v8694_v54  ;;  %v208_v54 = vld [vmem:[%s12909_s1 + $0x3f0] sm:$0xff] }
  0xe1   :  { %v7557_v2 = vcombine.low %v204_v53, %v208_v54 }
  0xe2   :  { %3090 = vmatpush1.bf16.msra.mxu0 %v7493_v59  ;;  %3429 = vmatpush1.bf16.msra.mxu1 %v7495_v60  ;;  %v7551_v59 = vcombine.low %v197_v47, %v201_v48  ;;  %v7558_v60 = vcombine.high %v204_v53, %v208_v54  ;;  %v8711_v53 = vld [vmem:[%s12908_s0 + $0x60] ss:$24 sps:$4 sm:$0xff]  }
  0xe3   :  { %3091 = vmatprep.subr.bf16.mxu0 %v7502_v61  ;;  %3430 = vmatprep.subr.bf16.mxu1 %v7504_v62  ;;  %v7560_v61 = vcombine.high %v205_v56, %v209_v57  ;;  %v212_v62 = vld [vmem:[%s12909_s1 + $0x410] sm:$0xff]  ;;  %v261_v54 = vld [vmem:[%s12909_s1 + $0x598] sm:$0xff]  ;;  %v7607_v57 = vcombine.low %v253_v45, %v257_v46 }
  0xe4   :  { %v7565_v11 = vcombine.low %v212_v62, %v216_v63 }
  0xe5   :  { %2696 = vmatmul.mubr.bf16.gmra.mrb[16].mxu0 %v8696_v1  ;;  %3035 = vmatmul.mubr.bf16.gmra.mrb[16].mxu1 %v8696_v1  ;;  %v217_v1 = vld [vmem:[%s12909_s1 + $0x438] sm:$0xff] }
  0xe6   :  { %3092 = vmatpush1.bf16.msra.mxu0 %v7501_v4  ;;  %3431 = vmatpush1.bf16.msra.mxu1 %v7503_v5  ;;  %v7566_v4 = vcombine.high %v212_v62, %v216_v63  ;;  %v8706_v5 = vld [vmem:[%s12908_s0 + $0x4] ss:$24 sps:$4 sm:$0xff]   ;;  %v7567_v12 = vcombine.low %v213_v0, %v217_v1  ;;  %v272_v62 = vld [vmem:[%s12909_s1 + $0x5f0] sm:$0xff] }
  0xe7   :  { %3093 = vmatprep.subr.bf16.mxu0 %v7510_v6  ;;  %3432 = vmatprep.subr.bf16.mxu1 %v7512_v7  ;;  %v7568_v6 = vcombine.high %v213_v0, %v217_v1  ;;  %v220_v7 = vld [vmem:[%s12909_s1 + $0x450] sm:$0xff]  ;;  %v269_v63 = vld [vmem:[%s12909_s1 + $0x5d8] sm:$0xff] }
  0xe8   :  { %7774 = vmatprep.mubr.msk.bf16.mxu0 %vm2372_vm0, %v8697_v8  ;;  %7782 = vmatprep.mubr.msk.bf16.mxu1 %vm2372_vm0, %v8697_v8  ;;  %v224_v8 = vld [vmem:[%s12909_s1 + $0x470] sm:$0xff]  ;;  %v273_v0 = vld [vmem:[%s12909_s1 + $0x5f8] sm:$0xff] }
  0xe9   :  { %v7573_v20 = vcombine.low %v220_v7, %v224_v8 }
  0xea   :  { %3094 = vmatpush1.bf16.msra.mxu0 %v7509_v13  ;;  %3433 = vmatpush1.bf16.msra.mxu1 %v7511_v14  ;;  %v7574_v13 = vcombine.high %v220_v7, %v224_v8  ;;  %v7576_v14 = vcombine.high %v221_v9, %v225_v10  ;;  %v8713_v7 = vld [vmem:[%s12908_s0 + $0x90] ss:$24 sps:$4 sm:$0xff]   ;;  %v277_v8 = vld [vmem:[%s12909_s1 + $0x618] sm:$0xff] }
  0xeb   :  { %3095 = vmatprep.subr.bf16.mxu0 %v7518_v15  ;;  %3434 = vmatprep.subr.bf16.mxu1 %v7520_v16  ;;  %v228_v15 = vld [vmem:[%s12909_s1 + $0x490] sm:$0xff]  ;;  %v281_v9 = vld [vmem:[%s12909_s1 + $0x638] sm:$0xff] }
  0xec   :  { %v232_v16 = vld [vmem:[%s12909_s1 + $0x4b0] sm:$0xff] }
  0xed   :  { %2706 = vmatmul.mubr.bf16.gmra.mrb[20].mxu0 %v8699_v19  ;;  %3045 = vmatmul.mubr.bf16.gmra.mrb[20].mxu1 %v8699_v19  ;;  %v233_v19 = vld [vmem:[%s12909_s1 + $0x4b8] sm:$0xff]  ;;  %v7581_v29 = vcombine.low %v228_v15, %v232_v16 }
  0xee   :  { %3096 = vmatpush1.bf16.msra.mxu0 %v7517_v22  ;;  %3435 = vmatpush1.bf16.msra.mxu1 %v7519_v23  ;;  %v7582_v22 = vcombine.high %v228_v15, %v232_v16  ;;  %v8708_v23 = vld [vmem:[%s12908_s0 + $0x34] ss:$24 sps:$4 sm:$0xff]   ;;  %v7583_v30 = vcombine.low %v229_v18, %v233_v19 }
  0xef   :  { %3097 = vmatprep.subr.bf16.mxu0 %v7526_v24  ;;  %3436 = vmatprep.subr.bf16.mxu1 %v7528_v25  ;;  %v7584_v24 = vcombine.high %v229_v18, %v233_v19  ;;  %v236_v25 = vld [vmem:[%s12909_s1 + $0x4d0] sm:$0xff]  ;;  %v289_v18 = vld [vmem:[%s12909_s1 + $0x678] sm:$0xff] }
  0xf0   :  { %7775 = vmatprep.mubr.msk.bf16.mxu0 %vm2372_vm0, %v8700_v26  ;;  %7783 = vmatprep.mubr.msk.bf16.mxu1 %vm2372_vm0, %v8700_v26  ;;  %v240_v26 = vld [vmem:[%s12909_s1 + $0x4f0] sm:$0xff] }
  0xf1   :  { %v7589_v38 = vcombine.low %v236_v25, %v240_v26  ;;  %v284_v15 = vld [vmem:[%s12909_s1 + $0x650] sm:$0xff] }
  0xf2   :  { %3098 = vmatpush1.bf16.msra.mxu0 %v7525_v31  ;;  %3437 = vmatpush1.bf16.msra.mxu1 %v7527_v32  ;;  %v7590_v31 = vcombine.high %v236_v25, %v240_v26  ;;  %v7592_v32 = vcombine.high %v237_v27, %v241_v28  ;;  %v288_v16 = vld [vmem:[%s12909_s1 + $0x670] sm:$0xff]  ;;  %v8715_v25 = vld [vmem:[%s12908_s0 + $0xc0] ss:$24 sps:$4 sm:$0xff]  }
  0xf3   :  { %3099 = vmatprep.subr.bf16.mxu0 %v7534_v33  ;;  %3438 = vmatprep.subr.bf16.mxu1 %v7536_v34  ;;  %v244_v33 = vld [vmem:[%s12909_s1 + $0x510] sm:$0xff]  ;;  %v293_v26 = vld [vmem:[%s12909_s1 + $0x698] sm:$0xff]  ;;  %v7637_v28 = vcombine.low %v284_v15, %v288_v16 }
  0xf4   :  { %v248_v34 = vld [vmem:[%s12909_s1 + $0x530] sm:$0xff]  ;;  %v297_v27 = vld [vmem:[%s12909_s1 + $0x6b8] sm:$0xff] }
  0xf5   :  { %2716 = vmatmul.mubr.bf16.gmra.mrb[24].mxu0 %v8702_v37  ;;  %3055 = vmatmul.mubr.bf16.gmra.mrb[24].mxu1 %v8702_v37  ;;  %v249_v37 = vld [vmem:[%s12909_s1 + $0x538] sm:$0xff]  ;;  %v7597_v47 = vcombine.low %v244_v33, %v248_v34 }
  0xf6   :  { %3100 = vmatpush1.bf16.msra.mxu0 %v7533_v40  ;;  %3439 = vmatpush1.bf16.msra.mxu1 %v7535_v41  ;;  %v7598_v40 = vcombine.high %v244_v33, %v248_v34  ;;  %v8710_v41 = vld [vmem:[%s12908_s0 + $0x64] ss:$24 sps:$4 sm:$0xff]   ;;  %v7599_v48 = vcombine.low %v245_v36, %v249_v37  ;;  %v300_v33 = vld [vmem:[%s12909_s1 + $0x6d0] sm:$0xff] }
  0xf7   :  { %3101 = vmatprep.subr.bf16.mxu0 %v7542_v42  ;;  %3440 = vmatprep.subr.bf16.mxu1 %v7544_v43  ;;  %v7600_v42 = vcombine.high %v245_v36, %v249_v37  ;;  %v252_v43 = vld [vmem:[%s12909_s1 + $0x550] sm:$0xff]  ;;  %v305_v36 = vld [vmem:[%s12909_s1 + $0x6f8] sm:$0xff] }
  0xf8   :  { %7776 = vmatprep.mubr.msk.bf16.mxu0 %vm2372_vm0, %v8703_v44  ;;  %7784 = vmatprep.mubr.msk.bf16.mxu1 %vm2372_vm0, %v8703_v44  ;;  %v256_v44 = vld [vmem:[%s12909_s1 + $0x570] sm:$0xff] }
  0xf9   :  { %v7605_v56 = vcombine.low %v252_v43, %v256_v44  ;;  %v304_v34 = vld [vmem:[%s12909_s1 + $0x6f0] sm:$0xff] }
  0xfa   :  { %3102 = vmatpush1.bf16.msra.mxu0 %v7541_v49  ;;  %3441 = vmatpush1.bf16.msra.mxu1 %v7543_v50  ;;  %v7606_v49 = vcombine.high %v252_v43, %v256_v44  ;;  %v7608_v50 = vcombine.high %v253_v45, %v257_v46  ;;  %v8717_v43 = vld [vmem:[%s12908_s0 + $0xf0] ss:$24 sps:$4 sm:$0xff]   ;;  %v309_v44 = vld [vmem:[%s12909_s1 + $0x718] sm:$0xff]  ;;  %v7653_v46 = vcombine.low %v300_v33, %v304_v34 }
  0xfb   :  { %3103 = vmatprep.subr.bf16.mxu0 %v7550_v51  ;;  %3442 = vmatprep.subr.bf16.mxu1 %v7552_v52  ;;  %v260_v51 = vld [vmem:[%s12909_s1 + $0x590] sm:$0xff]  ;;  %v313_v45 = vld [vmem:[%s12909_s1 + $0x738] sm:$0xff] }
  0xfc   :  { %v264_v52 = vld [vmem:[%s12909_s1 + $0x5b0] sm:$0xff] }
  0xfd   :  { %2726 = vmatmul.mubr.bf16.gmra.mrb[28].mxu0 %v8705_v55  ;;  %3065 = vmatmul.mubr.bf16.gmra.mrb[28].mxu1 %v8705_v55  ;;  %v265_v55 = vld [vmem:[%s12909_s1 + $0x5b8] sm:$0xff]  ;;  %v7613_v1 = vcombine.low %v260_v51, %v264_v52 }
  0xfe   :  { %3104 = vmatpush1.bf16.msra.mxu0 %v7549_v58  ;;  %3443 = vmatpush1.bf16.msra.mxu1 %v7551_v59  ;;  %v7614_v58 = vcombine.high %v260_v51, %v264_v52  ;;  %v8712_v59 = vld [vmem:[%s12908_s0 + $0x94] ss:$24 sps:$4 sm:$0xff]  }
  0xff   :  { %3105 = vmatprep.subr.bf16.mxu0 %v7558_v60  ;;  %3444 = vmatprep.subr.bf16.mxu1 %v7560_v61  ;;  %v7616_v60 = vcombine.high %v261_v54, %v265_v55  ;;  %v268_v61 = vld [vmem:[%s12909_s1 + $0x5d0] sm:$0xff] }
 0x100   :  { %3107 = vmatprep.mubr.bf16.mxu0 %v8706_v5  ;;  %3446 = vmatprep.mubr.bf16.mxu1 %v8706_v5  ;;  %v276_v5 = vld [vmem:[%s12909_s1 + $0x610] sm:$0xff]  ;;  %v7621_v10 = vcombine.low %v268_v61, %v272_v62 }
 0x101   :  { %v316_v51 = vld [vmem:[%s12909_s1 + $0x750] sm:$0xff] }
 0x102   :  { %3106 = vmatpush1.bf16.msra.mxu0 %v7557_v2  ;;  %3445 = vmatpush1.bf16.msra.mxu1 %v7559_v3  ;;  %v7615_v2 = vcombine.low %v261_v54, %v265_v55  ;;  %v7622_v3 = vcombine.high %v268_v61, %v272_v62  ;;  %v320_v52 = vld [vmem:[%s12909_s1 + $0x770] sm:$0xff]  ;;  %v321_v54 = vld [vmem:[%s12909_s1 + $0x778] sm:$0xff] }
 0x103   :  { %3188 = vmatprep.subr.bf16.mxu0 %v7566_v4  ;;  %3527 = vmatprep.subr.bf16.mxu1 %v7568_v6  ;;  %v7624_v4 = vcombine.high %v269_v63, %v273_v0  ;;  %v280_v6 = vld [vmem:[%s12909_s1 + $0x630] sm:$0xff]  ;;  %v8719_v61 = vld [vmem:[%s12908_s0 + $0x120] ss:$24 sps:$4 sm:$0xff]  }
 0x104   :  { %v7629_v19 = vcombine.low %v276_v5, %v280_v6  ;;  %v325_v62 = vld [vmem:[%s12909_s1 + $0x798] sm:$0xff] }
 0x105   :  { %3108 = vmatmul.mubr.bf16.vlgmr.msra.gmra.mrb[32].mxu0 %v8707_v17  ;;  %3447 = vmatmul.mubr.bf16.vlgmr.msra.gmra.mrb[32].mxu1 %v8707_v17  ;;  %v285_v17 = vld [vmem:[%s12909_s1 + $0x658] sm:$0xff] }
 0x106   :  { %3189 = vmatpush1.bf16.msra.mxu0 %v7565_v11  ;;  %3528 = vmatpush1.bf16.msra.mxu1 %v7567_v12  ;;  %v7623_v11 = vcombine.low %v269_v63, %v273_v0  ;;  %v7630_v12 = vcombine.high %v276_v5, %v280_v6  ;;  %v329_v63 = vld [vmem:[%s12909_s1 + $0x7b8] sm:$0xff]  ;;  %v7669_v0 = vcombine.low %v316_v51, %v320_v52  ;;  %v332_v5 = vld [vmem:[%s12909_s1 + $0x7d0] sm:$0xff] }
 0x107   :  { %3190 = vmatprep.subr.bf16.mxu0 %v7574_v13  ;;  %3529 = vmatprep.subr.bf16.mxu1 %v7576_v14  ;;  %v8714_v13 = vld [vmem:[%s12908_s0 + $0xc4] ss:$24 sps:$4 sm:$0xff]   ;;  %v7632_v14 = vcombine.high %v277_v8, %v281_v9  ;;  %v336_v6 = vld [vmem:[%s12909_s1 + $0x7f0] sm:$0xff] }
 0x108   :  { %3117 = vmatprep.mubr.bf16.mxu0 %v8708_v23  ;;  %3456 = vmatprep.mubr.bf16.mxu1 %v8708_v23  ;;  %v292_v23 = vld [vmem:[%s12909_s1 + $0x690] sm:$0xff] }
 0x10a   :  { %3191 = vmatpush1.bf16.msra.mxu0 %v7573_v20  ;;  %3530 = vmatpush1.bf16.msra.mxu1 %v7575_v21  ;;  %v7631_v20 = vcombine.low %v277_v8, %v281_v9  ;;  %v7638_v21 = vcombine.high %v284_v15, %v288_v16  ;;  %v337_v8 = vld [vmem:[%s12909_s1 + $0x7f8] sm:$0xff]  ;;  %v8721_v15 = vld [vmem:[%s12908_s0 + $0x150] ss:$24 sps:$4 sm:$0xff]  }
 0x10b   :  { %3192 = vmatprep.subr.bf16.mxu0 %v7582_v22  ;;  %3531 = vmatprep.subr.bf16.mxu1 %v7584_v24  ;;  %v7640_v22 = vcombine.high %v285_v17, %v289_v18  ;;  %v296_v24 = vld [vmem:[%s12909_s1 + $0x6b0] sm:$0xff]  ;;  %v341_v16 = vld [vmem:[%s12909_s1 + $0x818] sm:$0xff] }
 0x10c   :  { %v7645_v37 = vcombine.low %v292_v23, %v296_v24 }
 0x10d   :  { %3118 = vmatmul.mubr.bf16.gmra.mrb[36].mxu0 %v8709_v35  ;;  %3457 = vmatmul.mubr.bf16.gmra.mrb[36].mxu1 %v8709_v35  ;;  %v301_v35 = vld [vmem:[%s12909_s1 + $0x6d8] sm:$0xff] }
 0x10e   :  { %3193 = vmatpush1.bf16.msra.mxu0 %v7581_v29  ;;  %3532 = vmatpush1.bf16.msra.mxu1 %v7583_v30  ;;  %v7639_v29 = vcombine.low %v285_v17, %v289_v18  ;;  %v7646_v30 = vcombine.high %v292_v23, %v296_v24  ;;  %v345_v17 = vld [vmem:[%s12909_s1 + $0x838] sm:$0xff]  ;;  %v7685_v18 = vcombine.low %v332_v5, %v336_v6  ;;  %v348_v23 = vld [vmem:[%s12909_s1 + $0x850] sm:$0xff] }
 0x10f   :  { %3194 = vmatprep.subr.bf16.mxu0 %v7590_v31  ;;  %3533 = vmatprep.subr.bf16.mxu1 %v7592_v32  ;;  %v8716_v31 = vld [vmem:[%s12908_s0 + $0xf4] ss:$24 sps:$4 sm:$0xff]   ;;  %v7648_v32 = vcombine.high %v293_v26, %v297_v27 }
 0x110   :  { %3127 = vmatprep.mubr.bf16.mxu0 %v8710_v41  ;;  %3466 = vmatprep.mubr.bf16.mxu1 %v8710_v41  ;;  %v308_v41 = vld [vmem:[%s12909_s1 + $0x710] sm:$0xff] }
 0x111   :  { %v352_v24 = vld [vmem:[%s12909_s1 + $0x870] sm:$0xff] }
 0x112   :  { %3195 = vmatpush1.bf16.msra.mxu0 %v7589_v38  ;;  %3534 = vmatpush1.bf16.msra.mxu1 %v7591_v39  ;;  %v7647_v38 = vcombine.low %v293_v26, %v297_v27  ;;  %v7654_v39 = vcombine.high %v300_v33, %v304_v34  ;;  %v349_v26 = vld [vmem:[%s12909_s1 + $0x858] sm:$0xff] }
 0x113   :  { %3196 = vmatprep.subr.bf16.mxu0 %v7598_v40  ;;  %3535 = vmatprep.subr.bf16.mxu1 %v7600_v42  ;;  %v7656_v40 = vcombine.high %v301_v35, %v305_v36  ;;  %v312_v42 = vld [vmem:[%s12909_s1 + $0x730] sm:$0xff]  ;;  %v353_v27 = vld [vmem:[%s12909_s1 + $0x878] sm:$0xff] }
 0x114   :  { %v7661_v55 = vcombine.low %v308_v41, %v312_v42  ;;  %v7704_v33 = vcombine.high %v349_v26, %v353_v27  ;;  %v357_v34 = vld [vmem:[%s12909_s1 + $0x898] sm:$0xff] }
 0x115   :  { %3128 = vmatmul.mubr.bf16.gmra.mrb[40].mxu0 %v8711_v53  ;;  %3467 = vmatmul.mubr.bf16.gmra.mrb[40].mxu1 %v8711_v53  ;;  %v317_v53 = vld [vmem:[%s12909_s1 + $0x758] sm:$0xff] }
 0x116   :  { %3197 = vmatpush1.bf16.msra.mxu0 %v7597_v47  ;;  %3536 = vmatpush1.bf16.msra.mxu1 %v7599_v48  ;;  %v7655_v47 = vcombine.low %v301_v35, %v305_v36  ;;  %v7662_v48 = vcombine.high %v308_v41, %v312_v42  ;;  %v361_v35 = vld [vmem:[%s12909_s1 + $0x8b8] sm:$0xff]  ;;  %v7701_v36 = vcombine.low %v348_v23, %v352_v24  ;;  %v364_v41 = vld [vmem:[%s12909_s1 + $0x8d0] sm:$0xff] }
 0x117   :  { %3198 = vmatprep.subr.bf16.mxu0 %v7606_v49  ;;  %3537 = vmatprep.subr.bf16.mxu1 %v7608_v50  ;;  %v8718_v49 = vld [vmem:[%s12908_s0 + $0x124] ss:$24 sps:$4 sm:$0xff]   ;;  %v7664_v50 = vcombine.high %v309_v44, %v313_v45  ;;  %v368_v42 = vld [vmem:[%s12909_s1 + $0x8f0] sm:$0xff] }
 0x118   :  { %3137 = vmatprep.mubr.bf16.mxu0 %v8712_v59  ;;  %3476 = vmatprep.mubr.bf16.mxu1 %v8712_v59  ;;  %v324_v59 = vld [vmem:[%s12909_s1 + $0x790] sm:$0xff] }
 0x11a   :  { %3199 = vmatpush1.bf16.msra.mxu0 %v7605_v56  ;;  %3538 = vmatpush1.bf16.msra.mxu1 %v7607_v57  ;;  %v7663_v56 = vcombine.low %v309_v44, %v313_v45  ;;  %v7670_v57 = vcombine.high %v316_v51, %v320_v52  ;;  %v365_v44 = vld [vmem:[%s12909_s1 + $0x8d8] sm:$0xff] }
 0x11b   :  { %3200 = vmatprep.subr.bf16.mxu0 %v7614_v58  ;;  %3539 = vmatprep.subr.bf16.mxu1 %v7616_v60  ;;  %v7672_v58 = vcombine.high %v317_v53, %v321_v54  ;;  %v328_v60 = vld [vmem:[%s12909_s1 + $0x7b0] sm:$0xff]  ;;  %v369_v45 = vld [vmem:[%s12909_s1 + $0x8f8] sm:$0xff] }
 0x11c   :  { %v7677_v9 = vcombine.low %v324_v59, %v328_v60  ;;  %v7720_v51 = vcombine.high %v365_v44, %v369_v45  ;;  %v373_v52 = vld [vmem:[%s12909_s1 + $0x918] sm:$0xff] }
 0x11d   :  { %3138 = vmatmul.mubr.bf16.gmra.mrb[44].mxu0 %v8713_v7  ;;  %3477 = vmatmul.mubr.bf16.gmra.mrb[44].mxu1 %v8713_v7  ;;  %v333_v7 = vld [vmem:[%s12909_s1 + $0x7d8] sm:$0xff] }
 0x11e   :  { %3201 = vmatpush1.bf16.msra.mxu0 %v7613_v1  ;;  %3540 = vmatpush1.bf16.msra.mxu1 %v7615_v2  ;;  %v7671_v1 = vcombine.low %v317_v53, %v321_v54  ;;  %v7678_v2 = vcombine.high %v324_v59, %v328_v60  ;;  %v377_v53 = vld [vmem:[%s12909_s1 + $0x938] sm:$0xff]  ;;  %v7717_v54 = vcombine.low %v364_v41, %v368_v42  ;;  %v380_v59 = vld [vmem:[%s12909_s1 + $0x950] sm:$0xff] }
 0x11f   :  { %3202 = vmatprep.subr.bf16.mxu0 %v7622_v3  ;;  %3541 = vmatprep.subr.bf16.mxu1 %v7624_v4  ;;  %v8720_v3 = vld [vmem:[%s12908_s0 + $0x154] ss:$24 sps:$4 sm:$0xff]   ;;  %v7680_v4 = vcombine.high %v325_v62, %v329_v63 }
 0x120   :  { %3147 = vmatprep.mubr.bf16.mxu0 %v8714_v13  ;;  %3486 = vmatprep.mubr.bf16.mxu1 %v8714_v13  ;;  %v340_v13 = vld [vmem:[%s12909_s1 + $0x810] sm:$0xff] }
 0x121   :  { %v384_v60 = vld [vmem:[%s12909_s1 + $0x970] sm:$0xff] }
 0x122   :  { %3203 = vmatpush1.bf16.msra.mxu0 %v7621_v10  ;;  %3542 = vmatpush1.bf16.msra.mxu1 %v7623_v11  ;;  %v7679_v10 = vcombine.low %v325_v62, %v329_v63  ;;  %v7686_v11 = vcombine.high %v332_v5, %v336_v6  ;;  %v385_v62 = vld [vmem:[%s12909_s1 + $0x978] sm:$0xff]  ;;  %v392_v5 = vld [vmem:[%s12909_s1 + $0x9b0] sm:$0xff] }
 0x123   :  { %3204 = vmatprep.subr.bf16.mxu0 %v7630_v12  ;;  %3543 = vmatprep.subr.bf16.mxu1 %v7632_v14  ;;  %v7688_v12 = vcombine.high %v333_v7, %v337_v8  ;;  %v344_v14 = vld [vmem:[%s12909_s1 + $0x830] sm:$0xff] }
 0x124   :  { %v8728_v6 = vld [vmem:[%s12908_s0 + $0x9c] ss:$24 sps:$4 sm:$0xff]  }
 0x125   :  { %3148 = vmatmul.mubr.bf16.gmra.mrb[48].mxu0 %v8715_v25  ;;  %3487 = vmatmul.mubr.bf16.gmra.mrb[48].mxu1 %v8715_v25  ;;  %v7693_v25 = vcombine.low %v340_v13, %v344_v14 }
 0x126   :  { %3205 = vmatpush1.bf16.msra.mxu0 %v7629_v19  ;;  %3544 = vmatpush1.bf16.msra.mxu1 %v7631_v20  ;;  %v7687_v19 = vcombine.low %v333_v7, %v337_v8  ;;  %v7694_v20 = vcombine.high %v340_v13, %v344_v14  ;;  %v389_v7 = vld [vmem:[%s12909_s1 + $0x998] sm:$0xff]  ;;  %v396_v13 = vld [vmem:[%s12909_s1 + $0x9d0] sm:$0xff] }
 0x127   :  { %3206 = vmatprep.subr.bf16.mxu0 %v7638_v21  ;;  %3545 = vmatprep.subr.bf16.mxu1 %v7640_v22  ;;  %v8722_v21 = vld [vmem:[%s12908_s0 + $0xc] ss:$24 sps:$4 sm:$0xff]   ;;  %v7696_v22 = vcombine.high %v341_v16, %v345_v17  ;;  %v393_v8 = vld [vmem:[%s12909_s1 + $0x9b8] sm:$0xff]  ;;  %v400_v14 = vld [vmem:[%s12909_s1 + $0x9f0] sm:$0xff] }
 0x128   :  { %3157 = vmatprep.mubr.bf16.mxu0 %v8716_v31  ;;  %3496 = vmatprep.mubr.bf16.mxu1 %v8716_v31  ;;  %v360_v31 = vld [vmem:[%s12909_s1 + $0x8b0] sm:$0xff] }
 0x12a   :  { %3207 = vmatpush1.bf16.msra.mxu0 %v7637_v28  ;;  %3546 = vmatpush1.bf16.msra.mxu1 %v7639_v29  ;;  %v7695_v28 = vcombine.low %v341_v16, %v345_v17  ;;  %v7702_v29 = vcombine.high %v348_v23, %v352_v24  ;;  %v401_v16 = vld [vmem:[%s12909_s1 + $0x9f8] sm:$0xff]  ;;  %v408_v23 = vld [vmem:[%s12909_s1 + $0xa30] sm:$0xff]  ;;  %v8730_v24 = vld [vmem:[%s12908_s0 + $0xcc] ss:$24 sps:$4 sm:$0xff]  }
 0x12b   :  { %3208 = vmatprep.subr.bf16.mxu0 %v7646_v30  ;;  %3547 = vmatprep.subr.bf16.mxu1 %v7648_v32  ;;  %v356_v30 = vld [vmem:[%s12909_s1 + $0x890] sm:$0xff]  ;;  %v8723_v32 = vld [vmem:[%s12908_s0 + $0x8] ss:$24 sps:$4 sm:$0xff]  }
 0x12d   :  { %3158 = vmatmul.mubr.bf16.gmra.mrb[52].mxu0 %v8717_v43  ;;  %3497 = vmatmul.mubr.bf16.gmra.mrb[52].mxu1 %v8717_v43  ;;  %v7709_v43 = vcombine.low %v356_v30, %v360_v31 }
 0x12e   :  { %3209 = vmatpush1.bf16.msra.mxu0 %v7645_v37  ;;  %3548 = vmatpush1.bf16.msra.mxu1 %v7647_v38  ;;  %v8724_v37 = vld [vmem:[%s12908_s0 + $0x3c] ss:$24 sps:$4 sm:$0xff]   ;;  %v7703_v38 = vcombine.low %v349_v26, %v353_v27  ;;  %v7749_v27 = vcombine.low %v396_v13, %v400_v14 }
 0x12f   :  { %3210 = vmatprep.subr.bf16.mxu0 %v7654_v39  ;;  %3549 = vmatprep.subr.bf16.mxu1 %v7656_v40  ;;  %v7710_v39 = vcombine.high %v356_v30, %v360_v31  ;;  %v7712_v40 = vcombine.high %v357_v34, %v361_v35  ;;  %v409_v26 = vld [vmem:[%s12909_s1 + $0xa38] sm:$0xff]  ;;  %v412_v31 = vld [vmem:[%s12909_s1 + $0xa50] sm:$0xff] }
 0x130   :  { %3167 = vmatprep.mubr.bf16.mxu0 %v8718_v49  ;;  %3506 = vmatprep.mubr.bf16.mxu1 %v8718_v49  ;;  %v376_v49 = vld [vmem:[%s12909_s1 + $0x930] sm:$0xff] }
 0x132   :  { %3211 = vmatpush1.bf16.msra.mxu0 %v7653_v46  ;;  %3550 = vmatpush1.bf16.msra.mxu1 %v7655_v47  ;;  %v7711_v46 = vcombine.low %v357_v34, %v361_v35  ;;  %v7718_v47 = vcombine.high %v364_v41, %v368_v42  ;;  %v417_v34 = vld [vmem:[%s12909_s1 + $0xa78] sm:$0xff] }
 0x133   :  { %3212 = vmatprep.subr.bf16.mxu0 %v7662_v48  ;;  %3551 = vmatprep.subr.bf16.mxu1 %v7664_v50  ;;  %v372_v48 = vld [vmem:[%s12909_s1 + $0x910] sm:$0xff] }
 0x134   :  { %v8725_v50 = vld [vmem:[%s12908_s0 + $0x38] ss:$24 sps:$4 sm:$0xff]   ;;  %v7725_v63 = vcombine.low %v372_v48, %v376_v49 }
 0x135   :  { %3168 = vmatmul.mubr.bf16.gmra.mrb[56].mxu0 %v8719_v61  ;;  %3507 = vmatmul.mubr.bf16.gmra.mrb[56].mxu1 %v8719_v61  ;;  %v381_v61 = vld [vmem:[%s12909_s1 + $0x958] sm:$0xff] }
 0x136   :  { %3213 = vmatpush1.bf16.msra.mxu0 %v7661_v55  ;;  %3552 = vmatpush1.bf16.msra.mxu1 %v7663_v56  ;;  %v8726_v55 = vld [vmem:[%s12908_s0 + $0x6c] ss:$24 sps:$4 sm:$0xff]   ;;  %v7719_v56 = vcombine.low %v365_v44, %v369_v45  ;;  %v8735_v45 = vld [vmem:[%s12908_s0 + $0x128] ss:$24 sps:$4 sm:$0xff]  }
 0x137   :  { %3214 = vmatprep.subr.bf16.mxu0 %v7670_v57  ;;  %3553 = vmatprep.subr.bf16.mxu1 %v7672_v58  ;;  %v7726_v57 = vcombine.high %v372_v48, %v376_v49  ;;  %v7728_v58 = vcombine.high %v373_v52, %v377_v53  ;;  %v8734_v44 = vld [vmem:[%s12908_s0 + $0x12c] ss:$24 sps:$4 sm:$0xff]   ;;  %v8739_v49 = vld [vmem:[%s12908_s0 + $0x10] ss:$24 sps:$4 sm:$0xff]  }
 0x138   :  { %3177 = vmatprep.mubr.bf16.mxu0 %v8720_v3  ;;  %3516 = vmatprep.mubr.bf16.mxu1 %v8720_v3  ;;  %v7736_v3 = vcombine.high %v381_v61, %v385_v62  ;;  %v8738_v48 = vld [vmem:[%s12908_s0 + $0x14] ss:$24 sps:$4 sm:$0xff]  }
 0x13a   :  { %3215 = vmatpush1.bf16.msra.mxu0 %v7669_v0  ;;  %3554 = vmatpush1.bf16.msra.mxu1 %v7671_v1  ;;  %v7727_v0 = vcombine.low %v373_v52, %v377_v53  ;;  %v7734_v1 = vcombine.high %v380_v59, %v384_v60  ;;  %v8741_v52 = vld [vmem:[%s12908_s0 + $0x40] ss:$24 sps:$4 sm:$0xff]  }
 0x13b   :  { %3216 = vmatprep.subr.bf16.mxu0 %v7678_v2  ;;  %3555 = vmatprep.subr.bf16.mxu1 %v7680_v4  ;;  %v8727_v2 = vld [vmem:[%s12908_s0 + $0x68] ss:$24 sps:$4 sm:$0xff]   ;;  %v388_v4 = vld [vmem:[%s12909_s1 + $0x990] sm:$0xff] }
 0x13c   :  { %v7741_v17 = vcombine.low %v388_v4, %v392_v5 }
 0x13d   :  { %3178 = vmatmul.mubr.bf16.gmra.mrb[60].mxu0 %v8721_v15  ;;  %3517 = vmatmul.mubr.bf16.gmra.mrb[60].mxu1 %v8721_v15  ;;  %v397_v15 = vld [vmem:[%s12909_s1 + $0x9d8] sm:$0xff] }
 0x13e   :  { %3217 = vmatpush1.bf16.msra.mxu0 %v7677_v9  ;;  %3556 = vmatpush1.bf16.msra.mxu1 %v7679_v10  ;;  %v7733_v9 = vcombine.low %v380_v59, %v384_v60  ;;  %v7735_v10 = vcombine.low %v381_v61, %v385_v62  ;;  %v8743_v60 = vld [vmem:[%s12908_s0 + $0x70] ss:$24 sps:$4 sm:$0xff]  }
 0x13f   :  { %3218 = vmatprep.subr.bf16.mxu0 %v7686_v11  ;;  %3557 = vmatprep.subr.bf16.mxu1 %v7688_v12  ;;  %v7742_v11 = vcombine.high %v388_v4, %v392_v5  ;;  %v7744_v12 = vcombine.high %v389_v7, %v393_v8 }
 0x140   :  { %3220 = vmatprep.mubr.bf16.mxu0 %v8722_v21  ;;  %3559 = vmatprep.mubr.bf16.mxu1 %v8722_v21  ;;  %v7752_v21 = vcombine.high %v397_v15, %v401_v16 }
 0x142   :  { %3219 = vmatpush1.bf16.msra.mxu0 %v7685_v18  ;;  %3558 = vmatpush1.bf16.msra.mxu1 %v7687_v19  ;;  %v7743_v18 = vcombine.low %v389_v7, %v393_v8  ;;  %v7750_v19 = vcombine.high %v396_v13, %v400_v14 }
 0x143   :  { %3301 = vmatprep.subr.bf16.mxu0 %v7694_v20  ;;  %3640 = vmatprep.subr.bf16.mxu1 %v7696_v22  ;;  %v8729_v20 = vld [vmem:[%s12908_s0 + $0x98] ss:$24 sps:$4 sm:$0xff]  }
 0x144   :  { %v404_v22 = vld [vmem:[%s12909_s1 + $0xa10] sm:$0xff] }
 0x145   :  { %3221 = vmatmul.mubr.bf16.vlgmr.msra.gmra.mrb[32].mxu0 %v8723_v32  ;;  %3560 = vmatmul.mubr.bf16.vlgmr.msra.gmra.mrb[32].mxu1 %v8723_v32  ;;  %v416_v32 = vld [vmem:[%s12909_s1 + $0xa70] sm:$0xff]  ;;  %v7757_v35 = vcombine.low %v404_v22, %v408_v23 }
 0x146   :  { %3302 = vmatpush1.bf16.msra.mxu0 %v7693_v25  ;;  %3641 = vmatpush1.bf16.msra.mxu1 %v7695_v28  ;;  %v405_v25 = vld [vmem:[%s12909_s1 + $0xa18] sm:$0xff]  ;;  %v7751_v28 = vcombine.low %v397_v15, %v401_v16  ;;  %v7765_v41 = vcombine.low %v412_v31, %v416_v32 }
 0x147   :  { %3230 = vmatprep.mubr.bf16.mxu0 %v8724_v37  ;;  %3303 = vmatprep.subr.bf16.mxu0 %v7702_v29  ;;  %v7758_v29 = vcombine.high %v404_v22, %v408_v23  ;;  %v7760_v30 = vcombine.high %v405_v25, %v409_v26 }
 0x148   :  { %3569 = vmatprep.mubr.bf16.mxu1 %v8724_v37  ;;  %3642 = vmatprep.subr.bf16.mxu1 %v7704_v33  ;;  %v413_v33 = vld [vmem:[%s12909_s1 + $0xa58] sm:$0xff]  ;;  %v7766_v37 = vcombine.high %v412_v31, %v416_v32 }
 0x149   :  { %v7767_v42 = vcombine.low %v413_v33, %v417_v34 }
 0x14a   :  { %3304 = vmatpush1.bf16.msra.mxu0 %v7701_v36  ;;  %3643 = vmatpush1.bf16.msra.mxu1 %v7703_v38  ;;  %v7759_v36 = vcombine.low %v405_v25, %v409_v26  ;;  %v8731_v38 = vld [vmem:[%s12908_s0 + $0xc8] ss:$24 sps:$4 sm:$0xff]  }
 0x14b   :  { %3305 = vmatprep.subr.bf16.mxu0 %v7710_v39  ;;  %3644 = vmatprep.subr.bf16.mxu1 %v7712_v40  ;;  %v7768_v39 = vcombine.high %v413_v33, %v417_v34  ;;  %v8732_v40 = vld [vmem:[%s12908_s0 + $0xfc] ss:$24 sps:$4 sm:$0xff]  }
 0x14d   :  { %3231 = vmatmul.mubr.bf16.gmra.mrb[36].mxu0 %v8725_v50  ;;  %3570 = vmatmul.mubr.bf16.gmra.mrb[36].mxu1 %v8725_v50  ;;  %v8740_v50 = vld [vmem:[%s12908_s0 + $0x44] ss:$24 sps:$4 sm:$0xff]  }
 0x14e   :  { %3306 = vmatpush1.bf16.msra.mxu0 %v7709_v43  ;;  %3645 = vmatpush1.bf16.msra.mxu1 %v7711_v46  ;;  %v8733_v43 = vld [vmem:[%s12908_s0 + $0xf8] ss:$24 sps:$4 sm:$0xff]   ;;  %v8736_v46 = vld [vmem:[%s12908_s0 + $0x15c] ss:$24 sps:$4 sm:$0xff]  }
 0x14f   :  { %3240 = vmatprep.mubr.bf16.mxu0 %v8726_v55  ;;  %3579 = vmatprep.mubr.bf16.mxu1 %v8726_v55 }
 0x150   :  { %3307 = vmatprep.subr.bf16.mxu0 %v7718_v47  ;;  %3646 = vmatprep.subr.bf16.mxu1 %v7720_v51  ;;  %v8737_v47 = vld [vmem:[%s12908_s0 + $0x158] ss:$24 sps:$4 sm:$0xff]   ;;  %v420_v51 = vlaneseq }
 0x152   :  { %3308 = vmatpush1.bf16.msra.mxu0 %v7717_v54  ;;  %3647 = vmatpush1.bf16.msra.mxu1 %v7719_v56  ;;  %v10429_v53 = vshrl.u32 %v420_v51, 7  ;;  %v8742_v54 = vld [vmem:[%s12908_s0 + $0x74] ss:$24 sps:$4 sm:$0xff]   ;;  %v10440_v56 = vld [vmem:[%s12910_s2] sm:$0xff] }
 0x153   :  { %3309 = vmatprep.subr.bf16.mxu0 %v7726_v57  ;;  %3648 = vmatprep.subr.bf16.mxu1 %v7728_v58 }
 0x154   :  { %13051 = vst [vmem:[#allocation9_spill] sm:$0xff] %v10429_v53  ;;  %v12925_v55 = vsub.s32 0, %v10429_v53  ;;  %v12924_v57 = vsub.s32 2, %v10429_v53  ;;  %v12923_v58 = vsub.s32 1, %v10429_v53  ;;  %v12922_v59 = vsub.s32 3, %v10429_v53 }
 0x155   :  { %3241 = vmatmul.mubr.bf16.gmra.mrb[40].mxu0 %v8727_v2  ;;  %3580 = vmatmul.mubr.bf16.gmra.mrb[40].mxu1 %v8727_v2  ;;  %vm3883_vm1 = vcmp.lt.s32.totalorder %v10429_v53, 2 }
 0x156   :  { %3250 = vmatprep.mubr.bf16.mxu0 %v8728_v6  ;;  %3589 = vmatprep.mubr.bf16.mxu1 %v8728_v6  ;;  %v10451_v61 = vrot.slane %v10440_v56, %v12925_v55  ;;  %v10456_v62 = vrot.slane %v10440_v56, %v12924_v57 }
 0x157   :  { %3310 = vmatpush1.bf16.msra.mxu0 %v7725_v63  ;;  %3649 = vmatpush1.bf16.msra.mxu1 %v7727_v0  ;;  %v10461_v63 = vrot.slane %v10440_v56, %v12923_v58  ;;  %v8744_v0 = vld [vmem:[%s12908_s0 + $0xa4] ss:$24 sps:$4 sm:$0xff]  }
 0x158   :  { %3311 = vmatprep.subr.bf16.mxu0 %v7734_v1  ;;  %3650 = vmatprep.subr.bf16.mxu1 %v7736_v3  ;;  %v10470_v1 = vrot.slane %v10440_v56, %v12922_v59 }
 0x15b   :  { %3312 = vmatpush1.bf16.msra.mxu0 %v7733_v9  ;;  %3651 = vmatpush1.bf16.msra.mxu1 %v7735_v10 }
 0x15c   :  { %3313 = vmatprep.subr.bf16.mxu0 %v7742_v11  ;;  %3652 = vmatprep.subr.bf16.mxu1 %v7744_v12 }
 0x15d   :  { %3251 = vmatmul.mubr.bf16.gmra.mrb[44].mxu0 %v8729_v20  ;;  %3590 = vmatmul.mubr.bf16.gmra.mrb[44].mxu1 %v8729_v20 }
 0x15e   :  { %3260 = vmatprep.mubr.bf16.mxu0 %v8730_v24  ;;  %3599 = vmatprep.mubr.bf16.mxu1 %v8730_v24 }
 0x15f   :  { %3314 = vmatpush1.bf16.msra.mxu0 %v7741_v17  ;;  %3653 = vmatpush1.bf16.msra.mxu1 %v7743_v18  ;;  %v8745_v18 = vld [vmem:[%s12908_s0 + $0xa0] ss:$24 sps:$4 sm:$0xff]  }
 0x160   :  { %3315 = vmatprep.subr.bf16.mxu0 %v7750_v19  ;;  %3654 = vmatprep.subr.bf16.mxu1 %v7752_v21  ;;  %v8746_v19 = vld [vmem:[%s12908_s0 + $0xd4] ss:$24 sps:$4 sm:$0xff]  }
 0x163   :  { %3316 = vmatpush1.bf16.msra.mxu0 %v7749_v27  ;;  %3655 = vmatpush1.bf16.msra.mxu1 %v7751_v28 }
 0x164   :  { %3317 = vmatprep.subr.bf16.mxu0 %v7758_v29  ;;  %3656 = vmatprep.subr.bf16.mxu1 %v7760_v30 }
 0x165   :  { %3261 = vmatmul.mubr.bf16.gmra.mrb[48].mxu0 %v8731_v38  ;;  %3600 = vmatmul.mubr.bf16.gmra.mrb[48].mxu1 %v8731_v38 }
 0x166   :  { %3270 = vmatprep.mubr.bf16.mxu0 %v8732_v40  ;;  %3609 = vmatprep.mubr.bf16.mxu1 %v8732_v40 }
 0x167   :  { %3318 = vmatpush1.bf16.msra.mxu0 %v7757_v35  ;;  %3657 = vmatpush1.bf16.msra.mxu1 %v7759_v36  ;;  %v8747_v36 = vld [vmem:[%s12908_s0 + $0xd0] ss:$24 sps:$4 sm:$0xff]  }
 0x168   :  { %3319 = vmatprep.subr.bf16.mxu0 %v7766_v37  ;;  %3658 = vmatprep.subr.bf16.mxu1 %v7768_v39  ;;  %v8748_v37 = vld [vmem:[%s12908_s0 + $0x104] ss:$24 sps:$4 sm:$0xff]  }
 0x16b   :  { %3320 = vmatpush1.bf16.msra.mxu0 %v7765_v41  ;;  %3659 = vmatpush1.bf16.msra.mxu1 %v7767_v42 }
 0x16d   :  { %3271 = vmatmul.mubr.bf16.gmra.mrb[52].mxu0 %v8733_v43  ;;  %3610 = vmatmul.mubr.bf16.gmra.mrb[52].mxu1 %v8733_v43 }
 0x16e   :  { %3280 = vmatprep.mubr.bf16.mxu0 %v8734_v44  ;;  %3619 = vmatprep.mubr.bf16.mxu1 %v8734_v44 }
 0x175   :  { %3281 = vmatmul.mubr.bf16.gmra.mrb[56].mxu0 %v8735_v45  ;;  %3620 = vmatmul.mubr.bf16.gmra.mrb[56].mxu1 %v8735_v45 }
 0x176   :  { %3290 = vmatprep.mubr.bf16.mxu0 %v8736_v46  ;;  %3629 = vmatprep.mubr.bf16.mxu1 %v8736_v46 }
 0x17d   :  { %3291 = vmatmul.mubr.bf16.gmra.mrb[60].mxu0 %v8737_v47  ;;  %3630 = vmatmul.mubr.bf16.gmra.mrb[60].mxu1 %v8737_v47 }
 0x17e   :  { %7785 = vmatprep.mubr.msk.bf16.mxu0 %vm2372_vm0, %v8738_v48  ;;  %7793 = vmatprep.mubr.msk.bf16.mxu1 %vm2372_vm0, %v8738_v48 }
 0x185   :  { %3334 = vmatmul.mubr.bf16.vlgmr.msra.gmra.mrb[32].mxu0 %v8739_v49  ;;  %3673 = vmatmul.mubr.bf16.vlgmr.msra.gmra.mrb[32].mxu1 %v8739_v49 }
 0x186   :  { %7786 = vmatprep.mubr.msk.bf16.mxu0 %vm2372_vm0, %v8740_v50  ;;  %7794 = vmatprep.mubr.msk.bf16.mxu1 %vm2372_vm0, %v8740_v50 }
 0x18d   :  { %3344 = vmatmul.mubr.bf16.gmra.mrb[36].mxu0 %v8741_v52  ;;  %3683 = vmatmul.mubr.bf16.gmra.mrb[36].mxu1 %v8741_v52 }
 0x18e   :  { %7787 = vmatprep.mubr.msk.bf16.mxu0 %vm2372_vm0, %v8742_v54  ;;  %7795 = vmatprep.mubr.msk.bf16.mxu1 %vm2372_vm0, %v8742_v54 }
 0x195   :  { %3354 = vmatmul.mubr.bf16.gmra.mrb[40].mxu0 %v8743_v60  ;;  %3693 = vmatmul.mubr.bf16.gmra.mrb[40].mxu1 %v8743_v60  ;;  %v8749_v60 = vld [vmem:[%s12908_s0 + $0x100] ss:$24 sps:$4 sm:$0xff]  }
 0x196   :  { %7788 = vmatprep.mubr.msk.bf16.mxu0 %vm2372_vm0, %v8744_v0  ;;  %7796 = vmatprep.mubr.msk.bf16.mxu1 %vm2372_vm0, %v8744_v0  ;;  %v8750_v0 = vld [vmem:[%s12908_s0 + $0x134] ss:$24 sps:$4 sm:$0xff]  }
 0x198   :  { %v2657_v2 = vpop.f32.mrb[0].mxu0  ;;  %v2996_v4 = vpop.f32.mrb[0].mxu1 }
 0x199   :  { %v8201_v3 = vadd.f32 %v2657_v2, %v10451_v61  ;;  %v2659_v5 = vpop.f32.mrb[1].mxu0  ;;  %v8233_v6 = vadd.f32 %v2996_v4, %v10456_v62  ;;  %v2998_v8 = vpop.f32.mrb[1].mxu1 }
 0x19a   :  { %v8202_v7 = vadd.f32 %v2659_v5, %v10461_v63  ;;  %v2661_v9 = vpop.f32.mrb[2].mxu0  ;;  %v8234_v10 = vadd.f32 %v2998_v8, %v10470_v1  ;;  %v3000_v12 = vpop.f32.mrb[2].mxu1 }
 0x19b   :  { %3753 = vst [vmem:[#allocation2] sm:$0xff] %v8201_v3  ;;  %v8203_v11 = vadd.f32 %v2661_v9, %v10451_v61  ;;  %v2663_v13 = vpop.f32.mrb[3].mxu0  ;;  %3755 = vst [vmem:[#allocation2 + $0x10] sm:$0xff] %v8233_v6  ;;  %v8235_v14 = vadd.f32 %v3000_v12, %v10456_v62  ;;  %v3002_v16 = vpop.f32.mrb[3].mxu1 }
 0x19c   :  { %3754 = vst [vmem:[#allocation2 + $0x8] sm:$0xff] %v8202_v7  ;;  %v8204_v15 = vadd.f32 %v2663_v13, %v10461_v63  ;;  %3756 = vst [vmem:[#allocation2 + $0x18] sm:$0xff] %v8234_v10  ;;  %v8236_v17 = vadd.f32 %v3002_v16, %v10470_v1 }
 0x19d   :  { %3761 = vst [vmem:[#allocation2 + $0x40] sm:$0xff] %v8203_v11  ;;  %3364 = vmatmul.mubr.bf16.gmra.mrb[44].mxu0 %v8745_v18  ;;  %3763 = vst [vmem:[#allocation2 + $0x50] sm:$0xff] %v8235_v14  ;;  %3703 = vmatmul.mubr.bf16.gmra.mrb[44].mxu1 %v8745_v18  ;;  %v8751_v18 = vld [vmem:[%s12908_s0 + $0x130] ss:$24 sps:$4 sm:$0xff]  }
 0x19e   :  { %3762 = vst [vmem:[#allocation2 + $0x48] sm:$0xff] %v8204_v15  ;;  %7789 = vmatprep.mubr.msk.bf16.mxu0 %vm2372_vm0, %v8746_v19  ;;  %3764 = vst [vmem:[#allocation2 + $0x58] sm:$0xff] %v8236_v17  ;;  %7797 = vmatprep.mubr.msk.bf16.mxu1 %vm2372_vm0, %v8746_v19  ;;  %v8752_v19 = vld [vmem:[%s12908_s0 + $0x164] ss:$24 sps:$4 sm:$0xff]  }
 0x1a0   :  { %v2667_v20 = vpop.f32.mrb[4].mxu0  ;;  %v3006_v22 = vpop.f32.mrb[4].mxu1 }
 0x1a1   :  { %v8205_v21 = vadd.f32 %v2667_v20, %v10451_v61  ;;  %v2669_v23 = vpop.f32.mrb[5].mxu0  ;;  %v8237_v24 = vadd.f32 %v3006_v22, %v10456_v62  ;;  %v3008_v26 = vpop.f32.mrb[5].mxu1 }
 0x1a2   :  { %v8206_v25 = vadd.f32 %v2669_v23, %v10461_v63  ;;  %v2671_v27 = vpop.f32.mrb[6].mxu0  ;;  %v8238_v28 = vadd.f32 %v3008_v26, %v10470_v1  ;;  %v3010_v30 = vpop.f32.mrb[6].mxu1 }
 0x1a3   :  { %3769 = vst [vmem:[#allocation2 + $0x80] sm:$0xff] %v8205_v21  ;;  %v8207_v29 = vadd.f32 %v2671_v27, %v10451_v61  ;;  %v2673_v31 = vpop.f32.mrb[7].mxu0  ;;  %3771 = vst [vmem:[#allocation2 + $0x90] sm:$0xff] %v8237_v24  ;;  %v8239_v32 = vadd.f32 %v3010_v30, %v10456_v62  ;;  %v3012_v34 = vpop.f32.mrb[7].mxu1 }
 0x1a4   :  { %3770 = vst [vmem:[#allocation2 + $0x88] sm:$0xff] %v8206_v25  ;;  %v8208_v33 = vadd.f32 %v2673_v31, %v10461_v63  ;;  %3772 = vst [vmem:[#allocation2 + $0x98] sm:$0xff] %v8238_v28  ;;  %v8240_v35 = vadd.f32 %v3012_v34, %v10470_v1 }
 0x1a5   :  { %3777 = vst [vmem:[#allocation2 + $0xc0] sm:$0xff] %v8207_v29  ;;  %3374 = vmatmul.mubr.bf16.gmra.mrb[48].mxu0 %v8747_v36  ;;  %3779 = vst [vmem:[#allocation2 + $0xd0] sm:$0xff] %v8239_v32  ;;  %3713 = vmatmul.mubr.bf16.gmra.mrb[48].mxu1 %v8747_v36  ;;  %v8753_v36 = vld [vmem:[%s12908_s0 + $0x160] ss:$24 sps:$4 sm:$0xff]   ;;  %s10665_s0 = smov 0  }
 0x1a6   :  { %3778 = vst [vmem:[#allocation2 + $0xc8] sm:$0xff] %v8208_v33  ;;  %7790 = vmatprep.mubr.msk.bf16.mxu0 %vm2372_vm0, %v8748_v37  ;;  %3780 = vst [vmem:[#allocation2 + $0xd8] sm:$0xff] %v8240_v35  ;;  %7798 = vmatprep.mubr.msk.bf16.mxu1 %vm2372_vm0, %v8748_v37 }
 0x1a8   :  { %v2677_v38 = vpop.f32.mrb[8].mxu0  ;;  %v3016_v40 = vpop.f32.mrb[8].mxu1 }
 0x1a9   :  { %v8209_v39 = vadd.f32 %v2677_v38, %v10451_v61  ;;  %v2679_v41 = vpop.f32.mrb[9].mxu0  ;;  %v8241_v42 = vadd.f32 %v3016_v40, %v10456_v62  ;;  %v3018_v44 = vpop.f32.mrb[9].mxu1 }
 0x1aa   :  { %v8210_v43 = vadd.f32 %v2679_v41, %v10461_v63  ;;  %v2681_v45 = vpop.f32.mrb[10].mxu0  ;;  %v8242_v46 = vadd.f32 %v3018_v44, %v10470_v1  ;;  %v3020_v48 = vpop.f32.mrb[10].mxu1 }
 0x1ab   :  { %3785 = vst [vmem:[#allocation2 + $0x100] sm:$0xff] %v8209_v39  ;;  %v8211_v47 = vadd.f32 %v2681_v45, %v10451_v61  ;;  %v2683_v49 = vpop.f32.mrb[11].mxu0  ;;  %3787 = vst [vmem:[#allocation2 + $0x110] sm:$0xff] %v8241_v42  ;;  %v8243_v50 = vadd.f32 %v3020_v48, %v10456_v62  ;;  %v3022_v52 = vpop.f32.mrb[11].mxu1 }
 0x1ac   :  { %3786 = vst [vmem:[#allocation2 + $0x108] sm:$0xff] %v8210_v43  ;;  %v8212_v51 = vadd.f32 %v2683_v49, %v10461_v63  ;;  %3788 = vst [vmem:[#allocation2 + $0x118] sm:$0xff] %v8242_v46  ;;  %v8244_v54 = vadd.f32 %v3022_v52, %v10470_v1 }
 0x1ad   :  { %3793 = vst [vmem:[#allocation2 + $0x140] sm:$0xff] %v8211_v47  ;;  %3384 = vmatmul.mubr.bf16.gmra.mrb[52].mxu0 %v8749_v60  ;;  %3795 = vst [vmem:[#allocation2 + $0x150] sm:$0xff] %v8243_v50  ;;  %3723 = vmatmul.mubr.bf16.gmra.mrb[52].mxu1 %v8749_v60 }
 0x1ae   :  { %3794 = vst [vmem:[#allocation2 + $0x148] sm:$0xff] %v8212_v51  ;;  %7791 = vmatprep.mubr.msk.bf16.mxu0 %vm2372_vm0, %v8750_v0  ;;  %3796 = vst [vmem:[#allocation2 + $0x158] sm:$0xff] %v8244_v54  ;;  %7799 = vmatprep.mubr.msk.bf16.mxu1 %vm2372_vm0, %v8750_v0 }
 0x1b0   :  { %v2687_v2 = vpop.f32.mrb[12].mxu0  ;;  %v3026_v4 = vpop.f32.mrb[12].mxu1 }
 0x1b1   :  { %v8213_v3 = vadd.f32 %v2687_v2, %v10451_v61  ;;  %v2689_v5 = vpop.f32.mrb[13].mxu0  ;;  %v8245_v6 = vadd.f32 %v3026_v4, %v10456_v62  ;;  %v3028_v8 = vpop.f32.mrb[13].mxu1 }
 0x1b2   :  { %v8214_v7 = vadd.f32 %v2689_v5, %v10461_v63  ;;  %v2691_v9 = vpop.f32.mrb[14].mxu0  ;;  %v8246_v10 = vadd.f32 %v3028_v8, %v10470_v1  ;;  %v3030_v12 = vpop.f32.mrb[14].mxu1 }
 0x1b3   :  { %3801 = vst [vmem:[#allocation2 + $0x180] sm:$0xff] %v8213_v3  ;;  %v8215_v11 = vadd.f32 %v2691_v9, %v10451_v61  ;;  %v2693_v13 = vpop.f32.mrb[15].mxu0  ;;  %3803 = vst [vmem:[#allocation2 + $0x190] sm:$0xff] %v8245_v6  ;;  %v8247_v14 = vadd.f32 %v3030_v12, %v10456_v62  ;;  %v3032_v16 = vpop.f32.mrb[15].mxu1 }
 0x1b4   :  { %3802 = vst [vmem:[#allocation2 + $0x188] sm:$0xff] %v8214_v7  ;;  %v8216_v15 = vadd.f32 %v2693_v13, %v10461_v63  ;;  %3804 = vst [vmem:[#allocation2 + $0x198] sm:$0xff] %v8246_v10  ;;  %v8248_v17 = vadd.f32 %v3032_v16, %v10470_v1 }
 0x1b5   :  { %3809 = vst [vmem:[#allocation2 + $0x1c0] sm:$0xff] %v8215_v11  ;;  %3394 = vmatmul.mubr.bf16.gmra.mrb[56].mxu0 %v8751_v18  ;;  %3811 = vst [vmem:[#allocation2 + $0x1d0] sm:$0xff] %v8247_v14  ;;  %3733 = vmatmul.mubr.bf16.gmra.mrb[56].mxu1 %v8751_v18 }
 0x1b6   :  { %3810 = vst [vmem:[#allocation2 + $0x1c8] sm:$0xff] %v8216_v15  ;;  %7792 = vmatprep.mubr.msk.bf16.mxu0 %vm2372_vm0, %v8752_v19  ;;  %3812 = vst [vmem:[#allocation2 + $0x1d8] sm:$0xff] %v8248_v17  ;;  %7800 = vmatprep.mubr.msk.bf16.mxu1 %vm2372_vm0, %v8752_v19 }
 0x1b8   :  { %v2697_v20 = vpop.f32.mrb[16].mxu0  ;;  %v3036_v22 = vpop.f32.mrb[16].mxu1 }
 0x1b9   :  { %v8217_v21 = vadd.f32 %v2697_v20, %v10451_v61  ;;  %v2699_v23 = vpop.f32.mrb[17].mxu0  ;;  %v8249_v24 = vadd.f32 %v3036_v22, %v10456_v62  ;;  %v3038_v26 = vpop.f32.mrb[17].mxu1 }
 0x1ba   :  { %v8218_v25 = vadd.f32 %v2699_v23, %v10461_v63  ;;  %v2701_v27 = vpop.f32.mrb[18].mxu0  ;;  %v8250_v28 = vadd.f32 %v3038_v26, %v10470_v1  ;;  %v3040_v30 = vpop.f32.mrb[18].mxu1 }
 0x1bb   :  { %3817 = vst [vmem:[#allocation2 + $0x200] sm:$0xff] %v8217_v21  ;;  %v8219_v29 = vadd.f32 %v2701_v27, %v10451_v61  ;;  %v2703_v31 = vpop.f32.mrb[19].mxu0  ;;  %3819 = vst [vmem:[#allocation2 + $0x210] sm:$0xff] %v8249_v24  ;;  %v8251_v32 = vadd.f32 %v3040_v30, %v10456_v62  ;;  %v3042_v34 = vpop.f32.mrb[19].mxu1 }
 0x1bc   :  { %3818 = vst [vmem:[#allocation2 + $0x208] sm:$0xff] %v8218_v25  ;;  %v8220_v33 = vadd.f32 %v2703_v31, %v10461_v63  ;;  %3820 = vst [vmem:[#allocation2 + $0x218] sm:$0xff] %v8250_v28  ;;  %v8252_v35 = vadd.f32 %v3042_v34, %v10470_v1  ;;  %v12920_v31 = vsub.s32 6, %v10429_v53 }
 0x1bd   :  { %3825 = vst [vmem:[#allocation2 + $0x240] sm:$0xff] %v8219_v29  ;;  %3404 = vmatmul.mubr.bf16.gmra.mrb[60].mxu0 %v8753_v36  ;;  %3827 = vst [vmem:[#allocation2 + $0x250] sm:$0xff] %v8251_v32  ;;  %3743 = vmatmul.mubr.bf16.gmra.mrb[60].mxu1 %v8753_v36  ;;  %v12919_v32 = vsub.s32 5, %v10429_v53 }
 0x1be   :  { %3826 = vst [vmem:[#allocation2 + $0x248] sm:$0xff] %v8220_v33  ;;  %3828 = vst [vmem:[#allocation2 + $0x258] sm:$0xff] %v8252_v35 }
 0x1bf   :  { %v10590_v33 = vrot.slane %v10440_v56, %v12919_v32 }
 0x1c0   :  { %v2707_v37 = vpop.f32.mrb[20].mxu0  ;;  %v3046_v39 = vpop.f32.mrb[20].mxu1 }
 0x1c1   :  { %v8221_v38 = vadd.f32 %v2707_v37, %v10451_v61  ;;  %v2709_v40 = vpop.f32.mrb[21].mxu0  ;;  %v8253_v41 = vadd.f32 %v3046_v39, %v10456_v62  ;;  %v3048_v43 = vpop.f32.mrb[21].mxu1 }
 0x1c2   :  { %v8222_v42 = vadd.f32 %v2709_v40, %v10461_v63  ;;  %v2711_v44 = vpop.f32.mrb[22].mxu0  ;;  %v8254_v45 = vadd.f32 %v3048_v43, %v10470_v1  ;;  %v3050_v47 = vpop.f32.mrb[22].mxu1 }
 0x1c3   :  { %3833 = vst [vmem:[#allocation2 + $0x280] sm:$0xff] %v8221_v38  ;;  %v8223_v46 = vadd.f32 %v2711_v44, %v10451_v61  ;;  %v2713_v48 = vpop.f32.mrb[23].mxu0  ;;  %3835 = vst [vmem:[#allocation2 + $0x290] sm:$0xff] %v8253_v41  ;;  %v8255_v49 = vadd.f32 %v3050_v47, %v10456_v62  ;;  %v3052_v51 = vpop.f32.mrb[23].mxu1 }
 0x1c4   :  { %3834 = vst [vmem:[#allocation2 + $0x288] sm:$0xff] %v8222_v42  ;;  %v8224_v50 = vadd.f32 %v2713_v48, %v10461_v63  ;;  %3836 = vst [vmem:[#allocation2 + $0x298] sm:$0xff] %v8254_v45  ;;  %v8256_v52 = vadd.f32 %v3052_v51, %v10470_v1 }
 0x1c5   :  { %3841 = vst [vmem:[#allocation2 + $0x2c0] sm:$0xff] %v8223_v46  ;;  %3843 = vst [vmem:[#allocation2 + $0x2d0] sm:$0xff] %v8255_v49 }
 0x1c6   :  { %3842 = vst [vmem:[#allocation2 + $0x2c8] sm:$0xff] %v8224_v50  ;;  %3844 = vst [vmem:[#allocation2 + $0x2d8] sm:$0xff] %v8256_v52 }
 0x1c8   :  { %v2717_v54 = vpop.f32.mrb[24].mxu0  ;;  %v3056_v0 = vpop.f32.mrb[24].mxu1 }
 0x1c9   :  { %v8225_v60 = vadd.f32 %v2717_v54, %v10451_v61  ;;  %v2719_v2 = vpop.f32.mrb[25].mxu0  ;;  %v8257_v3 = vadd.f32 %v3056_v0, %v10456_v62  ;;  %v3058_v5 = vpop.f32.mrb[25].mxu1 }
 0x1ca   :  { %v8226_v4 = vadd.f32 %v2719_v2, %v10461_v63  ;;  %v2721_v6 = vpop.f32.mrb[26].mxu0  ;;  %v8258_v7 = vadd.f32 %v3058_v5, %v10470_v1  ;;  %v3060_v9 = vpop.f32.mrb[26].mxu1 }
 0x1cb   :  { %3849 = vst [vmem:[#allocation2 + $0x300] sm:$0xff] %v8225_v60  ;;  %v8227_v8 = vadd.f32 %v2721_v6, %v10451_v61  ;;  %v2723_v10 = vpop.f32.mrb[27].mxu0  ;;  %3851 = vst [vmem:[#allocation2 + $0x310] sm:$0xff] %v8257_v3  ;;  %v8259_v11 = vadd.f32 %v3060_v9, %v10456_v62  ;;  %v3062_v13 = vpop.f32.mrb[27].mxu1 }
 0x1cc   :  { %3850 = vst [vmem:[#allocation2 + $0x308] sm:$0xff] %v8226_v4  ;;  %v8228_v12 = vadd.f32 %v2723_v10, %v10461_v63  ;;  %3852 = vst [vmem:[#allocation2 + $0x318] sm:$0xff] %v8258_v7  ;;  %v8260_v14 = vadd.f32 %v3062_v13, %v10470_v1 }
 0x1cd   :  { %3857 = vst [vmem:[#allocation2 + $0x340] sm:$0xff] %v8227_v8  ;;  %3859 = vst [vmem:[#allocation2 + $0x350] sm:$0xff] %v8259_v11 }
 0x1ce   :  { %3858 = vst [vmem:[#allocation2 + $0x348] sm:$0xff] %v8228_v12  ;;  %3860 = vst [vmem:[#allocation2 + $0x358] sm:$0xff] %v8260_v14 }
 0x1d0   :  { %v2727_v15 = vpop.f32.mrb[28].mxu0  ;;  %v3066_v17 = vpop.f32.mrb[28].mxu1 }
 0x1d1   :  { %v8229_v16 = vadd.f32 %v2727_v15, %v10451_v61  ;;  %v2729_v18 = vpop.f32.mrb[29].mxu0  ;;  %v8261_v19 = vadd.f32 %v3066_v17, %v10456_v62  ;;  %v3068_v21 = vpop.f32.mrb[29].mxu1 }
 0x1d2   :  { %v8230_v20 = vadd.f32 %v2729_v18, %v10461_v63  ;;  %v2731_v22 = vpop.f32.mrb[30].mxu0  ;;  %v8262_v23 = vadd.f32 %v3068_v21, %v10470_v1  ;;  %v3070_v25 = vpop.f32.mrb[30].mxu1 }
 0x1d3   :  { %3865 = vst [vmem:[#allocation2 + $0x380] sm:$0xff] %v8229_v16  ;;  %v8231_v24 = vadd.f32 %v2731_v22, %v10451_v61  ;;  %v2733_v26 = vpop.f32.mrb[31].mxu0  ;;  %3867 = vst [vmem:[#allocation2 + $0x390] sm:$0xff] %v8261_v19  ;;  %v8263_v27 = vadd.f32 %v3070_v25, %v10456_v62  ;;  %v3072_v29 = vpop.f32.mrb[31].mxu1  ;;  %v12921_v61 = vsub.s32 4, %v10429_v53  ;;  %v12918_v62 = vsub.s32 7, %v10429_v53 }
 0x1d4   :  { %3866 = vst [vmem:[#allocation2 + $0x388] sm:$0xff] %v8230_v20  ;;  %v8232_v28 = vadd.f32 %v2733_v26, %v10461_v63  ;;  %3868 = vst [vmem:[#allocation2 + $0x398] sm:$0xff] %v8262_v23  ;;  %v8264_v30 = vadd.f32 %v3072_v29, %v10470_v1  ;;  %v10585_v1 = vrot.slane %v10440_v56, %v12920_v31 }
 0x1d5   :  { %3873 = vst [vmem:[#allocation2 + $0x3c0] sm:$0xff] %v8231_v24  ;;  %3875 = vst [vmem:[#allocation2 + $0x3d0] sm:$0xff] %v8263_v27  ;;  %v10580_v63 = vrot.slane %v10440_v56, %v12921_v61  ;;  %v10595_v34 = vrot.slane %v10440_v56, %v12918_v62 }
 0x1d6   :  { %3874 = vst [vmem:[#allocation2 + $0x3c8] sm:$0xff] %v8232_v28  ;;  %3876 = vst [vmem:[#allocation2 + $0x3d8] sm:$0xff] %v8264_v30 }
 0x258   :  { %v3335_v35 = vpop.f32.mrb[32].mxu0  ;;  %v3674_v37 = vpop.f32.mrb[32].mxu1 }
 0x259   :  { %v8265_v36 = vadd.f32 %v3335_v35, %v10580_v63  ;;  %v3337_v38 = vpop.f32.mrb[33].mxu0  ;;  %v8297_v39 = vadd.f32 %v3674_v37, %v10585_v1  ;;  %v3676_v41 = vpop.f32.mrb[33].mxu1 }
 0x25a   :  { %v8266_v40 = vadd.f32 %v3337_v38, %v10590_v33  ;;  %v3339_v42 = vpop.f32.mrb[34].mxu0  ;;  %v8298_v43 = vadd.f32 %v3676_v41, %v10595_v34  ;;  %v3678_v45 = vpop.f32.mrb[34].mxu1 }
 0x25b   :  { %3757 = vst [vmem:[#allocation2 + $0x20] sm:$0xff] %v8265_v36  ;;  %v8267_v44 = vadd.f32 %v3339_v42, %v10580_v63  ;;  %v3341_v46 = vpop.f32.mrb[35].mxu0  ;;  %3759 = vst [vmem:[#allocation2 + $0x30] sm:$0xff] %v8297_v39  ;;  %v8299_v56 = vadd.f32 %v3678_v45, %v10585_v1  ;;  %v3680_v48 = vpop.f32.mrb[35].mxu1 }
 0x25c   :  { %3758 = vst [vmem:[#allocation2 + $0x28] sm:$0xff] %v8266_v40  ;;  %v8268_v47 = vadd.f32 %v3341_v46, %v10590_v33  ;;  %3760 = vst [vmem:[#allocation2 + $0x38] sm:$0xff] %v8298_v43  ;;  %v8300_v49 = vadd.f32 %v3680_v48, %v10595_v34 }
 0x25d   :  { %3765 = vst [vmem:[#allocation2 + $0x60] sm:$0xff] %v8267_v44  ;;  %3767 = vst [vmem:[#allocation2 + $0x70] sm:$0xff] %v8299_v56 }
 0x25e   :  { %3766 = vst [vmem:[#allocation2 + $0x68] sm:$0xff] %v8268_v47  ;;  %3768 = vst [vmem:[#allocation2 + $0x78] sm:$0xff] %v8300_v49 }
 0x260   :  { %v3345_v50 = vpop.f32.mrb[36].mxu0  ;;  %v3684_v52 = vpop.f32.mrb[36].mxu1 }
 0x261   :  { %v8269_v51 = vadd.f32 %v3345_v50, %v10580_v63  ;;  %v3347_v54 = vpop.f32.mrb[37].mxu0  ;;  %v8301_v60 = vadd.f32 %v3684_v52, %v10585_v1  ;;  %v3686_v2 = vpop.f32.mrb[37].mxu1 }
 0x262   :  { %v8270_v0 = vadd.f32 %v3347_v54, %v10590_v33  ;;  %v3349_v3 = vpop.f32.mrb[38].mxu0  ;;  %v8302_v4 = vadd.f32 %v3686_v2, %v10595_v34  ;;  %v3688_v6 = vpop.f32.mrb[38].mxu1 }
 0x263   :  { %3773 = vst [vmem:[#allocation2 + $0xa0] sm:$0xff] %v8269_v51  ;;  %v8271_v5 = vadd.f32 %v3349_v3, %v10580_v63  ;;  %v3351_v7 = vpop.f32.mrb[39].mxu0  ;;  %3775 = vst [vmem:[#allocation2 + $0xb0] sm:$0xff] %v8301_v60  ;;  %v8303_v8 = vadd.f32 %v3688_v6, %v10585_v1  ;;  %v3690_v10 = vpop.f32.mrb[39].mxu1 }
 0x264   :  { %3774 = vst [vmem:[#allocation2 + $0xa8] sm:$0xff] %v8270_v0  ;;  %v8272_v9 = vadd.f32 %v3351_v7, %v10590_v33  ;;  %3776 = vst [vmem:[#allocation2 + $0xb8] sm:$0xff] %v8302_v4  ;;  %v8304_v11 = vadd.f32 %v3690_v10, %v10595_v34 }
 0x265   :  { %3781 = vst [vmem:[#allocation2 + $0xe0] sm:$0xff] %v8271_v5  ;;  %3783 = vst [vmem:[#allocation2 + $0xf0] sm:$0xff] %v8303_v8 }
 0x266   :  { %3782 = vst [vmem:[#allocation2 + $0xe8] sm:$0xff] %v8272_v9  ;;  %3784 = vst [vmem:[#allocation2 + $0xf8] sm:$0xff] %v8304_v11 }
 0x268   :  { %v3355_v12 = vpop.f32.mrb[40].mxu0  ;;  %v3694_v14 = vpop.f32.mrb[40].mxu1 }
 0x269   :  { %v8273_v13 = vadd.f32 %v3355_v12, %v10580_v63  ;;  %v3357_v15 = vpop.f32.mrb[41].mxu0  ;;  %v8305_v16 = vadd.f32 %v3694_v14, %v10585_v1  ;;  %v3696_v18 = vpop.f32.mrb[41].mxu1 }
 0x26a   :  { %v8274_v17 = vadd.f32 %v3357_v15, %v10590_v33  ;;  %v3359_v19 = vpop.f32.mrb[42].mxu0  ;;  %v8306_v20 = vadd.f32 %v3696_v18, %v10595_v34  ;;  %v3698_v22 = vpop.f32.mrb[42].mxu1 }
 0x26b   :  { %3789 = vst [vmem:[#allocation2 + $0x120] sm:$0xff] %v8273_v13  ;;  %v8275_v21 = vadd.f32 %v3359_v19, %v10580_v63  ;;  %v3361_v23 = vpop.f32.mrb[43].mxu0  ;;  %3791 = vst [vmem:[#allocation2 + $0x130] sm:$0xff] %v8305_v16  ;;  %v8307_v24 = vadd.f32 %v3698_v22, %v10585_v1  ;;  %v3700_v26 = vpop.f32.mrb[43].mxu1 }
 0x26c   :  { %3790 = vst [vmem:[#allocation2 + $0x128] sm:$0xff] %v8274_v17  ;;  %v8276_v25 = vadd.f32 %v3361_v23, %v10590_v33  ;;  %3792 = vst [vmem:[#allocation2 + $0x138] sm:$0xff] %v8306_v20  ;;  %v8308_v27 = vadd.f32 %v3700_v26, %v10595_v34 }
 0x26d   :  { %3797 = vst [vmem:[#allocation2 + $0x160] sm:$0xff] %v8275_v21  ;;  %3799 = vst [vmem:[#allocation2 + $0x170] sm:$0xff] %v8307_v24 }
 0x26e   :  { %3798 = vst [vmem:[#allocation2 + $0x168] sm:$0xff] %v8276_v25  ;;  %3800 = vst [vmem:[#allocation2 + $0x178] sm:$0xff] %v8308_v27 }
 0x270   :  { %v3365_v28 = vpop.f32.mrb[44].mxu0  ;;  %v3704_v30 = vpop.f32.mrb[44].mxu1 }
 0x271   :  { %v8277_v29 = vadd.f32 %v3365_v28, %v10580_v63  ;;  %v3367_v35 = vpop.f32.mrb[45].mxu0  ;;  %v8309_v36 = vadd.f32 %v3704_v30, %v10585_v1  ;;  %v3706_v38 = vpop.f32.mrb[45].mxu1 }
 0x272   :  { %v8278_v37 = vadd.f32 %v3367_v35, %v10590_v33  ;;  %v3369_v39 = vpop.f32.mrb[46].mxu0  ;;  %v8310_v40 = vadd.f32 %v3706_v38, %v10595_v34  ;;  %v3708_v42 = vpop.f32.mrb[46].mxu1 }
 0x273   :  { %3805 = vst [vmem:[#allocation2 + $0x1a0] sm:$0xff] %v8277_v29  ;;  %v8279_v41 = vadd.f32 %v3369_v39, %v10580_v63  ;;  %v3371_v43 = vpop.f32.mrb[47].mxu0  ;;  %3807 = vst [vmem:[#allocation2 + $0x1b0] sm:$0xff] %v8309_v36  ;;  %v8311_v44 = vadd.f32 %v3708_v42, %v10585_v1  ;;  %v3710_v46 = vpop.f32.mrb[47].mxu1 }
 0x274   :  { %3806 = vst [vmem:[#allocation2 + $0x1a8] sm:$0xff] %v8278_v37  ;;  %v8280_v45 = vadd.f32 %v3371_v43, %v10590_v33  ;;  %3808 = vst [vmem:[#allocation2 + $0x1b8] sm:$0xff] %v8310_v40  ;;  %v8312_v56 = vadd.f32 %v3710_v46, %v10595_v34 }
 0x275   :  { %3813 = vst [vmem:[#allocation2 + $0x1e0] sm:$0xff] %v8279_v41  ;;  %3815 = vst [vmem:[#allocation2 + $0x1f0] sm:$0xff] %v8311_v44 }
 0x276   :  { %3814 = vst [vmem:[#allocation2 + $0x1e8] sm:$0xff] %v8280_v45  ;;  %3816 = vst [vmem:[#allocation2 + $0x1f8] sm:$0xff] %v8312_v56 }
 0x278   :  { %v3375_v47 = vpop.f32.mrb[48].mxu0  ;;  %v3714_v49 = vpop.f32.mrb[48].mxu1 }
 0x279   :  { %v8281_v48 = vadd.f32 %v3375_v47, %v10580_v63  ;;  %v3377_v50 = vpop.f32.mrb[49].mxu0  ;;  %v8313_v51 = vadd.f32 %v3714_v49, %v10585_v1  ;;  %v3716_v54 = vpop.f32.mrb[49].mxu1 }
 0x27a   :  { %v8282_v52 = vadd.f32 %v3377_v50, %v10590_v33  ;;  %v3379_v60 = vpop.f32.mrb[50].mxu0  ;;  %v8314_v0 = vadd.f32 %v3716_v54, %v10595_v34  ;;  %v3718_v3 = vpop.f32.mrb[50].mxu1 }
 0x27b   :  { %3821 = vst [vmem:[#allocation2 + $0x220] sm:$0xff] %v8281_v48  ;;  %v8283_v2 = vadd.f32 %v3379_v60, %v10580_v63  ;;  %v3381_v4 = vpop.f32.mrb[51].mxu0  ;;  %3823 = vst [vmem:[#allocation2 + $0x230] sm:$0xff] %v8313_v51  ;;  %v8315_v5 = vadd.f32 %v3718_v3, %v10585_v1  ;;  %v3720_v7 = vpop.f32.mrb[51].mxu1 }
 0x27c   :  { %3822 = vst [vmem:[#allocation2 + $0x228] sm:$0xff] %v8282_v52  ;;  %v8284_v6 = vadd.f32 %v3381_v4, %v10590_v33  ;;  %3824 = vst [vmem:[#allocation2 + $0x238] sm:$0xff] %v8314_v0  ;;  %v8316_v8 = vadd.f32 %v3720_v7, %v10595_v34  ;;  %v10663_v7 = vmov 0.0  }
 0x27d   :  { %3829 = vst [vmem:[#allocation2 + $0x260] sm:$0xff] %v8283_v2  ;;  %3831 = vst [vmem:[#allocation2 + $0x270] sm:$0xff] %v8315_v5 }
 0x27e   :  { %3830 = vst [vmem:[#allocation2 + $0x268] sm:$0xff] %v8284_v6  ;;  %3832 = vst [vmem:[#allocation2 + $0x278] sm:$0xff] %v8316_v8  ;;  %v10661_v6 = vmov 0.0  }
 0x280   :  { %v3385_v9 = vpop.f32.mrb[52].mxu0  ;;  %v3724_v11 = vpop.f32.mrb[52].mxu1 }
 0x281   :  { %v8285_v10 = vadd.f32 %v3385_v9, %v10580_v63  ;;  %v3387_v12 = vpop.f32.mrb[53].mxu0  ;;  %v8317_v13 = vadd.f32 %v3724_v11, %v10585_v1  ;;  %v3726_v15 = vpop.f32.mrb[53].mxu1 }
 0x282   :  { %v8286_v14 = vadd.f32 %v3387_v12, %v10590_v33  ;;  %v3389_v16 = vpop.f32.mrb[54].mxu0  ;;  %v8318_v17 = vadd.f32 %v3726_v15, %v10595_v34  ;;  %v3728_v19 = vpop.f32.mrb[54].mxu1 }
 0x283   :  { %3837 = vst [vmem:[#allocation2 + $0x2a0] sm:$0xff] %v8285_v10  ;;  %v8287_v18 = vadd.f32 %v3389_v16, %v10580_v63  ;;  %v3391_v20 = vpop.f32.mrb[55].mxu0  ;;  %3839 = vst [vmem:[#allocation2 + $0x2b0] sm:$0xff] %v8317_v13  ;;  %v8319_v21 = vadd.f32 %v3728_v19, %v10585_v1  ;;  %v3730_v23 = vpop.f32.mrb[55].mxu1 }
 0x284   :  { %3838 = vst [vmem:[#allocation2 + $0x2a8] sm:$0xff] %v8286_v14  ;;  %v8288_v22 = vadd.f32 %v3391_v20, %v10590_v33  ;;  %3840 = vst [vmem:[#allocation2 + $0x2b8] sm:$0xff] %v8318_v17  ;;  %v8320_v24 = vadd.f32 %v3730_v23, %v10595_v34 }
 0x285   :  { %3845 = vst [vmem:[#allocation2 + $0x2e0] sm:$0xff] %v8287_v18  ;;  %3847 = vst [vmem:[#allocation2 + $0x2f0] sm:$0xff] %v8319_v21 }
 0x286   :  { %3846 = vst [vmem:[#allocation2 + $0x2e8] sm:$0xff] %v8288_v22  ;;  %3848 = vst [vmem:[#allocation2 + $0x2f8] sm:$0xff] %v8320_v24 }
 0x288   :  { %v3395_v25 = vpop.f32.mrb[56].mxu0  ;;  %v3734_v27 = vpop.f32.mrb[56].mxu1 }
 0x289   :  { %v8289_v26 = vadd.f32 %v3395_v25, %v10580_v63  ;;  %v3397_v28 = vpop.f32.mrb[57].mxu0  ;;  %v8321_v29 = vadd.f32 %v3734_v27, %v10585_v1  ;;  %v3736_v35 = vpop.f32.mrb[57].mxu1 }
 0x28a   :  { %v8290_v30 = vadd.f32 %v3397_v28, %v10590_v33  ;;  %v3399_v36 = vpop.f32.mrb[58].mxu0  ;;  %v8322_v37 = vadd.f32 %v3736_v35, %v10595_v34  ;;  %v3738_v39 = vpop.f32.mrb[58].mxu1 }
 0x28b   :  { %3853 = vst [vmem:[#allocation2 + $0x320] sm:$0xff] %v8289_v26  ;;  %v8291_v38 = vadd.f32 %v3399_v36, %v10580_v63  ;;  %v3401_v40 = vpop.f32.mrb[59].mxu0  ;;  %3855 = vst [vmem:[#allocation2 + $0x330] sm:$0xff] %v8321_v29  ;;  %v8323_v41 = vadd.f32 %v3738_v39, %v10585_v1  ;;  %v3740_v43 = vpop.f32.mrb[59].mxu1 }
 0x28c   :  { %3854 = vst [vmem:[#allocation2 + $0x328] sm:$0xff] %v8290_v30  ;;  %v8292_v42 = vadd.f32 %v3401_v40, %v10590_v33  ;;  %3856 = vst [vmem:[#allocation2 + $0x338] sm:$0xff] %v8322_v37  ;;  %v8324_v44 = vadd.f32 %v3740_v43, %v10595_v34 }
 0x28d   :  { %3861 = vst [vmem:[#allocation2 + $0x360] sm:$0xff] %v8291_v38  ;;  %3863 = vst [vmem:[#allocation2 + $0x370] sm:$0xff] %v8323_v41 }
 0x28e   :  { %3862 = vst [vmem:[#allocation2 + $0x368] sm:$0xff] %v8292_v42  ;;  %3864 = vst [vmem:[#allocation2 + $0x378] sm:$0xff] %v8324_v44 }
 0x290   :  { %v3405_v45 = vpop.f32.mrb[60].mxu0  ;;  %v3744_v56 = vpop.f32.mrb[60].mxu1 }
 0x291   :  { %v8293_v46 = vadd.f32 %v3405_v45, %v10580_v63  ;;  %v3407_v47 = vpop.f32.mrb[61].mxu0  ;;  %v8325_v48 = vadd.f32 %v3744_v56, %v10585_v1  ;;  %v3746_v50 = vpop.f32.mrb[61].mxu1 }
 0x292   :  { %v8294_v49 = vadd.f32 %v3407_v47, %v10590_v33  ;;  %v3409_v51 = vpop.f32.mrb[62].mxu0  ;;  %v8326_v52 = vadd.f32 %v3746_v50, %v10595_v34  ;;  %v3748_v60 = vpop.f32.mrb[62].mxu1 }
 0x293   :  { %3869 = vst [vmem:[#allocation2 + $0x3a0] sm:$0xff] %v8293_v46  ;;  %v8295_v54 = vadd.f32 %v3409_v51, %v10580_v63  ;;  %v3411_v0 = vpop.f32.mrb[63].mxu0  ;;  %3871 = vst [vmem:[#allocation2 + $0x3b0] sm:$0xff] %v8325_v48  ;;  %v8327_v2 = vadd.f32 %v3748_v60, %v10585_v1  ;;  %v3750_v4 = vpop.f32.mrb[63].mxu1 }
 0x294   :  { %3870 = vst [vmem:[#allocation2 + $0x3a8] sm:$0xff] %v8294_v49  ;;  %v8296_v3 = vadd.f32 %v3411_v0, %v10590_v33  ;;  %3872 = vst [vmem:[#allocation2 + $0x3b8] sm:$0xff] %v8326_v52  ;;  %v8328_v5 = vadd.f32 %v3750_v4, %v10595_v34 }
 0x295   :  { %3877 = vst [vmem:[#allocation2 + $0x3e0] sm:$0xff] %v8295_v54  ;;  %3879 = vst [vmem:[#allocation2 + $0x3f0] sm:$0xff] %v8327_v2 }
 0x296   :  { %3878 = vst [vmem:[#allocation2 + $0x3e8] sm:$0xff] %v8296_v3  ;;  %3880 = vst [vmem:[#allocation2 + $0x3f8] sm:$0xff] %v8328_v5 }
 0x297 LB: > { %13052 = vst [vmem:[#allocation10_spill] sm:$0xff] %v9076_v6  ;;  %v10679_v63 = vld [vmem:[%s12911_s3 + $0x4] ss:$16 sps:$4 sm:$0xff]   ;;  %v10684_v1 = vld [vmem:[%s12911_s3] ss:$16 sps:$4 sm:$0xff]   ;;  %v3930_v34 = vsel %vm3883_vm1, %v9080_v7, 0.0  ;;  %vm11067_vm2 = vmpackc.low %vm3883_vm1, %vm3883_vm1  ;;  %s9084_s0 = sphi %s10665_s0, %s3889_s0   ;;  %v9080_v7 = vphi %v10663_v7, %v4801_v7   ;;  %v9076_v6 = vphi %v10661_v6, %v4799_v6  }
 0x298   : > { %13053 = vst [vmem:[#allocation11_spill] sm:$0xff] %v10679_v63  ;;  %4318 = vmatprep.subr.bf16.mxu0 %v10679_v63  ;;  %v10690_v33 = vld [vmem:[%s12911_s3 + $0x24] ss:$16 sps:$4 sm:$0xff]   ;;  %v10699_v8 = vld [vmem:[%s12911_s3 + $0xc] ss:$16 sps:$4 sm:$0xff]   ;;  %v3931_v11 = vsub.f32 %v9080_v7, %v3930_v34  ;;  %s3893_s22 = ssub.s32 15, %s9084_s0 }
 0x299   : > { %4319 = vmatpush1.bf16.msra.mxu0 %v10684_v1  ;;  %13054 = vst [vmem:[#allocation12_spill] sm:$0xff] %v10699_v8  ;;  %v10704_v9 = vld [vmem:[%s12911_s3 + $0x20] ss:$16 sps:$4 sm:$0xff]   ;;  %v10709_v10 = vld [vmem:[%s12911_s3 + $0x8] ss:$16 sps:$4 sm:$0xff]   ;;  %4359 = vmatprep.subr.bf16.mxu1 %v10699_v8  ;;  %s11144_s23 = sshll.u32 %s3893_s22, 3 }
 0x29a   : > { %4320 = vmatprep.subr.bf16.mxu0 %v10690_v33  ;;  %v10716_v12 = vld [vmem:[%s12911_s3 + $0x44] ss:$16 sps:$4 sm:$0xff]   ;;  %v10722_v13 = vld [vmem:[%s12911_s3 + $0x2c] ss:$16 sps:$4 sm:$0xff]   ;;  %v3933_v14 = vpack.c.bf16 %v3931_v11, %v3931_v11  ;;  %4360 = vmatpush1.bf16.msra.mxu1 %v10709_v10  ;;  %v10728_v15 = vld [vmem:[%s12911_s3 + $0x28] ss:$16 sps:$4 sm:$0xff]  }
 0x29b   : > { %4361 = vmatprep.subr.bf16.mxu1 %v10722_v13  ;;  %v10735_v16 = vld [vmem:[%s12911_s3 + $0x40] ss:$16 sps:$4 sm:$0xff]   ;;  %v10741_v17 = vld [vmem:[%s12911_s3 + $0x64] ss:$16 sps:$4 sm:$0xff]   ;;  %v10746_v18 = vld [vmem:[%s12911_s3 + $0x4c] ss:$16 sps:$4 sm:$0xff]  }
 0x29c   : > { %4350 = vmatprep.mubr.bf16.mxu0 %v3933_v14  ;;  %4391 = vmatprep.mubr.bf16.mxu1 %v3933_v14  ;;  %v10752_v19 = vld [vmem:[%s12911_s3 + $0x48] ss:$16 sps:$4 sm:$0xff]   ;;  %v10759_v20 = vld [vmem:[%s12911_s3 + $0x60] ss:$16 sps:$4 sm:$0xff]   ;;  %v10764_v21 = vld [vmem:[%s12911_s3 + $0x6c] ss:$16 sps:$4 sm:$0xff]  }
 0x29d   : > { %4321 = vmatpush1.bf16.msra.mxu0 %v10704_v9  ;;  %v10770_v22 = vld [vmem:[%s12911_s3 + $0x84] ss:$16 sps:$4 sm:$0xff]   ;;  %v10776_v23 = vld [vmem:[%s12911_s3 + $0x80] ss:$16 sps:$4 sm:$0xff]   ;;  %v10781_v24 = vld [vmem:[%s12911_s3 + $0x68] ss:$16 sps:$4 sm:$0xff]  }
 0x29e   : > { %4322 = vmatprep.subr.bf16.mxu0 %v10716_v12  ;;  %4362 = vmatpush1.bf16.msra.mxu1 %v10728_v15  ;;  %v10788_v25 = vld [vmem:[%s12911_s3 + $0x8c] ss:$16 sps:$4 sm:$0xff]   ;;  %v10794_v26 = vld [vmem:[%s12911_s3 + $0xa4] ss:$16 sps:$4 sm:$0xff]   ;;  %v10800_v27 = vld [vmem:[%s12911_s3 + $0x88] ss:$16 sps:$4 sm:$0xff]  }
 0x29f   : > { %4363 = vmatprep.subr.bf16.mxu1 %v10746_v18  ;;  %v10807_v28 = vld [vmem:[%s12911_s3 + $0xa0] ss:$16 sps:$4 sm:$0xff]   ;;  %v10812_v29 = vld [vmem:[%s12911_s3 + $0xac] ss:$16 sps:$4 sm:$0xff]   ;;  %v10818_v30 = vld [vmem:[%s12911_s3 + $0xc4] ss:$16 sps:$4 sm:$0xff]  }
 0x2a0   : > { %v10824_v35 = vld [vmem:[%s12911_s3 + $0xc0] ss:$16 sps:$4 sm:$0xff]   ;;  %v10829_v36 = vld [vmem:[%s12911_s3 + $0xa8] ss:$16 sps:$4 sm:$0xff]   ;;  %v10836_v37 = vld [vmem:[%s12911_s3 + $0xcc] ss:$16 sps:$4 sm:$0xff]  }
 0x2a1   : > { %4323 = vmatpush1.bf16.msra.mxu0 %v10735_v16  ;;  %v10842_v38 = vld [vmem:[%s12911_s3 + $0xe4] ss:$16 sps:$4 sm:$0xff]   ;;  %v10848_v39 = vld [vmem:[%s12911_s3 + $0xc8] ss:$16 sps:$4 sm:$0xff]   ;;  %v10855_v40 = vld [vmem:[%s12911_s3 + $0xe0] ss:$16 sps:$4 sm:$0xff]  }
 0x2a2   : > { %4324 = vmatprep.subr.bf16.mxu0 %v10741_v17  ;;  %4364 = vmatpush1.bf16.msra.mxu1 %v10752_v19  ;;  %v10860_v41 = vld [vmem:[%s12911_s3 + $0xec] ss:$16 sps:$4 sm:$0xff]   ;;  %v10866_v42 = vld [vmem:[%s12911_s3 + $0x104] ss:$16 sps:$4 sm:$0xff]   ;;  %v10872_v43 = vld [vmem:[%s12911_s3 + $0x100] ss:$16 sps:$4 sm:$0xff]  }
 0x2a3   : > { %4365 = vmatprep.subr.bf16.mxu1 %v10764_v21  ;;  %v10877_v44 = vld [vmem:[%s12911_s3 + $0xe8] ss:$16 sps:$4 sm:$0xff]   ;;  %v10884_v45 = vld [vmem:[%s12911_s3 + $0x10c] ss:$16 sps:$4 sm:$0xff]   ;;  %v10890_v46 = vld [vmem:[%s12911_s3 + $0x124] ss:$16 sps:$4 sm:$0xff]  }
 0x2a4   : > { %v10896_v56 = vld [vmem:[%s12911_s3 + $0x108] ss:$16 sps:$4 sm:$0xff]   ;;  %v10903_v47 = vld [vmem:[%s12911_s3 + $0x120] ss:$16 sps:$4 sm:$0xff]   ;;  %v10908_v48 = vld [vmem:[%s12911_s3 + $0x12c] ss:$16 sps:$4 sm:$0xff]  }
 0x2a5   : > { %4325 = vmatpush1.bf16.msra.mxu0 %v10759_v20  ;;  %v10914_v49 = vld [vmem:[%s12911_s3 + $0x144] ss:$16 sps:$4 sm:$0xff]   ;;  %v10920_v50 = vld [vmem:[%s12911_s3 + $0x140] ss:$16 sps:$4 sm:$0xff]   ;;  %v10925_v51 = vld [vmem:[%s12911_s3 + $0x128] ss:$16 sps:$4 sm:$0xff]  }
 0x2a6   : > { %4326 = vmatprep.subr.bf16.mxu0 %v10770_v22  ;;  %4366 = vmatpush1.bf16.msra.mxu1 %v10781_v24  ;;  %13055 = vst [vmem:[#allocation13_spill] sm:$0xff] %v10914_v49  ;;  %13056 = vst [vmem:[#allocation14_spill] sm:$0xff] %v10920_v50  ;;  %v10932_v52 = vld [vmem:[%s12911_s3 + $0x14c] ss:$16 sps:$4 sm:$0xff]   ;;  %v10938_v54 = vld [vmem:[%s12911_s3 + $0x164] ss:$16 sps:$4 sm:$0xff]  }
 0x2a7   : > { %4367 = vmatprep.subr.bf16.mxu1 %v10788_v25  ;;  %13057 = vst [vmem:[#allocation15_spill] sm:$0xff] %v10932_v52  ;;  %13058 = vst [vmem:[#allocation16_spill] sm:$0xff] %v10938_v54  ;;  %v10944_v60 = vld [vmem:[%s12911_s3 + $0x148] ss:$16 sps:$4 sm:$0xff]   ;;  %v10951_v0 = vld [vmem:[%s12911_s3 + $0x160] ss:$16 sps:$4 sm:$0xff]  }
 0x2a8   : > { %13059 = vst [vmem:[#allocation17_spill] sm:$0xff] %v10944_v60  ;;  %13060 = vst [vmem:[#allocation18_spill] sm:$0xff] %v10951_v0  ;;  %v10956_v2 = vld [vmem:[%s12911_s3 + $0x16c] ss:$16 sps:$4 sm:$0xff]   ;;  %v10962_v3 = vld [vmem:[%s12911_s3 + $0x184] ss:$16 sps:$4 sm:$0xff]  }
 0x2a9   : > { %4327 = vmatpush1.bf16.msra.mxu0 %v10776_v23  ;;  %13061 = vst [vmem:[#allocation19_spill] sm:$0xff] %v10956_v2  ;;  %13062 = vst [vmem:[#allocation20_spill] sm:$0xff] %v10962_v3  ;;  %v10968_v4 = vld [vmem:[%s12911_s3 + $0x168] ss:$16 sps:$4 sm:$0xff]   ;;  %v10975_v5 = vld [vmem:[%s12911_s3 + $0x180] ss:$16 sps:$4 sm:$0xff]  }
 0x2aa   : > { %4328 = vmatprep.subr.bf16.mxu0 %v10794_v26  ;;  %4368 = vmatpush1.bf16.msra.mxu1 %v10800_v27  ;;  %13063 = vst [vmem:[#allocation21_spill] sm:$0xff] %v10968_v4  ;;  %13064 = vst [vmem:[#allocation22_spill] sm:$0xff] %v10975_v5  ;;  %v10980_v34 = vld [vmem:[%s12911_s3 + $0x18c] ss:$16 sps:$4 sm:$0xff]   ;;  %v10986_v11 = vld [vmem:[%s12911_s3 + $0x1a4] ss:$16 sps:$4 sm:$0xff]  }
 0x2ab   : > { %4369 = vmatprep.subr.bf16.mxu1 %v10812_v29  ;;  %13065 = vst [vmem:[#allocation23_spill] sm:$0xff] %v10980_v34  ;;  %13066 = vst [vmem:[#allocation24_spill] sm:$0xff] %v10986_v11  ;;  %v10992_v14 = vld [vmem:[%s12911_s3 + $0x188] ss:$16 sps:$4 sm:$0xff]   ;;  %v10999_v62 = vld [vmem:[%s12911_s3 + $0x1a0] ss:$16 sps:$4 sm:$0xff]  }
 0x2ac   : > { %13067 = vst [vmem:[#allocation25_spill] sm:$0xff] %v10992_v14  ;;  %13068 = vst [vmem:[#allocation26_spill] sm:$0xff] %v10999_v62  ;;  %v11004_v32 = vld [vmem:[%s12911_s3 + $0x1ac] ss:$16 sps:$4 sm:$0xff]   ;;  %v11010_v31 = vld [vmem:[%s12911_s3 + $0x1c4] ss:$16 sps:$4 sm:$0xff]  }
 0x2ad   : > { %4329 = vmatpush1.bf16.msra.mxu0 %v10807_v28  ;;  %13069 = vst [vmem:[#allocation27_spill] sm:$0xff] %v11004_v32  ;;  %13070 = vst [vmem:[#allocation28_spill] sm:$0xff] %v11010_v31  ;;  %v11016_v61 = vld [vmem:[%s12911_s3 + $0x1a8] ss:$16 sps:$4 sm:$0xff]   ;;  %v11023_v59 = vld [vmem:[%s12911_s3 + $0x1c0] ss:$16 sps:$4 sm:$0xff]  }
 0x2ae   : > { %4330 = vmatprep.subr.bf16.mxu0 %v10818_v30  ;;  %4370 = vmatpush1.bf16.msra.mxu1 %v10829_v36  ;;  %13071 = vst [vmem:[#allocation29_spill] sm:$0xff] %v11016_v61  ;;  %13072 = vst [vmem:[#allocation30_spill] sm:$0xff] %v11023_v59  ;;  %v11028_v58 = vld [vmem:[%s12911_s3 + $0x1cc] ss:$16 sps:$4 sm:$0xff]   ;;  %v11034_v57 = vld [vmem:[%s12911_s3 + $0x1e4] ss:$16 sps:$4 sm:$0xff]  }
 0x2af   : > { %4371 = vmatprep.subr.bf16.mxu1 %v10836_v37  ;;  %13073 = vst [vmem:[#allocation31_spill] sm:$0xff] %v11028_v58  ;;  %13074 = vst [vmem:[#allocation32_spill] sm:$0xff] %v11034_v57  ;;  %v11040_v55 = vld [vmem:[%s12911_s3 + $0x1c8] ss:$16 sps:$4 sm:$0xff]   ;;  %v11047_v6 = vld [vmem:[%s12911_s3 + $0x1e0] ss:$16 sps:$4 sm:$0xff]  }
 0x2b0   : > { %13075 = vst [vmem:[#allocation33_spill] sm:$0xff] %v11040_v55  ;;  %13076 = vst [vmem:[#allocation34_spill] sm:$0xff] %v11047_v6  ;;  %s3904_s24 = sshra.s32 %s11144_s23, 3  ;;  %s7801_s25 = sshll.u32 %s9084_s0, 3  ;;  %vm3925_vm3 = vcmask 1041408   ;;  %vm4812_vm4 = vcmask 1043456  }
 0x2b1   : > { %4331 = vmatpush1.bf16.msra.mxu0 %v10824_v35  ;;  %s8127_s26 = sshll.u32 %s3904_s24, 6  ;;  %s11150_s27 = sshra.s32 %s7801_s25, 3  ;;  %vm4814_vm5 = vcmask 1045504  }
 0x2b2   : > { %4332 = vmatprep.subr.bf16.mxu0 %v10842_v38  ;;  %4372 = vmatpush1.bf16.msra.mxu1 %v10848_v39  ;;  %s8126_s28 = sshll.u32 %s11150_s27, 6  ;;  %s3908_s29 = scalar_lea.vmem [#allocation2], %s8127_s26 }
 0x2b3   : > { %4373 = vmatprep.subr.bf16.mxu1 %v10860_v41  ;;  %s3899_s30 = scalar_lea.vmem [#allocation2], %s8126_s28  ;;  %s8128_s10 = sshll.u32 %s11150_s27, 4 }
 0x2b4   : > { %s8129_s11 = sshll.u32 %s3904_s24, 4  ;;  %s4818_s1 = scalar_lea.vmem [#allocation4], %s8128_s10 }
 0x2b5   : > { %4333 = vmatpush1.bf16.msra.mxu0 %v10855_v40  ;;  %s4828_s12 = scalar_lea.vmem [#allocation4], %s8129_s11  ;;  %s3889_s0 = sadd.s32 1, %s9084_s0  }
 0x2b6   : > { %4334 = vmatprep.subr.bf16.mxu0 %v10866_v42  ;;  %4374 = vmatpush1.bf16.msra.mxu1 %v10877_v44  ;;  %p3886_p0 = scmp.ge.s32.totalorder %s3889_s0, 16  }
 0x2b7   : > { %4375 = vmatprep.subr.bf16.mxu1 %v10884_v45 }
 0x2b9   : > { %4335 = vmatpush1.bf16.msra.mxu0 %v10872_v43 }
 0x2ba   : > { %4336 = vmatprep.subr.bf16.mxu0 %v10890_v46  ;;  %4376 = vmatpush1.bf16.msra.mxu1 %v10896_v56 }
 0x2bb   : > { %4377 = vmatprep.subr.bf16.mxu1 %v10908_v48 }
 0x2bd   : > { %4337 = vmatpush1.bf16.msra.mxu0 %v10903_v47 }
 0x2be   : > { %4338 = vmatprep.subr.bf16.mxu0 %v10914_v49  ;;  %4378 = vmatpush1.bf16.msra.mxu1 %v10925_v51 }
 0x2bf   : > { %4379 = vmatprep.subr.bf16.mxu1 %v10932_v52 }
 0x2c1   : > { %4339 = vmatpush1.bf16.msra.mxu0 %v10920_v50 }
 0x2c2   : > { %4340 = vmatprep.subr.bf16.mxu0 %v10938_v54  ;;  %4380 = vmatpush1.bf16.msra.mxu1 %v10944_v60 }
 0x2c3   : > { %4381 = vmatprep.subr.bf16.mxu1 %v10956_v2 }
 0x2c5   : > { %4341 = vmatpush1.bf16.msra.mxu0 %v10951_v0 }
 0x2c6   : > { %4342 = vmatprep.subr.bf16.mxu0 %v10962_v3  ;;  %4382 = vmatpush1.bf16.msra.mxu1 %v10968_v4 }
 0x2c7   : > { %4383 = vmatprep.subr.bf16.mxu1 %v10980_v34 }
 0x2c9   : > { %4343 = vmatpush1.bf16.msra.mxu0 %v10975_v5 }
 0x2ca   : > { %4344 = vmatprep.subr.bf16.mxu0 %v10986_v11  ;;  %4384 = vmatpush1.bf16.msra.mxu1 %v10992_v14 }
 0x2cb   : > { %4385 = vmatprep.subr.bf16.mxu1 %v11004_v32 }
 0x2cd   : > { %4345 = vmatpush1.bf16.msra.mxu0 %v10999_v62 }
 0x2ce   : > { %4346 = vmatprep.subr.bf16.mxu0 %v11010_v31  ;;  %4386 = vmatpush1.bf16.msra.mxu1 %v11016_v61  ;;  %v11052_v31 = vld [vmem:[%s12911_s3 + $0x1ec] ss:$16 sps:$4 sm:$0xff]   ;;  %v7872_v61 = vpack.c.bf16 %v9080_v7, %v9080_v7  ;;  %v13082_v7 = vld [vmem:[#allocation29_spill] sm:$0xff] }
 0x2cf   : > { %4387 = vmatprep.subr.bf16.mxu1 %v11028_v58  ;;  %13077 = vst [vmem:[#allocation35_spill] sm:$0xff] %v11052_v31 }
 0x2d1   : > { %4347 = vmatpush1.bf16.msra.mxu0 %v11023_v59  ;;  %v11061_v59 = vld [vmem:[%s12911_s3 + $0x1e8] ss:$16 sps:$4 sm:$0xff]  }
 0x2d2   : > { %4348 = vmatprep.subr.bf16.mxu0 %v11034_v57  ;;  %4388 = vmatpush1.bf16.msra.mxu1 %v11040_v55  ;;  %13078 = vst [vmem:[#allocation36_spill] sm:$0xff] %v11061_v59 }
 0x2d3   : > { %4389 = vmatprep.subr.bf16.mxu1 %v11052_v31 }
 0x2d5   : > { %4349 = vmatpush1.bf16.msra.mxu0 %v11047_v6 }
 0x2d6   : > { %4450 = vmatprep.subr.bf16.mxu0 %v10679_v63  ;;  %4390 = vmatpush1.bf16.msra.mxu1 %v11061_v59 }
 0x2d7   : > { %4491 = vmatprep.subr.bf16.mxu1 %v10699_v8 }
 0x2d8   : > { %7873 = vmatmul.mubr.msk.bf16.vlgmr.msra.gmra.mrb[0].mxu0 %vm11067_vm2, %v7872_v61 }
 0x2d9   : > { %4451 = vmatpush1.bf16.msra.mxu0 %v10684_v1  ;;  %7876 = vmatmul.mubr.msk.bf16.vlgmr.msra.gmra.mrb[0].mxu1 %vm11067_vm2, %v7872_v61  ;;  %v13081_v61 = vld [vmem:[#allocation28_spill] sm:$0xff] }
 0x2da   : > { %4452 = vmatprep.subr.bf16.mxu0 %v10690_v33  ;;  %4492 = vmatpush1.bf16.msra.mxu1 %v10709_v10 }
 0x2db   : > { %4493 = vmatprep.subr.bf16.mxu1 %v10722_v13 }
 0x2dd   : > { %4453 = vmatpush1.bf16.msra.mxu0 %v10704_v9 }
 0x2de   : > { %4454 = vmatprep.subr.bf16.mxu0 %v10716_v12  ;;  %4494 = vmatpush1.bf16.msra.mxu1 %v10728_v15 }
 0x2df   : > { %4495 = vmatprep.subr.bf16.mxu1 %v10746_v18 }
 0x2e1   : > { %4455 = vmatpush1.bf16.msra.mxu0 %v10735_v16 }
 0x2e2   : > { %4456 = vmatprep.subr.bf16.mxu0 %v10741_v17  ;;  %4496 = vmatpush1.bf16.msra.mxu1 %v10752_v19 }
 0x2e3   : > { %4497 = vmatprep.subr.bf16.mxu1 %v10764_v21 }
 0x2e5   : > { %4457 = vmatpush1.bf16.msra.mxu0 %v10759_v20 }
 0x2e6   : > { %4458 = vmatprep.subr.bf16.mxu0 %v10770_v22  ;;  %4498 = vmatpush1.bf16.msra.mxu1 %v10781_v24 }
 0x2e7   : > { %4499 = vmatprep.subr.bf16.mxu1 %v10788_v25 }
 0x2e9   : > { %4459 = vmatpush1.bf16.msra.mxu0 %v10776_v23 }
 0x2ea   : > { %4460 = vmatprep.subr.bf16.mxu0 %v10794_v26  ;;  %4500 = vmatpush1.bf16.msra.mxu1 %v10800_v27 }
 0x2eb   : > { %4501 = vmatprep.subr.bf16.mxu1 %v10812_v29 }
 0x2ed   : > { %4461 = vmatpush1.bf16.msra.mxu0 %v10807_v28 }
 0x2ee   : > { %4462 = vmatprep.subr.bf16.mxu0 %v10818_v30  ;;  %4502 = vmatpush1.bf16.msra.mxu1 %v10829_v36 }
 0x2ef   : > { %4503 = vmatprep.subr.bf16.mxu1 %v10836_v37 }
 0x2f1   : > { %4463 = vmatpush1.bf16.msra.mxu0 %v10824_v35 }
 0x2f2   : > { %4464 = vmatprep.subr.bf16.mxu0 %v10842_v38  ;;  %4504 = vmatpush1.bf16.msra.mxu1 %v10848_v39 }
 0x2f3   : > { %4505 = vmatprep.subr.bf16.mxu1 %v10860_v41 }
 0x2f5   : > { %4465 = vmatpush1.bf16.msra.mxu0 %v10855_v40 }
 0x2f6   : > { %4466 = vmatprep.subr.bf16.mxu0 %v10866_v42  ;;  %4506 = vmatpush1.bf16.msra.mxu1 %v10877_v44 }
 0x2f7   : > { %4507 = vmatprep.subr.bf16.mxu1 %v10884_v45 }
 0x2f9   : > { %4467 = vmatpush1.bf16.msra.mxu0 %v10872_v43 }
 0x2fa   : > { %4468 = vmatprep.subr.bf16.mxu0 %v10890_v46  ;;  %4508 = vmatpush1.bf16.msra.mxu1 %v10896_v56 }
 0x2fb   : > { %4509 = vmatprep.subr.bf16.mxu1 %v10908_v48 }
 0x2fd   : > { %4469 = vmatpush1.bf16.msra.mxu0 %v10903_v47 }
 0x2fe   : > { %4470 = vmatprep.subr.bf16.mxu0 %v10914_v49  ;;  %4510 = vmatpush1.bf16.msra.mxu1 %v10925_v51 }
 0x2ff   : > { %4511 = vmatprep.subr.bf16.mxu1 %v10932_v52 }
 0x301   : > { %4471 = vmatpush1.bf16.msra.mxu0 %v10920_v50 }
 0x302   : > { %4472 = vmatprep.subr.bf16.mxu0 %v10938_v54  ;;  %4512 = vmatpush1.bf16.msra.mxu1 %v10944_v60 }
 0x303   : > { %4513 = vmatprep.subr.bf16.mxu1 %v10956_v2 }
 0x305   : > { %4473 = vmatpush1.bf16.msra.mxu0 %v10951_v0 }
 0x306   : > { %4474 = vmatprep.subr.bf16.mxu0 %v10962_v3  ;;  %4514 = vmatpush1.bf16.msra.mxu1 %v10968_v4  ;;  %v13083_v3 = vld [vmem:[#allocation31_spill] sm:$0xff]  ;;  %v13084_v4 = vld [vmem:[#allocation30_spill] sm:$0xff] }
 0x307   : > { %4515 = vmatprep.subr.bf16.mxu1 %v10980_v34 }
 0x309   : > { %4475 = vmatpush1.bf16.msra.mxu0 %v10975_v5 }
 0x30a   : > { %4476 = vmatprep.subr.bf16.mxu0 %v10986_v11  ;;  %4516 = vmatpush1.bf16.msra.mxu1 %v10992_v14 }
 0x30b   : > { %4517 = vmatprep.subr.bf16.mxu1 %v11004_v32 }
 0x30d   : > { %4477 = vmatpush1.bf16.msra.mxu0 %v10999_v62 }
 0x30e   : > { %4478 = vmatprep.subr.bf16.mxu0 %v13081_v61  ;;  %4518 = vmatpush1.bf16.msra.mxu1 %v13082_v7  ;;  %v11168_v61 = vld [vmem:[%s3899_s30 + $0x10] sm:$0xff]  ;;  %v11172_v7 = vld [vmem:[%s3908_s29 + $0x38] sm:$0xff] }
 0x30f   : > { %4519 = vmatprep.subr.bf16.mxu1 %v13083_v3  ;;  %13090 = vst [vmem:[#allocation42_spill] sm:$0xff] %v11168_v61  ;;  %13091 = vst [vmem:[#allocation43_spill] sm:$0xff] %v11172_v7 }
 0x311   : > { %4479 = vmatpush1.bf16.msra.mxu0 %v13084_v4 }
 0x312   : > { %4480 = vmatprep.subr.bf16.mxu0 %v11034_v57  ;;  %4520 = vmatpush1.bf16.msra.mxu1 %v11040_v55  ;;  %v11163_v55 = vld [vmem:[%s3899_s30 + $0x8] sm:$0xff] }
 0x313   : > { %4521 = vmatprep.subr.bf16.mxu1 %v11052_v31  ;;  %v11160_v31 = vld [vmem:[%s3899_s30] sm:$0xff]  ;;  %13089 = vst [vmem:[#allocation41_spill] sm:$0xff] %v11163_v55 }
 0x314   : > { %13088 = vst [vmem:[#allocation40_spill] sm:$0xff] %v11160_v31 }
 0x315   : > { %4481 = vmatpush1.bf16.msra.mxu0 %v11047_v6  ;;  %v11153_v6 = vld [vmem:[%s3908_s29 + $0x20] sm:$0xff] }
 0x316   : > { %4570 = vmatprep.subr.bf16.mxu0 %v10679_v63  ;;  %4522 = vmatpush1.bf16.msra.mxu1 %v11061_v59  ;;  %13085 = vst [vmem:[#allocation37_spill] sm:$0xff] %v11153_v6  ;;  %v11155_v63 = vld [vmem:[%s3908_s29 + $0x28] sm:$0xff]  ;;  %v11158_v59 = vld [vmem:[%s3908_s29 + $0x30] sm:$0xff] }
 0x317   : > { %4611 = vmatprep.subr.bf16.mxu1 %v10699_v8  ;;  %13086 = vst [vmem:[#allocation38_spill] sm:$0xff] %v11155_v63  ;;  %v3917_v8 = vrot.slane %v11153_v6, 4  ;;  %13087 = vst [vmem:[#allocation39_spill] sm:$0xff] %v11158_v59  ;;  %v3918_v57 = vrot.slane %v11155_v63, 4  ;;  %v3919_v4 = vrot.slane %v11158_v59, 4  ;;  %v3920_v59 = vrot.slane %v11172_v7, 4 }
 0x319   : > { %v3926_v3 = vsel %vm3925_vm3, %v11160_v31, %v3917_v8  ;;  %v3927_v6 = vsel %vm3925_vm3, %v11163_v55, %v3918_v57  ;;  %v3928_v63 = vsel %vm3925_vm3, %v11168_v61, %v3919_v4  ;;  %v11177_v31 = vld [vmem:[%s3899_s30 + $0x18] sm:$0xff] }
 0x3ab   : > { %v4352_v62 = vpop.f32.mrb[0].mxu0 }
 0x3ac   : > { %v4400_v32 = vadd.f32 %v4352_v62, %v3926_v3  ;;  %v4354_v11 = vpop.f32.mrb[1].mxu0  ;;  %v4393_v8 = vpop.f32.mrb[0].mxu1  ;;  %v3929_v62 = vsel %vm3925_vm3, %v11177_v31, %v3920_v59 }
 0x3ad   : > { %v4401_v14 = vadd.f32 %v4354_v11, %v3927_v6  ;;  %v4356_v5 = vpop.f32.mrb[2].mxu0  ;;  %v4402_v54 = vadd.f32 %v4393_v8, %v3928_v63  ;;  %v4395_v57 = vpop.f32.mrb[1].mxu1  ;;  %v13092_v8 = vld [vmem:[#allocation10_spill] sm:$0xff] }
 0x3ae   : > { %v4404_v34 = vmul.f32 0.5, %v4400_v32  ;;  %v4357_v0 = vpop.f32.mrb[3].mxu0  ;;  %v4397_v55 = vpop.f32.mrb[2].mxu1  ;;  %v4403_v6 = vadd.f32 %v4395_v57, %v3929_v62 }
 0x3af   : > { %v4408_v2 = vmul.f32 0.5, %v4401_v14  ;;  %v4398_v3 = vpop.f32.mrb[3].mxu1 }
 0x3b0   : > { %8850 = vtanh.f32 %v4404_v34  ;;  %v4413_v4 = vmul.f32 0.5, %v4403_v6 }
 0x3b1   : > { %8852 = vtanh.f32 %v4408_v2 }
 0x3b2   : > { %8854 = vtanh.f32 %v4402_v54 }
 0x3b3   : > { %8856 = vtanh.f32 %v4413_v4  ;;  %v13094_v4 = vld [vmem:[#allocation16_spill] sm:$0xff] }
 0x3ba   : > { %v8851_v5 = vpop.eup %8850 }
 0x3bb   : > { %v8853_v11 = vpop.eup %8852  ;;  %v4406_v32 = vmul.f32 0.5, %v8851_v5  ;;  %v13095_v5 = vld [vmem:[#allocation19_spill] sm:$0xff] }
 0x3bc   : > { %v8855_v0 = vpop.eup %8854  ;;  %v4410_v7 = vmul.f32 0.5, %v8853_v11  ;;  %v13096_v11 = vld [vmem:[#allocation18_spill] sm:$0xff] }
 0x3bd   : > { %v4407_v61 = vadd.f32 0.5, %v4406_v32  ;;  %v8857_v59 = vpop.eup %8856  ;;  %v13097_v32 = vld [vmem:[#allocation21_spill] sm:$0xff] }
 0x3be   : > { %v4411_v14 = vadd.f32 0.5, %v4410_v7  ;;  %v4415_v2 = vmul.f32 0.5, %v8857_v59  ;;  %v13103_v59 = vld [vmem:[#allocation27_spill] sm:$0xff] }
 0x3bf   : > { %v4418_v63 = vmul.f32 %v8855_v0, %v4407_v61  ;;  %v13098_v0 = vld [vmem:[#allocation20_spill] sm:$0xff] }
 0x3c0   : > { %v4417_v34 = vmul.f32 %v13092_v8, %v4411_v14  ;;  %v4416_v54 = vadd.f32 0.5, %v4415_v2  ;;  %v13099_v14 = vld [vmem:[#allocation23_spill] sm:$0xff]  ;;  %v13101_v8 = vld [vmem:[#allocation25_spill] sm:$0xff]  ;;  %v13104_v2 = vld [vmem:[#allocation26_spill] sm:$0xff] }
 0x3c2   : > { %v11182_v55 = vadd.f32 %v4418_v63, %v4417_v34  ;;  %v13100_v63 = vld [vmem:[#allocation22_spill] sm:$0xff]  ;;  %v13102_v34 = vld [vmem:[#allocation24_spill] sm:$0xff] }
 0x3c4   : > { %8858 = vtanh.f32 %v11182_v55 }
 0x3ce   : > { %v8859_v57 = vpop.eup %8858 }
 0x3cf   : > { %v11185_v62 = vmul.f32 %v8859_v57, %v4416_v54  ;;  %v13105_v54 = vld [vmem:[#allocation29_spill] sm:$0xff]  ;;  %v13106_v57 = vld [vmem:[#allocation28_spill] sm:$0xff] }
 0x3d1   : > { %13093 = vst [vmem:[#allocation10_spill] sm:$0xff] %v11185_v62  ;;  %v4446_v3 = vsel %vm3883_vm1, %v11185_v62, 0.0  ;;  %v7878_v61 = vpack.c.bf16 %v11185_v62, %v11185_v62 }
 0x3d2   : > { %v4447_v6 = vsub.f32 %v11185_v62, %v4446_v3  ;;  %v13107_v3 = vld [vmem:[#allocation31_spill] sm:$0xff] }
 0x3d3   : > { %v13111_v62 = vld [vmem:[#allocation35_spill] sm:$0xff] }
 0x3d4   : > { %v4449_v7 = vpack.c.bf16 %v4447_v6, %v4447_v6  ;;  %v13108_v6 = vld [vmem:[#allocation30_spill] sm:$0xff] }
 0x3d6   : > { %4482 = vmatprep.mubr.bf16.mxu0 %v4449_v7  ;;  %4523 = vmatprep.mubr.bf16.mxu1 %v4449_v7  ;;  %v13109_v7 = vld [vmem:[#allocation33_spill] sm:$0xff] }
 0x3d7   : > { %7879 = vmatmul.mubr.msk.bf16.vlgmr.msra.gmra.mrb[4].mxu0 %vm11067_vm2, %v7878_v61  ;;  %7882 = vmatmul.mubr.msk.bf16.vlgmr.msra.gmra.mrb[4].mxu1 %vm11067_vm2, %v7878_v61  ;;  %v13110_v61 = vld [vmem:[#allocation32_spill] sm:$0xff] }
 0x3d8   : > { %4571 = vmatpush1.bf16.msra.mxu0 %v10684_v1  ;;  %4612 = vmatpush1.bf16.msra.mxu1 %v10709_v10 }
 0x3d9   : > { %4572 = vmatprep.subr.bf16.mxu0 %v10690_v33  ;;  %4613 = vmatprep.subr.bf16.mxu1 %v10722_v13 }
 0x3dc   : > { %4573 = vmatpush1.bf16.msra.mxu0 %v10704_v9  ;;  %4614 = vmatpush1.bf16.msra.mxu1 %v10728_v15 }
 0x3dd   : > { %4574 = vmatprep.subr.bf16.mxu0 %v10716_v12  ;;  %4615 = vmatprep.subr.bf16.mxu1 %v10746_v18 }
 0x3e0   : > { %4575 = vmatpush1.bf16.msra.mxu0 %v10735_v16  ;;  %4616 = vmatpush1.bf16.msra.mxu1 %v10752_v19 }
 0x3e1   : > { %4576 = vmatprep.subr.bf16.mxu0 %v10741_v17  ;;  %4617 = vmatprep.subr.bf16.mxu1 %v10764_v21 }
 0x3e4   : > { %4577 = vmatpush1.bf16.msra.mxu0 %v10759_v20  ;;  %4618 = vmatpush1.bf16.msra.mxu1 %v10781_v24 }
 0x3e5   : > { %4578 = vmatprep.subr.bf16.mxu0 %v10770_v22  ;;  %4619 = vmatprep.subr.bf16.mxu1 %v10788_v25 }
 0x3e8   : > { %4579 = vmatpush1.bf16.msra.mxu0 %v10776_v23  ;;  %4620 = vmatpush1.bf16.msra.mxu1 %v10800_v27 }
 0x3e9   : > { %4580 = vmatprep.subr.bf16.mxu0 %v10794_v26  ;;  %4621 = vmatprep.subr.bf16.mxu1 %v10812_v29 }
 0x3ec   : > { %4581 = vmatpush1.bf16.msra.mxu0 %v10807_v28  ;;  %4622 = vmatpush1.bf16.msra.mxu1 %v10829_v36 }
 0x3ed   : > { %4582 = vmatprep.subr.bf16.mxu0 %v10818_v30  ;;  %4623 = vmatprep.subr.bf16.mxu1 %v10836_v37 }
 0x3f0   : > { %4583 = vmatpush1.bf16.msra.mxu0 %v10824_v35  ;;  %4624 = vmatpush1.bf16.msra.mxu1 %v10848_v39 }
 0x3f1   : > { %4584 = vmatprep.subr.bf16.mxu0 %v10842_v38  ;;  %4625 = vmatprep.subr.bf16.mxu1 %v10860_v41 }
 0x3f4   : > { %4585 = vmatpush1.bf16.msra.mxu0 %v10855_v40  ;;  %4626 = vmatpush1.bf16.msra.mxu1 %v10877_v44 }
 0x3f5   : > { %4586 = vmatprep.subr.bf16.mxu0 %v10866_v42  ;;  %4627 = vmatprep.subr.bf16.mxu1 %v10884_v45 }
 0x3f8   : > { %4587 = vmatpush1.bf16.msra.mxu0 %v10872_v43  ;;  %4628 = vmatpush1.bf16.msra.mxu1 %v10896_v56 }
 0x3f9   : > { %4588 = vmatprep.subr.bf16.mxu0 %v10890_v46  ;;  %4629 = vmatprep.subr.bf16.mxu1 %v10908_v48 }
 0x3fc   : > { %4589 = vmatpush1.bf16.msra.mxu0 %v10903_v47  ;;  %4630 = vmatpush1.bf16.msra.mxu1 %v10925_v51 }
 0x3fd   : > { %4590 = vmatprep.subr.bf16.mxu0 %v10914_v49  ;;  %4631 = vmatprep.subr.bf16.mxu1 %v10932_v52 }
 0x400   : > { %4591 = vmatpush1.bf16.msra.mxu0 %v10920_v50  ;;  %4632 = vmatpush1.bf16.msra.mxu1 %v10944_v60  ;;  %v13122_v50 = vld [vmem:[#allocation43_spill] sm:$0xff] }
 0x401   : > { %4592 = vmatprep.subr.bf16.mxu0 %v13094_v4  ;;  %4633 = vmatprep.subr.bf16.mxu1 %v13095_v5 }
 0x404   : > { %4593 = vmatpush1.bf16.msra.mxu0 %v13096_v11  ;;  %4634 = vmatpush1.bf16.msra.mxu1 %v13097_v32  ;;  %v13120_v32 = vld [vmem:[#allocation42_spill] sm:$0xff]  ;;  %v13121_v11 = vld [vmem:[#allocation39_spill] sm:$0xff] }
 0x405   : > { %4594 = vmatprep.subr.bf16.mxu0 %v13098_v0  ;;  %4635 = vmatprep.subr.bf16.mxu1 %v13099_v14  ;;  %v13118_v14 = vld [vmem:[#allocation41_spill] sm:$0xff]  ;;  %v13119_v0 = vld [vmem:[#allocation38_spill] sm:$0xff] }
 0x408   : > { %4595 = vmatpush1.bf16.msra.mxu0 %v13100_v63  ;;  %4636 = vmatpush1.bf16.msra.mxu1 %v13101_v8  ;;  %v13112_v8 = vld [vmem:[#allocation34_spill] sm:$0xff]  ;;  %v13117_v63 = vld [vmem:[#allocation37_spill] sm:$0xff] }
 0x409   : > { %4596 = vmatprep.subr.bf16.mxu0 %v13102_v34  ;;  %4637 = vmatprep.subr.bf16.mxu1 %v13103_v59  ;;  %v13113_v34 = vld [vmem:[#allocation36_spill] sm:$0xff]  ;;  %v13114_v59 = vld [vmem:[#allocation11_spill] sm:$0xff] }
 0x40c   : > { %4597 = vmatpush1.bf16.msra.mxu0 %v13104_v2  ;;  %4638 = vmatpush1.bf16.msra.mxu1 %v13105_v54  ;;  %v13115_v2 = vld [vmem:[#allocation12_spill] sm:$0xff] }
 0x40d   : > { %4598 = vmatprep.subr.bf16.mxu0 %v13106_v57  ;;  %4639 = vmatprep.subr.bf16.mxu1 %v13107_v3  ;;  %v13116_v54 = vld [vmem:[#allocation40_spill] sm:$0xff]  ;;  %v4434_v3 = vrot.slane %v13117_v63, 2 }
 0x40e   : > { %v4426_v57 = vrot.slane %v13116_v54, 2 }
 0x410   : > { %4599 = vmatpush1.bf16.msra.mxu0 %v13108_v6  ;;  %4640 = vmatpush1.bf16.msra.mxu1 %v13109_v7  ;;  %v4427_v6 = vrot.slane %v13118_v14, 2  ;;  %v4435_v7 = vrot.slane %v13119_v0, 2  ;;  %v4429_v14 = vrot.slane %v11177_v31, 2  ;;  %v4437_v0 = vrot.slane %v13122_v50, 2 }
 0x411   : > { %4600 = vmatprep.subr.bf16.mxu0 %v13110_v61  ;;  %4641 = vmatprep.subr.bf16.mxu1 %v13111_v62  ;;  %v4442_v61 = vsel %vm3925_vm3, %v4426_v57, %v4434_v3  ;;  %v4428_v62 = vrot.slane %v13120_v32, 2 }
 0x414   : > { %4601 = vmatpush1.bf16.msra.mxu0 %v13112_v8  ;;  %4642 = vmatpush1.bf16.msra.mxu1 %v13113_v34  ;;  %v4436_v8 = vrot.slane %v13121_v11, 2  ;;  %v4443_v34 = vsel %vm3925_vm3, %v4427_v6, %v4435_v7 }
 0x415   : > { %4698 = vmatprep.subr.bf16.mxu0 %v13114_v59  ;;  %4739 = vmatprep.subr.bf16.mxu1 %v13115_v2 }
 0x416   : > { %v4444_v54 = vsel %vm3925_vm3, %v4428_v62, %v4436_v8 }
 0x4aa   : > { %v4484_v5 = vpop.f32.mrb[4].mxu0  ;;  %v4525_v59 = vpop.f32.mrb[4].mxu1 }
 0x4ab   : > { %v4532_v4 = vadd.f32 %v4484_v5, %v4442_v61  ;;  %v4486_v2 = vpop.f32.mrb[5].mxu0  ;;  %v4527_v60 = vpop.f32.mrb[5].mxu1  ;;  %v4534_v6 = vadd.f32 %v4525_v59, %v4444_v54  ;;  %v4445_v5 = vsel %vm3925_vm3, %v4429_v14, %v4437_v0 }
 0x4ac   : > { %v4533_v63 = vadd.f32 %v4486_v2, %v4443_v34  ;;  %v4488_v52 = vpop.f32.mrb[6].mxu0  ;;  %v4529_v57 = vpop.f32.mrb[6].mxu1  ;;  %v4535_v7 = vadd.f32 %v4527_v60, %v4445_v5 }
 0x4ad   : > { %v4536_v3 = vmul.f32 0.5, %v4532_v4  ;;  %v4489_v32 = vpop.f32.mrb[7].mxu0  ;;  %v4530_v49 = vpop.f32.mrb[7].mxu1 }
 0x4ae   : > { %v4540_v11 = vmul.f32 0.5, %v4533_v63  ;;  %v4545_v61 = vmul.f32 0.5, %v4535_v7 }
 0x4af   : > { %8860 = vtanh.f32 %v4536_v3 }
 0x4b0   : > { %8862 = vtanh.f32 %v4540_v11 }
 0x4b1   : > { %8864 = vtanh.f32 %v4534_v6  ;;  %v13152_v6 = vld [vmem:[#allocation39_spill] sm:$0xff] }
 0x4b2   : > { %8866 = vtanh.f32 %v4545_v61  ;;  %v4557_v61 = vrot.slane %v11177_v31, 4 }
 0x4b9   : > { %v8861_v62 = vpop.eup %8860 }
 0x4ba   : > { %v8863_v8 = vpop.eup %8862  ;;  %v4538_v34 = vmul.f32 0.5, %v8861_v62 }
 0x4bb   : > { %v4542_v2 = vmul.f32 0.5, %v8863_v8  ;;  %v8865_v52 = vpop.eup %8864 }
 0x4bc   : > { %v4539_v50 = vadd.f32 0.5, %v4538_v34  ;;  %v8867_v11 = vpop.eup %8866 }
 0x4bd   : > { %v4543_v57 = vadd.f32 0.5, %v4542_v2  ;;  %v4547_v0 = vmul.f32 0.5, %v8867_v11 }
 0x4be   : > { %v4550_v4 = vmul.f32 %v8865_v52, %v4539_v50 }
 0x4bf   : > { %v4549_v49 = vmul.f32 %v4543_v57, %v11182_v55  ;;  %v4548_v14 = vadd.f32 0.5, %v4547_v0 }
 0x4c1   : > { %v11274_v32 = vadd.f32 %v4550_v4, %v4549_v49  ;;  %v13153_v49 = vld [vmem:[#allocation43_spill] sm:$0xff] }
 0x4c2   : > { %v4565_v11 = vsel %vm3925_vm3, %v4557_v61, %v13153_v49 }
 0x4c3   : > { %8868 = vtanh.f32 %v11274_v32 }
 0x4cd   : > { %v8869_v60 = vpop.eup %8868 }
 0x4ce   : > { %v11277_v63 = vmul.f32 %v8869_v60, %v4548_v14 }
 0x4d0   : > { %v4566_v54 = vsel %vm3883_vm1, %v11277_v63, 0.0  ;;  %v7884_v50 = vpack.c.bf16 %v11277_v63, %v11277_v63 }
 0x4d1   : > { %v4567_v59 = vsub.f32 %v11277_v63, %v4566_v54 }
 0x4d3   : > { %v4569_v3 = vpack.c.bf16 %v4567_v59, %v4567_v59 }
 0x4d5   : > { %4602 = vmatprep.mubr.bf16.mxu0 %v4569_v3  ;;  %4643 = vmatprep.mubr.bf16.mxu1 %v4569_v3 }
 0x4d6   : > { %7885 = vmatmul.mubr.msk.bf16.vlgmr.msra.gmra.mrb[8].mxu0 %vm11067_vm2, %v7884_v50  ;;  %7888 = vmatmul.mubr.msk.bf16.vlgmr.msra.gmra.mrb[8].mxu1 %vm11067_vm2, %v7884_v50 }
 0x4d7   : > { %4699 = vmatpush1.bf16.msra.mxu0 %v10684_v1  ;;  %4740 = vmatpush1.bf16.msra.mxu1 %v10709_v10  ;;  %v13123_v1 = vld [vmem:[#allocation13_spill] sm:$0xff] }
 0x4d8   : > { %4700 = vmatprep.subr.bf16.mxu0 %v10690_v33  ;;  %4741 = vmatprep.subr.bf16.mxu1 %v10722_v13  ;;  %v13124_v33 = vld [vmem:[#allocation15_spill] sm:$0xff]  ;;  %v13126_v10 = vld [vmem:[#allocation17_spill] sm:$0xff] }
 0x4d9   : > { %v13128_v13 = vld [vmem:[#allocation19_spill] sm:$0xff] }
 0x4db   : > { %4701 = vmatpush1.bf16.msra.mxu0 %v10704_v9  ;;  %4742 = vmatpush1.bf16.msra.mxu1 %v10728_v15  ;;  %v13125_v9 = vld [vmem:[#allocation14_spill] sm:$0xff] }
 0x4dc   : > { %4702 = vmatprep.subr.bf16.mxu0 %v10716_v12  ;;  %4743 = vmatprep.subr.bf16.mxu1 %v10746_v18  ;;  %v13127_v12 = vld [vmem:[#allocation16_spill] sm:$0xff]  ;;  %v13129_v15 = vld [vmem:[#allocation18_spill] sm:$0xff]  ;;  %v13132_v18 = vld [vmem:[#allocation23_spill] sm:$0xff] }
 0x4df   : > { %4703 = vmatpush1.bf16.msra.mxu0 %v10735_v16  ;;  %4744 = vmatpush1.bf16.msra.mxu1 %v10752_v19  ;;  %v13130_v16 = vld [vmem:[#allocation21_spill] sm:$0xff]  ;;  %v13133_v19 = vld [vmem:[#allocation22_spill] sm:$0xff] }
 0x4e0   : > { %4704 = vmatprep.subr.bf16.mxu0 %v10741_v17  ;;  %4745 = vmatprep.subr.bf16.mxu1 %v10764_v21  ;;  %v13131_v17 = vld [vmem:[#allocation20_spill] sm:$0xff] }
 0x4e1   : > { %v13135_v21 = vld [vmem:[#allocation24_spill] sm:$0xff] }
 0x4e3   : > { %4705 = vmatpush1.bf16.msra.mxu0 %v10759_v20  ;;  %4746 = vmatpush1.bf16.msra.mxu1 %v10781_v24  ;;  %v13134_v20 = vld [vmem:[#allocation25_spill] sm:$0xff] }
 0x4e4   : > { %4706 = vmatprep.subr.bf16.mxu0 %v10770_v22  ;;  %4747 = vmatprep.subr.bf16.mxu1 %v10788_v25  ;;  %v13136_v22 = vld [vmem:[#allocation27_spill] sm:$0xff]  ;;  %v13138_v24 = vld [vmem:[#allocation29_spill] sm:$0xff]  ;;  %v13139_v25 = vld [vmem:[#allocation28_spill] sm:$0xff] }
 0x4e7   : > { %4707 = vmatpush1.bf16.msra.mxu0 %v10776_v23  ;;  %4748 = vmatpush1.bf16.msra.mxu1 %v10800_v27  ;;  %v13137_v23 = vld [vmem:[#allocation26_spill] sm:$0xff] }
 0x4e8   : > { %4708 = vmatprep.subr.bf16.mxu0 %v10794_v26  ;;  %4749 = vmatprep.subr.bf16.mxu1 %v10812_v29  ;;  %v13140_v26 = vld [vmem:[#allocation31_spill] sm:$0xff]  ;;  %v13141_v27 = vld [vmem:[#allocation30_spill] sm:$0xff]  ;;  %v13143_v29 = vld [vmem:[#allocation32_spill] sm:$0xff] }
 0x4eb   : > { %4709 = vmatpush1.bf16.msra.mxu0 %v10807_v28  ;;  %4750 = vmatpush1.bf16.msra.mxu1 %v10829_v36  ;;  %v13142_v28 = vld [vmem:[#allocation33_spill] sm:$0xff]  ;;  %v13146_v36 = vld [vmem:[#allocation36_spill] sm:$0xff] }
 0x4ec   : > { %4710 = vmatprep.subr.bf16.mxu0 %v10818_v30  ;;  %4751 = vmatprep.subr.bf16.mxu1 %v10836_v37  ;;  %v13144_v30 = vld [vmem:[#allocation35_spill] sm:$0xff]  ;;  %v13147_v37 = vld [vmem:[#allocation40_spill] sm:$0xff] }
 0x4ef   : > { %4711 = vmatpush1.bf16.msra.mxu0 %v10824_v35  ;;  %4752 = vmatpush1.bf16.msra.mxu1 %v10848_v39  ;;  %v13145_v35 = vld [vmem:[#allocation34_spill] sm:$0xff]  ;;  %v13148_v39 = vld [vmem:[#allocation41_spill] sm:$0xff] }
 0x4f0   : > { %4712 = vmatprep.subr.bf16.mxu0 %v10842_v38  ;;  %4753 = vmatprep.subr.bf16.mxu1 %v10860_v41  ;;  %v4554_v38 = vrot.slane %v13147_v37, 4  ;;  %v13149_v41 = vld [vmem:[#allocation37_spill] sm:$0xff] }
 0x4f3   : > { %4713 = vmatpush1.bf16.msra.mxu0 %v10855_v40  ;;  %4754 = vmatpush1.bf16.msra.mxu1 %v10877_v44  ;;  %v4555_v40 = vrot.slane %v13148_v39, 4 }
 0x4f4   : > { %4714 = vmatprep.subr.bf16.mxu0 %v10866_v42  ;;  %4755 = vmatprep.subr.bf16.mxu1 %v10884_v45  ;;  %v4562_v42 = vsel %vm3925_vm3, %v4554_v38, %v13149_v41  ;;  %v13151_v45 = vld [vmem:[#allocation38_spill] sm:$0xff] }
 0x4f7   : > { %4715 = vmatpush1.bf16.msra.mxu0 %v10872_v43  ;;  %4756 = vmatpush1.bf16.msra.mxu1 %v10896_v56  ;;  %v13150_v43 = vld [vmem:[#allocation42_spill] sm:$0xff] }
 0x4f8   : > { %4716 = vmatprep.subr.bf16.mxu0 %v10890_v46  ;;  %4757 = vmatprep.subr.bf16.mxu1 %v10908_v48  ;;  %v4556_v44 = vrot.slane %v13150_v43, 4  ;;  %v4563_v46 = vsel %vm3925_vm3, %v4555_v40, %v13151_v45 }
 0x4fa   : > { %v4564_v5 = vsel %vm3925_vm3, %v4556_v44, %v13152_v6 }
 0x4fb   : > { %4717 = vmatpush1.bf16.msra.mxu0 %v10903_v47  ;;  %4758 = vmatpush1.bf16.msra.mxu1 %v10925_v51 }
 0x4fc   : > { %4718 = vmatprep.subr.bf16.mxu0 %v13123_v1  ;;  %4759 = vmatprep.subr.bf16.mxu1 %v13124_v33 }
 0x4ff   : > { %4719 = vmatpush1.bf16.msra.mxu0 %v13125_v9  ;;  %4760 = vmatpush1.bf16.msra.mxu1 %v13126_v10 }
 0x500   : > { %4720 = vmatprep.subr.bf16.mxu0 %v13127_v12  ;;  %4761 = vmatprep.subr.bf16.mxu1 %v13128_v13 }
 0x503   : > { %4721 = vmatpush1.bf16.msra.mxu0 %v13129_v15  ;;  %4762 = vmatpush1.bf16.msra.mxu1 %v13130_v16 }
 0x504   : > { %4722 = vmatprep.subr.bf16.mxu0 %v13131_v17  ;;  %4763 = vmatprep.subr.bf16.mxu1 %v13132_v18 }
 0x507   : > { %4723 = vmatpush1.bf16.msra.mxu0 %v13133_v19  ;;  %4764 = vmatpush1.bf16.msra.mxu1 %v13134_v20 }
 0x508   : > { %4724 = vmatprep.subr.bf16.mxu0 %v13135_v21  ;;  %4765 = vmatprep.subr.bf16.mxu1 %v13136_v22 }
 0x50b   : > { %4725 = vmatpush1.bf16.msra.mxu0 %v13137_v23  ;;  %4766 = vmatpush1.bf16.msra.mxu1 %v13138_v24  ;;  %v4682_v23 = vrot.slane %v13149_v41, 6  ;;  %v4675_v24 = vrot.slane %v13148_v39, 6  ;;  %v4677_v39 = vrot.slane %v11177_v31, 6 }
 0x50c   : > { %4726 = vmatprep.subr.bf16.mxu0 %v13139_v25  ;;  %4767 = vmatprep.subr.bf16.mxu1 %v13140_v26  ;;  %v4683_v25 = vrot.slane %v13151_v45, 6 }
 0x50f   : > { %4727 = vmatpush1.bf16.msra.mxu0 %v13141_v27  ;;  %4768 = vmatpush1.bf16.msra.mxu1 %v13142_v28  ;;  %v4676_v27 = vrot.slane %v13150_v43, 6  ;;  %v4684_v28 = vrot.slane %v13152_v6, 6 }
 0x510   : > { %4728 = vmatprep.subr.bf16.mxu0 %v13143_v29  ;;  %4769 = vmatprep.subr.bf16.mxu1 %v13144_v30  ;;  %v4691_v29 = vsel %vm3925_vm3, %v4675_v24, %v4683_v25  ;;  %v4894_v24 = vld [vmem:[%s12912_s4 + $0x80] sm:$0xff] (%p3886_p0) }
 0x513   : > { %4729 = vmatpush1.bf16.msra.mxu0 %v13145_v35  ;;  %4770 = vmatpush1.bf16.msra.mxu1 %v13146_v36 }
 0x5a9   : > { %v4604_v56 = vpop.f32.mrb[8].mxu0  ;;  %v4645_v47 = vpop.f32.mrb[8].mxu1 }
 0x5aa   : > { %v4652_v48 = vadd.f32 %v4604_v56, %v4562_v42  ;;  %v4606_v51 = vpop.f32.mrb[9].mxu0  ;;  %v4647_v55 = vpop.f32.mrb[9].mxu1  ;;  %v4654_v4 = vadd.f32 %v4645_v47, %v4564_v5  ;;  %v4685_v42 = vrot.slane %v13153_v49, 6  ;;  %v4803_v49 = vrot.slane %v11277_v63, 6 }
 0x5ab   : > { %v4653_v7 = vadd.f32 %v4606_v51, %v4563_v46  ;;  %v4608_v62 = vpop.f32.mrb[10].mxu0  ;;  %v4649_v8 = vpop.f32.mrb[10].mxu1  ;;  %v4655_v0 = vadd.f32 %v4647_v55, %v4565_v11 }
 0x5ac   : > { %v4656_v34 = vmul.f32 0.5, %v4652_v48  ;;  %v4609_v2 = vpop.f32.mrb[11].mxu0  ;;  %v4650_v52 = vpop.f32.mrb[11].mxu1  ;;  %v4693_v51 = vsel %vm3925_vm3, %v4677_v39, %v4685_v42 }
 0x5ad   : > { %v4660_v57 = vmul.f32 0.5, %v4653_v7  ;;  %v4665_v14 = vmul.f32 0.5, %v4655_v0 }
 0x5ae   : > { %8870 = vtanh.f32 %v4656_v34 }
 0x5af   : > { %8872 = vtanh.f32 %v4660_v57 }
 0x5b0   : > { %8874 = vtanh.f32 %v4654_v4 }
 0x5b1   : > { %8876 = vtanh.f32 %v4665_v14 }
 0x5b8   : > { %v8871_v60 = vpop.eup %8870 }
 0x5b9   : > { %v8873_v54 = vpop.eup %8872  ;;  %v4658_v59 = vmul.f32 0.5, %v8871_v60 }
 0x5ba   : > { %v4662_v3 = vmul.f32 0.5, %v8873_v54  ;;  %v8875_v1 = vpop.eup %8874  ;;  %v13154_v54 = vld [vmem:[#allocation10_spill] sm:$0xff] }
 0x5bb   : > { %v4659_v50 = vadd.f32 0.5, %v4658_v59  ;;  %v8877_v13 = vpop.eup %8876  ;;  %v4811_v59 = vsel %vm3925_vm3, %v13154_v54, %v4803_v49 }
 0x5bc   : > { %v4663_v33 = vadd.f32 0.5, %v4662_v3  ;;  %v4667_v15 = vmul.f32 0.5, %v8877_v13  ;;  %v4879_v13 = vld [vmem:[%s12912_s4 + $0x8] sm:$0xff] (%p3886_p0) }
 0x5bd   : > { %v4670_v9 = vmul.f32 %v8875_v1, %v4659_v50  ;;  %v4821_v50 = vrot.slane %v13154_v54, 4 }
 0x5be   : > { %v4669_v10 = vmul.f32 %v4663_v33, %v11274_v32  ;;  %v4668_v16 = vadd.f32 0.5, %v4667_v15  ;;  %v4674_v32 = vrot.slane %v13147_v37, 6  ;;  %v4692_v37 = vsel %vm3925_vm3, %v4676_v27, %v4684_v28  ;;  %v4895_v27 = vld [vmem:[%s12912_s4 + $0x88] sm:$0xff] (%p3886_p0) }
 0x5bf   :  { %v4899_v28 = vld [vmem:[%s12912_s4 + $0xa8] sm:$0xff] (%p3886_p0) }
 0x5c0   : > { %v4671_v12 = vadd.f32 %v4670_v9, %v4669_v10  ;;  %v4690_v26 = vsel %vm3925_vm3, %v4674_v32, %v4682_v23  ;;  %v4878_v10 = vld [vmem:[%s12912_s4] sm:$0xff] (%p3886_p0)  ;;  %v4887_v32 = vld [vmem:[%s12912_s4 + $0x48] sm:$0xff] (%p3886_p0)  ;;  %v7917_v42 = vcombine.low (%p3886_p0), %v4895_v27, %v4899_v28 }
 0x5c1   :  { %v4891_v23 = vld [vmem:[%s12912_s4 + $0x68] sm:$0xff] (%p3886_p0) }
 0x5c2   : > { %8878 = vtanh.f32 %v4671_v12  ;;  %v7910_v25 = vcombine.high (%p3886_p0), %v4887_v32, %v4891_v23 }
 0x5cc   : > { %v8879_v17 = vpop.eup %8878 }
 0x5cd   : > { %v11364_v18 = vmul.f32 %v8879_v17, %v4668_v16  ;;  %v4883_v16 = vld [vmem:[%s12912_s4 + $0x28] sm:$0xff] (%p3886_p0) }
 0x5cf   : > { %v4694_v19 = vsel %vm3883_vm1, %v11364_v18, 0.0  ;;  %v7890_v22 = vpack.c.bf16 %v11364_v18, %v11364_v18  ;;  %v4806_v14 = vrot.slane %v11364_v18, 4 }
 0x5d0   : > { %v4695_v20 = vsub.f32 %v11364_v18, %v4694_v19  ;;  %v4890_v19 = vld [vmem:[%s12912_s4 + $0x60] sm:$0xff] (%p3886_p0) }
 0x5d1   : > { %v4813_v3 = vsel %vm4812_vm4, %v4811_v59, %v4806_v14 }
 0x5d2   : > { %v4697_v21 = vpack.c.bf16 %v4695_v20, %v4695_v20  ;;  %v7902_v20 = vcombine.high (%p3886_p0), %v4879_v13, %v4883_v16 }
 0x5d4   : > { %4730 = vmatprep.mubr.bf16.mxu0 %v4697_v21  ;;  %4771 = vmatprep.mubr.bf16.mxu1 %v4697_v21  ;;  %v7901_v21 = vcombine.low (%p3886_p0), %v4879_v13, %v4883_v16  ;;  %v4946_v16 = vld [vmem:[%s12912_s4 + $0x220] sm:$0xff] (%p3886_p0) }
 0x5d5   : > { %7891 = vmatmul.mubr.msk.bf16.vlgmr.msra.gmra.mrb[12].mxu0 %vm11067_vm2, %v7890_v22  ;;  %7894 = vmatmul.mubr.msk.bf16.vlgmr.msra.gmra.mrb[12].mxu1 %vm11067_vm2, %v7890_v22 }
 0x5d6   :  { %5801 = vmatprep.subr.bf16.mxu1 (%p3886_p0), %v7902_v20 }
 0x5d7   :  { %5802 = vmatpush1.bf16.msra.mxu1 (%p3886_p0), %v7901_v21 }
 0x5d8   :  { %5803 = vmatprep.subr.bf16.mxu1 (%p3886_p0), %v7910_v25  ;;  %v4955_v25 = vld [vmem:[%s12912_s4 + $0x268] sm:$0xff] (%p3886_p0) }
 0x6a8   : > { %v4732_v30 = vpop.f32.mrb[12].mxu0  ;;  %v4773_v35 = vpop.f32.mrb[12].mxu1 }
 0x6a9   : > { %v4780_v36 = vadd.f32 %v4732_v30, %v4690_v26  ;;  %v4734_v38 = vpop.f32.mrb[13].mxu0  ;;  %v4775_v40 = vpop.f32.mrb[13].mxu1  ;;  %v4782_v48 = vadd.f32 %v4773_v35, %v4692_v37  ;;  %v4898_v26 = vld [vmem:[%s12912_s4 + $0xa0] sm:$0xff] (%p3886_p0)  ;;  %v7909_v30 = vcombine.low (%p3886_p0), %v4887_v32, %v4891_v23  ;;  %v4903_v37 = vld [vmem:[%s12912_s4 + $0xc8] sm:$0xff] (%p3886_p0) }
 0x6aa   : > { %v4781_v41 = vadd.f32 %v4734_v38, %v4691_v29  ;;  %v4736_v44 = vpop.f32.mrb[14].mxu0  ;;  %v4777_v45 = vpop.f32.mrb[14].mxu1  ;;  %v4783_v55 = vadd.f32 %v4775_v40, %v4693_v51  ;;  %v7916_v35 = vcombine.high (%p3886_p0), %v4894_v24, %v4898_v26  ;;  %v4902_v38 = vld [vmem:[%s12912_s4 + $0xc0] sm:$0xff] (%p3886_p0)  ;;  %v7915_v39 = vcombine.low (%p3886_p0), %v4894_v24, %v4898_v26  ;;  %v4951_v24 = vld [vmem:[%s12912_s4 + $0x248] sm:$0xff] (%p3886_p0) }
 0x6ab   : > { %v4784_v46 = vmul.f32 0.5, %v4780_v36  ;;  %v4737_v43 = vpop.f32.mrb[15].mxu0  ;;  %v4778_v56 = vpop.f32.mrb[15].mxu1  ;;  %v7918_v36 = vcombine.high (%p3886_p0), %v4895_v27, %v4899_v28  ;;  %v4906_v40 = vld [vmem:[%s12912_s4 + $0xe0] sm:$0xff] (%p3886_p0)  ;;  %5804 = vmatpush1.bf16.msra.mxu1 (%p3886_p0), %v7909_v30 }
 0x6ac   : > { %v4788_v47 = vmul.f32 0.5, %v4781_v41  ;;  %v4793_v6 = vmul.f32 0.5, %v4783_v55  ;;  %v4907_v41 = vld [vmem:[%s12912_s4 + $0xe8] sm:$0xff] (%p3886_p0)  ;;  %v7924_v44 = vcombine.high (%p3886_p0), %v4902_v38, %v4906_v40  ;;  %v4914_v43 = vld [vmem:[%s12912_s4 + $0x120] sm:$0xff] (%p3886_p0) }
 0x6ad   : > { %8880 = vtanh.f32 %v4784_v46  ;;  %5805 = vmatprep.subr.bf16.mxu1 (%p3886_p0), %v7918_v36  ;;  %v7926_v45 = vcombine.high (%p3886_p0), %v4903_v37, %v4907_v41  ;;  %v4910_v46 = vld [vmem:[%s12912_s4 + $0x100] sm:$0xff] (%p3886_p0)  ;;  %v4911_v56 = vld [vmem:[%s12912_s4 + $0x108] sm:$0xff] (%p3886_p0)  ;;  %v7925_v51 = vcombine.low (%p3886_p0), %v4903_v37, %v4907_v41  ;;  %v7973_v37 = vcombine.low (%p3886_p0), %v4951_v24, %v4955_v25 }
 0x6ae   : > { %8882 = vtanh.f32 %v4788_v47  ;;  %v4915_v47 = vld [vmem:[%s12912_s4 + $0x128] sm:$0xff] (%p3886_p0)  ;;  %v7932_v55 = vcombine.high (%p3886_p0), %v4910_v46, %v4914_v43  ;;  %v4950_v32 = vld [vmem:[%s12912_s4 + $0x240] sm:$0xff] (%p3886_p0) }
 0x6af   : > { %8884 = vtanh.f32 %v4782_v48  ;;  %v7923_v48 = vcombine.low (%p3886_p0), %v4902_v38, %v4906_v40  ;;  %5806 = vmatpush1.bf16.msra.mxu1 (%p3886_p0), %v7917_v42  ;;  %v4954_v23 = vld [vmem:[%s12912_s4 + $0x260] sm:$0xff] (%p3886_p0)  ;;  %v4959_v36 = vld [vmem:[%s12912_s4 + $0x288] sm:$0xff] (%p3886_p0) }
 0x6b0   : > { %8886 = vtanh.f32 %v4793_v6  ;;  %5807 = vmatprep.subr.bf16.mxu1 (%p3886_p0), %v7926_v45  ;;  %v7972_v28 = vcombine.high (%p3886_p0), %v4950_v32, %v4954_v23  ;;  %v4958_v30 = vld [vmem:[%s12912_s4 + $0x280] sm:$0xff] (%p3886_p0)  ;;  %v4963_v38 = vld [vmem:[%s12912_s4 + $0x2a8] sm:$0xff] (%p3886_p0)  ;;  %v7971_v40 = vcombine.low (%p3886_p0), %v4950_v32, %v4954_v23 }
 0x6b1   :  { %v4966_v42 = vld [vmem:[%s12912_s4 + $0x2c0] sm:$0xff] (%p3886_p0)  ;;  %v4967_v45 = vld [vmem:[%s12912_s4 + $0x2c8] sm:$0xff] (%p3886_p0) }
 0x6b3   :  { %5808 = vmatpush1.bf16.msra.mxu1 (%p3886_p0), %v7925_v51  ;;  %v4974_v51 = vld [vmem:[%s12912_s4 + $0x300] sm:$0xff] (%p3886_p0) }
 0x6b7   : > { %v8881_v5 = vpop.eup %8880 }
 0x6b8   : > { %v8883_v7 = vpop.eup %8882  ;;  %v4786_v31 = vmul.f32 0.5, %v8881_v5  ;;  %v4918_v5 = vld [vmem:[%s12912_s4 + $0x140] sm:$0xff] (%p3886_p0) }
 0x6b9   : > { %v4790_v61 = vmul.f32 0.5, %v8883_v7  ;;  %v8885_v8 = vpop.eup %8884 }
 0x6ba   : > { %v4787_v62 = vadd.f32 0.5, %v4786_v31  ;;  %v8887_v57 = vpop.eup %8886  ;;  %v4919_v31 = vld [vmem:[%s12912_s4 + $0x148] sm:$0xff] (%p3886_p0) }
 0x6bb   : > { %v4791_v34 = vadd.f32 0.5, %v4790_v61  ;;  %v4795_v4 = vmul.f32 0.5, %v8887_v57  ;;  %v4923_v61 = vld [vmem:[%s12912_s4 + $0x168] sm:$0xff] (%p3886_p0)  ;;  %v4930_v57 = vld [vmem:[%s12912_s4 + $0x1a0] sm:$0xff] (%p3886_p0) }
 0x6bc   : > { %v4798_v2 = vmul.f32 %v8885_v8, %v4787_v62  ;;  %v7931_v62 = vcombine.low (%p3886_p0), %v4910_v46, %v4914_v43  ;;  %v7933_v8 = vcombine.low (%p3886_p0), %v4911_v56, %v4915_v47  ;;  %v4971_v46 = vld [vmem:[%s12912_s4 + $0x2e8] sm:$0xff] (%p3886_p0) }
 0x6bd   : > { %v4797_v52 = vmul.f32 %v4791_v34, %v4671_v12  ;;  %v4796_v11 = vadd.f32 0.5, %v4795_v4  ;;  %v4882_v12 = vld [vmem:[%s12912_s4 + $0x20] sm:$0xff] (%p3886_p0)  ;;  %v4927_v4 = vld [vmem:[%s12912_s4 + $0x188] sm:$0xff] (%p3886_p0) }
 0x6be   :  { %v7900_v15 = vcombine.high (%p3886_p0), %v4878_v10, %v4882_v12  ;;  %v7899_v17 = vcombine.low (%p3886_p0), %v4878_v10, %v4882_v12 }
 0x6bf   : > { %v4799_v6 = vadd.f32 %v4798_v2, %v4797_v52   ;;  %v7942_v2 = vcombine.high (%p3886_p0), %v4919_v31, %v4923_v61  ;;  %v4926_v52 = vld [vmem:[%s12912_s4 + $0x180] sm:$0xff] (%p3886_p0) }
 0x6c0   :  { %5688 = vmatprep.subr.bf16.mxu0 (%p3886_p0), %v7900_v15  ;;  %v7948_v14 = vcombine.high (%p3886_p0), %v4926_v52, %v4930_v57  ;;  %v4942_v15 = vld [vmem:[%s12912_s4 + $0x200] sm:$0xff] (%p3886_p0) }
 0x6c1   : > { %8888 = vtanh.f32 %v4799_v6  ;;  %5689 = vmatpush1.bf16.msra.mxu0 (%p3886_p0), %v7899_v17  ;;  %v7934_v6 = vcombine.high (%p3886_p0), %v4911_v56, %v4915_v47  ;;  %v4943_v17 = vld [vmem:[%s12912_s4 + $0x208] sm:$0xff] (%p3886_p0)  ;;  %v7964_v21 = vcombine.high (%p3886_p0), %v4942_v15, %v4946_v16  ;;  %v7963_v26 = vcombine.low (%p3886_p0), %v4942_v15, %v4946_v16 }
 0x6c2   :  { %v7981_v56 = vcombine.low (%p3886_p0), %v4959_v36, %v4963_v38 }
 0x6c3   :  { %5809 = vmatprep.subr.bf16.mxu1 (%p3886_p0), %v7934_v6  ;;  %v4975_v6 = vld [vmem:[%s12912_s4 + $0x308] sm:$0xff] (%p3886_p0) }
 0x6c4   :  { %5810 = vmatpush1.bf16.msra.mxu1 (%p3886_p0), %v7933_v8  ;;  %v4982_v8 = vld [vmem:[%s12912_s4 + $0x340] sm:$0xff] (%p3886_p0) }
 0x6c5   :  { %5811 = vmatprep.subr.bf16.mxu1 (%p3886_p0), %v7942_v2  ;;  %v4983_v2 = vld [vmem:[%s12912_s4 + $0x348] sm:$0xff] (%p3886_p0) }
 0x6cb   : > { %v8889_v0 = vpop.eup %8888 }
 0x6cc   : > { %v4801_v7 = vmul.f32 %v8889_v0, %v4796_v11   ;;  %v7941_v0 = vcombine.low (%p3886_p0), %v4919_v31, %v4923_v61  ;;  %v7989_v31 = vcombine.low (%p3886_p0), %v4967_v45, %v4971_v46 }
 0x6cd   :  { %3888 = sbr.rel (!%p3886_p0) target bundleno = 663 (0x297), region = 78 }
 0x6ce   : > { %v4809_v60 = vrot.slane %v4801_v7, 2  ;;  %v4922_v7 = vld [vmem:[%s12912_s4 + $0x160] sm:$0xff] (%p3886_p0)  ;;  %5812 = vmatpush1.bf16.msra.mxu1 (%p3886_p0), %v7941_v0 }
 0x6cf   :  { %v7940_v34 = vcombine.high (%p3886_p0), %v4918_v5, %v4922_v7  ;;  %v7939_v11 = vcombine.low (%p3886_p0), %v4918_v5, %v4922_v7  ;;  %v4979_v5 = vld [vmem:[%s12912_s4 + $0x328] sm:$0xff] (%p3886_p0)  ;;  %v4990_v0 = vld [vmem:[%s12912_s4 + $0x380] sm:$0xff] (%p3886_p0) }
 0x6d0   : > { %v4815_v63 = vsel %vm4814_vm5, %v4813_v3, %v4809_v60  ;;  %v4823_v1 = vsel %vm3925_vm3, %v4809_v60, %v11364_v18  ;;  %v4886_v18 = vld [vmem:[%s12912_s4 + $0x40] sm:$0xff] (%p3886_p0) }
 0x6d1   : > { %4819 = vst [vmem:[%s4818_s1] sm:$0xff] %v4815_v63  ;;  %v4824_v33 = vsel %vm4812_vm4, %v4823_v1, %v4803_v49  ;;  %v7908_v22 = vcombine.high (%p3886_p0), %v4886_v18, %v4890_v19  ;;  %v7907_v29 = vcombine.low (%p3886_p0), %v4886_v18, %v4890_v19  ;;  %v4931_v49 = vld [vmem:[%s12912_s4 + $0x1a8] sm:$0xff] (%p3886_p0)  ;;  %v4934_v3 = vld [vmem:[%s12912_s4 + $0x1c0] sm:$0xff] (%p3886_p0) }
 0x6d2   : > { %v4825_v9 = vsel %vm4814_vm5, %v4824_v33, %v4821_v50  ;;  %v7950_v59 = vcombine.high (%p3886_p0), %v4927_v4, %v4931_v49  ;;  %v4938_v50 = vld [vmem:[%s12912_s4 + $0x1e0] sm:$0xff] (%p3886_p0)  ;;  %v4935_v1 = vld [vmem:[%s12912_s4 + $0x1c8] sm:$0xff] (%p3886_p0)  ;;  %v7949_v10 = vcombine.low (%p3886_p0), %v4927_v4, %v4931_v49  ;;  %v7997_v4 = vcombine.low (%p3886_p0), %v4975_v6, %v4979_v5 }
 0x6d3   : > { %4829 = vst [vmem:[%s4828_s12 + $0x8] sm:$0xff] %v4825_v9  ;;  %5690 = vmatprep.subr.bf16.mxu0 (%p3886_p0), %v7908_v22  ;;  %v4939_v33 = vld [vmem:[%s12912_s4 + $0x1e8] sm:$0xff] (%p3886_p0)  ;;  %v7947_v9 = vcombine.low (%p3886_p0), %v4926_v52, %v4930_v57  ;;  %v7956_v12 = vcombine.high (%p3886_p0), %v4934_v3, %v4938_v50  ;;  %v7955_v19 = vcombine.low (%p3886_p0), %v4934_v3, %v4938_v50 }
 0x6d4   :  { %5691 = vmatpush1.bf16.msra.mxu0 %v7907_v29  ;;  %5813 = vmatprep.subr.bf16.mxu1 %v7950_v59  ;;  %v7958_v13 = vcombine.high %v4935_v1, %v4939_v33  ;;  %v4947_v18 = vld [vmem:[%s12912_s4 + $0x228] sm:$0xff]  ;;  %v7957_v20 = vcombine.low %v4935_v1, %v4939_v33  ;;  %v7974_v29 = vcombine.high %v4951_v24, %v4955_v25  ;;  %v4998_v33 = vld [vmem:[%s12912_s4 + $0x3c0] sm:$0xff] }
 0x6d5   :  { %5692 = vmatprep.subr.bf16.mxu0 %v7916_v35  ;;  %5814 = vmatpush1.bf16.msra.mxu1 %v7949_v10  ;;  %v7966_v22 = vcombine.high %v4943_v17, %v4947_v18  ;;  %v7965_v27 = vcombine.low %v4943_v17, %v4947_v18  ;;  %v4962_v35 = vld [vmem:[%s12912_s4 + $0x2a0] sm:$0xff]  ;;  %v4987_v52 = vld [vmem:[%s12912_s4 + $0x368] sm:$0xff]  ;;  %v4880_v18 = vld [vmem:[%s12912_s4 + $0x10] sm:$0xff] }
 0x6d6   :  { %5815 = vmatprep.subr.bf16.mxu1 %v7958_v13  ;;  %v7980_v41 = vcombine.high %v4958_v30, %v4962_v35  ;;  %v7979_v43 = vcombine.low %v4958_v30, %v4962_v35  ;;  %v8005_v3 = vcombine.low %v4983_v2, %v4987_v52  ;;  %v4999_v10 = vld [vmem:[%s12912_s4 + $0x3c8] sm:$0xff]  ;;  %v4893_v35 = vld [vmem:[%s12912_s4 + $0x78] sm:$0xff] }
 0x6d8   :  { %5693 = vmatpush1.bf16.msra.mxu0 %v7915_v39  ;;  %v7982_v39 = vcombine.high %v4959_v36, %v4963_v38 }
 0x6d9   :  { %5694 = vmatprep.subr.bf16.mxu0 %v7924_v44  ;;  %5816 = vmatpush1.bf16.msra.mxu1 %v7957_v20  ;;  %v4970_v44 = vld [vmem:[%s12912_s4 + $0x2e0] sm:$0xff]  ;;  %v4881_v20 = vld [vmem:[%s12912_s4 + $0x18] sm:$0xff] }
 0x6da   :  { %v4831_v60 = vld [vmem:[#allocation4 + $0x8] sm:$0xff]  ;;  %v4833_v54 = vld [vmem:[#allocation4 + $0x18] sm:$0xff]  ;;  %5817 = vmatprep.subr.bf16.mxu1 %v7966_v22  ;;  %v7988_v47 = vcombine.high %v4966_v42, %v4970_v44  ;;  %v7987_v7 = vcombine.low %v4966_v42, %v4970_v44  ;;  %v4830_v32 = vld [vmem:[#allocation4] sm:$0xff] }
 0x6db   :  { %v11499_v63 = vpack.c.bf16 %v4833_v54, %v4831_v60  ;;  %v4991_v60 = vld [vmem:[%s12912_s4 + $0x388] sm:$0xff]  ;;  %v4832_v23 = vld [vmem:[#allocation4 + $0x10] sm:$0xff]  ;;  %v4837_v38 = vld [vmem:[#allocation4 + $0x38] sm:$0xff] }
 0x6dc   :  { %5695 = vmatpush1.bf16.msra.mxu0 %v7923_v48  ;;  %v7990_v48 = vcombine.high %v4967_v45, %v4971_v46  ;;  %v4995_v54 = vld [vmem:[%s12912_s4 + $0x3a8] sm:$0xff]  ;;  %v11626_v30 = vpack.c.bf16 %v4832_v23, %v4830_v32  ;;  %v4896_v44 = vld [vmem:[%s12912_s4 + $0x90] sm:$0xff]  ;;  %v4897_v46 = vld [vmem:[%s12912_s4 + $0x98] sm:$0xff] }
 0x6dd   :  { %5696 = vmatprep.subr.bf16.mxu0 %v7932_v55  ;;  %5720 = vmatprep.mubr.bf16.mxu0 %v11499_v63  ;;  %v4978_v55 = vld [vmem:[%s12912_s4 + $0x320] sm:$0xff]  ;;  %v8014_v1 = vcombine.high %v4991_v60, %v4995_v54  ;;  %v8013_v15 = vcombine.low %v4991_v60, %v4995_v54  ;;  %v4835_v36 = vld [vmem:[#allocation4 + $0x28] sm:$0xff]  ;;  %v4900_v45 = vld [vmem:[%s12912_s4 + $0xb0] sm:$0xff] }
 0x6de   :  { %5833 = vmatprep.mubr.bf16.mxu1 %v11499_v63  ;;  %5818 = vmatpush1.bf16.msra.mxu1 %v7965_v27  ;;  %v7996_v61 = vcombine.high %v4974_v51, %v4978_v55  ;;  %v7995_v57 = vcombine.low %v4974_v51, %v4978_v55  ;;  %v4888_v27 = vld [vmem:[%s12912_s4 + $0x50] sm:$0xff]  ;;  %v11631_v42 = vpack.c.bf16 %v4837_v38, %v4835_v36  ;;  %v4917_v60 = vld [vmem:[%s12912_s4 + $0x138] sm:$0xff] }
 0x6df   :  { %5819 = vmatprep.subr.bf16.mxu1 %v7974_v29  ;;  %v4889_v29 = vld [vmem:[%s12912_s4 + $0x58] sm:$0xff]  ;;  %v7920_v55 = vcombine.high %v4896_v44, %v4900_v45  ;;  %v4928_v32 = vld [vmem:[%s12912_s4 + $0x190] sm:$0xff] }
 0x6e0   :  { %5697 = vmatpush1.bf16.msra.mxu0 %v7931_v62  ;;  %v7998_v62 = vcombine.high %v4975_v6, %v4979_v5  ;;  %v7913_v51 = vcombine.low %v4889_v29, %v4893_v35  ;;  %v4904_v5 = vld [vmem:[%s12912_s4 + $0xd0] sm:$0xff] }
 0x6e1   :  { %5698 = vmatprep.subr.bf16.mxu0 %v7940_v34  ;;  %v4986_v34 = vld [vmem:[%s12912_s4 + $0x360] sm:$0xff]  ;;  %v4932_v23 = vld [vmem:[%s12912_s4 + $0x1b0] sm:$0xff] }
 0x6e2   :  { %5820 = vmatpush1.bf16.msra.mxu1 %v7973_v37  ;;  %v8004_v49 = vcombine.high %v4982_v8, %v4986_v34  ;;  %v8003_v59 = vcombine.low %v4982_v8, %v4986_v34  ;;  %v4839_v8 = vld [vmem:[#allocation4 + $0x48] sm:$0xff]  ;;  %v4841_v34 = vld [vmem:[#allocation4 + $0x58] sm:$0xff]  ;;  %v4936_v38 = vld [vmem:[%s12912_s4 + $0x1d0] sm:$0xff] }
 0x6e3   :  { %5821 = vmatprep.subr.bf16.mxu1 %v7982_v39  ;;  %v7914_v39 = vcombine.high %v4889_v29, %v4893_v35  ;;  %v7952_v35 = vcombine.high %v4928_v32, %v4932_v23 }
 0x6e4   :  { %5699 = vmatpush1.bf16.msra.mxu0 %v7939_v11  ;;  %v8006_v11 = vcombine.high %v4983_v2, %v4987_v52  ;;  %v7919_v2 = vcombine.low %v4896_v44, %v4900_v45  ;;  %v4847_v44 = vld [vmem:[#allocation4 + $0x88] sm:$0xff]  ;;  %v4849_v45 = vld [vmem:[#allocation4 + $0x98] sm:$0xff] }
 0x6e5   :  { %5700 = vmatprep.subr.bf16.mxu0 %v7948_v14  ;;  %v4994_v14 = vld [vmem:[%s12912_s4 + $0x3a0] sm:$0xff] }
 0x6e6   :  { %5822 = vmatpush1.bf16.msra.mxu1 %v7981_v56  ;;  %v8012_v50 = vcombine.high %v4990_v0, %v4994_v14  ;;  %v8011_v13 = vcombine.low %v4990_v0, %v4994_v14  ;;  %v4916_v0 = vld [vmem:[%s12912_s4 + $0x130] sm:$0xff]  ;;  %v4913_v14 = vld [vmem:[%s12912_s4 + $0x118] sm:$0xff] }
 0x6e7   :  { %5823 = vmatprep.subr.bf16.mxu1 %v7990_v48  ;;  %v4836_v48 = vld [vmem:[#allocation4 + $0x30] sm:$0xff] }
 0x6e8   :  { %5701 = vmatpush1.bf16.msra.mxu0 %v7947_v9  ;;  %v5002_v9 = vld [vmem:[%s12912_s4 + $0x3e0] sm:$0xff] }
 0x6e9   :  { %5702 = vmatprep.subr.bf16.mxu0 %v7956_v12  ;;  %v5003_v12 = vld [vmem:[%s12912_s4 + $0x3e8] sm:$0xff]  ;;  %v8020_v16 = vcombine.high %v4998_v33, %v5002_v9  ;;  %v8019_v22 = vcombine.low %v4998_v33, %v5002_v9  ;;  %v7938_v33 = vcombine.high %v4913_v14, %v4917_v60  ;;  %v4920_v9 = vld [vmem:[%s12912_s4 + $0x150] sm:$0xff] }
 0x6ea   :  { %5824 = vmatpush1.bf16.msra.mxu1 %v7989_v31  ;;  %v8022_v17 = vcombine.high %v4999_v10, %v5003_v12  ;;  %v8021_v24 = vcombine.low %v4999_v10, %v5003_v12  ;;  %v4905_v31 = vld [vmem:[%s12912_s4 + $0xd8] sm:$0xff]  ;;  %v4924_v10 = vld [vmem:[%s12912_s4 + $0x170] sm:$0xff] }
 0x6eb   :  { %5825 = vmatprep.subr.bf16.mxu1 %v7998_v62  ;;  %v4909_v62 = vld [vmem:[%s12912_s4 + $0xf8] sm:$0xff] }
 0x6ec   :  { %5703 = vmatpush1.bf16.msra.mxu0 %v7955_v19  ;;  %v4884_v19 = vld [vmem:[%s12912_s4 + $0x30] sm:$0xff]  ;;  %v4921_v12 = vld [vmem:[%s12912_s4 + $0x158] sm:$0xff] }
 0x6ed   :  { %5704 = vmatprep.subr.bf16.mxu0 %v7964_v21  ;;  %v4885_v21 = vld [vmem:[%s12912_s4 + $0x38] sm:$0xff]  ;;  %v7904_v25 = vcombine.high %v4880_v18, %v4884_v19 }
 0x6ee   :  { %5826 = vmatpush1.bf16.msra.mxu1 %v7997_v4  ;;  %v7905_v37 = vcombine.low %v4881_v20, %v4885_v21  ;;  %v7930_v4 = vcombine.high %v4905_v31, %v4909_v62 }
 0x6ef   :  { %5827 = vmatprep.subr.bf16.mxu1 %v8006_v11  ;;  %v4912_v11 = vld [vmem:[%s12912_s4 + $0x110] sm:$0xff] }
 0x6f0   :  { %5705 = vmatpush1.bf16.msra.mxu0 %v7963_v26  ;;  %v7906_v26 = vcombine.high %v4881_v20, %v4885_v21  ;;  %v7944_v20 = vcombine.high %v4920_v9, %v4924_v10 }
 0x6f1   :  { %5706 = vmatprep.subr.bf16.mxu0 %v7972_v28  ;;  %v4892_v28 = vld [vmem:[%s12912_s4 + $0x70] sm:$0xff] }
 0x6f2   :  { %5828 = vmatpush1.bf16.msra.mxu1 %v8005_v3  ;;  %v7911_v56 = vcombine.low %v4888_v27, %v4892_v28  ;;  %v4840_v3 = vld [vmem:[#allocation4 + $0x50] sm:$0xff] }
 0x6f3   :  { %5829 = vmatprep.subr.bf16.mxu1 %v8014_v1  ;;  %v7936_v1 = vcombine.high %v4912_v11, %v4916_v0 }
 0x6f4   :  { %5707 = vmatpush1.bf16.msra.mxu0 %v7971_v40  ;;  %v7903_v40 = vcombine.low %v4880_v18, %v4884_v19  ;;  %v7935_v18 = vcombine.low %v4912_v11, %v4916_v0  ;;  %v7937_v19 = vcombine.low %v4913_v14, %v4917_v60  ;;  %v4957_v0 = vld [vmem:[%s12912_s4 + $0x278] sm:$0xff]  ;;  %v4851_v14 = vld [vmem:[#allocation4 + $0xa8] sm:$0xff] }
 0x6f5   :  { %5708 = vmatprep.subr.bf16.mxu0 %v7980_v41  ;;  %v7912_v41 = vcombine.high %v4888_v27, %v4892_v28  ;;  %v4842_v27 = vld [vmem:[#allocation4 + $0x60] sm:$0xff]  ;;  %v4844_v28 = vld [vmem:[#allocation4 + $0x70] sm:$0xff]  ;;  %v4853_v60 = vld [vmem:[#allocation4 + $0xb8] sm:$0xff] }
 0x6f6   :  { %5830 = vmatpush1.bf16.msra.mxu1 %v8013_v15  ;;  %v4925_v15 = vld [vmem:[%s12912_s4 + $0x178] sm:$0xff] }
 0x6f7   :  { %5831 = vmatprep.subr.bf16.mxu1 %v8022_v17  ;;  %v4845_v17 = vld [vmem:[#allocation4 + $0x78] sm:$0xff]  ;;  %v7946_v21 = vcombine.high %v4921_v12, %v4925_v15  ;;  %v7945_v29 = vcombine.low %v4921_v12, %v4925_v15 }
 0x6f8   :  { %5709 = vmatpush1.bf16.msra.mxu0 %v7979_v43  ;;  %v4901_v43 = vld [vmem:[%s12912_s4 + $0xb8] sm:$0xff] }
 0x6f9   :  { %5710 = vmatprep.subr.bf16.mxu0 %v7988_v47  ;;  %v4834_v47 = vld [vmem:[#allocation4 + $0x20] sm:$0xff]  ;;  %v7922_v6 = vcombine.high %v4897_v46, %v4901_v43  ;;  %v7921_v52 = vcombine.low %v4897_v46, %v4901_v43  ;;  %v7951_v46 = vcombine.low %v4928_v32, %v4932_v23  ;;  %v4965_v12 = vld [vmem:[%s12912_s4 + $0x2b8] sm:$0xff]  ;;  %v4972_v32 = vld [vmem:[%s12912_s4 + $0x2f0] sm:$0xff] }
 0x6fa   :  { %5832 = vmatpush1.bf16.msra.mxu1 %v8021_v24  ;;  %v4929_v24 = vld [vmem:[%s12912_s4 + $0x198] sm:$0xff] }
 0x6fb   :  { %6027 = vmatprep.subr.bf16.mxu1 %v7906_v26  ;;  %v7943_v26 = vcombine.low %v4920_v9, %v4924_v10  ;;  %v4964_v9 = vld [vmem:[%s12912_s4 + $0x2b0] sm:$0xff]  ;;  %v4961_v10 = vld [vmem:[%s12912_s4 + $0x298] sm:$0xff] }
 0x6fc   :  { %5711 = vmatpush1.bf16.msra.mxu0 %v7987_v7  ;;  %v4908_v7 = vld [vmem:[%s12912_s4 + $0xf0] sm:$0xff]  ;;  %v4969_v23 = vld [vmem:[%s12912_s4 + $0x2d8] sm:$0xff] }
 0x6fd   :  { %5712 = vmatprep.subr.bf16.mxu0 %v7996_v61  ;;  %5834 = vmatmul.mubr.bf16.vlgmr.msra.gmra.mrb[0].mxu1 %v11626_v30  ;;  %v11658_v61 = vpack.c.bf16 %v4836_v48, %v4834_v47  ;;  %v7927_v54 = vcombine.low %v4904_v5, %v4908_v7  ;;  %v11727_v48 = vpack.c.bf16 %v4849_v45, %v4847_v44  ;;  %v4981_v44 = vld [vmem:[%s12912_s4 + $0x338] sm:$0xff] }
 0x6fe   :  { %6028 = vmatpush1.bf16.msra.mxu1 %v7905_v37  ;;  %5843 = vmatprep.mubr.bf16.mxu1 %v11631_v42  ;;  %v4937_v37 = vld [vmem:[%s12912_s4 + $0x1d8] sm:$0xff] }
 0x6ff   :  { %6029 = vmatprep.subr.bf16.mxu1 %v7914_v39  ;;  %v4941_v39 = vld [vmem:[%s12912_s4 + $0x1f8] sm:$0xff] }
 0x700   :  { %5713 = vmatpush1.bf16.msra.mxu0 %v7995_v57  ;;  %v7928_v57 = vcombine.high %v4904_v5, %v4908_v7  ;;  %v7962_v47 = vcombine.high %v4937_v37, %v4941_v39  ;;  %v4949_v5 = vld [vmem:[%s12912_s4 + $0x238] sm:$0xff] }
 0x701   :  { %5714 = vmatprep.subr.bf16.mxu0 %v8004_v49  ;;  %v11663_v49 = vpack.c.bf16 %v4841_v34, %v4839_v8  ;;  %v7961_v8 = vcombine.low %v4937_v37, %v4941_v39  ;;  %v4980_v37 = vld [vmem:[%s12912_s4 + $0x330] sm:$0xff]  ;;  %v4977_v39 = vld [vmem:[%s12912_s4 + $0x318] sm:$0xff] }
 0x702   :  { %6030 = vmatpush1.bf16.msra.mxu1 %v7913_v51  ;;  %v4944_v51 = vld [vmem:[%s12912_s4 + $0x210] sm:$0xff] }
 0x703   :  { %6031 = vmatprep.subr.bf16.mxu1 %v7922_v6  ;;  %v4945_v6 = vld [vmem:[%s12912_s4 + $0x218] sm:$0xff] }
 0x704   :  { %5715 = vmatpush1.bf16.msra.mxu0 %v8003_v59  ;;  %v4838_v59 = vld [vmem:[#allocation4 + $0x40] sm:$0xff] }
 0x705   :  { %5716 = vmatprep.subr.bf16.mxu0 %v8012_v50  ;;  %5844 = vmatmul.mubr.bf16.gmra.mrb[4].mxu1 %v11658_v61  ;;  %v7929_v50 = vcombine.low %v4905_v31, %v4909_v62  ;;  %v4846_v31 = vld [vmem:[#allocation4 + $0x80] sm:$0xff]  ;;  %v4848_v62 = vld [vmem:[#allocation4 + $0x90] sm:$0xff] }
 0x706   :  { %6032 = vmatpush1.bf16.msra.mxu1 %v7921_v52  ;;  %5853 = vmatprep.mubr.bf16.mxu1 %v11663_v49  ;;  %v4952_v52 = vld [vmem:[%s12912_s4 + $0x250] sm:$0xff]  ;;  %v11754_v11 = vpack.c.bf16 %v4848_v62, %v4846_v31  ;;  %v4989_v31 = vld [vmem:[%s12912_s4 + $0x378] sm:$0xff]  ;;  %v4859_v62 = vld [vmem:[#allocation4 + $0xe8] sm:$0xff] }
 0x707   :  { %6033 = vmatprep.subr.bf16.mxu1 %v7930_v4  ;;  %v4953_v4 = vld [vmem:[%s12912_s4 + $0x258] sm:$0xff] }
 0x708   :  { %5717 = vmatpush1.bf16.msra.mxu0 %v8011_v13  ;;  %v11690_v13 = vpack.c.bf16 %v4840_v3, %v4838_v59  ;;  %v7969_v59 = vcombine.low %v4945_v6, %v4949_v5 }
 0x709   :  { %5718 = vmatprep.subr.bf16.mxu0 %v8020_v16  ;;  %v4843_v16 = vld [vmem:[#allocation4 + $0x68] sm:$0xff] }
 0x70a   :  { %6034 = vmatpush1.bf16.msra.mxu1 %v7929_v50  ;;  %v7978_v50 = vcombine.high %v4953_v4, %v4957_v0 }
 0x70b   :  { %6035 = vmatprep.subr.bf16.mxu1 %v7938_v33  ;;  %v4960_v33 = vld [vmem:[%s12912_s4 + $0x290] sm:$0xff] }
 0x70c   :  { %5719 = vmatpush1.bf16.msra.mxu0 %v8019_v22  ;;  %v11695_v22 = vpack.c.bf16 %v4845_v17, %v4843_v16  ;;  %v4850_v16 = vld [vmem:[#allocation4 + $0xa0] sm:$0xff]  ;;  %v4852_v17 = vld [vmem:[#allocation4 + $0xb0] sm:$0xff] }
 0x70d   :  { %5914 = vmatprep.subr.bf16.mxu0 %v7904_v25  ;;  %v4933_v25 = vld [vmem:[%s12912_s4 + $0x1b8] sm:$0xff]  ;;  %5854 = vmatmul.mubr.bf16.gmra.mrb[8].mxu1 %v11690_v13 }
 0x70e   :  { %6036 = vmatpush1.bf16.msra.mxu1 %v7937_v19  ;;  %v7954_v36 = vcombine.high %v4929_v24, %v4933_v25  ;;  %5863 = vmatprep.mubr.bf16.mxu1 %v11695_v22  ;;  %v7953_v43 = vcombine.low %v4929_v24, %v4933_v25  ;;  %v7984_v19 = vcombine.high %v4960_v33, %v4964_v9  ;;  %v4973_v25 = vld [vmem:[%s12912_s4 + $0x2f8] sm:$0xff] }
 0x70f   :  { %5721 = vmatmul.mubr.bf16.vlgmr.msra.gmra.mrb[0].mxu0 %v11626_v30  ;;  %6037 = vmatprep.subr.bf16.mxu1 %v7946_v21  ;;  %v4968_v21 = vld [vmem:[%s12912_s4 + $0x2d0] sm:$0xff]  ;;  %v11786_v24 = vpack.c.bf16 %v4852_v17, %v4850_v16  ;;  %v5001_v17 = vld [vmem:[%s12912_s4 + $0x3d8] sm:$0xff] }
 0x710   :  { %5915 = vmatpush1.bf16.msra.mxu0 %v7903_v40  ;;  %5730 = vmatprep.mubr.bf16.mxu0 %v11631_v42  ;;  %v4940_v40 = vld [vmem:[%s12912_s4 + $0x1f0] sm:$0xff]  ;;  %v7991_v45 = vcombine.low %v4968_v21, %v4972_v32 }
 0x711   :  { %5916 = vmatprep.subr.bf16.mxu0 %v7912_v41  ;;  %v11722_v41 = vpack.c.bf16 %v4844_v28, %v4842_v27  ;;  %v7959_v7 = vcombine.low %v4936_v38, %v4940_v40  ;;  %v4857_v27 = vld [vmem:[#allocation4 + $0xd8] sm:$0xff]  ;;  %v7983_v28 = vcombine.low %v4960_v33, %v4964_v9 }
 0x712   :  { %6038 = vmatpush1.bf16.msra.mxu1 %v7945_v29  ;;  %v7985_v29 = vcombine.low %v4961_v10, %v4965_v12 }
 0x713   :  { %6039 = vmatprep.subr.bf16.mxu1 %v7954_v36  ;;  %v7994_v36 = vcombine.high %v4969_v23, %v4973_v25 }
 0x714   :  { %5917 = vmatpush1.bf16.msra.mxu0 %v7911_v56  ;;  %v7960_v56 = vcombine.high %v4936_v38, %v4940_v40  ;;  %v4976_v40 = vld [vmem:[%s12912_s4 + $0x310] sm:$0xff] }
 0x715   :  { %5918 = vmatprep.subr.bf16.mxu0 %v7920_v55  ;;  %v4948_v55 = vld [vmem:[%s12912_s4 + $0x230] sm:$0xff]  ;;  %5864 = vmatmul.mubr.bf16.gmra.mrb[12].mxu1 %v11722_v41 }
 0x716   :  { %6040 = vmatpush1.bf16.msra.mxu1 %v7953_v43  ;;  %v7968_v34 = vcombine.high %v4944_v51, %v4948_v55  ;;  %5873 = vmatprep.mubr.bf16.mxu1 %v11727_v48  ;;  %v4856_v43 = vld [vmem:[#allocation4 + $0xd0] sm:$0xff] }
 0x717   :  { %5731 = vmatmul.mubr.bf16.gmra.mrb[4].mxu0 %v11658_v61  ;;  %6041 = vmatprep.subr.bf16.mxu1 %v7962_v47  ;;  %v8000_v47 = vcombine.high %v4976_v40, %v4980_v37 }
 0x718   :  { %5919 = vmatpush1.bf16.msra.mxu0 %v7919_v2  ;;  %5740 = vmatprep.mubr.bf16.mxu0 %v11663_v49  ;;  %v7970_v2 = vcombine.high %v4945_v6, %v4949_v5  ;;  %v4988_v6 = vld [vmem:[%s12912_s4 + $0x370] sm:$0xff]  ;;  %v4985_v5 = vld [vmem:[%s12912_s4 + $0x358] sm:$0xff] }
 0x719   :  { %5920 = vmatprep.subr.bf16.mxu0 %v7928_v57  ;;  %v4956_v57 = vld [vmem:[%s12912_s4 + $0x270] sm:$0xff]  ;;  %v8009_v33 = vcombine.low %v4985_v5, %v4989_v31 }
 0x71a   :  { %6042 = vmatpush1.bf16.msra.mxu1 %v7961_v8  ;;  %v7976_v3 = vcombine.high %v4952_v52, %v4956_v57  ;;  %v7975_v15 = vcombine.low %v4952_v52, %v4956_v57  ;;  %v4861_v8 = vld [vmem:[#allocation4 + $0xf8] sm:$0xff]  ;;  %v8010_v57 = vcombine.high %v4985_v5, %v4989_v31 }
 0x71b   :  { %6043 = vmatprep.subr.bf16.mxu1 %v7970_v2  ;;  %v8001_v2 = vcombine.low %v4977_v39, %v4981_v44 }
 0x71c   :  { %5921 = vmatpush1.bf16.msra.mxu0 %v7927_v54  ;;  %v7967_v54 = vcombine.low %v4944_v51, %v4948_v55  ;;  %v8002_v51 = vcombine.high %v4977_v39, %v4981_v44  ;;  %v4984_v55 = vld [vmem:[%s12912_s4 + $0x350] sm:$0xff] }
 0x71d   :  { %5922 = vmatprep.subr.bf16.mxu0 %v7936_v1  ;;  %v11759_v1 = vpack.c.bf16 %v4853_v60, %v4851_v14  ;;  %5874 = vmatmul.mubr.bf16.gmra.mrb[16].mxu1 %v11754_v11  ;;  %v8008_v52 = vcombine.high %v4984_v55, %v4988_v6  ;;  %v4996_v14 = vld [vmem:[%s12912_s4 + $0x3b0] sm:$0xff]  ;;  %v4993_v60 = vld [vmem:[%s12912_s4 + $0x398] sm:$0xff] }
 0x71e   :  { %6044 = vmatpush1.bf16.msra.mxu1 %v7969_v59  ;;  %v8007_v59 = vcombine.low %v4984_v55, %v4988_v6 }
 0x71f   :  { %5741 = vmatmul.mubr.bf16.gmra.mrb[8].mxu0 %v11690_v13  ;;  %6045 = vmatprep.subr.bf16.mxu1 %v7978_v50  ;;  %v4860_v50 = vld [vmem:[#allocation4 + $0xf0] sm:$0xff] }
 0x720   :  { %5923 = vmatpush1.bf16.msra.mxu0 %v7935_v18  ;;  %5750 = vmatprep.mubr.bf16.mxu0 %v11695_v22  ;;  %v7977_v18 = vcombine.low %v4953_v4, %v4957_v0  ;;  %v11823_v4 = vpack.c.bf16 %v4861_v8, %v4859_v62  ;;  %v4992_v0 = vld [vmem:[%s12912_s4 + $0x390] sm:$0xff] }
 0x721   :  { %5924 = vmatprep.subr.bf16.mxu0 %v7944_v20  ;;  %v7986_v20 = vcombine.high %v4961_v10, %v4965_v12  ;;  %5883 = vmatprep.mubr.bf16.mxu1 %v11759_v1  ;;  %v8016_v9 = vcombine.high %v4992_v0, %v4996_v14  ;;  %v5000_v12 = vld [vmem:[%s12912_s4 + $0x3d0] sm:$0xff] }
 0x722   :  { %6046 = vmatpush1.bf16.msra.mxu1 %v7977_v18  ;;  %v5005_v18 = vld [vmem:[%s12912_s4 + $0x3f8] sm:$0xff] }
 0x723   :  { %6047 = vmatprep.subr.bf16.mxu1 %v7986_v20 }
 0x724   :  { %5925 = vmatpush1.bf16.msra.mxu0 %v7943_v26  ;;  %v4855_v26 = vld [vmem:[#allocation4 + $0xc8] sm:$0xff] }
 0x725   :  { %5926 = vmatprep.subr.bf16.mxu0 %v7952_v35  ;;  %v7992_v35 = vcombine.high %v4968_v21, %v4972_v32  ;;  %v11791_v38 = vpack.c.bf16 %v4857_v27, %v4855_v26  ;;  %5884 = vmatmul.mubr.bf16.gmra.mrb[20].mxu1 %v11786_v24  ;;  %v8026_v32 = vcombine.high %v5001_v17, %v5005_v18 }
 0x726   :  { %6048 = vmatpush1.bf16.msra.mxu1 %v7985_v29 }
 0x727   :  { %5751 = vmatmul.mubr.bf16.gmra.mrb[12].mxu0 %v11722_v41  ;;  %6049 = vmatprep.subr.bf16.mxu1 %v7994_v36 }
 0x728   :  { %5927 = vmatpush1.bf16.msra.mxu0 %v7951_v46  ;;  %5760 = vmatprep.mubr.bf16.mxu0 %v11727_v48  ;;  %v4854_v46 = vld [vmem:[#allocation4 + $0xc0] sm:$0xff] }
 0x729   :  { %5928 = vmatprep.subr.bf16.mxu0 %v7960_v56  ;;  %v7993_v56 = vcombine.low %v4969_v23, %v4973_v25  ;;  %5893 = vmatprep.mubr.bf16.mxu1 %v11791_v38  ;;  %v8025_v25 = vcombine.low %v5001_v17, %v5005_v18 }
 0x72b   :  { %6050 = vmatpush1.bf16.msra.mxu1 %v7993_v56 }
 0x72c   :  { %5929 = vmatpush1.bf16.msra.mxu0 %v7959_v7  ;;  %v11818_v7 = vpack.c.bf16 %v4856_v43, %v4854_v46  ;;  %6051 = vmatprep.subr.bf16.mxu1 %v8002_v51 }
 0x72d   :  { %5930 = vmatprep.subr.bf16.mxu0 %v7968_v34  ;;  %v7999_v34 = vcombine.low %v4976_v40, %v4980_v37 }
 0x72e   :  { %5894 = vmatmul.mubr.bf16.gmra.mrb[24].mxu1 %v11818_v7 }
 0x72f   :  { %5761 = vmatmul.mubr.bf16.gmra.mrb[16].mxu0 %v11754_v11  ;;  %6052 = vmatpush1.bf16.msra.mxu1 %v8001_v2 }
 0x730   :  { %5931 = vmatpush1.bf16.msra.mxu0 %v7967_v54  ;;  %5770 = vmatprep.mubr.bf16.mxu0 %v11759_v1  ;;  %v4997_v54 = vld [vmem:[%s12912_s4 + $0x3b8] sm:$0xff] }
 0x731   :  { %5932 = vmatprep.subr.bf16.mxu0 %v7976_v3  ;;  %v4858_v3 = vld [vmem:[#allocation4 + $0xe0] sm:$0xff]  ;;  %6053 = vmatprep.subr.bf16.mxu1 %v8010_v57  ;;  %v8018_v10 = vcombine.high %v4993_v60, %v4997_v54  ;;  %v8017_v20 = vcombine.low %v4993_v60, %v4997_v54 }
 0x732   :  { %5903 = vmatprep.mubr.bf16.mxu1 %v11823_v4  ;;  %v4876_v16 = vpack.c.bf16 %v4860_v50, %v4858_v3 }
 0x733   :  { %6054 = vmatpush1.bf16.msra.mxu1 %v8009_v33 }
 0x734   :  { %5933 = vmatpush1.bf16.msra.mxu0 %v7975_v15  ;;  %v5004_v15 = vld [vmem:[%s12912_s4 + $0x3f0] sm:$0xff]  ;;  %6055 = vmatprep.subr.bf16.mxu1 %v8018_v10 }
 0x735   :  { %5934 = vmatprep.subr.bf16.mxu0 %v7984_v19  ;;  %v8015_v19 = vcombine.low %v4992_v0, %v4996_v14  ;;  %v8024_v21 = vcombine.high %v5000_v12, %v5004_v15  ;;  %v8023_v23 = vcombine.low %v5000_v12, %v5004_v15 }
 0x736   :  { %5904 = vmatmul.mubr.bf16.gmra.mrb[28].mxu1 %v4876_v16 }
 0x737   :  { %5771 = vmatmul.mubr.bf16.gmra.mrb[20].mxu0 %v11786_v24  ;;  %6056 = vmatpush1.bf16.msra.mxu1 %v8017_v20 }
 0x738   :  { %5935 = vmatpush1.bf16.msra.mxu0 %v7983_v28  ;;  %5780 = vmatprep.mubr.bf16.mxu0 %v11791_v38 }
 0x739   :  { %5936 = vmatprep.subr.bf16.mxu0 %v7992_v35  ;;  %6057 = vmatprep.subr.bf16.mxu1 %v8026_v32 }
 0x73a   :  { %6059 = vmatprep.mubr.bf16.mxu1 %v11499_v63 }
 0x73b   :  { %6058 = vmatpush1.bf16.msra.mxu1 %v8025_v25 }
 0x73c   :  { %5937 = vmatpush1.bf16.msra.mxu0 %v7991_v45 }
 0x73d   :  { %5938 = vmatprep.subr.bf16.mxu0 %v8000_v47 }
 0x73e   :  { %6060 = vmatmul.mubr.bf16.vlgmr.msra.gmra.mrb[32].mxu1 %v11626_v30 }
 0x73f   :  { %5781 = vmatmul.mubr.bf16.gmra.mrb[24].mxu0 %v11818_v7  ;;  %6069 = vmatprep.mubr.bf16.mxu1 %v11631_v42 }
 0x740   :  { %5939 = vmatpush1.bf16.msra.mxu0 %v7999_v34  ;;  %5790 = vmatprep.mubr.bf16.mxu0 %v11823_v4 }
 0x741   :  { %5940 = vmatprep.subr.bf16.mxu0 %v8008_v52 }
 0x744   :  { %5941 = vmatpush1.bf16.msra.mxu0 %v8007_v59 }
 0x745   :  { %5942 = vmatprep.subr.bf16.mxu0 %v8016_v9 }
 0x746   :  { %6070 = vmatmul.mubr.bf16.gmra.mrb[36].mxu1 %v11658_v61 }
 0x747   :  { %5791 = vmatmul.mubr.bf16.gmra.mrb[28].mxu0 %v4876_v16  ;;  %6079 = vmatprep.mubr.bf16.mxu1 %v11663_v49 }
 0x748   :  { %5943 = vmatpush1.bf16.msra.mxu0 %v8015_v19  ;;  %5946 = vmatprep.mubr.bf16.mxu0 %v11499_v63  ;;  %v11886_v63 = vld [vmem:[%s12913_s5] sm:$0xff]  ;;  %s12060_s5 = smov 0  }
 0x749   :  { %5944 = vmatprep.subr.bf16.mxu0 %v8024_v21 }
 0x74c   :  { %5945 = vmatpush1.bf16.msra.mxu0 %v8023_v23 }
 0x74e   :  { %6080 = vmatmul.mubr.bf16.gmra.mrb[40].mxu1 %v11690_v13 }
 0x74f   :  { %5947 = vmatmul.mubr.bf16.vlgmr.msra.gmra.mrb[32].mxu0 %v11626_v30  ;;  %6089 = vmatprep.mubr.bf16.mxu1 %v11695_v22  ;;  %v13155_v30 = vsub.s32 0, %v10429_v53 }
 0x750   :  { %5956 = vmatprep.mubr.bf16.mxu0 %v11631_v42 }
 0x751   :  { %v11891_v42 = vrot.slane %v11886_v63, %v13155_v30 }
 0x756   :  { %6090 = vmatmul.mubr.bf16.gmra.mrb[44].mxu1 %v11722_v41 }
 0x757   :  { %5957 = vmatmul.mubr.bf16.gmra.mrb[36].mxu0 %v11658_v61  ;;  %6099 = vmatprep.mubr.bf16.mxu1 %v11727_v48  ;;  %v13156_v61 = vsub.s32 2, %v10429_v53 }
 0x758   :  { %5966 = vmatprep.mubr.bf16.mxu0 %v11663_v49 }
 0x759   :  { %v11896_v49 = vrot.slane %v11886_v63, %v13156_v61 }
 0x75e   :  { %6100 = vmatmul.mubr.bf16.gmra.mrb[48].mxu1 %v11754_v11 }
 0x75f   :  { %5967 = vmatmul.mubr.bf16.gmra.mrb[40].mxu0 %v11690_v13  ;;  %6109 = vmatprep.mubr.bf16.mxu1 %v11759_v1  ;;  %v13157_v13 = vsub.s32 1, %v10429_v53 }
 0x760   :  { %5976 = vmatprep.mubr.bf16.mxu0 %v11695_v22 }
 0x761   :  { %v11901_v22 = vrot.slane %v11886_v63, %v13157_v13 }
 0x766   :  { %6110 = vmatmul.mubr.bf16.gmra.mrb[52].mxu1 %v11786_v24 }
 0x767   :  { %5977 = vmatmul.mubr.bf16.gmra.mrb[44].mxu0 %v11722_v41  ;;  %6119 = vmatprep.mubr.bf16.mxu1 %v11791_v38  ;;  %v13158_v41 = vsub.s32 3, %v10429_v53 }
 0x768   :  { %5986 = vmatprep.mubr.bf16.mxu0 %v11727_v48 }
 0x769   :  { %v11906_v48 = vrot.slane %v11886_v63, %v13158_v41 }
 0x76e   :  { %6120 = vmatmul.mubr.bf16.gmra.mrb[56].mxu1 %v11818_v7 }
 0x76f   :  { %5987 = vmatmul.mubr.bf16.gmra.mrb[48].mxu0 %v11754_v11  ;;  %6129 = vmatprep.mubr.bf16.mxu1 %v11823_v4 }
 0x770   :  { %5996 = vmatprep.mubr.bf16.mxu0 %v11759_v1 }
 0x776   :  { %6130 = vmatmul.mubr.bf16.gmra.mrb[60].mxu1 %v4876_v16 }
 0x777   :  { %5997 = vmatmul.mubr.bf16.gmra.mrb[52].mxu0 %v11786_v24 }
 0x778   :  { %6006 = vmatprep.mubr.bf16.mxu0 %v11791_v38 }
 0x77f   :  { %6007 = vmatmul.mubr.bf16.gmra.mrb[56].mxu0 %v11818_v7 }
 0x780   :  { %6016 = vmatprep.mubr.bf16.mxu0 %v11823_v4 }
 0x787   :  { %6017 = vmatmul.mubr.bf16.gmra.mrb[60].mxu0 %v4876_v16 }
 0x7d0   :  { %v5835_v24 = vpop.f32.mrb[0].mxu1 }
 0x7d1   :  { %v5836_v27 = vadd.f32 %v5835_v24, %v11896_v49  ;;  %v5837_v29 = vpop.f32.mrb[1].mxu1 }
 0x7d2   :  { %v5838_v36 = vadd.f32 %v5837_v29, %v11906_v48  ;;  %v5839_v40 = vpop.f32.mrb[2].mxu1 }
 0x7d3   :  { %6142 = vst [vmem:[#allocation3 + $0x10] sm:$0xff] %v5836_v27  ;;  %v5840_v39 = vadd.f32 %v5839_v40, %v11896_v49  ;;  %v5841_v45 = vpop.f32.mrb[3].mxu1 }
 0x7d4   :  { %6143 = vst [vmem:[#allocation3 + $0x18] sm:$0xff] %v5838_v36  ;;  %v5842_v46 = vadd.f32 %v5841_v45, %v11906_v48 }
 0x7d5   :  { %6150 = vst [vmem:[#allocation3 + $0x50] sm:$0xff] %v5840_v39 }
 0x7d6   :  { %6151 = vst [vmem:[#allocation3 + $0x58] sm:$0xff] %v5842_v46 }
 0x7d8   :  { %v5845_v47 = vpop.f32.mrb[4].mxu1 }
 0x7d9   :  { %v5846_v55 = vadd.f32 %v5845_v47, %v11896_v49  ;;  %v5847_v5 = vpop.f32.mrb[5].mxu1 }
 0x7da   :  { %v5848_v31 = vadd.f32 %v5847_v5, %v11906_v48  ;;  %v5849_v8 = vpop.f32.mrb[6].mxu1 }
 0x7db   :  { %6158 = vst [vmem:[#allocation3 + $0x90] sm:$0xff] %v5846_v55  ;;  %v5850_v2 = vadd.f32 %v5849_v8, %v11896_v49  ;;  %v5851_v57 = vpop.f32.mrb[7].mxu1 }
 0x7dc   :  { %6159 = vst [vmem:[#allocation3 + $0x98] sm:$0xff] %v5848_v31  ;;  %v5852_v4 = vadd.f32 %v5851_v57, %v11906_v48 }
 0x7dd   :  { %6166 = vst [vmem:[#allocation3 + $0xd0] sm:$0xff] %v5850_v2 }
 0x7de   :  { %6167 = vst [vmem:[#allocation3 + $0xd8] sm:$0xff] %v5852_v4 }
 0x7e0   :  { %v5855_v60 = vpop.f32.mrb[8].mxu1 }
 0x7e1   :  { %v5856_v59 = vadd.f32 %v5855_v60, %v11896_v49  ;;  %v5857_v50 = vpop.f32.mrb[9].mxu1 }
 0x7e2   :  { %v5722_v11 = vpop.f32.mrb[0].mxu0  ;;  %v5858_v9 = vadd.f32 %v5857_v50, %v11906_v48  ;;  %v5859_v12 = vpop.f32.mrb[10].mxu1 }
 0x7e3   :  { %v5723_v1 = vadd.f32 %v5722_v11, %v11891_v42  ;;  %v5724_v26 = vpop.f32.mrb[1].mxu0  ;;  %6174 = vst [vmem:[#allocation3 + $0x110] sm:$0xff] %v5856_v59  ;;  %v5860_v16 = vadd.f32 %v5859_v12, %v11896_v49  ;;  %v5861_v18 = vpop.f32.mrb[11].mxu1 }
 0x7e4   :  { %v5725_v28 = vadd.f32 %v5724_v26, %v11901_v22  ;;  %v5726_v35 = vpop.f32.mrb[2].mxu0  ;;  %6175 = vst [vmem:[#allocation3 + $0x118] sm:$0xff] %v5858_v9  ;;  %v5862_v19 = vadd.f32 %v5861_v18, %v11906_v48 }
 0x7e5   :  { %6140 = vst [vmem:[#allocation3] sm:$0xff] %v5723_v1  ;;  %v5727_v38 = vadd.f32 %v5726_v35, %v11891_v42  ;;  %v5728_v37 = vpop.f32.mrb[3].mxu0  ;;  %6182 = vst [vmem:[#allocation3 + $0x150] sm:$0xff] %v5860_v16 }
 0x7e6   :  { %6141 = vst [vmem:[#allocation3 + $0x8] sm:$0xff] %v5725_v28  ;;  %v5729_v44 = vadd.f32 %v5728_v37, %v11901_v22  ;;  %6183 = vst [vmem:[#allocation3 + $0x158] sm:$0xff] %v5862_v19 }
 0x7e7   :  { %6148 = vst [vmem:[#allocation3 + $0x40] sm:$0xff] %v5727_v38 }
 0x7e8   :  { %6149 = vst [vmem:[#allocation3 + $0x48] sm:$0xff] %v5729_v44  ;;  %v5865_v32 = vpop.f32.mrb[12].mxu1 }
 0x7e9   :  { %v5866_v25 = vadd.f32 %v5865_v32, %v11896_v49  ;;  %v5867_v61 = vpop.f32.mrb[13].mxu1 }
 0x7ea   :  { %v5732_v43 = vpop.f32.mrb[4].mxu0  ;;  %v5868_v41 = vadd.f32 %v5867_v61, %v11906_v48  ;;  %v5869_v1 = vpop.f32.mrb[14].mxu1 }
 0x7eb   :  { %v5733_v56 = vadd.f32 %v5732_v43, %v11891_v42  ;;  %v5734_v51 = vpop.f32.mrb[5].mxu0  ;;  %6190 = vst [vmem:[#allocation3 + $0x190] sm:$0xff] %v5866_v25  ;;  %v5870_v26 = vadd.f32 %v5869_v1, %v11896_v49  ;;  %v5871_v28 = vpop.f32.mrb[15].mxu1 }
 0x7ec   :  { %v5735_v6 = vadd.f32 %v5734_v51, %v11901_v22  ;;  %v5736_v7 = vpop.f32.mrb[6].mxu0  ;;  %6191 = vst [vmem:[#allocation3 + $0x198] sm:$0xff] %v5868_v41  ;;  %v5872_v29 = vadd.f32 %v5871_v28, %v11906_v48 }
 0x7ed   :  { %6156 = vst [vmem:[#allocation3 + $0x80] sm:$0xff] %v5733_v56  ;;  %v5737_v62 = vadd.f32 %v5736_v7, %v11891_v42  ;;  %v5738_v34 = vpop.f32.mrb[7].mxu0  ;;  %6198 = vst [vmem:[#allocation3 + $0x1d0] sm:$0xff] %v5870_v26 }
 0x7ee   :  { %6157 = vst [vmem:[#allocation3 + $0x88] sm:$0xff] %v5735_v6  ;;  %v5739_v52 = vadd.f32 %v5738_v34, %v11901_v22  ;;  %6199 = vst [vmem:[#allocation3 + $0x1d8] sm:$0xff] %v5872_v29 }
 0x7ef   :  { %6164 = vst [vmem:[#allocation3 + $0xc0] sm:$0xff] %v5737_v62 }
 0x7f0   :  { %6165 = vst [vmem:[#allocation3 + $0xc8] sm:$0xff] %v5739_v52  ;;  %v5875_v38 = vpop.f32.mrb[16].mxu1 }
 0x7f1   :  { %v5876_v37 = vadd.f32 %v5875_v38, %v11896_v49  ;;  %v5877_v44 = vpop.f32.mrb[17].mxu1 }
 0x7f2   :  { %v5742_v0 = vpop.f32.mrb[8].mxu0  ;;  %v5878_v46 = vadd.f32 %v5877_v44, %v11906_v48  ;;  %v5879_v56 = vpop.f32.mrb[18].mxu1 }
 0x7f3   :  { %v5743_v14 = vadd.f32 %v5742_v0, %v11891_v42  ;;  %v5744_v54 = vpop.f32.mrb[9].mxu0  ;;  %6206 = vst [vmem:[#allocation3 + $0x210] sm:$0xff] %v5876_v37  ;;  %v5880_v51 = vadd.f32 %v5879_v56, %v11896_v49  ;;  %v5881_v6 = vpop.f32.mrb[19].mxu1 }
 0x7f4   :  { %v5745_v3 = vadd.f32 %v5744_v54, %v11901_v22  ;;  %v5746_v33 = vpop.f32.mrb[10].mxu0  ;;  %6207 = vst [vmem:[#allocation3 + $0x218] sm:$0xff] %v5878_v46  ;;  %v5882_v5 = vadd.f32 %v5881_v6, %v11906_v48 }
 0x7f5   :  { %6172 = vst [vmem:[#allocation3 + $0x100] sm:$0xff] %v5743_v14  ;;  %v5747_v10 = vadd.f32 %v5746_v33, %v11891_v42  ;;  %v5748_v15 = vpop.f32.mrb[11].mxu0  ;;  %6214 = vst [vmem:[#allocation3 + $0x250] sm:$0xff] %v5880_v51 }
 0x7f6   :  { %6173 = vst [vmem:[#allocation3 + $0x108] sm:$0xff] %v5745_v3  ;;  %v5749_v17 = vadd.f32 %v5748_v15, %v11901_v22  ;;  %6215 = vst [vmem:[#allocation3 + $0x258] sm:$0xff] %v5882_v5 }
 0x7f7   :  { %6180 = vst [vmem:[#allocation3 + $0x140] sm:$0xff] %v5747_v10 }
 0x7f8   :  { %6181 = vst [vmem:[#allocation3 + $0x148] sm:$0xff] %v5749_v17  ;;  %v5885_v62 = vpop.f32.mrb[20].mxu1 }
 0x7f9   :  { %v5886_v34 = vadd.f32 %v5885_v62, %v11896_v49  ;;  %v5887_v52 = vpop.f32.mrb[21].mxu1 }
 0x7fa   :  { %v5752_v20 = vpop.f32.mrb[12].mxu0  ;;  %v5888_v4 = vadd.f32 %v5887_v52, %v11906_v48  ;;  %v5889_v14 = vpop.f32.mrb[22].mxu1 }
 0x7fb   :  { %v5753_v21 = vadd.f32 %v5752_v20, %v11891_v42  ;;  %v5754_v23 = vpop.f32.mrb[13].mxu0  ;;  %6222 = vst [vmem:[#allocation3 + $0x290] sm:$0xff] %v5886_v34  ;;  %v5890_v54 = vadd.f32 %v5889_v14, %v11896_v49  ;;  %v5891_v3 = vpop.f32.mrb[23].mxu1 }
 0x7fc   :  { %v5755_v30 = vadd.f32 %v5754_v23, %v11901_v22  ;;  %v5756_v13 = vpop.f32.mrb[14].mxu0  ;;  %6223 = vst [vmem:[#allocation3 + $0x298] sm:$0xff] %v5888_v4  ;;  %v5892_v50 = vadd.f32 %v5891_v3, %v11906_v48 }
 0x7fd   :  { %6188 = vst [vmem:[#allocation3 + $0x180] sm:$0xff] %v5753_v21  ;;  %v5757_v11 = vadd.f32 %v5756_v13, %v11891_v42  ;;  %v5758_v24 = vpop.f32.mrb[15].mxu0  ;;  %6230 = vst [vmem:[#allocation3 + $0x2d0] sm:$0xff] %v5890_v54 }
 0x7fe   :  { %6189 = vst [vmem:[#allocation3 + $0x188] sm:$0xff] %v5755_v30  ;;  %v5759_v27 = vadd.f32 %v5758_v24, %v11901_v22  ;;  %6231 = vst [vmem:[#allocation3 + $0x2d8] sm:$0xff] %v5892_v50 }
 0x7ff   :  { %6196 = vst [vmem:[#allocation3 + $0x1c0] sm:$0xff] %v5757_v11 }
 0x800   :  { %6197 = vst [vmem:[#allocation3 + $0x1c8] sm:$0xff] %v5759_v27 }
 0x801   :  { %v5895_v10 = vpop.f32.mrb[24].mxu1 }
 0x802   :  { %v5762_v35 = vpop.f32.mrb[16].mxu0  ;;  %v5896_v15 = vadd.f32 %v5895_v10, %v11896_v49  ;;  %v5897_v17 = vpop.f32.mrb[25].mxu1 }
 0x803   :  { %v5763_v36 = vadd.f32 %v5762_v35, %v11891_v42  ;;  %v5764_v40 = vpop.f32.mrb[17].mxu0  ;;  %v5898_v19 = vadd.f32 %v5897_v17, %v11906_v48  ;;  %v5899_v21 = vpop.f32.mrb[26].mxu1 }
 0x804   :  { %v5765_v39 = vadd.f32 %v5764_v40, %v11901_v22  ;;  %v5766_v45 = vpop.f32.mrb[18].mxu0  ;;  %6238 = vst [vmem:[#allocation3 + $0x310] sm:$0xff] %v5896_v15  ;;  %v5900_v23 = vadd.f32 %v5899_v21, %v11896_v49  ;;  %v5901_v30 = vpop.f32.mrb[27].mxu1 }
 0x805   :  { %6204 = vst [vmem:[#allocation3 + $0x200] sm:$0xff] %v5763_v36  ;;  %v5767_v43 = vadd.f32 %v5766_v45, %v11891_v42  ;;  %v5768_v47 = vpop.f32.mrb[19].mxu0  ;;  %6239 = vst [vmem:[#allocation3 + $0x318] sm:$0xff] %v5898_v19  ;;  %v5902_v61 = vadd.f32 %v5901_v30, %v11906_v48  ;;  %v13159_v45 = vsub.s32 4, %v10429_v53 }
 0x806   :  { %6205 = vst [vmem:[#allocation3 + $0x208] sm:$0xff] %v5765_v39  ;;  %v5769_v55 = vadd.f32 %v5768_v47, %v11901_v22  ;;  %6246 = vst [vmem:[#allocation3 + $0x350] sm:$0xff] %v5900_v23 }
 0x807   :  { %6212 = vst [vmem:[#allocation3 + $0x240] sm:$0xff] %v5767_v43  ;;  %6247 = vst [vmem:[#allocation3 + $0x358] sm:$0xff] %v5902_v61  ;;  %v11975_v46 = vrot.slane %v11886_v63, %v13159_v45 }
 0x808   :  { %6213 = vst [vmem:[#allocation3 + $0x248] sm:$0xff] %v5769_v55 }
 0x809   :  { %v5905_v11 = vpop.f32.mrb[28].mxu1 }
 0x80a   :  { %v5772_v7 = vpop.f32.mrb[20].mxu0  ;;  %v5906_v24 = vadd.f32 %v5905_v11, %v11896_v49  ;;  %v5907_v27 = vpop.f32.mrb[29].mxu1 }
 0x80b   :  { %v5773_v31 = vadd.f32 %v5772_v7, %v11891_v42  ;;  %v5774_v8 = vpop.f32.mrb[21].mxu0  ;;  %v5908_v29 = vadd.f32 %v5907_v27, %v11906_v48  ;;  %v5909_v36 = vpop.f32.mrb[30].mxu1 }
 0x80c   :  { %v5775_v2 = vadd.f32 %v5774_v8, %v11901_v22  ;;  %v5776_v57 = vpop.f32.mrb[22].mxu0  ;;  %6254 = vst [vmem:[#allocation3 + $0x390] sm:$0xff] %v5906_v24  ;;  %v5910_v40 = vadd.f32 %v5909_v36, %v11896_v49  ;;  %v5911_v39 = vpop.f32.mrb[31].mxu1  ;;  %v13161_v49 = vsub.s32 5, %v10429_v53 }
 0x80d   :  { %6220 = vst [vmem:[#allocation3 + $0x280] sm:$0xff] %v5773_v31  ;;  %v5777_v0 = vadd.f32 %v5776_v57, %v11891_v42  ;;  %v5778_v60 = vpop.f32.mrb[23].mxu0  ;;  %6255 = vst [vmem:[#allocation3 + $0x398] sm:$0xff] %v5908_v29  ;;  %v5912_v44 = vadd.f32 %v5911_v39, %v11906_v48  ;;  %v13162_v48 = vsub.s32 7, %v10429_v53 }
 0x80e   :  { %6221 = vst [vmem:[#allocation3 + $0x288] sm:$0xff] %v5775_v2  ;;  %v5779_v59 = vadd.f32 %v5778_v60, %v11901_v22  ;;  %6262 = vst [vmem:[#allocation3 + $0x3d0] sm:$0xff] %v5910_v40 }
 0x80f   :  { %6228 = vst [vmem:[#allocation3 + $0x2c0] sm:$0xff] %v5777_v0  ;;  %6263 = vst [vmem:[#allocation3 + $0x3d8] sm:$0xff] %v5912_v44  ;;  %v11990_v56 = vrot.slane %v11886_v63, %v13162_v48 }
 0x810   :  { %6229 = vst [vmem:[#allocation3 + $0x2c8] sm:$0xff] %v5779_v59 }
 0x811   :  { %v6061_v55 = vpop.f32.mrb[32].mxu1 }
 0x812   :  { %v5782_v33 = vpop.f32.mrb[24].mxu0  ;;  %v6063_v31 = vpop.f32.mrb[33].mxu1 }
 0x813   :  { %v5783_v9 = vadd.f32 %v5782_v33, %v11891_v42  ;;  %v5784_v12 = vpop.f32.mrb[25].mxu0  ;;  %v6064_v8 = vadd.f32 %v6063_v31, %v11990_v56  ;;  %v6065_v2 = vpop.f32.mrb[34].mxu1 }
 0x814   :  { %v5785_v16 = vadd.f32 %v5784_v12, %v11901_v22  ;;  %v5786_v18 = vpop.f32.mrb[26].mxu0  ;;  %v6067_v4 = vpop.f32.mrb[35].mxu1 }
 0x815   :  { %6236 = vst [vmem:[#allocation3 + $0x300] sm:$0xff] %v5783_v9  ;;  %v5787_v20 = vadd.f32 %v5786_v18, %v11891_v42  ;;  %v5788_v32 = vpop.f32.mrb[27].mxu0  ;;  %6147 = vst [vmem:[#allocation3 + $0x38] sm:$0xff] %v6064_v8  ;;  %v6068_v0 = vadd.f32 %v6067_v4, %v11990_v56 }
 0x816   :  { %6237 = vst [vmem:[#allocation3 + $0x308] sm:$0xff] %v5785_v16  ;;  %v5789_v25 = vadd.f32 %v5788_v32, %v11901_v22 }
 0x817   :  { %6244 = vst [vmem:[#allocation3 + $0x340] sm:$0xff] %v5787_v20  ;;  %6155 = vst [vmem:[#allocation3 + $0x78] sm:$0xff] %v6068_v0 }
 0x818   :  { %6245 = vst [vmem:[#allocation3 + $0x348] sm:$0xff] %v5789_v25 }
 0x819   :  { %v6071_v54 = vpop.f32.mrb[36].mxu1 }
 0x81a   :  { %v5792_v13 = vpop.f32.mrb[28].mxu0  ;;  %v6073_v33 = vpop.f32.mrb[37].mxu1 }
 0x81b   :  { %v5793_v41 = vadd.f32 %v5792_v13, %v11891_v42  ;;  %v5794_v1 = vpop.f32.mrb[29].mxu0  ;;  %v6074_v10 = vadd.f32 %v6073_v33, %v11990_v56  ;;  %v6075_v15 = vpop.f32.mrb[38].mxu1 }
 0x81c   :  { %v5795_v26 = vadd.f32 %v5794_v1, %v11901_v22  ;;  %v5796_v28 = vpop.f32.mrb[30].mxu0  ;;  %v6077_v19 = vpop.f32.mrb[39].mxu1 }
 0x81d   :  { %6252 = vst [vmem:[#allocation3 + $0x380] sm:$0xff] %v5793_v41  ;;  %v5797_v35 = vadd.f32 %v5796_v28, %v11891_v42  ;;  %v5798_v38 = vpop.f32.mrb[31].mxu0  ;;  %v13160_v42 = vsub.s32 6, %v10429_v53  ;;  %6163 = vst [vmem:[#allocation3 + $0xb8] sm:$0xff] %v6074_v10  ;;  %v6078_v20 = vadd.f32 %v6077_v19, %v11990_v56 }
 0x81e   :  { %6253 = vst [vmem:[#allocation3 + $0x388] sm:$0xff] %v5795_v26  ;;  %v5799_v37 = vadd.f32 %v5798_v38, %v11901_v22  ;;  %v11985_v22 = vrot.slane %v11886_v63, %v13161_v49 }
 0x81f   :  { %6260 = vst [vmem:[#allocation3 + $0x3c0] sm:$0xff] %v5797_v35  ;;  %v11980_v43 = vrot.slane %v11886_v63, %v13160_v42  ;;  %6171 = vst [vmem:[#allocation3 + $0xf8] sm:$0xff] %v6078_v20 }
 0x820   :  { %6261 = vst [vmem:[#allocation3 + $0x3c8] sm:$0xff] %v5799_v37 }
 0x821   :  { %v6062_v5 = vadd.f32 %v6061_v55, %v11980_v43  ;;  %v6066_v63 = vadd.f32 %v6065_v2, %v11980_v43  ;;  %v6072_v3 = vadd.f32 %v6071_v54, %v11980_v43  ;;  %v6076_v17 = vadd.f32 %v6075_v15, %v11980_v43  ;;  %v6081_v23 = vpop.f32.mrb[40].mxu1 }
 0x822   :  { %v5948_v47 = vpop.f32.mrb[32].mxu0  ;;  %v6082_v30 = vadd.f32 %v6081_v23, %v11980_v43  ;;  %v6083_v13 = vpop.f32.mrb[41].mxu1 }
 0x823   :  { %v5949_v51 = vadd.f32 %v5948_v47, %v11975_v46  ;;  %v5950_v6 = vpop.f32.mrb[33].mxu0  ;;  %6146 = vst [vmem:[#allocation3 + $0x30] sm:$0xff] %v6062_v5  ;;  %6154 = vst [vmem:[#allocation3 + $0x70] sm:$0xff] %v6066_v63  ;;  %v6084_v11 = vadd.f32 %v6083_v13, %v11990_v56  ;;  %v6085_v24 = vpop.f32.mrb[42].mxu1 }
 0x824   :  { %v5951_v7 = vadd.f32 %v5950_v6, %v11985_v22  ;;  %v5952_v62 = vpop.f32.mrb[34].mxu0  ;;  %6162 = vst [vmem:[#allocation3 + $0xb0] sm:$0xff] %v6072_v3  ;;  %6170 = vst [vmem:[#allocation3 + $0xf0] sm:$0xff] %v6076_v17  ;;  %v6086_v27 = vadd.f32 %v6085_v24, %v11980_v43  ;;  %v6087_v29 = vpop.f32.mrb[43].mxu1 }
 0x825   :  { %6144 = vst [vmem:[#allocation3 + $0x20] sm:$0xff] %v5949_v51  ;;  %v5953_v34 = vadd.f32 %v5952_v62, %v11975_v46  ;;  %v5954_v52 = vpop.f32.mrb[35].mxu0  ;;  %6178 = vst [vmem:[#allocation3 + $0x130] sm:$0xff] %v6082_v30  ;;  %v6088_v35 = vadd.f32 %v6087_v29, %v11990_v56 }
 0x826   :  { %6145 = vst [vmem:[#allocation3 + $0x28] sm:$0xff] %v5951_v7  ;;  %v5955_v57 = vadd.f32 %v5954_v52, %v11985_v22  ;;  %6179 = vst [vmem:[#allocation3 + $0x138] sm:$0xff] %v6084_v11 }
 0x827   :  { %6152 = vst [vmem:[#allocation3 + $0x60] sm:$0xff] %v5953_v34  ;;  %6186 = vst [vmem:[#allocation3 + $0x170] sm:$0xff] %v6086_v27 }
 0x828   :  { %6153 = vst [vmem:[#allocation3 + $0x68] sm:$0xff] %v5955_v57  ;;  %6187 = vst [vmem:[#allocation3 + $0x178] sm:$0xff] %v6088_v35 }
 0x829   :  { %v6091_v40 = vpop.f32.mrb[44].mxu1 }
 0x82a   :  { %v5958_v14 = vpop.f32.mrb[36].mxu0  ;;  %v6092_v39 = vadd.f32 %v6091_v40, %v11980_v43  ;;  %v6093_v45 = vpop.f32.mrb[45].mxu1 }
 0x82b   :  { %v5959_v60 = vadd.f32 %v5958_v14, %v11975_v46  ;;  %v5960_v59 = vpop.f32.mrb[37].mxu0  ;;  %v6094_v49 = vadd.f32 %v6093_v45, %v11990_v56  ;;  %v6095_v47 = vpop.f32.mrb[46].mxu1 }
 0x82c   :  { %v5961_v50 = vadd.f32 %v5960_v59, %v11985_v22  ;;  %v5962_v9 = vpop.f32.mrb[38].mxu0  ;;  %6194 = vst [vmem:[#allocation3 + $0x1b0] sm:$0xff] %v6092_v39  ;;  %v6096_v55 = vadd.f32 %v6095_v47, %v11980_v43  ;;  %v6097_v5 = vpop.f32.mrb[47].mxu1 }
 0x82d   :  { %6160 = vst [vmem:[#allocation3 + $0xa0] sm:$0xff] %v5959_v60  ;;  %v5963_v12 = vadd.f32 %v5962_v9, %v11975_v46  ;;  %v5964_v16 = vpop.f32.mrb[39].mxu0  ;;  %6195 = vst [vmem:[#allocation3 + $0x1b8] sm:$0xff] %v6094_v49  ;;  %v6098_v7 = vadd.f32 %v6097_v5, %v11990_v56 }
 0x82e   :  { %6161 = vst [vmem:[#allocation3 + $0xa8] sm:$0xff] %v5961_v50  ;;  %v5965_v18 = vadd.f32 %v5964_v16, %v11985_v22  ;;  %6202 = vst [vmem:[#allocation3 + $0x1f0] sm:$0xff] %v6096_v55 }
 0x82f   :  { %6168 = vst [vmem:[#allocation3 + $0xe0] sm:$0xff] %v5963_v12  ;;  %6203 = vst [vmem:[#allocation3 + $0x1f8] sm:$0xff] %v6098_v7 }
 0x830   :  { %6169 = vst [vmem:[#allocation3 + $0xe8] sm:$0xff] %v5965_v18 }
 0x831   :  { %v6101_v8 = vpop.f32.mrb[48].mxu1 }
 0x832   :  { %v5968_v21 = vpop.f32.mrb[40].mxu0  ;;  %v6102_v2 = vadd.f32 %v6101_v8, %v11980_v43  ;;  %v6103_v63 = vpop.f32.mrb[49].mxu1 }
 0x833   :  { %v5969_v32 = vadd.f32 %v5968_v21, %v11975_v46  ;;  %v5970_v25 = vpop.f32.mrb[41].mxu0  ;;  %v6104_v4 = vadd.f32 %v6103_v63, %v11990_v56  ;;  %v6105_v14 = vpop.f32.mrb[50].mxu1  ;;  %v12056_v63 = vmov 0.0  }
 0x834   :  { %v5971_v61 = vadd.f32 %v5970_v25, %v11985_v22  ;;  %v5972_v41 = vpop.f32.mrb[42].mxu0  ;;  %6210 = vst [vmem:[#allocation3 + $0x230] sm:$0xff] %v6102_v2  ;;  %v6106_v54 = vadd.f32 %v6105_v14, %v11980_v43  ;;  %v6107_v3 = vpop.f32.mrb[51].mxu1 }
 0x835   :  { %6176 = vst [vmem:[#allocation3 + $0x120] sm:$0xff] %v5969_v32  ;;  %v5973_v1 = vadd.f32 %v5972_v41, %v11975_v46  ;;  %v5974_v26 = vpop.f32.mrb[43].mxu0  ;;  %6211 = vst [vmem:[#allocation3 + $0x238] sm:$0xff] %v6104_v4  ;;  %v6108_v50 = vadd.f32 %v6107_v3, %v11990_v56 }
 0x836   :  { %6177 = vst [vmem:[#allocation3 + $0x128] sm:$0xff] %v5971_v61  ;;  %v5975_v28 = vadd.f32 %v5974_v26, %v11985_v22  ;;  %6218 = vst [vmem:[#allocation3 + $0x270] sm:$0xff] %v6106_v54 }
 0x837   :  { %6184 = vst [vmem:[#allocation3 + $0x160] sm:$0xff] %v5973_v1  ;;  %6219 = vst [vmem:[#allocation3 + $0x278] sm:$0xff] %v6108_v50 }
 0x838   :  { %6185 = vst [vmem:[#allocation3 + $0x168] sm:$0xff] %v5975_v28 }
 0x839   :  { %v6111_v10 = vpop.f32.mrb[52].mxu1 }
 0x83a   :  { %v5978_v36 = vpop.f32.mrb[44].mxu0  ;;  %v6112_v15 = vadd.f32 %v6111_v10, %v11980_v43  ;;  %v6113_v17 = vpop.f32.mrb[53].mxu1 }
 0x83b   :  { %v5979_v38 = vadd.f32 %v5978_v36, %v11975_v46  ;;  %v5980_v37 = vpop.f32.mrb[45].mxu0  ;;  %v6114_v19 = vadd.f32 %v6113_v17, %v11990_v56  ;;  %v6115_v21 = vpop.f32.mrb[54].mxu1 }
 0x83c   :  { %v5981_v44 = vadd.f32 %v5980_v37, %v11985_v22  ;;  %v5982_v42 = vpop.f32.mrb[46].mxu0  ;;  %6226 = vst [vmem:[#allocation3 + $0x2b0] sm:$0xff] %v6112_v15  ;;  %v6116_v23 = vadd.f32 %v6115_v21, %v11980_v43  ;;  %v6117_v30 = vpop.f32.mrb[55].mxu1 }
 0x83d   :  { %6192 = vst [vmem:[#allocation3 + $0x1a0] sm:$0xff] %v5979_v38  ;;  %v5983_v48 = vadd.f32 %v5982_v42, %v11975_v46  ;;  %v5984_v51 = vpop.f32.mrb[47].mxu0  ;;  %6227 = vst [vmem:[#allocation3 + $0x2b8] sm:$0xff] %v6114_v19  ;;  %v6118_v61 = vadd.f32 %v6117_v30, %v11990_v56 }
 0x83e   :  { %6193 = vst [vmem:[#allocation3 + $0x1a8] sm:$0xff] %v5981_v44  ;;  %v5985_v6 = vadd.f32 %v5984_v51, %v11985_v22  ;;  %6234 = vst [vmem:[#allocation3 + $0x2f0] sm:$0xff] %v6116_v23 }
 0x83f   :  { %6200 = vst [vmem:[#allocation3 + $0x1e0] sm:$0xff] %v5983_v48  ;;  %6235 = vst [vmem:[#allocation3 + $0x2f8] sm:$0xff] %v6118_v61 }
 0x840   :  { %6201 = vst [vmem:[#allocation3 + $0x1e8] sm:$0xff] %v5985_v6 }
 0x841   :  { %v6121_v11 = vpop.f32.mrb[56].mxu1 }
 0x842   :  { %v5988_v31 = vpop.f32.mrb[48].mxu0  ;;  %v6122_v24 = vadd.f32 %v6121_v11, %v11980_v43  ;;  %v6123_v27 = vpop.f32.mrb[57].mxu1 }
 0x843   :  { %v5989_v62 = vadd.f32 %v5988_v31, %v11975_v46  ;;  %v5990_v34 = vpop.f32.mrb[49].mxu0  ;;  %v6124_v29 = vadd.f32 %v6123_v27, %v11990_v56  ;;  %v6125_v36 = vpop.f32.mrb[58].mxu1 }
 0x844   :  { %v5991_v52 = vadd.f32 %v5990_v34, %v11985_v22  ;;  %v5992_v57 = vpop.f32.mrb[50].mxu0  ;;  %6242 = vst [vmem:[#allocation3 + $0x330] sm:$0xff] %v6122_v24  ;;  %v6126_v40 = vadd.f32 %v6125_v36, %v11980_v43  ;;  %v6127_v39 = vpop.f32.mrb[59].mxu1 }
 0x845   :  { %6208 = vst [vmem:[#allocation3 + $0x220] sm:$0xff] %v5989_v62  ;;  %v5993_v0 = vadd.f32 %v5992_v57, %v11975_v46  ;;  %v5994_v60 = vpop.f32.mrb[51].mxu0  ;;  %6243 = vst [vmem:[#allocation3 + $0x338] sm:$0xff] %v6124_v29  ;;  %v6128_v44 = vadd.f32 %v6127_v39, %v11990_v56  ;;  %v12058_v57 = vmov 0.0  }
 0x846   :  { %6209 = vst [vmem:[#allocation3 + $0x228] sm:$0xff] %v5991_v52  ;;  %v5995_v59 = vadd.f32 %v5994_v60, %v11985_v22  ;;  %6250 = vst [vmem:[#allocation3 + $0x370] sm:$0xff] %v6126_v40 }
 0x847   :  { %6216 = vst [vmem:[#allocation3 + $0x260] sm:$0xff] %v5993_v0  ;;  %6251 = vst [vmem:[#allocation3 + $0x378] sm:$0xff] %v6128_v44 }
 0x848   :  { %6217 = vst [vmem:[#allocation3 + $0x268] sm:$0xff] %v5995_v59 }
 0x849   :  { %v6131_v49 = vpop.f32.mrb[60].mxu1 }
 0x84a   :  { %v5998_v33 = vpop.f32.mrb[52].mxu0  ;;  %v6132_v47 = vadd.f32 %v6131_v49, %v11980_v43  ;;  %v6133_v55 = vpop.f32.mrb[61].mxu1 }
 0x84b   :  { %v5999_v9 = vadd.f32 %v5998_v33, %v11975_v46  ;;  %v6000_v12 = vpop.f32.mrb[53].mxu0  ;;  %v6134_v5 = vadd.f32 %v6133_v55, %v11990_v56  ;;  %v6135_v31 = vpop.f32.mrb[62].mxu1 }
 0x84c   :  { %v6001_v16 = vadd.f32 %v6000_v12, %v11985_v22  ;;  %v6002_v18 = vpop.f32.mrb[54].mxu0  ;;  %6258 = vst [vmem:[#allocation3 + $0x3b0] sm:$0xff] %v6132_v47  ;;  %v6136_v8 = vadd.f32 %v6135_v31, %v11980_v43  ;;  %v6137_v2 = vpop.f32.mrb[63].mxu1 }
 0x84d   :  { %6224 = vst [vmem:[#allocation3 + $0x2a0] sm:$0xff] %v5999_v9  ;;  %v6003_v20 = vadd.f32 %v6002_v18, %v11975_v46  ;;  %v6004_v32 = vpop.f32.mrb[55].mxu0  ;;  %6259 = vst [vmem:[#allocation3 + $0x3b8] sm:$0xff] %v6134_v5  ;;  %v6138_v52 = vadd.f32 %v6137_v2, %v11990_v56 }
 0x84e   :  { %6225 = vst [vmem:[#allocation3 + $0x2a8] sm:$0xff] %v6001_v16  ;;  %v6005_v25 = vadd.f32 %v6004_v32, %v11985_v22  ;;  %6266 = vst [vmem:[#allocation3 + $0x3f0] sm:$0xff] %v6136_v8 }
 0x84f   :  { %6232 = vst [vmem:[#allocation3 + $0x2e0] sm:$0xff] %v6003_v20  ;;  %6267 = vst [vmem:[#allocation3 + $0x3f8] sm:$0xff] %v6138_v52 }
 0x850   :  { %6233 = vst [vmem:[#allocation3 + $0x2e8] sm:$0xff] %v6005_v25 }
 0x852   :  { %v6008_v13 = vpop.f32.mrb[56].mxu0 }
 0x853   :  { %v6009_v41 = vadd.f32 %v6008_v13, %v11975_v46  ;;  %v6010_v1 = vpop.f32.mrb[57].mxu0 }
 0x854   :  { %v6011_v26 = vadd.f32 %v6010_v1, %v11985_v22  ;;  %v6012_v28 = vpop.f32.mrb[58].mxu0 }
 0x855   :  { %6240 = vst [vmem:[#allocation3 + $0x320] sm:$0xff] %v6009_v41  ;;  %v6013_v35 = vadd.f32 %v6012_v28, %v11975_v46  ;;  %v6014_v38 = vpop.f32.mrb[59].mxu0 }
 0x856   :  { %6241 = vst [vmem:[#allocation3 + $0x328] sm:$0xff] %v6011_v26  ;;  %v6015_v37 = vadd.f32 %v6014_v38, %v11985_v22 }
 0x857   :  { %6248 = vst [vmem:[#allocation3 + $0x360] sm:$0xff] %v6013_v35 }
 0x858   :  { %6249 = vst [vmem:[#allocation3 + $0x368] sm:$0xff] %v6015_v37 }
 0x85a   :  { %v6018_v45 = vpop.f32.mrb[60].mxu0 }
 0x85b   :  { %v6019_v42 = vadd.f32 %v6018_v45, %v11975_v46  ;;  %v6020_v48 = vpop.f32.mrb[61].mxu0 }
 0x85c   :  { %v6021_v51 = vadd.f32 %v6020_v48, %v11985_v22  ;;  %v6022_v6 = vpop.f32.mrb[62].mxu0 }
 0x85d   :  { %6256 = vst [vmem:[#allocation3 + $0x3a0] sm:$0xff] %v6019_v42  ;;  %v6023_v7 = vadd.f32 %v6022_v6, %v11975_v46  ;;  %v6024_v62 = vpop.f32.mrb[63].mxu0 }
 0x85e   :  { %6257 = vst [vmem:[#allocation3 + $0x3a8] sm:$0xff] %v6021_v51  ;;  %v6025_v34 = vadd.f32 %v6024_v62, %v11985_v22 }
 0x85f   :  { %6264 = vst [vmem:[#allocation3 + $0x3e0] sm:$0xff] %v6023_v7 }
 0x860   :  { %6265 = vst [vmem:[#allocation3 + $0x3e8] sm:$0xff] %v6025_v34 }
 0x861 LB: > { %13163 = vst [vmem:[#allocation44_spill] sm:$0xff] %v9088_v63  ;;  %v12074_v46 = vld [vmem:[%s12914_s6 + $0x4] ss:$16 sps:$4 sm:$0xff]   ;;  %v12079_v43 = vld [vmem:[%s12914_s6] ss:$16 sps:$4 sm:$0xff]   ;;  %v6314_v56 = vsel %vm3883_vm1, %v9092_v57, 0.0  ;;  %s9096_s5 = sphi %s12060_s5, %s6273_s5   ;;  %v9092_v57 = vphi %v12058_v57, %v7185_v57   ;;  %v9088_v63 = vphi %v12056_v63, %v7183_v63  }
 0x862   : > { %13164 = vst [vmem:[#allocation45_spill] sm:$0xff] %v12074_v46  ;;  %6702 = vmatprep.subr.bf16.mxu0 %v12074_v46  ;;  %v12085_v22 = vld [vmem:[%s12914_s6 + $0x24] ss:$16 sps:$4 sm:$0xff]   ;;  %v12094_v4 = vld [vmem:[%s12914_s6 + $0xc] ss:$16 sps:$4 sm:$0xff]   ;;  %v6315_v60 = vsub.f32 %v9092_v57, %v6314_v56  ;;  %s6277_s4 = ssub.s32 15, %s9096_s5 }
 0x863   : > { %6703 = vmatpush1.bf16.msra.mxu0 %v12079_v43  ;;  %13166 = vst [vmem:[#allocation46_spill] sm:$0xff] %v12094_v4  ;;  %v12099_v0 = vld [vmem:[%s12914_s6 + $0x20] ss:$16 sps:$4 sm:$0xff]   ;;  %v12104_v14 = vld [vmem:[%s12914_s6 + $0x8] ss:$16 sps:$4 sm:$0xff]   ;;  %6743 = vmatprep.subr.bf16.mxu1 %v12094_v4  ;;  %s12532_s18 = sshll.u32 %s6277_s4, 3 }
 0x864   : > { %6704 = vmatprep.subr.bf16.mxu0 %v12085_v22  ;;  %v12111_v54 = vld [vmem:[%s12914_s6 + $0x44] ss:$16 sps:$4 sm:$0xff]   ;;  %v12117_v59 = vld [vmem:[%s12914_s6 + $0x2c] ss:$16 sps:$4 sm:$0xff]   ;;  %v6317_v3 = vpack.c.bf16 %v6315_v60, %v6315_v60  ;;  %6744 = vmatpush1.bf16.msra.mxu1 %v12104_v14  ;;  %v12123_v50 = vld [vmem:[%s12914_s6 + $0x28] ss:$16 sps:$4 sm:$0xff]  }
 0x865   : > { %6745 = vmatprep.subr.bf16.mxu1 %v12117_v59  ;;  %v12130_v33 = vld [vmem:[%s12914_s6 + $0x40] ss:$16 sps:$4 sm:$0xff]   ;;  %v12136_v9 = vld [vmem:[%s12914_s6 + $0x64] ss:$16 sps:$4 sm:$0xff]   ;;  %v12141_v10 = vld [vmem:[%s12914_s6 + $0x4c] ss:$16 sps:$4 sm:$0xff]  }
 0x866   : > { %6734 = vmatprep.mubr.bf16.mxu0 %v6317_v3  ;;  %6775 = vmatprep.mubr.bf16.mxu1 %v6317_v3  ;;  %v12147_v12 = vld [vmem:[%s12914_s6 + $0x48] ss:$16 sps:$4 sm:$0xff]   ;;  %v12154_v15 = vld [vmem:[%s12914_s6 + $0x60] ss:$16 sps:$4 sm:$0xff]   ;;  %v12159_v16 = vld [vmem:[%s12914_s6 + $0x6c] ss:$16 sps:$4 sm:$0xff]  }
 0x867   : > { %6705 = vmatpush1.bf16.msra.mxu0 %v12099_v0  ;;  %v12165_v17 = vld [vmem:[%s12914_s6 + $0x84] ss:$16 sps:$4 sm:$0xff]   ;;  %v12171_v18 = vld [vmem:[%s12914_s6 + $0x80] ss:$16 sps:$4 sm:$0xff]   ;;  %v12176_v19 = vld [vmem:[%s12914_s6 + $0x68] ss:$16 sps:$4 sm:$0xff]  }
 0x868   : > { %6706 = vmatprep.subr.bf16.mxu0 %v12111_v54  ;;  %6746 = vmatpush1.bf16.msra.mxu1 %v12123_v50  ;;  %v12183_v20 = vld [vmem:[%s12914_s6 + $0x8c] ss:$16 sps:$4 sm:$0xff]   ;;  %v12189_v21 = vld [vmem:[%s12914_s6 + $0xa4] ss:$16 sps:$4 sm:$0xff]   ;;  %v12195_v32 = vld [vmem:[%s12914_s6 + $0x88] ss:$16 sps:$4 sm:$0xff]  }
 0x869   : > { %6747 = vmatprep.subr.bf16.mxu1 %v12141_v10  ;;  %v12202_v23 = vld [vmem:[%s12914_s6 + $0xa0] ss:$16 sps:$4 sm:$0xff]   ;;  %v12207_v25 = vld [vmem:[%s12914_s6 + $0xac] ss:$16 sps:$4 sm:$0xff]   ;;  %v12213_v30 = vld [vmem:[%s12914_s6 + $0xc4] ss:$16 sps:$4 sm:$0xff]  }
 0x86a   : > { %v12219_v61 = vld [vmem:[%s12914_s6 + $0xc0] ss:$16 sps:$4 sm:$0xff]   ;;  %v12224_v13 = vld [vmem:[%s12914_s6 + $0xa8] ss:$16 sps:$4 sm:$0xff]   ;;  %v12231_v41 = vld [vmem:[%s12914_s6 + $0xcc] ss:$16 sps:$4 sm:$0xff]  }
 0x86b   : > { %6707 = vmatpush1.bf16.msra.mxu0 %v12130_v33  ;;  %v12237_v11 = vld [vmem:[%s12914_s6 + $0xe4] ss:$16 sps:$4 sm:$0xff]   ;;  %v12243_v1 = vld [vmem:[%s12914_s6 + $0xc8] ss:$16 sps:$4 sm:$0xff]   ;;  %v12250_v24 = vld [vmem:[%s12914_s6 + $0xe0] ss:$16 sps:$4 sm:$0xff]  }
 0x86c   : > { %6708 = vmatprep.subr.bf16.mxu0 %v12136_v9  ;;  %6748 = vmatpush1.bf16.msra.mxu1 %v12147_v12  ;;  %v12255_v26 = vld [vmem:[%s12914_s6 + $0xec] ss:$16 sps:$4 sm:$0xff]   ;;  %v12261_v27 = vld [vmem:[%s12914_s6 + $0x104] ss:$16 sps:$4 sm:$0xff]   ;;  %v12267_v28 = vld [vmem:[%s12914_s6 + $0x100] ss:$16 sps:$4 sm:$0xff]  }
 0x86d   : > { %6749 = vmatprep.subr.bf16.mxu1 %v12159_v16  ;;  %v12272_v29 = vld [vmem:[%s12914_s6 + $0xe8] ss:$16 sps:$4 sm:$0xff]   ;;  %v12279_v35 = vld [vmem:[%s12914_s6 + $0x10c] ss:$16 sps:$4 sm:$0xff]   ;;  %v12285_v36 = vld [vmem:[%s12914_s6 + $0x124] ss:$16 sps:$4 sm:$0xff]  }
 0x86e   : > { %v12291_v38 = vld [vmem:[%s12914_s6 + $0x108] ss:$16 sps:$4 sm:$0xff]   ;;  %v12298_v40 = vld [vmem:[%s12914_s6 + $0x120] ss:$16 sps:$4 sm:$0xff]   ;;  %v12303_v37 = vld [vmem:[%s12914_s6 + $0x12c] ss:$16 sps:$4 sm:$0xff]  }
 0x86f   : > { %6709 = vmatpush1.bf16.msra.mxu0 %v12154_v15  ;;  %v12309_v39 = vld [vmem:[%s12914_s6 + $0x144] ss:$16 sps:$4 sm:$0xff]   ;;  %v12315_v44 = vld [vmem:[%s12914_s6 + $0x140] ss:$16 sps:$4 sm:$0xff]   ;;  %v12320_v45 = vld [vmem:[%s12914_s6 + $0x128] ss:$16 sps:$4 sm:$0xff]  }
 0x870   : > { %6710 = vmatprep.subr.bf16.mxu0 %v12165_v17  ;;  %6750 = vmatpush1.bf16.msra.mxu1 %v12176_v19  ;;  %13167 = vst [vmem:[#allocation47_spill] sm:$0xff] %v12309_v39  ;;  %13168 = vst [vmem:[#allocation48_spill] sm:$0xff] %v12315_v44  ;;  %v12327_v42 = vld [vmem:[%s12914_s6 + $0x14c] ss:$16 sps:$4 sm:$0xff]   ;;  %v12333_v49 = vld [vmem:[%s12914_s6 + $0x164] ss:$16 sps:$4 sm:$0xff]  }
 0x871   : > { %6751 = vmatprep.subr.bf16.mxu1 %v12183_v20  ;;  %13169 = vst [vmem:[#allocation49_spill] sm:$0xff] %v12327_v42  ;;  %13170 = vst [vmem:[#allocation50_spill] sm:$0xff] %v12333_v49  ;;  %v12339_v48 = vld [vmem:[%s12914_s6 + $0x148] ss:$16 sps:$4 sm:$0xff]   ;;  %v12346_v47 = vld [vmem:[%s12914_s6 + $0x160] ss:$16 sps:$4 sm:$0xff]  }
 0x872   : > { %13171 = vst [vmem:[#allocation51_spill] sm:$0xff] %v12339_v48  ;;  %13172 = vst [vmem:[#allocation52_spill] sm:$0xff] %v12346_v47  ;;  %v12351_v51 = vld [vmem:[%s12914_s6 + $0x16c] ss:$16 sps:$4 sm:$0xff]   ;;  %v12357_v55 = vld [vmem:[%s12914_s6 + $0x184] ss:$16 sps:$4 sm:$0xff]  }
 0x873   : > { %6711 = vmatpush1.bf16.msra.mxu0 %v12171_v18  ;;  %13173 = vst [vmem:[#allocation53_spill] sm:$0xff] %v12351_v51  ;;  %13174 = vst [vmem:[#allocation54_spill] sm:$0xff] %v12357_v55  ;;  %v12363_v6 = vld [vmem:[%s12914_s6 + $0x168] ss:$16 sps:$4 sm:$0xff]   ;;  %v12370_v5 = vld [vmem:[%s12914_s6 + $0x180] ss:$16 sps:$4 sm:$0xff]  }
 0x874   : > { %6712 = vmatprep.subr.bf16.mxu0 %v12189_v21  ;;  %6752 = vmatpush1.bf16.msra.mxu1 %v12195_v32  ;;  %13175 = vst [vmem:[#allocation55_spill] sm:$0xff] %v12363_v6  ;;  %13176 = vst [vmem:[#allocation56_spill] sm:$0xff] %v12370_v5  ;;  %v12375_v7 = vld [vmem:[%s12914_s6 + $0x18c] ss:$16 sps:$4 sm:$0xff]   ;;  %v12381_v31 = vld [vmem:[%s12914_s6 + $0x1a4] ss:$16 sps:$4 sm:$0xff]  }
 0x875   : > { %6753 = vmatprep.subr.bf16.mxu1 %v12207_v25  ;;  %13177 = vst [vmem:[#allocation57_spill] sm:$0xff] %v12375_v7  ;;  %13178 = vst [vmem:[#allocation58_spill] sm:$0xff] %v12381_v31  ;;  %v12387_v62 = vld [vmem:[%s12914_s6 + $0x188] ss:$16 sps:$4 sm:$0xff]   ;;  %v12394_v8 = vld [vmem:[%s12914_s6 + $0x1a0] ss:$16 sps:$4 sm:$0xff]  }
 0x876   : > { %13179 = vst [vmem:[#allocation59_spill] sm:$0xff] %v12387_v62  ;;  %13180 = vst [vmem:[#allocation60_spill] sm:$0xff] %v12394_v8  ;;  %v12399_v34 = vld [vmem:[%s12914_s6 + $0x1ac] ss:$16 sps:$4 sm:$0xff]   ;;  %v12405_v2 = vld [vmem:[%s12914_s6 + $0x1c4] ss:$16 sps:$4 sm:$0xff]  }
 0x877   : > { %6713 = vmatpush1.bf16.msra.mxu0 %v12202_v23  ;;  %13181 = vst [vmem:[#allocation61_spill] sm:$0xff] %v12399_v34  ;;  %13182 = vst [vmem:[#allocation62_spill] sm:$0xff] %v12405_v2  ;;  %v12411_v52 = vld [vmem:[%s12914_s6 + $0x1a8] ss:$16 sps:$4 sm:$0xff]   ;;  %v12418_v56 = vld [vmem:[%s12914_s6 + $0x1c0] ss:$16 sps:$4 sm:$0xff]  }
 0x878   : > { %6714 = vmatprep.subr.bf16.mxu0 %v12213_v30  ;;  %6754 = vmatpush1.bf16.msra.mxu1 %v12224_v13  ;;  %13183 = vst [vmem:[#allocation63_spill] sm:$0xff] %v12411_v52  ;;  %13184 = vst [vmem:[#allocation64_spill] sm:$0xff] %v12418_v56  ;;  %v12423_v60 = vld [vmem:[%s12914_s6 + $0x1cc] ss:$16 sps:$4 sm:$0xff]   ;;  %v12429_v3 = vld [vmem:[%s12914_s6 + $0x1e4] ss:$16 sps:$4 sm:$0xff]  }
 0x879   : > { %6755 = vmatprep.subr.bf16.mxu1 %v12231_v41  ;;  %13185 = vst [vmem:[#allocation65_spill] sm:$0xff] %v12423_v60  ;;  %13186 = vst [vmem:[#allocation66_spill] sm:$0xff] %v12429_v3  ;;  %v12435_v53 = vld [vmem:[%s12914_s6 + $0x1c8] ss:$16 sps:$4 sm:$0xff]   ;;  %v12442_v63 = vld [vmem:[%s12914_s6 + $0x1e0] ss:$16 sps:$4 sm:$0xff]  }
 0x87a   : > { %13187 = vst [vmem:[#allocation67_spill] sm:$0xff] %v12435_v53  ;;  %13188 = vst [vmem:[#allocation68_spill] sm:$0xff] %v12442_v63  ;;  %s6288_s19 = sshra.s32 %s12532_s18, 3  ;;  %s8027_s0 = sshll.u32 %s9096_s5, 3 }
 0x87b   : > { %6715 = vmatpush1.bf16.msra.mxu0 %v12219_v61  ;;  %s8131_s20 = sshll.u32 %s6288_s19, 6  ;;  %s12538_s3 = sshra.s32 %s8027_s0, 3 }
 0x87c   : > { %6716 = vmatprep.subr.bf16.mxu0 %v12237_v11  ;;  %6756 = vmatpush1.bf16.msra.mxu1 %v12243_v1  ;;  %s8130_s21 = sshll.u32 %s12538_s3, 6  ;;  %s6292_s22 = scalar_lea.vmem [#allocation3], %s8131_s20 }
 0x87d   : > { %6757 = vmatprep.subr.bf16.mxu1 %v12255_v26  ;;  %s6283_s23 = scalar_lea.vmem [#allocation3], %s8130_s21  ;;  %s8132_s24 = sshll.u32 %s12538_s3, 4 }
 0x87e   : > { %s8133_s25 = sshll.u32 %s6288_s19, 4  ;;  %s7202_s26 = scalar_lea.vmem [#allocation5], %s8132_s24 }
 0x87f   : > { %6717 = vmatpush1.bf16.msra.mxu0 %v12250_v24  ;;  %s7212_s27 = scalar_lea.vmem [#allocation5], %s8133_s25  ;;  %s6273_s5 = sadd.s32 1, %s9096_s5  }
 0x880   : > { %6718 = vmatprep.subr.bf16.mxu0 %v12261_v27  ;;  %6758 = vmatpush1.bf16.msra.mxu1 %v12272_v29  ;;  %p6270_p1 = scmp.ge.s32.totalorder %s6273_s5, 16  }
 0x881   : > { %6759 = vmatprep.subr.bf16.mxu1 %v12279_v35  ;;  %v7234_v58 = vld [vmem:[%s12915_s7 + $0x90] sm:$0xff] (%p6270_p1)  ;;  %vm7331_vm6 = vcmask (%p6270_p1), 386048  }
 0x883   : > { %6719 = vmatpush1.bf16.msra.mxu0 %v12267_v28 }
 0x884   : > { %6720 = vmatprep.subr.bf16.mxu0 %v12285_v36  ;;  %6760 = vmatpush1.bf16.msra.mxu1 %v12291_v38 }
 0x885   : > { %6761 = vmatprep.subr.bf16.mxu1 %v12303_v37 }
 0x887   : > { %6721 = vmatpush1.bf16.msra.mxu0 %v12298_v40 }
 0x888   : > { %6722 = vmatprep.subr.bf16.mxu0 %v12309_v39  ;;  %6762 = vmatpush1.bf16.msra.mxu1 %v12320_v45 }
 0x889   : > { %6763 = vmatprep.subr.bf16.mxu1 %v12327_v42 }
 0x88b   : > { %6723 = vmatpush1.bf16.msra.mxu0 %v12315_v44 }
 0x88c   : > { %6724 = vmatprep.subr.bf16.mxu0 %v12333_v49  ;;  %6764 = vmatpush1.bf16.msra.mxu1 %v12339_v48 }
 0x88d   : > { %6765 = vmatprep.subr.bf16.mxu1 %v12351_v51 }
 0x88f   : > { %6725 = vmatpush1.bf16.msra.mxu0 %v12346_v47 }
 0x890   : > { %6726 = vmatprep.subr.bf16.mxu0 %v12357_v55  ;;  %6766 = vmatpush1.bf16.msra.mxu1 %v12363_v6 }
 0x891   : > { %6767 = vmatprep.subr.bf16.mxu1 %v12375_v7 }
 0x893   : > { %6727 = vmatpush1.bf16.msra.mxu0 %v12370_v5 }
 0x894   : > { %6728 = vmatprep.subr.bf16.mxu0 %v12381_v31  ;;  %6768 = vmatpush1.bf16.msra.mxu1 %v12387_v62 }
 0x895   : > { %6769 = vmatprep.subr.bf16.mxu1 %v12399_v34 }
 0x897   : > { %6729 = vmatpush1.bf16.msra.mxu0 %v12394_v8 }
 0x898   : > { %6730 = vmatprep.subr.bf16.mxu0 %v12405_v2  ;;  %6770 = vmatpush1.bf16.msra.mxu1 %v12411_v52  ;;  %v12447_v2 = vld [vmem:[%s12914_s6 + $0x1ec] ss:$16 sps:$4 sm:$0xff]   ;;  %v8098_v52 = vpack.c.bf16 %v9092_v57, %v9092_v57 }
 0x899   : > { %6771 = vmatprep.subr.bf16.mxu1 %v12423_v60  ;;  %13189 = vst [vmem:[#allocation69_spill] sm:$0xff] %v12447_v2  ;;  %v13191_v57 = vld [vmem:[#allocation62_spill] sm:$0xff] }
 0x89b   : > { %6731 = vmatpush1.bf16.msra.mxu0 %v12418_v56  ;;  %v12456_v56 = vld [vmem:[%s12914_s6 + $0x1e8] ss:$16 sps:$4 sm:$0xff]   ;;  %s9098_s6 = smov (%p6270_p1), [#allocation6]  }
 0x89c   : > { %6732 = vmatprep.subr.bf16.mxu0 %v12429_v3  ;;  %6772 = vmatpush1.bf16.msra.mxu1 %v12435_v53  ;;  %13190 = vst [vmem:[#allocation70_spill] sm:$0xff] %v12456_v56  ;;  %s7339_s14 = sshll.u32 (%p6270_p1), %s9098_s6, 4  ;;  %s7340_s14 = int_to_ptr.vmem [resolvable:$true] %s7339_s14 }
 0x89d   : > { %6773 = vmatprep.subr.bf16.mxu1 %v12447_v2  ;;  %p9031_p3 = scmp.lt.s32.totalorder (%p6270_p1), %s7340_s14, %s7340_s14 }
 0x89f   : > { %6733 = vmatpush1.bf16.msra.mxu0 %v12442_v63 }
 0x8a0   : > { %6834 = vmatprep.subr.bf16.mxu0 %v12074_v46  ;;  %6774 = vmatpush1.bf16.msra.mxu1 %v12456_v56 }
 0x8a1   : > { %6875 = vmatprep.subr.bf16.mxu1 %v12094_v4 }
 0x8a2   : > { %8099 = vmatmul.mubr.msk.bf16.vlgmr.msra.gmra.mrb[0].mxu0 %vm11067_vm2, %v8098_v52 }
 0x8a3   : > { %6835 = vmatpush1.bf16.msra.mxu0 %v12079_v43  ;;  %8102 = vmatmul.mubr.msk.bf16.vlgmr.msra.gmra.mrb[0].mxu1 %vm11067_vm2, %v8098_v52  ;;  %v13192_v52 = vld [vmem:[#allocation63_spill] sm:$0xff] }
 0x8a4   : > { %6836 = vmatprep.subr.bf16.mxu0 %v12085_v22  ;;  %6876 = vmatpush1.bf16.msra.mxu1 %v12104_v14 }
 0x8a5   : > { %6877 = vmatprep.subr.bf16.mxu1 %v12117_v59 }
 0x8a7   : > { %6837 = vmatpush1.bf16.msra.mxu0 %v12099_v0 }
 0x8a8   : > { %6838 = vmatprep.subr.bf16.mxu0 %v12111_v54  ;;  %6878 = vmatpush1.bf16.msra.mxu1 %v12123_v50 }
 0x8a9   : > { %6879 = vmatprep.subr.bf16.mxu1 %v12141_v10 }
 0x8ab   : > { %6839 = vmatpush1.bf16.msra.mxu0 %v12130_v33 }
 0x8ac   : > { %6840 = vmatprep.subr.bf16.mxu0 %v12136_v9  ;;  %6880 = vmatpush1.bf16.msra.mxu1 %v12147_v12 }
 0x8ad   : > { %6881 = vmatprep.subr.bf16.mxu1 %v12159_v16 }
 0x8af   : > { %6841 = vmatpush1.bf16.msra.mxu0 %v12154_v15 }
 0x8b0   : > { %6842 = vmatprep.subr.bf16.mxu0 %v12165_v17  ;;  %6882 = vmatpush1.bf16.msra.mxu1 %v12176_v19 }
 0x8b1   : > { %6883 = vmatprep.subr.bf16.mxu1 %v12183_v20 }
 0x8b3   : > { %6843 = vmatpush1.bf16.msra.mxu0 %v12171_v18 }
 0x8b4   : > { %6844 = vmatprep.subr.bf16.mxu0 %v12189_v21  ;;  %6884 = vmatpush1.bf16.msra.mxu1 %v12195_v32 }
 0x8b5   : > { %6885 = vmatprep.subr.bf16.mxu1 %v12207_v25 }
 0x8b7   : > { %6845 = vmatpush1.bf16.msra.mxu0 %v12202_v23 }
 0x8b8   : > { %6846 = vmatprep.subr.bf16.mxu0 %v12213_v30  ;;  %6886 = vmatpush1.bf16.msra.mxu1 %v12224_v13 }
 0x8b9   : > { %6887 = vmatprep.subr.bf16.mxu1 %v12231_v41 }
 0x8bb   : > { %6847 = vmatpush1.bf16.msra.mxu0 %v12219_v61 }
 0x8bc   : > { %6848 = vmatprep.subr.bf16.mxu0 %v12237_v11  ;;  %6888 = vmatpush1.bf16.msra.mxu1 %v12243_v1 }
 0x8bd   : > { %6889 = vmatprep.subr.bf16.mxu1 %v12255_v26 }
 0x8bf   : > { %6849 = vmatpush1.bf16.msra.mxu0 %v12250_v24 }
 0x8c0   : > { %6850 = vmatprep.subr.bf16.mxu0 %v12261_v27  ;;  %6890 = vmatpush1.bf16.msra.mxu1 %v12272_v29 }
 0x8c1   : > { %6891 = vmatprep.subr.bf16.mxu1 %v12279_v35 }
 0x8c3   : > { %6851 = vmatpush1.bf16.msra.mxu0 %v12267_v28 }
 0x8c4   : > { %6852 = vmatprep.subr.bf16.mxu0 %v12285_v36  ;;  %6892 = vmatpush1.bf16.msra.mxu1 %v12291_v38 }
 0x8c5   : > { %6893 = vmatprep.subr.bf16.mxu1 %v12303_v37 }
 0x8c7   : > { %6853 = vmatpush1.bf16.msra.mxu0 %v12298_v40 }
 0x8c8   : > { %6854 = vmatprep.subr.bf16.mxu0 %v12309_v39  ;;  %6894 = vmatpush1.bf16.msra.mxu1 %v12320_v45 }
 0x8c9   : > { %6895 = vmatprep.subr.bf16.mxu1 %v12327_v42 }
 0x8cb   : > { %6855 = vmatpush1.bf16.msra.mxu0 %v12315_v44 }
 0x8cc   : > { %6856 = vmatprep.subr.bf16.mxu0 %v12333_v49  ;;  %6896 = vmatpush1.bf16.msra.mxu1 %v12339_v48 }
 0x8cd   : > { %6897 = vmatprep.subr.bf16.mxu1 %v12351_v51 }
 0x8cf   : > { %6857 = vmatpush1.bf16.msra.mxu0 %v12346_v47 }
 0x8d0   : > { %6858 = vmatprep.subr.bf16.mxu0 %v12357_v55  ;;  %6898 = vmatpush1.bf16.msra.mxu1 %v12363_v6  ;;  %v13193_v55 = vld [vmem:[#allocation64_spill] sm:$0xff] }
 0x8d1   : > { %6899 = vmatprep.subr.bf16.mxu1 %v12375_v7 }
 0x8d3   : > { %6859 = vmatpush1.bf16.msra.mxu0 %v12370_v5 }
 0x8d4   : > { %6860 = vmatprep.subr.bf16.mxu0 %v12381_v31  ;;  %6900 = vmatpush1.bf16.msra.mxu1 %v12387_v62 }
 0x8d5   : > { %6901 = vmatprep.subr.bf16.mxu1 %v12399_v34 }
 0x8d7   : > { %6861 = vmatpush1.bf16.msra.mxu0 %v12394_v8 }
 0x8d8   : > { %6862 = vmatprep.subr.bf16.mxu0 %v13191_v57  ;;  %6902 = vmatpush1.bf16.msra.mxu1 %v13192_v52  ;;  %v12556_v57 = vld [vmem:[%s6283_s23 + $0x10] sm:$0xff] }
 0x8d9   : > { %6903 = vmatprep.subr.bf16.mxu1 %v12423_v60  ;;  %13199 = vst [vmem:[#allocation76_spill] sm:$0xff] %v12556_v57 }
 0x8db   : > { %6863 = vmatpush1.bf16.msra.mxu0 %v13193_v55 }
 0x8dc   : > { %6864 = vmatprep.subr.bf16.mxu0 %v12429_v3  ;;  %6904 = vmatpush1.bf16.msra.mxu1 %v12435_v53  ;;  %v12551_v53 = vld [vmem:[%s6283_s23 + $0x8] sm:$0xff] }
 0x8dd   : > { %6905 = vmatprep.subr.bf16.mxu1 %v12447_v2  ;;  %v12548_v2 = vld [vmem:[%s6283_s23] sm:$0xff]  ;;  %13198 = vst [vmem:[#allocation75_spill] sm:$0xff] %v12551_v53 }
 0x8de   : > { %13197 = vst [vmem:[#allocation74_spill] sm:$0xff] %v12548_v2 }
 0x8df   : > { %6865 = vmatpush1.bf16.msra.mxu0 %v12442_v63  ;;  %v12541_v63 = vld [vmem:[%s6292_s22 + $0x20] sm:$0xff] }
 0x8e0   : > { %6954 = vmatprep.subr.bf16.mxu0 %v12074_v46  ;;  %6906 = vmatpush1.bf16.msra.mxu1 %v12456_v56  ;;  %13194 = vst [vmem:[#allocation71_spill] sm:$0xff] %v12541_v63  ;;  %v12543_v46 = vld [vmem:[%s6292_s22 + $0x28] sm:$0xff]  ;;  %v12546_v56 = vld [vmem:[%s6292_s22 + $0x30] sm:$0xff] }
 0x8e1   : > { %6995 = vmatprep.subr.bf16.mxu1 %v12094_v4  ;;  %13195 = vst [vmem:[#allocation72_spill] sm:$0xff] %v12543_v46  ;;  %v6301_v4 = vrot.slane %v12541_v63, 4  ;;  %13196 = vst [vmem:[#allocation73_spill] sm:$0xff] %v12546_v56  ;;  %v6302_v3 = vrot.slane %v12543_v46, 4  ;;  %v6303_v55 = vrot.slane %v12546_v56, 4  ;;  %v12560_v63 = vld [vmem:[%s6292_s22 + $0x38] sm:$0xff] }
 0x8e2   : > { %13200 = vst [vmem:[#allocation77_spill] sm:$0xff] %v12560_v63  ;;  %v6304_v56 = vrot.slane %v12560_v63, 4 }
 0x8e3   : > { %v6310_v60 = vsel %vm3925_vm3, %v12548_v2, %v6301_v4  ;;  %v6311_v52 = vsel %vm3925_vm3, %v12551_v53, %v6302_v3  ;;  %v6312_v46 = vsel %vm3925_vm3, %v12556_v57, %v6303_v55  ;;  %v12565_v2 = vld [vmem:[%s6283_s23 + $0x18] sm:$0xff] }
 0x975   : > { %v6736_v8 = vpop.f32.mrb[0].mxu0 }
 0x976   : > { %v6784_v34 = vadd.f32 %v6736_v8, %v6310_v60  ;;  %v6738_v31 = vpop.f32.mrb[1].mxu0  ;;  %v6777_v4 = vpop.f32.mrb[0].mxu1  ;;  %v6313_v8 = vsel %vm3925_vm3, %v12565_v2, %v6304_v56 }
 0x977   : > { %v6785_v62 = vadd.f32 %v6738_v31, %v6311_v52  ;;  %v6740_v5 = vpop.f32.mrb[2].mxu0  ;;  %v6786_v51 = vadd.f32 %v6777_v4, %v6312_v46  ;;  %v6779_v3 = vpop.f32.mrb[1].mxu1  ;;  %v13201_v4 = vld [vmem:[#allocation44_spill] sm:$0xff] }
 0x978   : > { %v6788_v7 = vmul.f32 0.5, %v6784_v34  ;;  %v6741_v6 = vpop.f32.mrb[3].mxu0  ;;  %v6781_v53 = vpop.f32.mrb[2].mxu1  ;;  %v6787_v55 = vadd.f32 %v6779_v3, %v6313_v8 }
 0x979   : > { %v6792_v47 = vmul.f32 0.5, %v6785_v62  ;;  %v6782_v60 = vpop.f32.mrb[3].mxu1 }
 0x97a   : > { %8986 = vtanh.f32 %v6788_v7  ;;  %v6797_v5 = vmul.f32 0.5, %v6787_v55 }
 0x97b   : > { %8988 = vtanh.f32 %v6792_v47 }
 0x97c   : > { %8990 = vtanh.f32 %v6786_v51 }
 0x97d   : > { %8992 = vtanh.f32 %v6797_v5 }
 0x984   : > { %v8987_v31 = vpop.eup %8986 }
 0x985   : > { %v8989_v52 = vpop.eup %8988  ;;  %v6790_v34 = vmul.f32 0.5, %v8987_v31  ;;  %v13204_v31 = vld [vmem:[#allocation53_spill] sm:$0xff] }
 0x986   : > { %v8991_v6 = vpop.eup %8990  ;;  %v6794_v63 = vmul.f32 0.5, %v8989_v52  ;;  %v13205_v52 = vld [vmem:[#allocation52_spill] sm:$0xff] }
 0x987   : > { %v6791_v57 = vadd.f32 0.5, %v6790_v34  ;;  %v8993_v47 = vpop.eup %8992  ;;  %v13206_v34 = vld [vmem:[#allocation55_spill] sm:$0xff] }
 0x988   : > { %v6795_v62 = vadd.f32 0.5, %v6794_v63  ;;  %v6799_v56 = vmul.f32 0.5, %v8993_v47  ;;  %v13212_v47 = vld [vmem:[#allocation61_spill] sm:$0xff] }
 0x989   : > { %v6802_v46 = vmul.f32 %v8991_v6, %v6791_v57  ;;  %v13207_v6 = vld [vmem:[#allocation54_spill] sm:$0xff] }
 0x98a   : > { %v6801_v7 = vmul.f32 %v13201_v4, %v6795_v62  ;;  %v6800_v51 = vadd.f32 0.5, %v6799_v56  ;;  %v13208_v62 = vld [vmem:[#allocation57_spill] sm:$0xff]  ;;  %v13210_v4 = vld [vmem:[#allocation59_spill] sm:$0xff]  ;;  %v13213_v56 = vld [vmem:[#allocation60_spill] sm:$0xff] }
 0x98c   : > { %v12570_v53 = vadd.f32 %v6802_v46, %v6801_v7  ;;  %v13209_v46 = vld [vmem:[#allocation56_spill] sm:$0xff]  ;;  %v13211_v7 = vld [vmem:[#allocation58_spill] sm:$0xff] }
 0x98e   : > { %8994 = vtanh.f32 %v12570_v53 }
 0x998   : > { %v8995_v3 = vpop.eup %8994 }
 0x999   : > { %v12573_v8 = vmul.f32 %v8995_v3, %v6800_v51  ;;  %v13214_v51 = vld [vmem:[#allocation63_spill] sm:$0xff]  ;;  %v13215_v3 = vld [vmem:[#allocation62_spill] sm:$0xff] }
 0x99b   : > { %13202 = vst [vmem:[#allocation44_spill] sm:$0xff] %v12573_v8  ;;  %v6830_v55 = vsel %vm3883_vm1, %v12573_v8, 0.0  ;;  %v8104_v57 = vpack.c.bf16 %v12573_v8, %v12573_v8 }
 0x99c   : > { %v6831_v5 = vsub.f32 %v12573_v8, %v6830_v55  ;;  %v13216_v55 = vld [vmem:[#allocation65_spill] sm:$0xff] }
 0x99d   : > { %v13220_v8 = vld [vmem:[#allocation69_spill] sm:$0xff] }
 0x99e   : > { %v6833_v63 = vpack.c.bf16 %v6831_v5, %v6831_v5  ;;  %v13217_v5 = vld [vmem:[#allocation64_spill] sm:$0xff] }
 0x9a0   : > { %6866 = vmatprep.mubr.bf16.mxu0 %v6833_v63  ;;  %6907 = vmatprep.mubr.bf16.mxu1 %v6833_v63  ;;  %v13218_v63 = vld [vmem:[#allocation67_spill] sm:$0xff] }
 0x9a1   : > { %8105 = vmatmul.mubr.msk.bf16.vlgmr.msra.gmra.mrb[4].mxu0 %vm11067_vm2, %v8104_v57  ;;  %8108 = vmatmul.mubr.msk.bf16.vlgmr.msra.gmra.mrb[4].mxu1 %vm11067_vm2, %v8104_v57  ;;  %v13219_v57 = vld [vmem:[#allocation66_spill] sm:$0xff] }
 0x9a2   : > { %6955 = vmatpush1.bf16.msra.mxu0 %v12079_v43  ;;  %6996 = vmatpush1.bf16.msra.mxu1 %v12104_v14 }
 0x9a3   : > { %6956 = vmatprep.subr.bf16.mxu0 %v12085_v22  ;;  %6997 = vmatprep.subr.bf16.mxu1 %v12117_v59 }
 0x9a6   : > { %6957 = vmatpush1.bf16.msra.mxu0 %v12099_v0  ;;  %6998 = vmatpush1.bf16.msra.mxu1 %v12123_v50 }
 0x9a7   : > { %6958 = vmatprep.subr.bf16.mxu0 %v12111_v54  ;;  %6999 = vmatprep.subr.bf16.mxu1 %v12141_v10 }
 0x9aa   : > { %6959 = vmatpush1.bf16.msra.mxu0 %v12130_v33  ;;  %7000 = vmatpush1.bf16.msra.mxu1 %v12147_v12 }
 0x9ab   : > { %6960 = vmatprep.subr.bf16.mxu0 %v12136_v9  ;;  %7001 = vmatprep.subr.bf16.mxu1 %v12159_v16 }
 0x9ae   : > { %6961 = vmatpush1.bf16.msra.mxu0 %v12154_v15  ;;  %7002 = vmatpush1.bf16.msra.mxu1 %v12176_v19 }
 0x9af   : > { %6962 = vmatprep.subr.bf16.mxu0 %v12165_v17  ;;  %7003 = vmatprep.subr.bf16.mxu1 %v12183_v20 }
 0x9b2   : > { %6963 = vmatpush1.bf16.msra.mxu0 %v12171_v18  ;;  %7004 = vmatpush1.bf16.msra.mxu1 %v12195_v32 }
 0x9b3   : > { %6964 = vmatprep.subr.bf16.mxu0 %v12189_v21  ;;  %7005 = vmatprep.subr.bf16.mxu1 %v12207_v25 }
 0x9b6   : > { %6965 = vmatpush1.bf16.msra.mxu0 %v12202_v23  ;;  %7006 = vmatpush1.bf16.msra.mxu1 %v12224_v13 }
 0x9b7   : > { %6966 = vmatprep.subr.bf16.mxu0 %v12213_v30  ;;  %7007 = vmatprep.subr.bf16.mxu1 %v12231_v41 }
 0x9ba   : > { %6967 = vmatpush1.bf16.msra.mxu0 %v12219_v61  ;;  %7008 = vmatpush1.bf16.msra.mxu1 %v12243_v1 }
 0x9bb   : > { %6968 = vmatprep.subr.bf16.mxu0 %v12237_v11  ;;  %7009 = vmatprep.subr.bf16.mxu1 %v12255_v26 }
 0x9be   : > { %6969 = vmatpush1.bf16.msra.mxu0 %v12250_v24  ;;  %7010 = vmatpush1.bf16.msra.mxu1 %v12272_v29 }
 0x9bf   : > { %6970 = vmatprep.subr.bf16.mxu0 %v12261_v27  ;;  %7011 = vmatprep.subr.bf16.mxu1 %v12279_v35 }
 0x9c2   : > { %6971 = vmatpush1.bf16.msra.mxu0 %v12267_v28  ;;  %7012 = vmatpush1.bf16.msra.mxu1 %v12291_v38 }
 0x9c3   : > { %6972 = vmatprep.subr.bf16.mxu0 %v12285_v36  ;;  %7013 = vmatprep.subr.bf16.mxu1 %v12303_v37 }
 0x9c6   : > { %6973 = vmatpush1.bf16.msra.mxu0 %v12298_v40  ;;  %7014 = vmatpush1.bf16.msra.mxu1 %v12320_v45 }
 0x9c7   : > { %6974 = vmatprep.subr.bf16.mxu0 %v12309_v39  ;;  %7015 = vmatprep.subr.bf16.mxu1 %v12327_v42 }
 0x9ca   : > { %6975 = vmatpush1.bf16.msra.mxu0 %v12315_v44  ;;  %7016 = vmatpush1.bf16.msra.mxu1 %v12339_v48  ;;  %v13231_v44 = vld [vmem:[#allocation77_spill] sm:$0xff] }
 0x9cb   : > { %6976 = vmatprep.subr.bf16.mxu0 %v12333_v49  ;;  %7017 = vmatprep.subr.bf16.mxu1 %v13204_v31 }
 0x9ce   : > { %6977 = vmatpush1.bf16.msra.mxu0 %v13205_v52  ;;  %7018 = vmatpush1.bf16.msra.mxu1 %v13206_v34  ;;  %v13229_v34 = vld [vmem:[#allocation76_spill] sm:$0xff]  ;;  %v13230_v52 = vld [vmem:[#allocation73_spill] sm:$0xff] }
 0x9cf   : > { %6978 = vmatprep.subr.bf16.mxu0 %v13207_v6  ;;  %7019 = vmatprep.subr.bf16.mxu1 %v13208_v62  ;;  %v13227_v62 = vld [vmem:[#allocation75_spill] sm:$0xff]  ;;  %v13228_v6 = vld [vmem:[#allocation72_spill] sm:$0xff] }
 0x9d2   : > { %6979 = vmatpush1.bf16.msra.mxu0 %v13209_v46  ;;  %7020 = vmatpush1.bf16.msra.mxu1 %v13210_v4  ;;  %v13221_v4 = vld [vmem:[#allocation68_spill] sm:$0xff]  ;;  %v13226_v46 = vld [vmem:[#allocation71_spill] sm:$0xff] }
 0x9d3   : > { %6980 = vmatprep.subr.bf16.mxu0 %v13211_v7  ;;  %7021 = vmatprep.subr.bf16.mxu1 %v13212_v47  ;;  %v13222_v7 = vld [vmem:[#allocation70_spill] sm:$0xff]  ;;  %v13223_v47 = vld [vmem:[#allocation45_spill] sm:$0xff] }
 0x9d6   : > { %6981 = vmatpush1.bf16.msra.mxu0 %v13213_v56  ;;  %7022 = vmatpush1.bf16.msra.mxu1 %v13214_v51  ;;  %v13224_v56 = vld [vmem:[#allocation46_spill] sm:$0xff] }
 0x9d7   : > { %6982 = vmatprep.subr.bf16.mxu0 %v13215_v3  ;;  %7023 = vmatprep.subr.bf16.mxu1 %v13216_v55  ;;  %v13225_v51 = vld [vmem:[#allocation74_spill] sm:$0xff]  ;;  %v6818_v55 = vrot.slane %v13226_v46, 2 }
 0x9d8   : > { %v6810_v3 = vrot.slane %v13225_v51, 2 }
 0x9da   : > { %6983 = vmatpush1.bf16.msra.mxu0 %v13217_v5  ;;  %7024 = vmatpush1.bf16.msra.mxu1 %v13218_v63  ;;  %v6811_v5 = vrot.slane %v13227_v62, 2  ;;  %v6819_v63 = vrot.slane %v13228_v6, 2  ;;  %v6813_v62 = vrot.slane %v12565_v2, 2  ;;  %v6821_v6 = vrot.slane %v13231_v44, 2 }
 0x9db   : > { %6984 = vmatprep.subr.bf16.mxu0 %v13219_v57  ;;  %7025 = vmatprep.subr.bf16.mxu1 %v13220_v8  ;;  %v6826_v57 = vsel %vm3925_vm3, %v6810_v3, %v6818_v55  ;;  %v6812_v8 = vrot.slane %v13229_v34, 2 }
 0x9de   : > { %6985 = vmatpush1.bf16.msra.mxu0 %v13221_v4  ;;  %7026 = vmatpush1.bf16.msra.mxu1 %v13222_v7  ;;  %v6820_v4 = vrot.slane %v13230_v52, 2  ;;  %v6827_v7 = vsel %vm3925_vm3, %v6811_v5, %v6819_v63 }
 0x9df   : > { %7082 = vmatprep.subr.bf16.mxu0 %v13223_v47  ;;  %7123 = vmatprep.subr.bf16.mxu1 %v13224_v56 }
 0x9e0   : > { %v6828_v51 = vsel %vm3925_vm3, %v6812_v8, %v6820_v4 }
 0xa74   : > { %v6868_v31 = vpop.f32.mrb[4].mxu0  ;;  %v6909_v47 = vpop.f32.mrb[4].mxu1 }
 0xa75   : > { %v6916_v49 = vadd.f32 %v6868_v31, %v6826_v57  ;;  %v6870_v56 = vpop.f32.mrb[5].mxu0  ;;  %v6911_v48 = vpop.f32.mrb[5].mxu1  ;;  %v6918_v5 = vadd.f32 %v6909_v47, %v6828_v51  ;;  %v6829_v31 = vsel %vm3925_vm3, %v6813_v62, %v6821_v6 }
 0xa76   : > { %v6917_v46 = vadd.f32 %v6870_v56, %v6827_v7  ;;  %v6872_v42 = vpop.f32.mrb[6].mxu0  ;;  %v6913_v3 = vpop.f32.mrb[6].mxu1  ;;  %v6919_v63 = vadd.f32 %v6911_v48, %v6829_v31 }
 0xa77   : > { %v6920_v55 = vmul.f32 0.5, %v6916_v49  ;;  %v6873_v34 = vpop.f32.mrb[7].mxu0  ;;  %v6914_v39 = vpop.f32.mrb[7].mxu1 }
 0xa78   : > { %v6924_v52 = vmul.f32 0.5, %v6917_v46  ;;  %v6929_v57 = vmul.f32 0.5, %v6919_v63 }
 0xa79   : > { %8996 = vtanh.f32 %v6920_v55 }
 0xa7a   : > { %8998 = vtanh.f32 %v6924_v52 }
 0xa7b   : > { %9000 = vtanh.f32 %v6918_v5  ;;  %v13261_v5 = vld [vmem:[#allocation73_spill] sm:$0xff] }
 0xa7c   : > { %9002 = vtanh.f32 %v6929_v57  ;;  %v6941_v57 = vrot.slane %v12565_v2, 4 }
 0xa83   : > { %v8997_v8 = vpop.eup %8996 }
 0xa84   : > { %v8999_v4 = vpop.eup %8998  ;;  %v6922_v7 = vmul.f32 0.5, %v8997_v8 }
 0xa85   : > { %v6926_v56 = vmul.f32 0.5, %v8999_v4  ;;  %v9001_v42 = vpop.eup %9000 }
 0xa86   : > { %v6923_v44 = vadd.f32 0.5, %v6922_v7  ;;  %v9003_v52 = vpop.eup %9002 }
 0xa87   : > { %v6927_v3 = vadd.f32 0.5, %v6926_v56  ;;  %v6931_v6 = vmul.f32 0.5, %v9003_v52 }
 0xa88   : > { %v6934_v49 = vmul.f32 %v9001_v42, %v6923_v44 }
 0xa89   : > { %v6933_v39 = vmul.f32 %v6927_v3, %v12570_v53  ;;  %v6932_v62 = vadd.f32 0.5, %v6931_v6 }
 0xa8b   : > { %v12662_v34 = vadd.f32 %v6934_v49, %v6933_v39  ;;  %v13262_v39 = vld [vmem:[#allocation77_spill] sm:$0xff] }
 0xa8c   : > { %v6949_v52 = vsel %vm3925_vm3, %v6941_v57, %v13262_v39 }
 0xa8d   : > { %9004 = vtanh.f32 %v12662_v34 }
 0xa97   : > { %v9005_v48 = vpop.eup %9004 }
 0xa98   : > { %v12665_v46 = vmul.f32 %v9005_v48, %v6932_v62 }
 0xa9a   : > { %v6950_v51 = vsel %vm3883_vm1, %v12665_v46, 0.0  ;;  %v8110_v44 = vpack.c.bf16 %v12665_v46, %v12665_v46 }
 0xa9b   : > { %v6951_v47 = vsub.f32 %v12665_v46, %v6950_v51 }
 0xa9d   : > { %v6953_v55 = vpack.c.bf16 %v6951_v47, %v6951_v47 }
 0xa9f   : > { %6986 = vmatprep.mubr.bf16.mxu0 %v6953_v55  ;;  %7027 = vmatprep.mubr.bf16.mxu1 %v6953_v55 }
 0xaa0   : > { %8111 = vmatmul.mubr.msk.bf16.vlgmr.msra.gmra.mrb[8].mxu0 %vm11067_vm2, %v8110_v44  ;;  %8114 = vmatmul.mubr.msk.bf16.vlgmr.msra.gmra.mrb[8].mxu1 %vm11067_vm2, %v8110_v44 }
 0xaa1   : > { %7083 = vmatpush1.bf16.msra.mxu0 %v12079_v43  ;;  %7124 = vmatpush1.bf16.msra.mxu1 %v12104_v14  ;;  %v13232_v43 = vld [vmem:[#allocation47_spill] sm:$0xff] }
 0xaa2   : > { %7084 = vmatprep.subr.bf16.mxu0 %v12085_v22  ;;  %7125 = vmatprep.subr.bf16.mxu1 %v12117_v59  ;;  %v13233_v22 = vld [vmem:[#allocation49_spill] sm:$0xff]  ;;  %v13235_v14 = vld [vmem:[#allocation51_spill] sm:$0xff] }
 0xaa3   : > { %v13237_v59 = vld [vmem:[#allocation53_spill] sm:$0xff] }
 0xaa5   : > { %7085 = vmatpush1.bf16.msra.mxu0 %v12099_v0  ;;  %7126 = vmatpush1.bf16.msra.mxu1 %v12123_v50  ;;  %v13234_v0 = vld [vmem:[#allocation48_spill] sm:$0xff] }
 0xaa6   : > { %7086 = vmatprep.subr.bf16.mxu0 %v12111_v54  ;;  %7127 = vmatprep.subr.bf16.mxu1 %v12141_v10  ;;  %v13236_v54 = vld [vmem:[#allocation50_spill] sm:$0xff]  ;;  %v13238_v50 = vld [vmem:[#allocation52_spill] sm:$0xff]  ;;  %v13241_v10 = vld [vmem:[#allocation57_spill] sm:$0xff] }
 0xaa9   : > { %7087 = vmatpush1.bf16.msra.mxu0 %v12130_v33  ;;  %7128 = vmatpush1.bf16.msra.mxu1 %v12147_v12  ;;  %v13239_v33 = vld [vmem:[#allocation55_spill] sm:$0xff]  ;;  %v13242_v12 = vld [vmem:[#allocation56_spill] sm:$0xff] }
 0xaaa   : > { %7088 = vmatprep.subr.bf16.mxu0 %v12136_v9  ;;  %7129 = vmatprep.subr.bf16.mxu1 %v12159_v16  ;;  %v13240_v9 = vld [vmem:[#allocation54_spill] sm:$0xff] }
 0xaab   : > { %v13244_v16 = vld [vmem:[#allocation58_spill] sm:$0xff] }
 0xaad   : > { %7089 = vmatpush1.bf16.msra.mxu0 %v12154_v15  ;;  %7130 = vmatpush1.bf16.msra.mxu1 %v12176_v19  ;;  %v13243_v15 = vld [vmem:[#allocation59_spill] sm:$0xff] }
 0xaae   : > { %7090 = vmatprep.subr.bf16.mxu0 %v12165_v17  ;;  %7131 = vmatprep.subr.bf16.mxu1 %v12183_v20  ;;  %v13245_v17 = vld [vmem:[#allocation61_spill] sm:$0xff]  ;;  %v13247_v19 = vld [vmem:[#allocation63_spill] sm:$0xff]  ;;  %v13248_v20 = vld [vmem:[#allocation62_spill] sm:$0xff] }
 0xab1   : > { %7091 = vmatpush1.bf16.msra.mxu0 %v12171_v18  ;;  %7132 = vmatpush1.bf16.msra.mxu1 %v12195_v32  ;;  %v13246_v18 = vld [vmem:[#allocation60_spill] sm:$0xff] }
 0xab2   : > { %7092 = vmatprep.subr.bf16.mxu0 %v12189_v21  ;;  %7133 = vmatprep.subr.bf16.mxu1 %v12207_v25  ;;  %v13249_v21 = vld [vmem:[#allocation65_spill] sm:$0xff]  ;;  %v13250_v32 = vld [vmem:[#allocation64_spill] sm:$0xff]  ;;  %v13252_v25 = vld [vmem:[#allocation66_spill] sm:$0xff] }
 0xab5   : > { %7093 = vmatpush1.bf16.msra.mxu0 %v12202_v23  ;;  %7134 = vmatpush1.bf16.msra.mxu1 %v12224_v13  ;;  %v13251_v23 = vld [vmem:[#allocation67_spill] sm:$0xff]  ;;  %v13255_v13 = vld [vmem:[#allocation70_spill] sm:$0xff] }
 0xab6   : > { %7094 = vmatprep.subr.bf16.mxu0 %v12213_v30  ;;  %7135 = vmatprep.subr.bf16.mxu1 %v12231_v41  ;;  %v13253_v30 = vld [vmem:[#allocation69_spill] sm:$0xff]  ;;  %v13256_v41 = vld [vmem:[#allocation74_spill] sm:$0xff] }
 0xab9   : > { %7095 = vmatpush1.bf16.msra.mxu0 %v12219_v61  ;;  %7136 = vmatpush1.bf16.msra.mxu1 %v12243_v1  ;;  %v13254_v61 = vld [vmem:[#allocation68_spill] sm:$0xff]  ;;  %v13257_v1 = vld [vmem:[#allocation75_spill] sm:$0xff] }
 0xaba   : > { %7096 = vmatprep.subr.bf16.mxu0 %v12237_v11  ;;  %7137 = vmatprep.subr.bf16.mxu1 %v12255_v26  ;;  %v6938_v11 = vrot.slane %v13256_v41, 4  ;;  %v13258_v26 = vld [vmem:[#allocation71_spill] sm:$0xff]  ;;  %v7059_v60 = vrot.slane %v13257_v1, 6 }
 0xabd   : > { %7097 = vmatpush1.bf16.msra.mxu0 %v12250_v24  ;;  %7138 = vmatpush1.bf16.msra.mxu1 %v12272_v29  ;;  %v6939_v24 = vrot.slane %v13257_v1, 4  ;;  %v7061_v1 = vrot.slane %v12565_v2, 6 }
 0xabe   : > { %7098 = vmatprep.subr.bf16.mxu0 %v12261_v27  ;;  %7139 = vmatprep.subr.bf16.mxu1 %v12279_v35  ;;  %v6946_v27 = vsel %vm3925_vm3, %v6938_v11, %v13258_v26  ;;  %v13260_v35 = vld [vmem:[#allocation72_spill] sm:$0xff] }
 0xac1   : > { %7099 = vmatpush1.bf16.msra.mxu0 %v12267_v28  ;;  %7140 = vmatpush1.bf16.msra.mxu1 %v12291_v38  ;;  %v13259_v28 = vld [vmem:[#allocation76_spill] sm:$0xff] }
 0xac2   : > { %7100 = vmatprep.subr.bf16.mxu0 %v12285_v36  ;;  %7141 = vmatprep.subr.bf16.mxu1 %v12303_v37  ;;  %v6940_v29 = vrot.slane %v13259_v28, 4  ;;  %v6947_v36 = vsel %vm3925_vm3, %v6939_v24, %v13260_v35 }
 0xac4   : > { %v6948_v31 = vsel %vm3925_vm3, %v6940_v29, %v13261_v5 }
 0xac5   : > { %7101 = vmatpush1.bf16.msra.mxu0 %v12298_v40  ;;  %7142 = vmatpush1.bf16.msra.mxu1 %v12320_v45 }
 0xac6   : > { %7102 = vmatprep.subr.bf16.mxu0 %v13232_v43  ;;  %7143 = vmatprep.subr.bf16.mxu1 %v13233_v22 }
 0xac9   : > { %7103 = vmatpush1.bf16.msra.mxu0 %v13234_v0  ;;  %7144 = vmatpush1.bf16.msra.mxu1 %v13235_v14 }
 0xaca   : > { %7104 = vmatprep.subr.bf16.mxu0 %v13236_v54  ;;  %7145 = vmatprep.subr.bf16.mxu1 %v13237_v59 }
 0xacd   : > { %7105 = vmatpush1.bf16.msra.mxu0 %v13238_v50  ;;  %7146 = vmatpush1.bf16.msra.mxu1 %v13239_v33 }
 0xace   : > { %7106 = vmatprep.subr.bf16.mxu0 %v13240_v9  ;;  %7147 = vmatprep.subr.bf16.mxu1 %v13241_v10 }
 0xad1   : > { %7107 = vmatpush1.bf16.msra.mxu0 %v13242_v12  ;;  %7148 = vmatpush1.bf16.msra.mxu1 %v13243_v15 }
 0xad2   : > { %7108 = vmatprep.subr.bf16.mxu0 %v13244_v16  ;;  %7149 = vmatprep.subr.bf16.mxu1 %v13245_v17 }
 0xad5   : > { %7109 = vmatpush1.bf16.msra.mxu0 %v13246_v18  ;;  %7150 = vmatpush1.bf16.msra.mxu1 %v13247_v19  ;;  %v7066_v18 = vrot.slane %v13258_v26, 6  ;;  %v7067_v19 = vrot.slane %v13260_v35, 6  ;;  %v7069_v26 = vrot.slane %v13262_v39, 6  ;;  %v7187_v39 = vrot.slane %v12665_v46, 6 }
 0xad6   : > { %7110 = vmatprep.subr.bf16.mxu0 %v13248_v20  ;;  %7151 = vmatprep.subr.bf16.mxu1 %v13249_v21  ;;  %v7060_v21 = vrot.slane %v13259_v28, 6 }
 0xad9   : > { %7111 = vmatpush1.bf16.msra.mxu0 %v13250_v32  ;;  %7152 = vmatpush1.bf16.msra.mxu1 %v13251_v23  ;;  %v7068_v32 = vrot.slane %v13261_v5, 6  ;;  %v7075_v23 = vsel %vm3925_vm3, %v7059_v60, %v7067_v19  ;;  %v7220_v60 = vld [vmem:[%s12915_s7 + $0x20] sm:$0xff] (%p6270_p1)  ;;  %v7221_v19 = vld [vmem:[%s12915_s7 + $0x28] sm:$0xff] (%p6270_p1) }
 0xada   : > { %7112 = vmatprep.subr.bf16.mxu0 %v13252_v25  ;;  %7153 = vmatprep.subr.bf16.mxu1 %v13253_v30 }
 0xadd   : > { %7113 = vmatpush1.bf16.msra.mxu0 %v13254_v61  ;;  %7154 = vmatpush1.bf16.msra.mxu1 %v13255_v13 }
 0xb73   : > { %v6988_v38 = vpop.f32.mrb[8].mxu0  ;;  %v7029_v40 = vpop.f32.mrb[8].mxu1 }
 0xb74   : > { %v7036_v37 = vadd.f32 %v6988_v38, %v6946_v27  ;;  %v6990_v45 = vpop.f32.mrb[9].mxu0  ;;  %v7031_v53 = vpop.f32.mrb[9].mxu1  ;;  %v7038_v49 = vadd.f32 %v7029_v40, %v6948_v31 }
 0xb75   : > { %v7037_v63 = vadd.f32 %v6990_v45, %v6947_v36  ;;  %v6992_v8 = vpop.f32.mrb[10].mxu0  ;;  %v7033_v4 = vpop.f32.mrb[10].mxu1  ;;  %v7039_v6 = vadd.f32 %v7031_v53, %v6949_v52 }
 0xb76   : > { %v7040_v7 = vmul.f32 0.5, %v7036_v37  ;;  %v6993_v56 = vpop.f32.mrb[11].mxu0  ;;  %v7034_v42 = vpop.f32.mrb[11].mxu1  ;;  %v7077_v37 = vsel %vm3925_vm3, %v7061_v1, %v7069_v26  ;;  %v7224_v26 = vld [vmem:[%s12915_s7 + $0x40] sm:$0xff] (%p6270_p1) }
 0xb77   : > { %v7044_v3 = vmul.f32 0.5, %v7037_v63  ;;  %v7049_v62 = vmul.f32 0.5, %v7039_v6 }
 0xb78   : > { %9006 = vtanh.f32 %v7040_v7 }
 0xb79   : > { %9008 = vtanh.f32 %v7044_v3 }
 0xb7a   : > { %9010 = vtanh.f32 %v7038_v49 }
 0xb7b   : > { %9012 = vtanh.f32 %v7049_v62 }
 0xb82   : > { %v9007_v48 = vpop.eup %9006 }
 0xb83   : > { %v9009_v51 = vpop.eup %9008  ;;  %v7042_v47 = vmul.f32 0.5, %v9007_v48  ;;  %v13263_v48 = vld [vmem:[#allocation44_spill] sm:$0xff] }
 0xb84   : > { %v7046_v55 = vmul.f32 0.5, %v9009_v51  ;;  %v9011_v43 = vpop.eup %9010  ;;  %v7195_v51 = vsel %vm3925_vm3, %v13263_v48, %v7187_v39 }
 0xb85   : > { %v7043_v44 = vadd.f32 0.5, %v7042_v47  ;;  %v9013_v59 = vpop.eup %9012 }
 0xb86   : > { %v7047_v22 = vadd.f32 0.5, %v7046_v55  ;;  %v7051_v50 = vmul.f32 0.5, %v9013_v59 }
 0xb87   : > { %v7054_v0 = vmul.f32 %v9011_v43, %v7043_v44  ;;  %v7205_v44 = vrot.slane %v13263_v48, 4 }
 0xb88   : > { %v7053_v14 = vmul.f32 %v7047_v22, %v12662_v34  ;;  %v7052_v33 = vadd.f32 0.5, %v7051_v50  ;;  %v7058_v34 = vrot.slane %v13256_v41, 6  ;;  %v7076_v41 = vsel %vm3925_vm3, %v7060_v21, %v7068_v32  ;;  %v7217_v50 = vld [vmem:[%s12915_s7 + $0x8] sm:$0xff] (%p6270_p1)  ;;  %v7239_v21 = vld [vmem:[%s12915_s7 + $0xb8] sm:$0xff] (%p6270_p1) }
 0xb89   :  { %v8179_v32 = vpack.c.bf16 (%p6270_p1), %v7221_v19, %v7220_v60 }
 0xb8a   : > { %v7055_v54 = vadd.f32 %v7054_v0, %v7053_v14  ;;  %v7074_v20 = vsel %vm3925_vm3, %v7058_v34, %v7066_v18  ;;  %v7232_v0 = vld [vmem:[%s12915_s7 + $0x80] sm:$0xff] (%p6270_p1)  ;;  %v7233_v14 = vld [vmem:[%s12915_s7 + $0x88] sm:$0xff] (%p6270_p1) }
 0xb8b   :  { %v8169_v59 = vpack.c.bf16 (%p6270_p1), %v7233_v14, %v7232_v0 }
 0xb8c   : > { %9014 = vtanh.f32 %v7055_v54 }
 0xb8d   :  { %8170 = vmatprep.subr.bf16.mxu0 (%p6270_p1), %v8169_v59 }
 0xb96   : > { %v9015_v9 = vpop.eup %9014 }
 0xb97   : > { %v12752_v10 = vmul.f32 %v9015_v9, %v7052_v33  ;;  %v7235_v33 = vld [vmem:[%s12915_s7 + $0x98] sm:$0xff] (%p6270_p1) }
 0xb99   : > { %v7078_v12 = vsel %vm3883_vm1, %v12752_v10, 0.0  ;;  %v8116_v17 = vpack.c.bf16 %v12752_v10, %v12752_v10  ;;  %v7190_v6 = vrot.slane %v12752_v10, 4 }
 0xb9a   : > { %v7079_v15 = vsub.f32 %v12752_v10, %v7078_v12  ;;  %v7218_v12 = vld [vmem:[%s12915_s7 + $0x10] sm:$0xff] (%p6270_p1) }
 0xb9b   : > { %v7197_v47 = vsel %vm4812_vm4, %v7195_v51, %v7190_v6  ;;  %v8125_v6 = vld [vmem:[%s12916_s8] ss:$0 sm:$0xff] (%p6270_p1) }
 0xb9c   : > { %v7081_v16 = vpack.c.bf16 %v7079_v15, %v7079_v15  ;;  %v7219_v15 = vld [vmem:[%s12915_s7 + $0x18] sm:$0xff] (%p6270_p1) }
 0xb9d   :  { %v8175_v34 = vpack.c.bf16 (%p6270_p1), %v7219_v15, %v7218_v12 }
 0xb9e   : > { %7114 = vmatprep.mubr.bf16.mxu0 %v7081_v16  ;;  %7155 = vmatprep.mubr.bf16.mxu1 %v7081_v16  ;;  %v7236_v16 = vld [vmem:[%s12915_s7 + $0xa0] sm:$0xff] (%p6270_p1) }
 0xb9f   : > { %8117 = vmatmul.mubr.msk.bf16.vlgmr.msra.gmra.mrb[12].mxu0 %vm11067_vm2, %v8116_v17  ;;  %8120 = vmatmul.mubr.msk.bf16.vlgmr.msra.gmra.mrb[12].mxu1 %vm11067_vm2, %v8116_v17  ;;  %v7237_v17 = vld [vmem:[%s12915_s7 + $0xa8] sm:$0xff] (%p6270_p1) }
 0xba0   :  { %v8177_v18 = vpack.c.bf16 (%p6270_p1), %v7237_v17, %v7236_v16 }
 0xc72   : > { %v7116_v25 = vpop.f32.mrb[12].mxu0  ;;  %v7157_v30 = vpop.f32.mrb[12].mxu1 }
 0xc73   : > { %v7164_v61 = vadd.f32 %v7116_v25, %v7074_v20  ;;  %v7118_v13 = vpop.f32.mrb[13].mxu0  ;;  %v7159_v11 = vpop.f32.mrb[13].mxu1  ;;  %v7166_v40 = vadd.f32 %v7157_v30, %v7076_v41  ;;  %v7238_v20 = vld [vmem:[%s12915_s7 + $0xb0] sm:$0xff] (%p6270_p1)  ;;  %v7223_v30 = vld [vmem:[%s12915_s7 + $0x38] sm:$0xff] (%p6270_p1) }
 0xc74   : > { %v7165_v24 = vadd.f32 %v7118_v13, %v7075_v23  ;;  %v7120_v27 = vpop.f32.mrb[14].mxu0  ;;  %v7161_v29 = vpop.f32.mrb[14].mxu1  ;;  %v7167_v45 = vadd.f32 %v7159_v11, %v7077_v37  ;;  %v8181_v23 = vpack.c.bf16 (%p6270_p1), %v7239_v21, %v7238_v20  ;;  %v7222_v25 = vld [vmem:[%s12915_s7 + $0x30] sm:$0xff] (%p6270_p1)  ;;  %v7241_v13 = vld [vmem:[%s12915_s7 + $0xc8] sm:$0xff] (%p6270_p1)  ;;  %v7244_v37 = vld [vmem:[%s12915_s7 + $0xe0] sm:$0xff] (%p6270_p1) }
 0xc75   : > { %v7168_v35 = vmul.f32 0.5, %v7164_v61  ;;  %v7121_v28 = vpop.f32.mrb[15].mxu0  ;;  %v7162_v36 = vpop.f32.mrb[15].mxu1  ;;  %v7240_v61 = vld [vmem:[%s12915_s7 + $0xc0] sm:$0xff] (%p6270_p1)  ;;  %v7225_v27 = vld [vmem:[%s12915_s7 + $0x48] sm:$0xff] (%p6270_p1)  ;;  %v7242_v29 = vld [vmem:[%s12915_s7 + $0xd0] sm:$0xff] (%p6270_p1) }
 0xc76   : > { %v7172_v38 = vmul.f32 0.5, %v7165_v24  ;;  %v7177_v53 = vmul.f32 0.5, %v7167_v45  ;;  %v8183_v24 = vpack.c.bf16 (%p6270_p1), %v7223_v30, %v7222_v25  ;;  %v8185_v1 = vpack.c.bf16 (%p6270_p1), %v7241_v13, %v7240_v61  ;;  %v7245_v45 = vld [vmem:[%s12915_s7 + $0xe8] sm:$0xff] (%p6270_p1) }
 0xc77   : > { %9016 = vtanh.f32 %v7168_v35  ;;  %v7243_v35 = vld [vmem:[%s12915_s7 + $0xd8] sm:$0xff] (%p6270_p1)  ;;  %v8187_v28 = vpack.c.bf16 (%p6270_p1), %v7225_v27, %v7224_v26 }
 0xc78   : > { %9018 = vtanh.f32 %v7172_v38  ;;  %v8189_v36 = vpack.c.bf16 (%p6270_p1), %v7243_v35, %v7242_v29  ;;  %v7226_v38 = vld [vmem:[%s12915_s7 + $0x50] sm:$0xff] (%p6270_p1) }
 0xc79   : > { %9020 = vtanh.f32 %v7166_v40  ;;  %v7227_v40 = vld [vmem:[%s12915_s7 + $0x58] sm:$0xff] (%p6270_p1) }
 0xc7a   : > { %9022 = vtanh.f32 %v7177_v53  ;;  %v8191_v53 = vpack.c.bf16 (%p6270_p1), %v7227_v40, %v7226_v38 }
 0xc81   : > { %v9017_v5 = vpop.eup %9016 }
 0xc82   : > { %v9019_v31 = vpop.eup %9018  ;;  %v7170_v63 = vmul.f32 0.5, %v9017_v5  ;;  %v8193_v5 = vpack.c.bf16 (%p6270_p1), %v7245_v45, %v7244_v37 }
 0xc83   : > { %v7174_v2 = vmul.f32 0.5, %v9019_v31  ;;  %v9021_v8 = vpop.eup %9020  ;;  %v7228_v31 = vld [vmem:[%s12915_s7 + $0x60] sm:$0xff] (%p6270_p1) }
 0xc84   : > { %v7171_v57 = vadd.f32 0.5, %v7170_v63  ;;  %v9023_v42 = vpop.eup %9022 }
 0xc85   : > { %v7175_v4 = vadd.f32 0.5, %v7174_v2  ;;  %v7179_v3 = vmul.f32 0.5, %v9023_v42  ;;  %v7246_v2 = vld [vmem:[%s12915_s7 + $0xf0] sm:$0xff] (%p6270_p1) }
 0xc86   : > { %v7182_v7 = vmul.f32 %v9021_v8, %v7171_v57 }
 0xc87   : > { %v7181_v56 = vmul.f32 %v7175_v4, %v7055_v54  ;;  %v7180_v49 = vadd.f32 0.5, %v7179_v3  ;;  %v7216_v54 = vld [vmem:[%s12915_s7] sm:$0xff] (%p6270_p1) }
 0xc88   :  { %v8171_v9 = vpack.c.bf16 (%p6270_p1), %v7217_v50, %v7216_v54 }
 0xc89   : > { %v7183_v63 = vadd.f32 %v7182_v7, %v7181_v56   ;;  %v7230_v7 = vld [vmem:[%s12915_s7 + $0x70] sm:$0xff] (%p6270_p1)  ;;  %v7231_v56 = vld [vmem:[%s12915_s7 + $0x78] sm:$0xff] (%p6270_p1) }
 0xc8a   :  { %8172 = vmatpush3.bf16.msra.mxu0 (%p6270_p1), %v8171_v9  ;;  %v8199_v42 = vpack.c.bf16 (%p6270_p1), %v7231_v56, %v7230_v7 }
 0xc8b   : > { %9024 = vtanh.f32 %v7183_v63  ;;  %v7229_v63 = vld [vmem:[%s12915_s7 + $0x68] sm:$0xff] (%p6270_p1) }
 0xc8c   :  { %v8195_v8 = vpack.c.bf16 (%p6270_p1), %v7229_v63, %v7228_v31 }
 0xc95   : > { %v9025_v52 = vpop.eup %9024 }
 0xc96   : > { %v7185_v57 = vmul.f32 %v9025_v52, %v7180_v49  }
 0xc97   :  { %6272 = sbr.rel (!%p6270_p1) target bundleno = 2145 (0x861), region = 89 }
 0xc98   : > { %v7193_v62 = vrot.slane %v7185_v57, 2  ;;  %v7247_v57 = vld [vmem:[%s12915_s7 + $0xf8] sm:$0xff] (%p6270_p1)  ;;  %s9026_s7 = scalar_lea.vmem (%p6270_p1), %s7340_s14, 32 }
 0xc99   :  { %v8197_v4 = vpack.c.bf16 (%p6270_p1), %v7247_v57, %v7246_v2  ;;  %p9027_p2 = scmp.ne.s32.totalorder (%p6270_p1), %s7340_s14, %s9026_s7  ;;  %p9032_p4 = scmp.lt.s32.totalorder (%p6270_p1), %s9026_s7, %s9026_s7 }
 0xc9a   : > { %v7199_v55 = vsel %vm4814_vm5, %v7197_v47, %v7193_v62  ;;  %v7207_v46 = vsel %vm3925_vm3, %v7193_v62, %v12752_v10  ;;  %v8173_v10 = vpack.c.bf16 (%p6270_p1), %v7235_v33, %v7234_v58 }
 0xc9b   : > { %7203 = vst [vmem:[%s7202_s26] sm:$0xff] %v7199_v55  ;;  %v7208_v43 = vsel %vm4812_vm4, %v7207_v46, %v7187_v39  ;;  %p9033_p5 = por (%p6270_p1), %p9032_p4, %p9031_p3 }
 0xc9c   : > { %v7209_v22 = vsel %vm4814_vm5, %v7208_v43, %v7205_v44  ;;  %8174 = vmatprep.subr.bf16.mxu0 (%p6270_p1), %v8173_v10 }
 0xc9d   : > { %7213 = vst [vmem:[%s7212_s27 + $0x8] sm:$0xff] %v7209_v22  ;;  %8176 = vmatpush3.bf16.msra.mxu0 (%p6270_p1), %v8175_v34  ;;  %p9034_p6 = pnand (%p6270_p1), %p9033_p5, %p9027_p2 }
 0xc9e   :  { %8178 = vmatprep.subr.bf16.mxu0 %v8177_v18 }
 0xca1   :  { %8180 = vmatpush3.bf16.msra.mxu0 %v8179_v32 }
 0xca2   :  { %8182 = vmatprep.subr.bf16.mxu0 %v8181_v23 }
 0xca4   :  { %v7215_v11 = vld [vmem:[#allocation5 + $0xf8] sm:$0xff]  ;;  %v7214_v3 = vld [vmem:[#allocation5 + $0xf0] sm:$0xff] }
 0xca5   :  { %v7258_v41 = vrot.slane %v7215_v11, 6  ;;  %8184 = vmatpush3.bf16.msra.mxu0 %v8183_v24  ;;  %v7257_v49 = vrot.slane %v7214_v3, 6 }
 0xca6   :  { %8186 = vmatprep.subr.bf16.mxu0 %v8185_v1 }
 0xca7   :  { %7325 = vmatprep.mubr.f32.mxu0 %v7258_v41 }
 0xca9   :  { %8188 = vmatpush3.bf16.msra.mxu0 %v8187_v28 }
 0xcaa   :  { %8190 = vmatprep.subr.bf16.mxu0 %v8189_v36 }
 0xcad   :  { %8192 = vmatpush3.bf16.msra.mxu0 %v8191_v53 }
 0xcae   :  { %8194 = vmatprep.subr.bf16.mxu0 %v8193_v5 }
 0xcb1   :  { %8196 = vmatpush3.bf16.msra.mxu0 %v8195_v8 }
 0xcb2   :  { %8198 = vmatprep.subr.bf16.mxu0 %v8197_v4 }
 0xcb5   :  { %8200 = vmatpush3.bf16.msra.mxu0 %v8199_v42 }
 0xcb8   :  { %7326 = vmatmul.mubr.f32.vlgmr.msra.gmra.mrb[0].mxu0 %v7257_v49 }
 0xd8b   :  { %v8166_v39 = vpop.f32.mrb[0].mxu0 }
 0xd8c   :  { %v8167_v52 = vpop.f32.mrb[1].mxu0 }
 0xd8d   :  { %v8168_v62 = vadd.f32 %v8167_v52, %v8166_v39 }
 0xd8f   :  { %v7328_v48 = vadd.f32 %v8168_v62, %v8125_v6 }
 0xd91   :  { %7332 = vst.msk [vmem:[#allocation6] sm:$0x3] %vm7331_vm6, %v7328_v48 }
 0xd92   :  { %9037 = shalt.err (!%p9034_p6)
}
 0xd93   :  { %s9038_s17 = scalar_lea.hbm %s12917_s9, 32 }
 0xd94   :  { %p9039_p7 = scmp.ne.s32.totalorder %s12917_s9, %s9038_s17  ;;  %p9042_p8 = scmp.lt.u32.totalorder %s9038_s17, %s12917_s9 }
 0xd96   :  { %p9044_p9 = pnand %p9042_p8, %p9039_p7 }
 0xd98   :  { %9047 = shalt.err (!%p9044_p9)
}
 0xd99   :  { %7342 = dma.vmem_to_hbm [thread:$0]  %s7340_s14, 32, %s12917_s9, [#allocation7]  }
 0xd9a   :  { %9072 = dma.done.wait [#allocation7], 32  }
 0xd9b   :  { %9073 = vsyncadd [#allocation7], 4294967264 }
 0xd9c   :  { %7346 = vsyncpa [#allocation7], 1 }

</bundles_post_ra>
